<compile_context>
chip_gen: v7x
topology: tpu7x:2x2x1
jax: 0.10.0
libtpu: 0.0.40
codegen_flags: <defaults>
</compile_context>

<pallas_src>
import functools

import jax
import jax.numpy as jnp
from jax.experimental import pallas as pl
from jax.experimental.pallas import tpu as pltpu


# -----------------------------------------------------------------------------
# Fused forward kernel.
# -----------------------------------------------------------------------------
def _fused_sun_kernel(x_ref, w_ref, b_ref, bn_ref, o_ref, col_ref, *,
                      H, W, M, C, num_planes, num_layers, emb):
    HW = H * W

    # ---- border masks (computed once, shared by all 13 convs) --------------
    # idx is the position on the flattened (image-batched) pixel axis.  The
    # masks zero conv taps whose source pixel falls outside its own image,
    # which also prevents cross-image bleed when several images share M.
    idx = jax.lax.broadcasted_iota(jnp.int32, (1, M), 1)
    q = idx % HW                                   # pixel index inside image
    xw = idx % W                                   # column index
    f_up = (q >= W).astype(jnp.float32)            # row above exists
    f_down = (q < HW - W).astype(jnp.float32)      # row below exists
    f_left = (xw >= 1).astype(jnp.float32)         # column to the left exists
    f_right = (xw < W - 1).astype(jnp.float32)     # column to the right exists

    tap_shift, tap_mask = [], []
    for dy in (-1, 0, 1):
        my = f_up if dy == -1 else (f_down if dy == 1 else None)
        for dx in (-1, 0, 1):
            mx = f_left if dx == -1 else (f_right if dx == 1 else None)
            m = my if mx is None else (mx if my is None else my * mx)
            tap_shift.append((-(dy * W + dx)) % M)
            tap_mask.append(m)

    def conv3x3(a, li, relu, bn_idx=None):
        """3x3 'same' conv on a channel-major (C, M) activation slab."""
        if bn_idx is not None:
            # Exact eval-mode SyncBatchNorm on the conv INPUT (zero padding of
            # the conv then stays exact at the image border).
            a = a * bn_ref[bn_idx, 0] + bn_ref[bn_idx, 1]
        # Build the (9C, M) im2col slab: lane rolls + border masks.  Every
        # store is sublane-aligned (offsets are multiples of C) and lane-dense,
        # and the slab is written once in bf16 (half the bytes of f32).
        for tap in range(9):
            s = tap_shift[tap]
            t = a if s == 0 else pltpu.roll(a, shift=s, axis=1)
            m = tap_mask[tap]
            if m is not None:
                t = t * m
            col_ref[tap * C:(tap + 1) * C, :] = t.astype(jnp.bfloat16)
        # One big-K (K = 9C) bf16 MXU matmul, f32 accumulation; output stays
        # channel-major (C, M), so the matmul N dim (= M) is lane-dense.
        out = jnp.dot(w_ref[li], col_ref[...],
                      preferred_element_type=jnp.float32)
        out = out + b_ref[li]
        if relu:
            out = jnp.maximum(out, 0.0)
        return out

    a = x_ref[0]                                   # (C, M) channel-major input

    # discriptor_net (BaseEncoderDecoder) -- approximated (see header TODO).
    a = conv3x3(a, 0, relu=True)
    a = conv3x3(a, 1, relu=True)
    a = conv3x3(a, 2, relu=True)

    # base_res_layers (2 ResBlocks) + first 2 ResBlocks of the blending head,
    # residual add fused as an epilogue on in-vreg data.
    li = 3
    for _ in range(4):
        t = conv3x3(a, li, relu=True)
        t = conv3x3(t, li + 1, relu=False)
        a = a + t
        li += 2

    # SyncBN -> ConvBlock(relu) -> SyncBN -> ConvBlock(no relu).
    a = conv3x3(a, 11, relu=True, bn_idx=0)
    y = conv3x3(a, 12, relu=False, bn_idx=1)       # (C, M); rows [:total_out]

    nbeta = num_planes * num_layers
    nseg = (num_layers - 1) * emb

    def softmax_rows(g):
        # softmax along axis 0 of a small (gsize, M) slab (exact division).
        mx = jnp.max(g, axis=0, keepdims=True)
        e = jnp.exp(g - mx)
        return e / jnp.sum(e, axis=0, keepdims=True)

    # alpha = sigmoid(clamp(., -100, 100)), numerically stable, exact divide.
    al = jnp.clip(y[nbeta + nseg:nbeta + nseg + num_planes, :], -100.0, 100.0)
    ea = jnp.exp(-jnp.abs(al))
    inv = 1.0 / (1.0 + ea)
    alpha = jnp.where(al >= 0.0, inv, ea * inv)

    # Head slab layout: [ alpha (P) | seg softmax ((L-1)*emb) | beta softmax (P*L) ]
    pieces = [alpha]
    for g in range(num_layers - 1):                # seg groups: softmax over emb
        r0 = nbeta + g * emb
        pieces.append(softmax_rows(y[r0:r0 + emb, :]))
    for g in range(num_planes):                    # beta groups: softmax over L
        r0 = g * num_layers
        pieces.append(softmax_rows(y[r0:r0 + num_layers, :]))

    # Single aligned, lane-dense store of the whole head.
    o_ref[0, :, :] = jnp.concatenate(pieces, axis=0)


def sun_forward_fused(x_steps, w_pack, b_pack, bn_pack, opts, H, W):
    """x_steps: (num_steps, C_pad, M) f32 channel-major, M = ips * H * W."""
    num_steps, C_pad, M = x_steps.shape
    P = opts["num_planes"]
    L = opts["num_layers"]
    emb = opts["embedding_size"]
    C_out = P + (L - 1) * emb + P * L
    n_conv = w_pack.shape[0]

    kernel = functools.partial(_fused_sun_kernel, H=H, W=W, M=M, C=C_pad,
                               num_planes=P, num_layers=L, emb=emb)
    return pl.pallas_call(
        kernel,
        out_shape=jax.ShapeDtypeStruct((num_steps, C_out, M), jnp.float32),
        grid=(num_steps,),
        in_specs=[
            pl.BlockSpec((1, C_pad, M), lambda i: (i, 0, 0)),
            pl.BlockSpec((n_conv, C_pad, 9 * C_pad), lambda i: (0, 0, 0)),
            pl.BlockSpec((n_conv, C_pad, 1), lambda i: (0, 0, 0)),
            pl.BlockSpec((2, 2, C_pad, 1), lambda i: (0, 0, 0, 0)),
        ],
        out_specs=pl.BlockSpec((1, C_out, M), lambda i: (i, 0, 0)),
        scratch_shapes=[
            pltpu.VMEM((9 * C_pad, M), jnp.bfloat16),   # bf16 im2col slab
        ],
        compiler_params=pltpu.CompilerParams(
            dimension_semantics=("parallel",)),
    )(x_steps, w_pack, b_pack, bn_pack)


# -----------------------------------------------------------------------------
# Parameter init and one-time packing (plain JAX glue).
# -----------------------------------------------------------------------------
def _conv_init(key, cin, cout):
    kw_, kb = jax.random.split(key)
    w = jax.random.normal(kw_, (3, 3, cin, cout), jnp.float32) / jnp.sqrt(cin * 9.0)
    b = 0.01 * jax.random.normal(kb, (cout,), jnp.float32)
    return {"w": w, "b": b}


def _bn_init(key, c):
    # Non-trivial eval-mode running statistics so the BN path is exercised.
    k1, k2, k3, k4 = jax.random.split(key, 4)
    return {"gamma": 1.0 + 0.1 * jax.random.normal(k1, (c,), jnp.float32),
            "beta": 0.1 * jax.random.normal(k2, (c,), jnp.float32),
            "mean": 0.1 * jax.random.normal(k3, (c,), jnp.float32),
            "var": 1.0 + 0.1 * jax.random.uniform(k4, (c,), jnp.float32)}


def init_params(key, opts):
    nc = opts["num_classes"]
    ef = opts["mpi_encoder_features"]
    total_out = ((opts["num_layers"] - 1) * opts["embedding_size"]
                 + opts["num_planes"]
                 + opts["num_planes"] * opts["num_layers"])
    ks = iter(jax.random.split(key, 16))
    return {
        "enc0": _conv_init(next(ks), nc, ef),
        "enc1": _conv_init(next(ks), ef, ef),
        "enc2": _conv_init(next(ks), ef, ef),
        "res0": {"c1": _conv_init(next(ks), ef, ef), "c2": _conv_init(next(ks), ef, ef)},
        "res1": {"c1": _conv_init(next(ks), ef, ef), "c2": _conv_init(next(ks), ef, ef)},
        "res2": {"c1": _conv_init(next(ks), ef, ef), "c2": _conv_init(next(ks), ef, ef)},
        "res3": {"c1": _conv_init(next(ks), ef, ef), "c2": _conv_init(next(ks), ef, ef)},
        "bn0": _bn_init(next(ks), ef),
        "conv_half": _conv_init(next(ks), ef, total_out // 2),
        "bn1": _bn_init(next(ks), total_out // 2),
        "conv_out": _conv_init(next(ks), total_out // 2, total_out),
    }


def pack_params(params, opts, eps=1e-5):
    """One-time prep: pad every conv to a uniform C_pad, repack weights into
    the channel-major im2col layout (n_conv, C_pad, 9*C_pad) (lane-dense), and
    turn the two eval-mode SyncBatchNorms into exact per-channel scale/shift
    vectors applied inside the kernel."""
    nc = opts["num_classes"]
    ef = opts["mpi_encoder_features"]
    emb = opts["embedding_size"]
    total_out = ((opts["num_layers"] - 1) * emb + opts["num_planes"]
                 + opts["num_planes"] * opts["num_layers"])
    C_pad = max(nc, ef, total_out // 2, total_out)
    C_pad = ((C_pad + 15) // 16) * 16              # bf16 sublane tile alignment

    layers = [
        (params["enc0"]["w"], params["enc0"]["b"]),
        (params["enc1"]["w"], params["enc1"]["b"]),
        (params["enc2"]["w"], params["enc2"]["b"]),
    ]
    for r in ("res0", "res1", "res2", "res3"):
        layers.append((params[r]["c1"]["w"], params[r]["c1"]["b"]))
        layers.append((params[r]["c2"]["w"], params[r]["c2"]["b"]))
    layers.append((params["conv_half"]["w"], params["conv_half"]["b"]))
    layers.append((params["conv_out"]["w"], params["conv_out"]["b"]))

    w_list, b_list = [], []
    for w, b in layers:
        _, _, cin, cout = w.shape
        wp = jnp.pad(w, ((0, 0), (0, 0), (0, C_pad - cin), (0, C_pad - cout)))
        # row = cout, col = (kh, kw, cin) -> matches the kernel's tap layout.
        w_list.append(jnp.transpose(wp, (3, 0, 1, 2)).reshape(C_pad, 9 * C_pad))
        b_list.append(jnp.pad(b, ((0, C_pad - cout),)).reshape(C_pad, 1))

    def bn_scale_shift(bn):
        s = bn["gamma"] * jax.lax.rsqrt(bn["var"] + eps)
        t = bn["beta"] - bn["mean"] * s
        s = jnp.pad(s, ((0, C_pad - s.shape[0]),), constant_values=1.0)
        t = jnp.pad(t, ((0, C_pad - t.shape[0]),))
        return jnp.stack([s.reshape(C_pad, 1), t.reshape(C_pad, 1)])

    bn_pack = jnp.stack([bn_scale_shift(params["bn0"]),
                         bn_scale_shift(params["bn1"])])

    return {
        "w_pack": jnp.stack(w_list).astype(jnp.bfloat16),   # (13, C, 9C)
        "b_pack": jnp.stack(b_list).astype(jnp.float32),    # (13, C, 1)
        "bn_pack": bn_pack.astype(jnp.float32),              # (2, 2, C, 1)
        "C_pad": C_pad,
    }


def sun_model_inference(packed, input_seg_nchw, opts, images_per_step=None):
    """Mirrors SUNModel.forward(input_data, mode='inference') with
    num_classes == embedding_size (no SemanticEmbedding)."""
    P = opts["num_planes"]
    L = opts["num_layers"]
    emb = opts["embedding_size"]
    C_pad = packed["C_pad"]
    B, Cin, H, W = input_seg_nchw.shape
    HW = H * W

    if images_per_step is None:
        # v5e/v6e (single TC): batch several images per step to amortize the
        # per-step overhead; v7x (2 TCs): keep >= 2 parallel grid steps.
        images_per_step = B // 2 if (B % 2 == 0 and B >= 4) else 1
    assert B % images_per_step == 0
    steps = B // images_per_step
    M = images_per_step * HW

    # NCHW -> channel-major (steps, C_pad, images_per_step * HW).
    x = input_seg_nchw.reshape(B, Cin, HW)
    x = jnp.pad(x, ((0, 0), (0, C_pad - Cin), (0, 0)))
    x = (x.reshape(steps, images_per_step, C_pad, HW)
           .transpose(0, 2, 1, 3)
           .reshape(steps, C_pad, M))

    out = sun_forward_fused(x, packed["w_pack"], packed["b_pack"],
                            packed["bn_pack"], opts, H, W)
    C_out = out.shape[1]
    out = (out.reshape(steps, C_out, images_per_step, HW)
              .transpose(0, 2, 1, 3)
              .reshape(B, C_out, H, W))

    alpha = out[:, :P].reshape(B, P, 1, H, W)
    seg_sm = out[:, P:P + (L - 1) * emb].reshape(B, L - 1, emb, H, W)
    # Segmentation layer 0 is the (identity-embedded) input itself: pure
    # passthrough done here in the wrapper instead of inside the kernel.
    seg_mul_layer = jnp.concatenate([input_seg_nchw[:, None], seg_sm], axis=1)
    associations = out[:, P + (L - 1) * emb:].reshape(B, P, L, H, W)
    return seg_mul_layer, alpha, associations


# -----------------------------------------------------------------------------
# Pure-JAX reference (same architecture approximation, same bf16 MXU precision)
# used to validate the fused kernel.
# -----------------------------------------------------------------------------
def reference_forward(params, input_seg, opts, eps=1e-5):
    def conv(x, w, b, relu):
        y = jax.lax.conv_general_dilated(
            x.astype(jnp.bfloat16), w.astype(jnp.bfloat16),
            window_strides=(1, 1), padding=((1, 1), (1, 1)),
            dimension_numbers=("NCHW", "HWIO", "NCHW"),
            preferred_element_type=jnp.float32)
        y = y + b[None, :, None, None]
        return jnp.maximum(y, 0.0) if relu else y

    def bn(x, p):
        s = p["gamma"] * jax.lax.rsqrt(p["var"] + eps)
        t = p["beta"] - p["mean"] * s
        return x * s[None, :, None, None] + t[None, :, None, None]

    a = conv(input_seg, params["enc0"]["w"], params["enc0"]["b"], True)
    a = conv(a, params["enc1"]["w"], params["enc1"]["b"], True)
    a = conv(a, params["enc2"]["w"], params["enc2"]["b"], True)
    for r in ("res0", "res1", "res2", "res3"):
        t = conv(a, params[r]["c1"]["w"], params[r]["c1"]["b"], True)
        t = conv(t, params[r]["c2"]["w"], params[r]["c2"]["b"], False)
        a = a + t
    a = conv(bn(a, params["bn0"]), params["conv_half"]["w"],
             params["conv_half"]["b"], True)
    y = conv(bn(a, params["bn1"]), params["conv_out"]["w"],
             params["conv_out"]["b"], False)

    P, L, emb = opts["num_planes"], opts["num_layers"], opts["embedding_size"]
    nbeta, nseg = P * L, (L - 1) * emb
    B, _, H, W = input_seg.shape
    beta = y[:, :nbeta]
    seg = y[:, nbeta:nbeta + nseg]
    alpha = y[:, nbeta + nseg:nbeta + nseg + P]
    alpha = jax.nn.sigmoid(jnp.clip(alpha, -100.0, 100.0)).reshape(B, P, 1, H, W)
    seg = jax.nn.softmax(seg.reshape(B, L - 1, emb, H, W), axis=2)
    seg_mul = jnp.concatenate([input_seg[:, None], seg], axis=1)
    beta = jax.nn.softmax(beta.reshape(B, P, L, H, W), axis=2)
    return seg_mul, alpha, beta


if __name__ == "__main__":
    opts = dict(
        num_classes=8,
        embedding_size=8,       # == num_classes -> no SemanticEmbedding
        num_planes=4,
        num_layers=3,
        mpi_encoder_features=32,
    )
    B, H, W = 2, 16, 16

    key = jax.random.PRNGKey(0)
    k_param, k_in = jax.random.split(key)
    params = init_params(k_param, opts)
    packed = pack_params(params, opts)        # one-time prep / repacking
    input_seg = jax.random.normal(
        k_in, (B, opts["num_classes"], H, W), jnp.float32)

    fwd = jax.jit(lambda x: sun_model_inference(packed, x, opts))
    seg_mul_layer, alpha, associations = fwd(input_seg)
    jax.block_until_ready((seg_mul_layer, alpha, associations))

    P, L, emb = opts["num_planes"], opts["num_layers"], opts["embedding_size"]
    assert seg_mul_layer.shape == (B, L, emb, H, W)
    assert alpha.shape == (B, P, 1, H, W)
    assert associations.shape == (B, P, L, H, W)

    # Validate against a pure-JAX reference run at matching (bf16 MXU) precision.
    ref_seg, ref_alpha, ref_assoc = reference_forward(params, input_seg, opts)
    for got, ref in ((seg_mul_layer, ref_seg), (alpha, ref_alpha),
                     (associations, ref_assoc)):
        err = float(jnp.max(jnp.abs(got - ref)))
        assert err < 2e-2, f"kernel/reference mismatch: max abs err = {err}"

    print("KERNEL_OK")
</pallas_src>

<mosaic_0001>
module attributes {stable_mosaic.version = 11 : i64} {
  func.func @_fused_sun_kernel(%arg0: i32, %arg1: memref<1x32x256xf32, #tpu.memory_space<vmem>>, %arg2: memref<13x32x288xbf16, #tpu.memory_space<vmem>>, %arg3: memref<13x32x1xf32, #tpu.memory_space<vmem>>, %arg4: memref<2x2x32x1xf32, #tpu.memory_space<vmem>>, %arg5: memref<1x32x256xf32, #tpu.memory_space<vmem>>, %arg6: memref<288x256xbf16, #tpu.memory_space<vmem>>) attributes {dimension_semantics = [#tpu.dimension_semantics<parallel>], iteration_bounds = array<i64: 2>, scalar_prefetch = 0 : i64, scratch_operands = 1 : i64, tpu.core_type = #tpu.core_type<tc>, window_params = [{transform_indices = @transform_0, window_bounds = array<i64: 1, 32, 256>}, {pipeline_mode = #tpu.pipeline_mode<synchronous>, transform_indices = @transform_1, window_bounds = array<i64: 13, 32, 288>}, {pipeline_mode = #tpu.pipeline_mode<synchronous>, transform_indices = @transform_2, window_bounds = array<i64: 13, 32, 1>}, {pipeline_mode = #tpu.pipeline_mode<synchronous>, transform_indices = @transform_3, window_bounds = array<i64: 2, 2, 32, 1>}, {transform_indices = @transform_4, window_bounds = array<i64: 1, 32, 256>}]} {
    %0 = tpu.iota {dimensions = array<i32: 1>} : vector<1x256xi32>
    %c256_i32 = arith.constant 256 : i32
    %c0_i32 = arith.constant 0 : i32
    %1 = arith.cmpi eq, %c256_i32, %c0_i32 : i32
    %c1_i32 = arith.constant 1 : i32
    %2 = arith.select %1, %c1_i32, %c256_i32 : i32
    %3 = vector.broadcast %2 : i32 to vector<1x256xi32>
    %4 = arith.remsi %0, %3 : vector<1x256xi32>
    %c0_i32_0 = arith.constant 0 : i32
    %5 = vector.broadcast %c0_i32_0 : i32 to vector<1x256xi32>
    %6 = arith.cmpi ne, %4, %5 : vector<1x256xi32>
    %c0_i32_1 = arith.constant 0 : i32
    %7 = vector.broadcast %c0_i32_1 : i32 to vector<1x256xi32>
    %8 = arith.cmpi slt, %4, %7 : vector<1x256xi32>
    %c0_i32_2 = arith.constant 0 : i32
    %9 = arith.cmpi slt, %2, %c0_i32_2 : i32
    %10 = vector.broadcast %9 : i1 to vector<1x256xi1>
    %11 = vector.broadcast %10 : vector<1x256xi1> to vector<1x256xi1>
    %12 = arith.xori %8, %11 : vector<1x256xi1>
    %13 = arith.andi %12, %6 : vector<1x256xi1>
    %14 = vector.broadcast %2 : i32 to vector<1x256xi32>
    %15 = arith.addi %4, %14 : vector<1x256xi32>
    %16 = arith.select %13, %15, %4 : vector<1x256xi1>, vector<1x256xi32>
    %c16_i32 = arith.constant 16 : i32
    %c0_i32_3 = arith.constant 0 : i32
    %17 = arith.cmpi eq, %c16_i32, %c0_i32_3 : i32
    %c1_i32_4 = arith.constant 1 : i32
    %18 = arith.select %17, %c1_i32_4, %c16_i32 : i32
    %19 = vector.broadcast %18 : i32 to vector<1x256xi32>
    %20 = arith.remsi %0, %19 : vector<1x256xi32>
    %c0_i32_5 = arith.constant 0 : i32
    %21 = vector.broadcast %c0_i32_5 : i32 to vector<1x256xi32>
    %22 = arith.cmpi ne, %20, %21 : vector<1x256xi32>
    %c0_i32_6 = arith.constant 0 : i32
    %23 = vector.broadcast %c0_i32_6 : i32 to vector<1x256xi32>
    %24 = arith.cmpi slt, %20, %23 : vector<1x256xi32>
    %c0_i32_7 = arith.constant 0 : i32
    %25 = arith.cmpi slt, %18, %c0_i32_7 : i32
    %26 = vector.broadcast %25 : i1 to vector<1x256xi1>
    %27 = vector.broadcast %26 : vector<1x256xi1> to vector<1x256xi1>
    %28 = arith.xori %24, %27 : vector<1x256xi1>
    %29 = arith.andi %28, %22 : vector<1x256xi1>
    %30 = vector.broadcast %18 : i32 to vector<1x256xi32>
    %31 = arith.addi %20, %30 : vector<1x256xi32>
    %32 = arith.select %29, %31, %20 : vector<1x256xi1>, vector<1x256xi32>
    %c16_i32_8 = arith.constant 16 : i32
    %33 = vector.broadcast %c16_i32_8 : i32 to vector<1x256xi32>
    %34 = arith.cmpi sge, %16, %33 : vector<1x256xi32>
    %35 = arith.extui %34 : vector<1x256xi1> to vector<1x256xi32>
    %36 = arith.sitofp %35 : vector<1x256xi32> to vector<1x256xf32>
    %c240_i32 = arith.constant 240 : i32
    %37 = vector.broadcast %c240_i32 : i32 to vector<1x256xi32>
    %38 = arith.cmpi slt, %16, %37 : vector<1x256xi32>
    %39 = arith.extui %38 : vector<1x256xi1> to vector<1x256xi32>
    %40 = arith.sitofp %39 : vector<1x256xi32> to vector<1x256xf32>
    %c1_i32_9 = arith.constant 1 : i32
    %41 = vector.broadcast %c1_i32_9 : i32 to vector<1x256xi32>
    %42 = arith.cmpi sge, %32, %41 : vector<1x256xi32>
    %43 = arith.extui %42 : vector<1x256xi1> to vector<1x256xi32>
    %44 = arith.sitofp %43 : vector<1x256xi32> to vector<1x256xf32>
    %c15_i32 = arith.constant 15 : i32
    %45 = vector.broadcast %c15_i32 : i32 to vector<1x256xi32>
    %46 = arith.cmpi slt, %32, %45 : vector<1x256xi32>
    %47 = arith.extui %46 : vector<1x256xi1> to vector<1x256xi32>
    %48 = arith.sitofp %47 : vector<1x256xi32> to vector<1x256xf32>
    %49 = arith.mulf %36, %44 : vector<1x256xf32>
    %50 = arith.mulf %36, %48 : vector<1x256xf32>
    %51 = arith.mulf %40, %44 : vector<1x256xf32>
    %52 = arith.mulf %40, %48 : vector<1x256xf32>
    %c0 = arith.constant 0 : index
    %c0_10 = arith.constant 0 : index
    %c0_11 = arith.constant 0 : index
    %53 = vector.load %arg1[%c0, %c0_10, %c0_11] : memref<1x32x256xf32, #tpu.memory_space<vmem>>, vector<1x32x256xf32>
    %54 = vector.shape_cast %53 : vector<1x32x256xf32> to vector<32x256xf32>
    %c17_i32 = arith.constant 17 : i32
    %55 = tpu.dynamic_rotate %54 by %c17_i32 dim 1 : vector<32x256xf32>, i32 -> vector<32x256xf32>
    %56 = vector.broadcast %49 : vector<1x256xf32> to vector<32x256xf32>
    %57 = arith.mulf %55, %56 : vector<32x256xf32>
    %58 = arith.truncf %57 : vector<32x256xf32> to vector<32x256xbf16>
    %c0_12 = arith.constant 0 : index
    %c0_13 = arith.constant 0 : index
    %59 = vector.load %arg6[%c0_12, %c0_13] : memref<288x256xbf16, #tpu.memory_space<vmem>>, vector<32x256xbf16>
    tpu.vector_store %arg6[%c0_12, %c0_13], %58 {strides = array<i32>} : memref<288x256xbf16, #tpu.memory_space<vmem>>, vector<32x256xbf16>,
    %c16_i32_14 = arith.constant 16 : i32
    %60 = tpu.dynamic_rotate %54 by %c16_i32_14 dim 1 : vector<32x256xf32>, i32 -> vector<32x256xf32>
    %61 = vector.broadcast %36 : vector<1x256xf32> to vector<32x256xf32>
    %62 = arith.mulf %60, %61 : vector<32x256xf32>
    %63 = arith.truncf %62 : vector<32x256xf32> to vector<32x256xbf16>
    %c32 = arith.constant 32 : index
    %c0_15 = arith.constant 0 : index
    %64 = vector.load %arg6[%c32, %c0_15] : memref<288x256xbf16, #tpu.memory_space<vmem>>, vector<32x256xbf16>
    tpu.vector_store %arg6[%c32, %c0_15], %63 {strides = array<i32>} : memref<288x256xbf16, #tpu.memory_space<vmem>>, vector<32x256xbf16>,
    %c15_i32_16 = arith.constant 15 : i32
    %65 = tpu.dynamic_rotate %54 by %c15_i32_16 dim 1 : vector<32x256xf32>, i32 -> vector<32x256xf32>
    %66 = vector.broadcast %50 : vector<1x256xf32> to vector<32x256xf32>
    %67 = arith.mulf %65, %66 : vector<32x256xf32>
    %68 = arith.truncf %67 : vector<32x256xf32> to vector<32x256xbf16>
    %c64 = arith.constant 64 : index
    %c0_17 = arith.constant 0 : index
    %69 = vector.load %arg6[%c64, %c0_17] : memref<288x256xbf16, #tpu.memory_space<vmem>>, vector<32x256xbf16>
    tpu.vector_store %arg6[%c64, %c0_17], %68 {strides = array<i32>} : memref<288x256xbf16, #tpu.memory_space<vmem>>, vector<32x256xbf16>,
    %c1_i32_18 = arith.constant 1 : i32
    %70 = tpu.dynamic_rotate %54 by %c1_i32_18 dim 1 : vector<32x256xf32>, i32 -> vector<32x256xf32>
    %71 = vector.broadcast %44 : vector<1x256xf32> to vector<32x256xf32>
    %72 = arith.mulf %70, %71 : vector<32x256xf32>
    %73 = arith.truncf %72 : vector<32x256xf32> to vector<32x256xbf16>
    %c96 = arith.constant 96 : index
    %c0_19 = arith.constant 0 : index
    %74 = vector.load %arg6[%c96, %c0_19] : memref<288x256xbf16, #tpu.memory_space<vmem>>, vector<32x256xbf16>
    tpu.vector_store %arg6[%c96, %c0_19], %73 {strides = array<i32>} : memref<288x256xbf16, #tpu.memory_space<vmem>>, vector<32x256xbf16>,
    %75 = arith.truncf %54 : vector<32x256xf32> to vector<32x256xbf16>
    %c128 = arith.constant 128 : index
    %c0_20 = arith.constant 0 : index
    %76 = vector.load %arg6[%c128, %c0_20] : memref<288x256xbf16, #tpu.memory_space<vmem>>, vector<32x256xbf16>
    tpu.vector_store %arg6[%c128, %c0_20], %75 {strides = array<i32>} : memref<288x256xbf16, #tpu.memory_space<vmem>>, vector<32x256xbf16>,
    %c255_i32 = arith.constant 255 : i32
    %77 = tpu.dynamic_rotate %54 by %c255_i32 dim 1 : vector<32x256xf32>, i32 -> vector<32x256xf32>
    %78 = vector.broadcast %48 : vector<1x256xf32> to vector<32x256xf32>
    %79 = arith.mulf %77, %78 : vector<32x256xf32>
    %80 = arith.truncf %79 : vector<32x256xf32> to vector<32x256xbf16>
    %c160 = arith.constant 160 : index
    %c0_21 = arith.constant 0 : index
    %81 = vector.load %arg6[%c160, %c0_21] : memref<288x256xbf16, #tpu.memory_space<vmem>>, vector<32x256xbf16>
    tpu.vector_store %arg6[%c160, %c0_21], %80 {strides = array<i32>} : memref<288x256xbf16, #tpu.memory_space<vmem>>, vector<32x256xbf16>,
    %c241_i32 = arith.constant 241 : i32
    %82 = tpu.dynamic_rotate %54 by %c241_i32 dim 1 : vector<32x256xf32>, i32 -> vector<32x256xf32>
    %83 = vector.broadcast %51 : vector<1x256xf32> to vector<32x256xf32>
    %84 = arith.mulf %82, %83 : vector<32x256xf32>
    %85 = arith.truncf %84 : vector<32x256xf32> to vector<32x256xbf16>
    %c192 = arith.constant 192 : index
    %c0_22 = arith.constant 0 : index
    %86 = vector.load %arg6[%c192, %c0_22] : memref<288x256xbf16, #tpu.memory_space<vmem>>, vector<32x256xbf16>
    tpu.vector_store %arg6[%c192, %c0_22], %85 {strides = array<i32>} : memref<288x256xbf16, #tpu.memory_space<vmem>>, vector<32x256xbf16>,
    %c240_i32_23 = arith.constant 240 : i32
    %87 = tpu.dynamic_rotate %54 by %c240_i32_23 dim 1 : vector<32x256xf32>, i32 -> vector<32x256xf32>
    %88 = vector.broadcast %40 : vector<1x256xf32> to vector<32x256xf32>
    %89 = arith.mulf %87, %88 : vector<32x256xf32>
    %90 = arith.truncf %89 : vector<32x256xf32> to vector<32x256xbf16>
    %c224 = arith.constant 224 : index
    %c0_24 = arith.constant 0 : index
    %91 = vector.load %arg6[%c224, %c0_24] : memref<288x256xbf16, #tpu.memory_space<vmem>>, vector<32x256xbf16>
    tpu.vector_store %arg6[%c224, %c0_24], %90 {strides = array<i32>} : memref<288x256xbf16, #tpu.memory_space<vmem>>, vector<32x256xbf16>,
    %c239_i32 = arith.constant 239 : i32
    %92 = tpu.dynamic_rotate %54 by %c239_i32 dim 1 : vector<32x256xf32>, i32 -> vector<32x256xf32>
    %93 = vector.broadcast %52 : vector<1x256xf32> to vector<32x256xf32>
    %94 = arith.mulf %92, %93 : vector<32x256xf32>
    %95 = arith.truncf %94 : vector<32x256xf32> to vector<32x256xbf16>
    %c256 = arith.constant 256 : index
    %c0_25 = arith.constant 0 : index
    %96 = vector.load %arg6[%c256, %c0_25] : memref<288x256xbf16, #tpu.memory_space<vmem>>, vector<32x256xbf16>
    tpu.vector_store %arg6[%c256, %c0_25], %95 {strides = array<i32>} : memref<288x256xbf16, #tpu.memory_space<vmem>>, vector<32x256xbf16>,
    %c0_26 = arith.constant 0 : index
    %c0_27 = arith.constant 0 : index
    %c0_28 = arith.constant 0 : index
    %97 = vector.load %arg2[%c0_26, %c0_27, %c0_28] : memref<13x32x288xbf16, #tpu.memory_space<vmem>>, vector<1x32x288xbf16>
    %98 = vector.shape_cast %97 : vector<1x32x288xbf16> to vector<32x288xbf16>
    %c0_29 = arith.constant 0 : index
    %c0_30 = arith.constant 0 : index
    %99 = vector.load %arg6[%c0_29, %c0_30] : memref<288x256xbf16, #tpu.memory_space<vmem>>, vector<288x256xbf16>
    %cst = arith.constant dense<0.000000e+00> : vector<32x256xf32>
    %100 = tpu.matmul %98, %99, %cst {dimension_numbers = #tpu.dot_dimension_numbers<[1], [0], [0], [1], [0, 0, 1, 1], [], []>} : vector<32x288xbf16>, vector<288x256xbf16>, vector<32x256xf32> -> vector<32x256xf32>
    %c0_31 = arith.constant 0 : index
    %c0_32 = arith.constant 0 : index
    %c0_33 = arith.constant 0 : index
    %101 = vector.load %arg3[%c0_31, %c0_32, %c0_33] : memref<13x32x1xf32, #tpu.memory_space<vmem>>, vector<1x32x1xf32>
    %102 = vector.shape_cast %101 : vector<1x32x1xf32> to vector<32x1xf32>
    %103 = vector.broadcast %102 : vector<32x1xf32> to vector<32x256xf32>
    %104 = arith.addf %100, %103 : vector<32x256xf32>
    %cst_34 = arith.constant 0.000000e+00 : f32
    %105 = vector.broadcast %cst_34 : f32 to vector<32x256xf32>
    %106 = arith.maximumf %104, %105 : vector<32x256xf32>
    %c17_i32_35 = arith.constant 17 : i32
    %107 = tpu.dynamic_rotate %106 by %c17_i32_35 dim 1 : vector<32x256xf32>, i32 -> vector<32x256xf32>
    %108 = vector.broadcast %49 : vector<1x256xf32> to vector<32x256xf32>
    %109 = arith.mulf %107, %108 : vector<32x256xf32>
    %110 = arith.truncf %109 : vector<32x256xf32> to vector<32x256xbf16>
    %c0_36 = arith.constant 0 : index
    %c0_37 = arith.constant 0 : index
    %111 = vector.load %arg6[%c0_36, %c0_37] : memref<288x256xbf16, #tpu.memory_space<vmem>>, vector<32x256xbf16>
    tpu.vector_store %arg6[%c0_36, %c0_37], %110 {strides = array<i32>} : memref<288x256xbf16, #tpu.memory_space<vmem>>, vector<32x256xbf16>,
    %c16_i32_38 = arith.constant 16 : i32
    %112 = tpu.dynamic_rotate %106 by %c16_i32_38 dim 1 : vector<32x256xf32>, i32 -> vector<32x256xf32>
    %113 = vector.broadcast %36 : vector<1x256xf32> to vector<32x256xf32>
    %114 = arith.mulf %112, %113 : vector<32x256xf32>
    %115 = arith.truncf %114 : vector<32x256xf32> to vector<32x256xbf16>
    %c32_39 = arith.constant 32 : index
    %c0_40 = arith.constant 0 : index
    %116 = vector.load %arg6[%c32_39, %c0_40] : memref<288x256xbf16, #tpu.memory_space<vmem>>, vector<32x256xbf16>
    tpu.vector_store %arg6[%c32_39, %c0_40], %115 {strides = array<i32>} : memref<288x256xbf16, #tpu.memory_space<vmem>>, vector<32x256xbf16>,
    %c15_i32_41 = arith.constant 15 : i32
    %117 = tpu.dynamic_rotate %106 by %c15_i32_41 dim 1 : vector<32x256xf32>, i32 -> vector<32x256xf32>
    %118 = vector.broadcast %50 : vector<1x256xf32> to vector<32x256xf32>
    %119 = arith.mulf %117, %118 : vector<32x256xf32>
    %120 = arith.truncf %119 : vector<32x256xf32> to vector<32x256xbf16>
    %c64_42 = arith.constant 64 : index
    %c0_43 = arith.constant 0 : index
    %121 = vector.load %arg6[%c64_42, %c0_43] : memref<288x256xbf16, #tpu.memory_space<vmem>>, vector<32x256xbf16>
    tpu.vector_store %arg6[%c64_42, %c0_43], %120 {strides = array<i32>} : memref<288x256xbf16, #tpu.memory_space<vmem>>, vector<32x256xbf16>,
    %c1_i32_44 = arith.constant 1 : i32
    %122 = tpu.dynamic_rotate %106 by %c1_i32_44 dim 1 : vector<32x256xf32>, i32 -> vector<32x256xf32>
    %123 = vector.broadcast %44 : vector<1x256xf32> to vector<32x256xf32>
    %124 = arith.mulf %122, %123 : vector<32x256xf32>
    %125 = arith.truncf %124 : vector<32x256xf32> to vector<32x256xbf16>
    %c96_45 = arith.constant 96 : index
    %c0_46 = arith.constant 0 : index
    %126 = vector.load %arg6[%c96_45, %c0_46] : memref<288x256xbf16, #tpu.memory_space<vmem>>, vector<32x256xbf16>
    tpu.vector_store %arg6[%c96_45, %c0_46], %125 {strides = array<i32>} : memref<288x256xbf16, #tpu.memory_space<vmem>>, vector<32x256xbf16>,
    %127 = arith.truncf %106 : vector<32x256xf32> to vector<32x256xbf16>
    %c128_47 = arith.constant 128 : index
    %c0_48 = arith.constant 0 : index
    %128 = vector.load %arg6[%c128_47, %c0_48] : memref<288x256xbf16, #tpu.memory_space<vmem>>, vector<32x256xbf16>
    tpu.vector_store %arg6[%c128_47, %c0_48], %127 {strides = array<i32>} : memref<288x256xbf16, #tpu.memory_space<vmem>>, vector<32x256xbf16>,
    %c255_i32_49 = arith.constant 255 : i32
    %129 = tpu.dynamic_rotate %106 by %c255_i32_49 dim 1 : vector<32x256xf32>, i32 -> vector<32x256xf32>
    %130 = vector.broadcast %48 : vector<1x256xf32> to vector<32x256xf32>
    %131 = arith.mulf %129, %130 : vector<32x256xf32>
    %132 = arith.truncf %131 : vector<32x256xf32> to vector<32x256xbf16>
    %c160_50 = arith.constant 160 : index
    %c0_51 = arith.constant 0 : index
    %133 = vector.load %arg6[%c160_50, %c0_51] : memref<288x256xbf16, #tpu.memory_space<vmem>>, vector<32x256xbf16>
    tpu.vector_store %arg6[%c160_50, %c0_51], %132 {strides = array<i32>} : memref<288x256xbf16, #tpu.memory_space<vmem>>, vector<32x256xbf16>,
    %c241_i32_52 = arith.constant 241 : i32
    %134 = tpu.dynamic_rotate %106 by %c241_i32_52 dim 1 : vector<32x256xf32>, i32 -> vector<32x256xf32>
    %135 = vector.broadcast %51 : vector<1x256xf32> to vector<32x256xf32>
    %136 = arith.mulf %134, %135 : vector<32x256xf32>
    %137 = arith.truncf %136 : vector<32x256xf32> to vector<32x256xbf16>
    %c192_53 = arith.constant 192 : index
    %c0_54 = arith.constant 0 : index
    %138 = vector.load %arg6[%c192_53, %c0_54] : memref<288x256xbf16, #tpu.memory_space<vmem>>, vector<32x256xbf16>
    tpu.vector_store %arg6[%c192_53, %c0_54], %137 {strides = array<i32>} : memref<288x256xbf16, #tpu.memory_space<vmem>>, vector<32x256xbf16>,
    %c240_i32_55 = arith.constant 240 : i32
    %139 = tpu.dynamic_rotate %106 by %c240_i32_55 dim 1 : vector<32x256xf32>, i32 -> vector<32x256xf32>
    %140 = vector.broadcast %40 : vector<1x256xf32> to vector<32x256xf32>
    %141 = arith.mulf %139, %140 : vector<32x256xf32>
    %142 = arith.truncf %141 : vector<32x256xf32> to vector<32x256xbf16>
    %c224_56 = arith.constant 224 : index
    %c0_57 = arith.constant 0 : index
    %143 = vector.load %arg6[%c224_56, %c0_57] : memref<288x256xbf16, #tpu.memory_space<vmem>>, vector<32x256xbf16>
    tpu.vector_store %arg6[%c224_56, %c0_57], %142 {strides = array<i32>} : memref<288x256xbf16, #tpu.memory_space<vmem>>, vector<32x256xbf16>,
    %c239_i32_58 = arith.constant 239 : i32
    %144 = tpu.dynamic_rotate %106 by %c239_i32_58 dim 1 : vector<32x256xf32>, i32 -> vector<32x256xf32>
    %145 = vector.broadcast %52 : vector<1x256xf32> to vector<32x256xf32>
    %146 = arith.mulf %144, %145 : vector<32x256xf32>
    %147 = arith.truncf %146 : vector<32x256xf32> to vector<32x256xbf16>
    %c256_59 = arith.constant 256 : index
    %c0_60 = arith.constant 0 : index
    %148 = vector.load %arg6[%c256_59, %c0_60] : memref<288x256xbf16, #tpu.memory_space<vmem>>, vector<32x256xbf16>
    tpu.vector_store %arg6[%c256_59, %c0_60], %147 {strides = array<i32>} : memref<288x256xbf16, #tpu.memory_space<vmem>>, vector<32x256xbf16>,
    %c1 = arith.constant 1 : index
    %c0_61 = arith.constant 0 : index
    %c0_62 = arith.constant 0 : index
    %149 = vector.load %arg2[%c1, %c0_61, %c0_62] : memref<13x32x288xbf16, #tpu.memory_space<vmem>>, vector<1x32x288xbf16>
    %150 = vector.shape_cast %149 : vector<1x32x288xbf16> to vector<32x288xbf16>
    %c0_63 = arith.constant 0 : index
    %c0_64 = arith.constant 0 : index
    %151 = vector.load %arg6[%c0_63, %c0_64] : memref<288x256xbf16, #tpu.memory_space<vmem>>, vector<288x256xbf16>
    %cst_65 = arith.constant dense<0.000000e+00> : vector<32x256xf32>
    %152 = tpu.matmul %150, %151, %cst_65 {dimension_numbers = #tpu.dot_dimension_numbers<[1], [0], [0], [1], [0, 0, 1, 1], [], []>} : vector<32x288xbf16>, vector<288x256xbf16>, vector<32x256xf32> -> vector<32x256xf32>
    %c1_66 = arith.constant 1 : index
    %c0_67 = arith.constant 0 : index
    %c0_68 = arith.constant 0 : index
    %153 = vector.load %arg3[%c1_66, %c0_67, %c0_68] : memref<13x32x1xf32, #tpu.memory_space<vmem>>, vector<1x32x1xf32>
    %154 = vector.shape_cast %153 : vector<1x32x1xf32> to vector<32x1xf32>
    %155 = vector.broadcast %154 : vector<32x1xf32> to vector<32x256xf32>
    %156 = arith.addf %152, %155 : vector<32x256xf32>
    %cst_69 = arith.constant 0.000000e+00 : f32
    %157 = vector.broadcast %cst_69 : f32 to vector<32x256xf32>
    %158 = arith.maximumf %156, %157 : vector<32x256xf32>
    %c17_i32_70 = arith.constant 17 : i32
    %159 = tpu.dynamic_rotate %158 by %c17_i32_70 dim 1 : vector<32x256xf32>, i32 -> vector<32x256xf32>
    %160 = vector.broadcast %49 : vector<1x256xf32> to vector<32x256xf32>
    %161 = arith.mulf %159, %160 : vector<32x256xf32>
    %162 = arith.truncf %161 : vector<32x256xf32> to vector<32x256xbf16>
    %c0_71 = arith.constant 0 : index
    %c0_72 = arith.constant 0 : index
    %163 = vector.load %arg6[%c0_71, %c0_72] : memref<288x256xbf16, #tpu.memory_space<vmem>>, vector<32x256xbf16>
    tpu.vector_store %arg6[%c0_71, %c0_72], %162 {strides = array<i32>} : memref<288x256xbf16, #tpu.memory_space<vmem>>, vector<32x256xbf16>,
    %c16_i32_73 = arith.constant 16 : i32
    %164 = tpu.dynamic_rotate %158 by %c16_i32_73 dim 1 : vector<32x256xf32>, i32 -> vector<32x256xf32>
    %165 = vector.broadcast %36 : vector<1x256xf32> to vector<32x256xf32>
    %166 = arith.mulf %164, %165 : vector<32x256xf32>
    %167 = arith.truncf %166 : vector<32x256xf32> to vector<32x256xbf16>
    %c32_74 = arith.constant 32 : index
    %c0_75 = arith.constant 0 : index
    %168 = vector.load %arg6[%c32_74, %c0_75] : memref<288x256xbf16, #tpu.memory_space<vmem>>, vector<32x256xbf16>
    tpu.vector_store %arg6[%c32_74, %c0_75], %167 {strides = array<i32>} : memref<288x256xbf16, #tpu.memory_space<vmem>>, vector<32x256xbf16>,
    %c15_i32_76 = arith.constant 15 : i32
    %169 = tpu.dynamic_rotate %158 by %c15_i32_76 dim 1 : vector<32x256xf32>, i32 -> vector<32x256xf32>
    %170 = vector.broadcast %50 : vector<1x256xf32> to vector<32x256xf32>
    %171 = arith.mulf %169, %170 : vector<32x256xf32>
    %172 = arith.truncf %171 : vector<32x256xf32> to vector<32x256xbf16>
    %c64_77 = arith.constant 64 : index
    %c0_78 = arith.constant 0 : index
    %173 = vector.load %arg6[%c64_77, %c0_78] : memref<288x256xbf16, #tpu.memory_space<vmem>>, vector<32x256xbf16>
    tpu.vector_store %arg6[%c64_77, %c0_78], %172 {strides = array<i32>} : memref<288x256xbf16, #tpu.memory_space<vmem>>, vector<32x256xbf16>,
    %c1_i32_79 = arith.constant 1 : i32
    %174 = tpu.dynamic_rotate %158 by %c1_i32_79 dim 1 : vector<32x256xf32>, i32 -> vector<32x256xf32>
    %175 = vector.broadcast %44 : vector<1x256xf32> to vector<32x256xf32>
    %176 = arith.mulf %174, %175 : vector<32x256xf32>
    %177 = arith.truncf %176 : vector<32x256xf32> to vector<32x256xbf16>
    %c96_80 = arith.constant 96 : index
    %c0_81 = arith.constant 0 : index
    %178 = vector.load %arg6[%c96_80, %c0_81] : memref<288x256xbf16, #tpu.memory_space<vmem>>, vector<32x256xbf16>
    tpu.vector_store %arg6[%c96_80, %c0_81], %177 {strides = array<i32>} : memref<288x256xbf16, #tpu.memory_space<vmem>>, vector<32x256xbf16>,
    %179 = arith.truncf %158 : vector<32x256xf32> to vector<32x256xbf16>
    %c128_82 = arith.constant 128 : index
    %c0_83 = arith.constant 0 : index
    %180 = vector.load %arg6[%c128_82, %c0_83] : memref<288x256xbf16, #tpu.memory_space<vmem>>, vector<32x256xbf16>
    tpu.vector_store %arg6[%c128_82, %c0_83], %179 {strides = array<i32>} : memref<288x256xbf16, #tpu.memory_space<vmem>>, vector<32x256xbf16>,
    %c255_i32_84 = arith.constant 255 : i32
    %181 = tpu.dynamic_rotate %158 by %c255_i32_84 dim 1 : vector<32x256xf32>, i32 -> vector<32x256xf32>
    %182 = vector.broadcast %48 : vector<1x256xf32> to vector<32x256xf32>
    %183 = arith.mulf %181, %182 : vector<32x256xf32>
    %184 = arith.truncf %183 : vector<32x256xf32> to vector<32x256xbf16>
    %c160_85 = arith.constant 160 : index
    %c0_86 = arith.constant 0 : index
    %185 = vector.load %arg6[%c160_85, %c0_86] : memref<288x256xbf16, #tpu.memory_space<vmem>>, vector<32x256xbf16>
    tpu.vector_store %arg6[%c160_85, %c0_86], %184 {strides = array<i32>} : memref<288x256xbf16, #tpu.memory_space<vmem>>, vector<32x256xbf16>,
    %c241_i32_87 = arith.constant 241 : i32
    %186 = tpu.dynamic_rotate %158 by %c241_i32_87 dim 1 : vector<32x256xf32>, i32 -> vector<32x256xf32>
    %187 = vector.broadcast %51 : vector<1x256xf32> to vector<32x256xf32>
    %188 = arith.mulf %186, %187 : vector<32x256xf32>
    %189 = arith.truncf %188 : vector<32x256xf32> to vector<32x256xbf16>
    %c192_88 = arith.constant 192 : index
    %c0_89 = arith.constant 0 : index
    %190 = vector.load %arg6[%c192_88, %c0_89] : memref<288x256xbf16, #tpu.memory_space<vmem>>, vector<32x256xbf16>
    tpu.vector_store %arg6[%c192_88, %c0_89], %189 {strides = array<i32>} : memref<288x256xbf16, #tpu.memory_space<vmem>>, vector<32x256xbf16>,
    %c240_i32_90 = arith.constant 240 : i32
    %191 = tpu.dynamic_rotate %158 by %c240_i32_90 dim 1 : vector<32x256xf32>, i32 -> vector<32x256xf32>
    %192 = vector.broadcast %40 : vector<1x256xf32> to vector<32x256xf32>
    %193 = arith.mulf %191, %192 : vector<32x256xf32>
    %194 = arith.truncf %193 : vector<32x256xf32> to vector<32x256xbf16>
    %c224_91 = arith.constant 224 : index
    %c0_92 = arith.constant 0 : index
    %195 = vector.load %arg6[%c224_91, %c0_92] : memref<288x256xbf16, #tpu.memory_space<vmem>>, vector<32x256xbf16>
    tpu.vector_store %arg6[%c224_91, %c0_92], %194 {strides = array<i32>} : memref<288x256xbf16, #tpu.memory_space<vmem>>, vector<32x256xbf16>,
    %c239_i32_93 = arith.constant 239 : i32
    %196 = tpu.dynamic_rotate %158 by %c239_i32_93 dim 1 : vector<32x256xf32>, i32 -> vector<32x256xf32>
    %197 = vector.broadcast %52 : vector<1x256xf32> to vector<32x256xf32>
    %198 = arith.mulf %196, %197 : vector<32x256xf32>
    %199 = arith.truncf %198 : vector<32x256xf32> to vector<32x256xbf16>
    %c256_94 = arith.constant 256 : index
    %c0_95 = arith.constant 0 : index
    %200 = vector.load %arg6[%c256_94, %c0_95] : memref<288x256xbf16, #tpu.memory_space<vmem>>, vector<32x256xbf16>
    tpu.vector_store %arg6[%c256_94, %c0_95], %199 {strides = array<i32>} : memref<288x256xbf16, #tpu.memory_space<vmem>>, vector<32x256xbf16>,
    %c2 = arith.constant 2 : index
    %c0_96 = arith.constant 0 : index
    %c0_97 = arith.constant 0 : index
    %201 = vector.load %arg2[%c2, %c0_96, %c0_97] : memref<13x32x288xbf16, #tpu.memory_space<vmem>>, vector<1x32x288xbf16>
    %202 = vector.shape_cast %201 : vector<1x32x288xbf16> to vector<32x288xbf16>
    %c0_98 = arith.constant 0 : index
    %c0_99 = arith.constant 0 : index
    %203 = vector.load %arg6[%c0_98, %c0_99] : memref<288x256xbf16, #tpu.memory_space<vmem>>, vector<288x256xbf16>
    %cst_100 = arith.constant dense<0.000000e+00> : vector<32x256xf32>
    %204 = tpu.matmul %202, %203, %cst_100 {dimension_numbers = #tpu.dot_dimension_numbers<[1], [0], [0], [1], [0, 0, 1, 1], [], []>} : vector<32x288xbf16>, vector<288x256xbf16>, vector<32x256xf32> -> vector<32x256xf32>
    %c2_101 = arith.constant 2 : index
    %c0_102 = arith.constant 0 : index
    %c0_103 = arith.constant 0 : index
    %205 = vector.load %arg3[%c2_101, %c0_102, %c0_103] : memref<13x32x1xf32, #tpu.memory_space<vmem>>, vector<1x32x1xf32>
    %206 = vector.shape_cast %205 : vector<1x32x1xf32> to vector<32x1xf32>
    %207 = vector.broadcast %206 : vector<32x1xf32> to vector<32x256xf32>
    %208 = arith.addf %204, %207 : vector<32x256xf32>
    %cst_104 = arith.constant 0.000000e+00 : f32
    %209 = vector.broadcast %cst_104 : f32 to vector<32x256xf32>
    %210 = arith.maximumf %208, %209 : vector<32x256xf32>
    %c17_i32_105 = arith.constant 17 : i32
    %211 = tpu.dynamic_rotate %210 by %c17_i32_105 dim 1 : vector<32x256xf32>, i32 -> vector<32x256xf32>
    %212 = vector.broadcast %49 : vector<1x256xf32> to vector<32x256xf32>
    %213 = arith.mulf %211, %212 : vector<32x256xf32>
    %214 = arith.truncf %213 : vector<32x256xf32> to vector<32x256xbf16>
    %c0_106 = arith.constant 0 : index
    %c0_107 = arith.constant 0 : index
    %215 = vector.load %arg6[%c0_106, %c0_107] : memref<288x256xbf16, #tpu.memory_space<vmem>>, vector<32x256xbf16>
    tpu.vector_store %arg6[%c0_106, %c0_107], %214 {strides = array<i32>} : memref<288x256xbf16, #tpu.memory_space<vmem>>, vector<32x256xbf16>,
    %c16_i32_108 = arith.constant 16 : i32
    %216 = tpu.dynamic_rotate %210 by %c16_i32_108 dim 1 : vector<32x256xf32>, i32 -> vector<32x256xf32>
    %217 = vector.broadcast %36 : vector<1x256xf32> to vector<32x256xf32>
    %218 = arith.mulf %216, %217 : vector<32x256xf32>
    %219 = arith.truncf %218 : vector<32x256xf32> to vector<32x256xbf16>
    %c32_109 = arith.constant 32 : index
    %c0_110 = arith.constant 0 : index
    %220 = vector.load %arg6[%c32_109, %c0_110] : memref<288x256xbf16, #tpu.memory_space<vmem>>, vector<32x256xbf16>
    tpu.vector_store %arg6[%c32_109, %c0_110], %219 {strides = array<i32>} : memref<288x256xbf16, #tpu.memory_space<vmem>>, vector<32x256xbf16>,
    %c15_i32_111 = arith.constant 15 : i32
    %221 = tpu.dynamic_rotate %210 by %c15_i32_111 dim 1 : vector<32x256xf32>, i32 -> vector<32x256xf32>
    %222 = vector.broadcast %50 : vector<1x256xf32> to vector<32x256xf32>
    %223 = arith.mulf %221, %222 : vector<32x256xf32>
    %224 = arith.truncf %223 : vector<32x256xf32> to vector<32x256xbf16>
    %c64_112 = arith.constant 64 : index
    %c0_113 = arith.constant 0 : index
    %225 = vector.load %arg6[%c64_112, %c0_113] : memref<288x256xbf16, #tpu.memory_space<vmem>>, vector<32x256xbf16>
    tpu.vector_store %arg6[%c64_112, %c0_113], %224 {strides = array<i32>} : memref<288x256xbf16, #tpu.memory_space<vmem>>, vector<32x256xbf16>,
    %c1_i32_114 = arith.constant 1 : i32
    %226 = tpu.dynamic_rotate %210 by %c1_i32_114 dim 1 : vector<32x256xf32>, i32 -> vector<32x256xf32>
    %227 = vector.broadcast %44 : vector<1x256xf32> to vector<32x256xf32>
    %228 = arith.mulf %226, %227 : vector<32x256xf32>
    %229 = arith.truncf %228 : vector<32x256xf32> to vector<32x256xbf16>
    %c96_115 = arith.constant 96 : index
    %c0_116 = arith.constant 0 : index
    %230 = vector.load %arg6[%c96_115, %c0_116] : memref<288x256xbf16, #tpu.memory_space<vmem>>, vector<32x256xbf16>
    tpu.vector_store %arg6[%c96_115, %c0_116], %229 {strides = array<i32>} : memref<288x256xbf16, #tpu.memory_space<vmem>>, vector<32x256xbf16>,
    %231 = arith.truncf %210 : vector<32x256xf32> to vector<32x256xbf16>
    %c128_117 = arith.constant 128 : index
    %c0_118 = arith.constant 0 : index
    %232 = vector.load %arg6[%c128_117, %c0_118] : memref<288x256xbf16, #tpu.memory_space<vmem>>, vector<32x256xbf16>
    tpu.vector_store %arg6[%c128_117, %c0_118], %231 {strides = array<i32>} : memref<288x256xbf16, #tpu.memory_space<vmem>>, vector<32x256xbf16>,
    %c255_i32_119 = arith.constant 255 : i32
    %233 = tpu.dynamic_rotate %210 by %c255_i32_119 dim 1 : vector<32x256xf32>, i32 -> vector<32x256xf32>
    %234 = vector.broadcast %48 : vector<1x256xf32> to vector<32x256xf32>
    %235 = arith.mulf %233, %234 : vector<32x256xf32>
    %236 = arith.truncf %235 : vector<32x256xf32> to vector<32x256xbf16>
    %c160_120 = arith.constant 160 : index
    %c0_121 = arith.constant 0 : index
    %237 = vector.load %arg6[%c160_120, %c0_121] : memref<288x256xbf16, #tpu.memory_space<vmem>>, vector<32x256xbf16>
    tpu.vector_store %arg6[%c160_120, %c0_121], %236 {strides = array<i32>} : memref<288x256xbf16, #tpu.memory_space<vmem>>, vector<32x256xbf16>,
    %c241_i32_122 = arith.constant 241 : i32
    %238 = tpu.dynamic_rotate %210 by %c241_i32_122 dim 1 : vector<32x256xf32>, i32 -> vector<32x256xf32>
    %239 = vector.broadcast %51 : vector<1x256xf32> to vector<32x256xf32>
    %240 = arith.mulf %238, %239 : vector<32x256xf32>
    %241 = arith.truncf %240 : vector<32x256xf32> to vector<32x256xbf16>
    %c192_123 = arith.constant 192 : index
    %c0_124 = arith.constant 0 : index
    %242 = vector.load %arg6[%c192_123, %c0_124] : memref<288x256xbf16, #tpu.memory_space<vmem>>, vector<32x256xbf16>
    tpu.vector_store %arg6[%c192_123, %c0_124], %241 {strides = array<i32>} : memref<288x256xbf16, #tpu.memory_space<vmem>>, vector<32x256xbf16>,
    %c240_i32_125 = arith.constant 240 : i32
    %243 = tpu.dynamic_rotate %210 by %c240_i32_125 dim 1 : vector<32x256xf32>, i32 -> vector<32x256xf32>
    %244 = vector.broadcast %40 : vector<1x256xf32> to vector<32x256xf32>
    %245 = arith.mulf %243, %244 : vector<32x256xf32>
    %246 = arith.truncf %245 : vector<32x256xf32> to vector<32x256xbf16>
    %c224_126 = arith.constant 224 : index
    %c0_127 = arith.constant 0 : index
    %247 = vector.load %arg6[%c224_126, %c0_127] : memref<288x256xbf16, #tpu.memory_space<vmem>>, vector<32x256xbf16>
    tpu.vector_store %arg6[%c224_126, %c0_127], %246 {strides = array<i32>} : memref<288x256xbf16, #tpu.memory_space<vmem>>, vector<32x256xbf16>,
    %c239_i32_128 = arith.constant 239 : i32
    %248 = tpu.dynamic_rotate %210 by %c239_i32_128 dim 1 : vector<32x256xf32>, i32 -> vector<32x256xf32>
    %249 = vector.broadcast %52 : vector<1x256xf32> to vector<32x256xf32>
    %250 = arith.mulf %248, %249 : vector<32x256xf32>
    %251 = arith.truncf %250 : vector<32x256xf32> to vector<32x256xbf16>
    %c256_129 = arith.constant 256 : index
    %c0_130 = arith.constant 0 : index
    %252 = vector.load %arg6[%c256_129, %c0_130] : memref<288x256xbf16, #tpu.memory_space<vmem>>, vector<32x256xbf16>
    tpu.vector_store %arg6[%c256_129, %c0_130], %251 {strides = array<i32>} : memref<288x256xbf16, #tpu.memory_space<vmem>>, vector<32x256xbf16>,
    %c3 = arith.constant 3 : index
    %c0_131 = arith.constant 0 : index
    %c0_132 = arith.constant 0 : index
    %253 = vector.load %arg2[%c3, %c0_131, %c0_132] : memref<13x32x288xbf16, #tpu.memory_space<vmem>>, vector<1x32x288xbf16>
    %254 = vector.shape_cast %253 : vector<1x32x288xbf16> to vector<32x288xbf16>
    %c0_133 = arith.constant 0 : index
    %c0_134 = arith.constant 0 : index
    %255 = vector.load %arg6[%c0_133, %c0_134] : memref<288x256xbf16, #tpu.memory_space<vmem>>, vector<288x256xbf16>
    %cst_135 = arith.constant dense<0.000000e+00> : vector<32x256xf32>
    %256 = tpu.matmul %254, %255, %cst_135 {dimension_numbers = #tpu.dot_dimension_numbers<[1], [0], [0], [1], [0, 0, 1, 1], [], []>} : vector<32x288xbf16>, vector<288x256xbf16>, vector<32x256xf32> -> vector<32x256xf32>
    %c3_136 = arith.constant 3 : index
    %c0_137 = arith.constant 0 : index
    %c0_138 = arith.constant 0 : index
    %257 = vector.load %arg3[%c3_136, %c0_137, %c0_138] : memref<13x32x1xf32, #tpu.memory_space<vmem>>, vector<1x32x1xf32>
    %258 = vector.shape_cast %257 : vector<1x32x1xf32> to vector<32x1xf32>
    %259 = vector.broadcast %258 : vector<32x1xf32> to vector<32x256xf32>
    %260 = arith.addf %256, %259 : vector<32x256xf32>
    %cst_139 = arith.constant 0.000000e+00 : f32
    %261 = vector.broadcast %cst_139 : f32 to vector<32x256xf32>
    %262 = arith.maximumf %260, %261 : vector<32x256xf32>
    %c17_i32_140 = arith.constant 17 : i32
    %263 = tpu.dynamic_rotate %262 by %c17_i32_140 dim 1 : vector<32x256xf32>, i32 -> vector<32x256xf32>
    %264 = vector.broadcast %49 : vector<1x256xf32> to vector<32x256xf32>
    %265 = arith.mulf %263, %264 : vector<32x256xf32>
    %266 = arith.truncf %265 : vector<32x256xf32> to vector<32x256xbf16>
    %c0_141 = arith.constant 0 : index
    %c0_142 = arith.constant 0 : index
    %267 = vector.load %arg6[%c0_141, %c0_142] : memref<288x256xbf16, #tpu.memory_space<vmem>>, vector<32x256xbf16>
    tpu.vector_store %arg6[%c0_141, %c0_142], %266 {strides = array<i32>} : memref<288x256xbf16, #tpu.memory_space<vmem>>, vector<32x256xbf16>,
    %c16_i32_143 = arith.constant 16 : i32
    %268 = tpu.dynamic_rotate %262 by %c16_i32_143 dim 1 : vector<32x256xf32>, i32 -> vector<32x256xf32>
    %269 = vector.broadcast %36 : vector<1x256xf32> to vector<32x256xf32>
    %270 = arith.mulf %268, %269 : vector<32x256xf32>
    %271 = arith.truncf %270 : vector<32x256xf32> to vector<32x256xbf16>
    %c32_144 = arith.constant 32 : index
    %c0_145 = arith.constant 0 : index
    %272 = vector.load %arg6[%c32_144, %c0_145] : memref<288x256xbf16, #tpu.memory_space<vmem>>, vector<32x256xbf16>
    tpu.vector_store %arg6[%c32_144, %c0_145], %271 {strides = array<i32>} : memref<288x256xbf16, #tpu.memory_space<vmem>>, vector<32x256xbf16>,
    %c15_i32_146 = arith.constant 15 : i32
    %273 = tpu.dynamic_rotate %262 by %c15_i32_146 dim 1 : vector<32x256xf32>, i32 -> vector<32x256xf32>
    %274 = vector.broadcast %50 : vector<1x256xf32> to vector<32x256xf32>
    %275 = arith.mulf %273, %274 : vector<32x256xf32>
    %276 = arith.truncf %275 : vector<32x256xf32> to vector<32x256xbf16>
    %c64_147 = arith.constant 64 : index
    %c0_148 = arith.constant 0 : index
    %277 = vector.load %arg6[%c64_147, %c0_148] : memref<288x256xbf16, #tpu.memory_space<vmem>>, vector<32x256xbf16>
    tpu.vector_store %arg6[%c64_147, %c0_148], %276 {strides = array<i32>} : memref<288x256xbf16, #tpu.memory_space<vmem>>, vector<32x256xbf16>,
    %c1_i32_149 = arith.constant 1 : i32
    %278 = tpu.dynamic_rotate %262 by %c1_i32_149 dim 1 : vector<32x256xf32>, i32 -> vector<32x256xf32>
    %279 = vector.broadcast %44 : vector<1x256xf32> to vector<32x256xf32>
    %280 = arith.mulf %278, %279 : vector<32x256xf32>
    %281 = arith.truncf %280 : vector<32x256xf32> to vector<32x256xbf16>
    %c96_150 = arith.constant 96 : index
    %c0_151 = arith.constant 0 : index
    %282 = vector.load %arg6[%c96_150, %c0_151] : memref<288x256xbf16, #tpu.memory_space<vmem>>, vector<32x256xbf16>
    tpu.vector_store %arg6[%c96_150, %c0_151], %281 {strides = array<i32>} : memref<288x256xbf16, #tpu.memory_space<vmem>>, vector<32x256xbf16>,
    %283 = arith.truncf %262 : vector<32x256xf32> to vector<32x256xbf16>
    %c128_152 = arith.constant 128 : index
    %c0_153 = arith.constant 0 : index
    %284 = vector.load %arg6[%c128_152, %c0_153] : memref<288x256xbf16, #tpu.memory_space<vmem>>, vector<32x256xbf16>
    tpu.vector_store %arg6[%c128_152, %c0_153], %283 {strides = array<i32>} : memref<288x256xbf16, #tpu.memory_space<vmem>>, vector<32x256xbf16>,
    %c255_i32_154 = arith.constant 255 : i32
    %285 = tpu.dynamic_rotate %262 by %c255_i32_154 dim 1 : vector<32x256xf32>, i32 -> vector<32x256xf32>
    %286 = vector.broadcast %48 : vector<1x256xf32> to vector<32x256xf32>
    %287 = arith.mulf %285, %286 : vector<32x256xf32>
    %288 = arith.truncf %287 : vector<32x256xf32> to vector<32x256xbf16>
    %c160_155 = arith.constant 160 : index
    %c0_156 = arith.constant 0 : index
    %289 = vector.load %arg6[%c160_155, %c0_156] : memref<288x256xbf16, #tpu.memory_space<vmem>>, vector<32x256xbf16>
    tpu.vector_store %arg6[%c160_155, %c0_156], %288 {strides = array<i32>} : memref<288x256xbf16, #tpu.memory_space<vmem>>, vector<32x256xbf16>,
    %c241_i32_157 = arith.constant 241 : i32
    %290 = tpu.dynamic_rotate %262 by %c241_i32_157 dim 1 : vector<32x256xf32>, i32 -> vector<32x256xf32>
    %291 = vector.broadcast %51 : vector<1x256xf32> to vector<32x256xf32>
    %292 = arith.mulf %290, %291 : vector<32x256xf32>
    %293 = arith.truncf %292 : vector<32x256xf32> to vector<32x256xbf16>
    %c192_158 = arith.constant 192 : index
    %c0_159 = arith.constant 0 : index
    %294 = vector.load %arg6[%c192_158, %c0_159] : memref<288x256xbf16, #tpu.memory_space<vmem>>, vector<32x256xbf16>
    tpu.vector_store %arg6[%c192_158, %c0_159], %293 {strides = array<i32>} : memref<288x256xbf16, #tpu.memory_space<vmem>>, vector<32x256xbf16>,
    %c240_i32_160 = arith.constant 240 : i32
    %295 = tpu.dynamic_rotate %262 by %c240_i32_160 dim 1 : vector<32x256xf32>, i32 -> vector<32x256xf32>
    %296 = vector.broadcast %40 : vector<1x256xf32> to vector<32x256xf32>
    %297 = arith.mulf %295, %296 : vector<32x256xf32>
    %298 = arith.truncf %297 : vector<32x256xf32> to vector<32x256xbf16>
    %c224_161 = arith.constant 224 : index
    %c0_162 = arith.constant 0 : index
    %299 = vector.load %arg6[%c224_161, %c0_162] : memref<288x256xbf16, #tpu.memory_space<vmem>>, vector<32x256xbf16>
    tpu.vector_store %arg6[%c224_161, %c0_162], %298 {strides = array<i32>} : memref<288x256xbf16, #tpu.memory_space<vmem>>, vector<32x256xbf16>,
    %c239_i32_163 = arith.constant 239 : i32
    %300 = tpu.dynamic_rotate %262 by %c239_i32_163 dim 1 : vector<32x256xf32>, i32 -> vector<32x256xf32>
    %301 = vector.broadcast %52 : vector<1x256xf32> to vector<32x256xf32>
    %302 = arith.mulf %300, %301 : vector<32x256xf32>
    %303 = arith.truncf %302 : vector<32x256xf32> to vector<32x256xbf16>
    %c256_164 = arith.constant 256 : index
    %c0_165 = arith.constant 0 : index
    %304 = vector.load %arg6[%c256_164, %c0_165] : memref<288x256xbf16, #tpu.memory_space<vmem>>, vector<32x256xbf16>
    tpu.vector_store %arg6[%c256_164, %c0_165], %303 {strides = array<i32>} : memref<288x256xbf16, #tpu.memory_space<vmem>>, vector<32x256xbf16>,
    %c4 = arith.constant 4 : index
    %c0_166 = arith.constant 0 : index
    %c0_167 = arith.constant 0 : index
    %305 = vector.load %arg2[%c4, %c0_166, %c0_167] : memref<13x32x288xbf16, #tpu.memory_space<vmem>>, vector<1x32x288xbf16>
    %306 = vector.shape_cast %305 : vector<1x32x288xbf16> to vector<32x288xbf16>
    %c0_168 = arith.constant 0 : index
    %c0_169 = arith.constant 0 : index
    %307 = vector.load %arg6[%c0_168, %c0_169] : memref<288x256xbf16, #tpu.memory_space<vmem>>, vector<288x256xbf16>
    %cst_170 = arith.constant dense<0.000000e+00> : vector<32x256xf32>
    %308 = tpu.matmul %306, %307, %cst_170 {dimension_numbers = #tpu.dot_dimension_numbers<[1], [0], [0], [1], [0, 0, 1, 1], [], []>} : vector<32x288xbf16>, vector<288x256xbf16>, vector<32x256xf32> -> vector<32x256xf32>
    %c4_171 = arith.constant 4 : index
    %c0_172 = arith.constant 0 : index
    %c0_173 = arith.constant 0 : index
    %309 = vector.load %arg3[%c4_171, %c0_172, %c0_173] : memref<13x32x1xf32, #tpu.memory_space<vmem>>, vector<1x32x1xf32>
    %310 = vector.shape_cast %309 : vector<1x32x1xf32> to vector<32x1xf32>
    %311 = vector.broadcast %310 : vector<32x1xf32> to vector<32x256xf32>
    %312 = arith.addf %308, %311 : vector<32x256xf32>
    %313 = arith.addf %210, %312 : vector<32x256xf32>
    %c17_i32_174 = arith.constant 17 : i32
    %314 = tpu.dynamic_rotate %313 by %c17_i32_174 dim 1 : vector<32x256xf32>, i32 -> vector<32x256xf32>
    %315 = vector.broadcast %49 : vector<1x256xf32> to vector<32x256xf32>
    %316 = arith.mulf %314, %315 : vector<32x256xf32>
    %317 = arith.truncf %316 : vector<32x256xf32> to vector<32x256xbf16>
    %c0_175 = arith.constant 0 : index
    %c0_176 = arith.constant 0 : index
    %318 = vector.load %arg6[%c0_175, %c0_176] : memref<288x256xbf16, #tpu.memory_space<vmem>>, vector<32x256xbf16>
    tpu.vector_store %arg6[%c0_175, %c0_176], %317 {strides = array<i32>} : memref<288x256xbf16, #tpu.memory_space<vmem>>, vector<32x256xbf16>,
    %c16_i32_177 = arith.constant 16 : i32
    %319 = tpu.dynamic_rotate %313 by %c16_i32_177 dim 1 : vector<32x256xf32>, i32 -> vector<32x256xf32>
    %320 = vector.broadcast %36 : vector<1x256xf32> to vector<32x256xf32>
    %321 = arith.mulf %319, %320 : vector<32x256xf32>
    %322 = arith.truncf %321 : vector<32x256xf32> to vector<32x256xbf16>
    %c32_178 = arith.constant 32 : index
    %c0_179 = arith.constant 0 : index
    %323 = vector.load %arg6[%c32_178, %c0_179] : memref<288x256xbf16, #tpu.memory_space<vmem>>, vector<32x256xbf16>
    tpu.vector_store %arg6[%c32_178, %c0_179], %322 {strides = array<i32>} : memref<288x256xbf16, #tpu.memory_space<vmem>>, vector<32x256xbf16>,
    %c15_i32_180 = arith.constant 15 : i32
    %324 = tpu.dynamic_rotate %313 by %c15_i32_180 dim 1 : vector<32x256xf32>, i32 -> vector<32x256xf32>
    %325 = vector.broadcast %50 : vector<1x256xf32> to vector<32x256xf32>
    %326 = arith.mulf %324, %325 : vector<32x256xf32>
    %327 = arith.truncf %326 : vector<32x256xf32> to vector<32x256xbf16>
    %c64_181 = arith.constant 64 : index
    %c0_182 = arith.constant 0 : index
    %328 = vector.load %arg6[%c64_181, %c0_182] : memref<288x256xbf16, #tpu.memory_space<vmem>>, vector<32x256xbf16>
    tpu.vector_store %arg6[%c64_181, %c0_182], %327 {strides = array<i32>} : memref<288x256xbf16, #tpu.memory_space<vmem>>, vector<32x256xbf16>,
    %c1_i32_183 = arith.constant 1 : i32
    %329 = tpu.dynamic_rotate %313 by %c1_i32_183 dim 1 : vector<32x256xf32>, i32 -> vector<32x256xf32>
    %330 = vector.broadcast %44 : vector<1x256xf32> to vector<32x256xf32>
    %331 = arith.mulf %329, %330 : vector<32x256xf32>
    %332 = arith.truncf %331 : vector<32x256xf32> to vector<32x256xbf16>
    %c96_184 = arith.constant 96 : index
    %c0_185 = arith.constant 0 : index
    %333 = vector.load %arg6[%c96_184, %c0_185] : memref<288x256xbf16, #tpu.memory_space<vmem>>, vector<32x256xbf16>
    tpu.vector_store %arg6[%c96_184, %c0_185], %332 {strides = array<i32>} : memref<288x256xbf16, #tpu.memory_space<vmem>>, vector<32x256xbf16>,
    %334 = arith.truncf %313 : vector<32x256xf32> to vector<32x256xbf16>
    %c128_186 = arith.constant 128 : index
    %c0_187 = arith.constant 0 : index
    %335 = vector.load %arg6[%c128_186, %c0_187] : memref<288x256xbf16, #tpu.memory_space<vmem>>, vector<32x256xbf16>
    tpu.vector_store %arg6[%c128_186, %c0_187], %334 {strides = array<i32>} : memref<288x256xbf16, #tpu.memory_space<vmem>>, vector<32x256xbf16>,
    %c255_i32_188 = arith.constant 255 : i32
    %336 = tpu.dynamic_rotate %313 by %c255_i32_188 dim 1 : vector<32x256xf32>, i32 -> vector<32x256xf32>
    %337 = vector.broadcast %48 : vector<1x256xf32> to vector<32x256xf32>
    %338 = arith.mulf %336, %337 : vector<32x256xf32>
    %339 = arith.truncf %338 : vector<32x256xf32> to vector<32x256xbf16>
    %c160_189 = arith.constant 160 : index
    %c0_190 = arith.constant 0 : index
    %340 = vector.load %arg6[%c160_189, %c0_190] : memref<288x256xbf16, #tpu.memory_space<vmem>>, vector<32x256xbf16>
    tpu.vector_store %arg6[%c160_189, %c0_190], %339 {strides = array<i32>} : memref<288x256xbf16, #tpu.memory_space<vmem>>, vector<32x256xbf16>,
    %c241_i32_191 = arith.constant 241 : i32
    %341 = tpu.dynamic_rotate %313 by %c241_i32_191 dim 1 : vector<32x256xf32>, i32 -> vector<32x256xf32>
    %342 = vector.broadcast %51 : vector<1x256xf32> to vector<32x256xf32>
    %343 = arith.mulf %341, %342 : vector<32x256xf32>
    %344 = arith.truncf %343 : vector<32x256xf32> to vector<32x256xbf16>
    %c192_192 = arith.constant 192 : index
    %c0_193 = arith.constant 0 : index
    %345 = vector.load %arg6[%c192_192, %c0_193] : memref<288x256xbf16, #tpu.memory_space<vmem>>, vector<32x256xbf16>
    tpu.vector_store %arg6[%c192_192, %c0_193], %344 {strides = array<i32>} : memref<288x256xbf16, #tpu.memory_space<vmem>>, vector<32x256xbf16>,
    %c240_i32_194 = arith.constant 240 : i32
    %346 = tpu.dynamic_rotate %313 by %c240_i32_194 dim 1 : vector<32x256xf32>, i32 -> vector<32x256xf32>
    %347 = vector.broadcast %40 : vector<1x256xf32> to vector<32x256xf32>
    %348 = arith.mulf %346, %347 : vector<32x256xf32>
    %349 = arith.truncf %348 : vector<32x256xf32> to vector<32x256xbf16>
    %c224_195 = arith.constant 224 : index
    %c0_196 = arith.constant 0 : index
    %350 = vector.load %arg6[%c224_195, %c0_196] : memref<288x256xbf16, #tpu.memory_space<vmem>>, vector<32x256xbf16>
    tpu.vector_store %arg6[%c224_195, %c0_196], %349 {strides = array<i32>} : memref<288x256xbf16, #tpu.memory_space<vmem>>, vector<32x256xbf16>,
    %c239_i32_197 = arith.constant 239 : i32
    %351 = tpu.dynamic_rotate %313 by %c239_i32_197 dim 1 : vector<32x256xf32>, i32 -> vector<32x256xf32>
    %352 = vector.broadcast %52 : vector<1x256xf32> to vector<32x256xf32>
    %353 = arith.mulf %351, %352 : vector<32x256xf32>
    %354 = arith.truncf %353 : vector<32x256xf32> to vector<32x256xbf16>
    %c256_198 = arith.constant 256 : index
    %c0_199 = arith.constant 0 : index
    %355 = vector.load %arg6[%c256_198, %c0_199] : memref<288x256xbf16, #tpu.memory_space<vmem>>, vector<32x256xbf16>
    tpu.vector_store %arg6[%c256_198, %c0_199], %354 {strides = array<i32>} : memref<288x256xbf16, #tpu.memory_space<vmem>>, vector<32x256xbf16>,
    %c5 = arith.constant 5 : index
    %c0_200 = arith.constant 0 : index
    %c0_201 = arith.constant 0 : index
    %356 = vector.load %arg2[%c5, %c0_200, %c0_201] : memref<13x32x288xbf16, #tpu.memory_space<vmem>>, vector<1x32x288xbf16>
    %357 = vector.shape_cast %356 : vector<1x32x288xbf16> to vector<32x288xbf16>
    %c0_202 = arith.constant 0 : index
    %c0_203 = arith.constant 0 : index
    %358 = vector.load %arg6[%c0_202, %c0_203] : memref<288x256xbf16, #tpu.memory_space<vmem>>, vector<288x256xbf16>
    %cst_204 = arith.constant dense<0.000000e+00> : vector<32x256xf32>
    %359 = tpu.matmul %357, %358, %cst_204 {dimension_numbers = #tpu.dot_dimension_numbers<[1], [0], [0], [1], [0, 0, 1, 1], [], []>} : vector<32x288xbf16>, vector<288x256xbf16>, vector<32x256xf32> -> vector<32x256xf32>
    %c5_205 = arith.constant 5 : index
    %c0_206 = arith.constant 0 : index
    %c0_207 = arith.constant 0 : index
    %360 = vector.load %arg3[%c5_205, %c0_206, %c0_207] : memref<13x32x1xf32, #tpu.memory_space<vmem>>, vector<1x32x1xf32>
    %361 = vector.shape_cast %360 : vector<1x32x1xf32> to vector<32x1xf32>
    %362 = vector.broadcast %361 : vector<32x1xf32> to vector<32x256xf32>
    %363 = arith.addf %359, %362 : vector<32x256xf32>
    %cst_208 = arith.constant 0.000000e+00 : f32
    %364 = vector.broadcast %cst_208 : f32 to vector<32x256xf32>
    %365 = arith.maximumf %363, %364 : vector<32x256xf32>
    %c17_i32_209 = arith.constant 17 : i32
    %366 = tpu.dynamic_rotate %365 by %c17_i32_209 dim 1 : vector<32x256xf32>, i32 -> vector<32x256xf32>
    %367 = vector.broadcast %49 : vector<1x256xf32> to vector<32x256xf32>
    %368 = arith.mulf %366, %367 : vector<32x256xf32>
    %369 = arith.truncf %368 : vector<32x256xf32> to vector<32x256xbf16>
    %c0_210 = arith.constant 0 : index
    %c0_211 = arith.constant 0 : index
    %370 = vector.load %arg6[%c0_210, %c0_211] : memref<288x256xbf16, #tpu.memory_space<vmem>>, vector<32x256xbf16>
    tpu.vector_store %arg6[%c0_210, %c0_211], %369 {strides = array<i32>} : memref<288x256xbf16, #tpu.memory_space<vmem>>, vector<32x256xbf16>,
    %c16_i32_212 = arith.constant 16 : i32
    %371 = tpu.dynamic_rotate %365 by %c16_i32_212 dim 1 : vector<32x256xf32>, i32 -> vector<32x256xf32>
    %372 = vector.broadcast %36 : vector<1x256xf32> to vector<32x256xf32>
    %373 = arith.mulf %371, %372 : vector<32x256xf32>
    %374 = arith.truncf %373 : vector<32x256xf32> to vector<32x256xbf16>
    %c32_213 = arith.constant 32 : index
    %c0_214 = arith.constant 0 : index
    %375 = vector.load %arg6[%c32_213, %c0_214] : memref<288x256xbf16, #tpu.memory_space<vmem>>, vector<32x256xbf16>
    tpu.vector_store %arg6[%c32_213, %c0_214], %374 {strides = array<i32>} : memref<288x256xbf16, #tpu.memory_space<vmem>>, vector<32x256xbf16>,
    %c15_i32_215 = arith.constant 15 : i32
    %376 = tpu.dynamic_rotate %365 by %c15_i32_215 dim 1 : vector<32x256xf32>, i32 -> vector<32x256xf32>
    %377 = vector.broadcast %50 : vector<1x256xf32> to vector<32x256xf32>
    %378 = arith.mulf %376, %377 : vector<32x256xf32>
    %379 = arith.truncf %378 : vector<32x256xf32> to vector<32x256xbf16>
    %c64_216 = arith.constant 64 : index
    %c0_217 = arith.constant 0 : index
    %380 = vector.load %arg6[%c64_216, %c0_217] : memref<288x256xbf16, #tpu.memory_space<vmem>>, vector<32x256xbf16>
    tpu.vector_store %arg6[%c64_216, %c0_217], %379 {strides = array<i32>} : memref<288x256xbf16, #tpu.memory_space<vmem>>, vector<32x256xbf16>,
    %c1_i32_218 = arith.constant 1 : i32
    %381 = tpu.dynamic_rotate %365 by %c1_i32_218 dim 1 : vector<32x256xf32>, i32 -> vector<32x256xf32>
    %382 = vector.broadcast %44 : vector<1x256xf32> to vector<32x256xf32>
    %383 = arith.mulf %381, %382 : vector<32x256xf32>
    %384 = arith.truncf %383 : vector<32x256xf32> to vector<32x256xbf16>
    %c96_219 = arith.constant 96 : index
    %c0_220 = arith.constant 0 : index
    %385 = vector.load %arg6[%c96_219, %c0_220] : memref<288x256xbf16, #tpu.memory_space<vmem>>, vector<32x256xbf16>
    tpu.vector_store %arg6[%c96_219, %c0_220], %384 {strides = array<i32>} : memref<288x256xbf16, #tpu.memory_space<vmem>>, vector<32x256xbf16>,
    %386 = arith.truncf %365 : vector<32x256xf32> to vector<32x256xbf16>
    %c128_221 = arith.constant 128 : index
    %c0_222 = arith.constant 0 : index
    %387 = vector.load %arg6[%c128_221, %c0_222] : memref<288x256xbf16, #tpu.memory_space<vmem>>, vector<32x256xbf16>
    tpu.vector_store %arg6[%c128_221, %c0_222], %386 {strides = array<i32>} : memref<288x256xbf16, #tpu.memory_space<vmem>>, vector<32x256xbf16>,
    %c255_i32_223 = arith.constant 255 : i32
    %388 = tpu.dynamic_rotate %365 by %c255_i32_223 dim 1 : vector<32x256xf32>, i32 -> vector<32x256xf32>
    %389 = vector.broadcast %48 : vector<1x256xf32> to vector<32x256xf32>
    %390 = arith.mulf %388, %389 : vector<32x256xf32>
    %391 = arith.truncf %390 : vector<32x256xf32> to vector<32x256xbf16>
    %c160_224 = arith.constant 160 : index
    %c0_225 = arith.constant 0 : index
    %392 = vector.load %arg6[%c160_224, %c0_225] : memref<288x256xbf16, #tpu.memory_space<vmem>>, vector<32x256xbf16>
    tpu.vector_store %arg6[%c160_224, %c0_225], %391 {strides = array<i32>} : memref<288x256xbf16, #tpu.memory_space<vmem>>, vector<32x256xbf16>,
    %c241_i32_226 = arith.constant 241 : i32
    %393 = tpu.dynamic_rotate %365 by %c241_i32_226 dim 1 : vector<32x256xf32>, i32 -> vector<32x256xf32>
    %394 = vector.broadcast %51 : vector<1x256xf32> to vector<32x256xf32>
    %395 = arith.mulf %393, %394 : vector<32x256xf32>
    %396 = arith.truncf %395 : vector<32x256xf32> to vector<32x256xbf16>
    %c192_227 = arith.constant 192 : index
    %c0_228 = arith.constant 0 : index
    %397 = vector.load %arg6[%c192_227, %c0_228] : memref<288x256xbf16, #tpu.memory_space<vmem>>, vector<32x256xbf16>
    tpu.vector_store %arg6[%c192_227, %c0_228], %396 {strides = array<i32>} : memref<288x256xbf16, #tpu.memory_space<vmem>>, vector<32x256xbf16>,
    %c240_i32_229 = arith.constant 240 : i32
    %398 = tpu.dynamic_rotate %365 by %c240_i32_229 dim 1 : vector<32x256xf32>, i32 -> vector<32x256xf32>
    %399 = vector.broadcast %40 : vector<1x256xf32> to vector<32x256xf32>
    %400 = arith.mulf %398, %399 : vector<32x256xf32>
    %401 = arith.truncf %400 : vector<32x256xf32> to vector<32x256xbf16>
    %c224_230 = arith.constant 224 : index
    %c0_231 = arith.constant 0 : index
    %402 = vector.load %arg6[%c224_230, %c0_231] : memref<288x256xbf16, #tpu.memory_space<vmem>>, vector<32x256xbf16>
    tpu.vector_store %arg6[%c224_230, %c0_231], %401 {strides = array<i32>} : memref<288x256xbf16, #tpu.memory_space<vmem>>, vector<32x256xbf16>,
    %c239_i32_232 = arith.constant 239 : i32
    %403 = tpu.dynamic_rotate %365 by %c239_i32_232 dim 1 : vector<32x256xf32>, i32 -> vector<32x256xf32>
    %404 = vector.broadcast %52 : vector<1x256xf32> to vector<32x256xf32>
    %405 = arith.mulf %403, %404 : vector<32x256xf32>
    %406 = arith.truncf %405 : vector<32x256xf32> to vector<32x256xbf16>
    %c256_233 = arith.constant 256 : index
    %c0_234 = arith.constant 0 : index
    %407 = vector.load %arg6[%c256_233, %c0_234] : memref<288x256xbf16, #tpu.memory_space<vmem>>, vector<32x256xbf16>
    tpu.vector_store %arg6[%c256_233, %c0_234], %406 {strides = array<i32>} : memref<288x256xbf16, #tpu.memory_space<vmem>>, vector<32x256xbf16>,
    %c6 = arith.constant 6 : index
    %c0_235 = arith.constant 0 : index
    %c0_236 = arith.constant 0 : index
    %408 = vector.load %arg2[%c6, %c0_235, %c0_236] : memref<13x32x288xbf16, #tpu.memory_space<vmem>>, vector<1x32x288xbf16>
    %409 = vector.shape_cast %408 : vector<1x32x288xbf16> to vector<32x288xbf16>
    %c0_237 = arith.constant 0 : index
    %c0_238 = arith.constant 0 : index
    %410 = vector.load %arg6[%c0_237, %c0_238] : memref<288x256xbf16, #tpu.memory_space<vmem>>, vector<288x256xbf16>
    %cst_239 = arith.constant dense<0.000000e+00> : vector<32x256xf32>
    %411 = tpu.matmul %409, %410, %cst_239 {dimension_numbers = #tpu.dot_dimension_numbers<[1], [0], [0], [1], [0, 0, 1, 1], [], []>} : vector<32x288xbf16>, vector<288x256xbf16>, vector<32x256xf32> -> vector<32x256xf32>
    %c6_240 = arith.constant 6 : index
    %c0_241 = arith.constant 0 : index
    %c0_242 = arith.constant 0 : index
    %412 = vector.load %arg3[%c6_240, %c0_241, %c0_242] : memref<13x32x1xf32, #tpu.memory_space<vmem>>, vector<1x32x1xf32>
    %413 = vector.shape_cast %412 : vector<1x32x1xf32> to vector<32x1xf32>
    %414 = vector.broadcast %413 : vector<32x1xf32> to vector<32x256xf32>
    %415 = arith.addf %411, %414 : vector<32x256xf32>
    %416 = arith.addf %313, %415 : vector<32x256xf32>
    %c17_i32_243 = arith.constant 17 : i32
    %417 = tpu.dynamic_rotate %416 by %c17_i32_243 dim 1 : vector<32x256xf32>, i32 -> vector<32x256xf32>
    %418 = vector.broadcast %49 : vector<1x256xf32> to vector<32x256xf32>
    %419 = arith.mulf %417, %418 : vector<32x256xf32>
    %420 = arith.truncf %419 : vector<32x256xf32> to vector<32x256xbf16>
    %c0_244 = arith.constant 0 : index
    %c0_245 = arith.constant 0 : index
    %421 = vector.load %arg6[%c0_244, %c0_245] : memref<288x256xbf16, #tpu.memory_space<vmem>>, vector<32x256xbf16>
    tpu.vector_store %arg6[%c0_244, %c0_245], %420 {strides = array<i32>} : memref<288x256xbf16, #tpu.memory_space<vmem>>, vector<32x256xbf16>,
    %c16_i32_246 = arith.constant 16 : i32
    %422 = tpu.dynamic_rotate %416 by %c16_i32_246 dim 1 : vector<32x256xf32>, i32 -> vector<32x256xf32>
    %423 = vector.broadcast %36 : vector<1x256xf32> to vector<32x256xf32>
    %424 = arith.mulf %422, %423 : vector<32x256xf32>
    %425 = arith.truncf %424 : vector<32x256xf32> to vector<32x256xbf16>
    %c32_247 = arith.constant 32 : index
    %c0_248 = arith.constant 0 : index
    %426 = vector.load %arg6[%c32_247, %c0_248] : memref<288x256xbf16, #tpu.memory_space<vmem>>, vector<32x256xbf16>
    tpu.vector_store %arg6[%c32_247, %c0_248], %425 {strides = array<i32>} : memref<288x256xbf16, #tpu.memory_space<vmem>>, vector<32x256xbf16>,
    %c15_i32_249 = arith.constant 15 : i32
    %427 = tpu.dynamic_rotate %416 by %c15_i32_249 dim 1 : vector<32x256xf32>, i32 -> vector<32x256xf32>
    %428 = vector.broadcast %50 : vector<1x256xf32> to vector<32x256xf32>
    %429 = arith.mulf %427, %428 : vector<32x256xf32>
    %430 = arith.truncf %429 : vector<32x256xf32> to vector<32x256xbf16>
    %c64_250 = arith.constant 64 : index
    %c0_251 = arith.constant 0 : index
    %431 = vector.load %arg6[%c64_250, %c0_251] : memref<288x256xbf16, #tpu.memory_space<vmem>>, vector<32x256xbf16>
    tpu.vector_store %arg6[%c64_250, %c0_251], %430 {strides = array<i32>} : memref<288x256xbf16, #tpu.memory_space<vmem>>, vector<32x256xbf16>,
    %c1_i32_252 = arith.constant 1 : i32
    %432 = tpu.dynamic_rotate %416 by %c1_i32_252 dim 1 : vector<32x256xf32>, i32 -> vector<32x256xf32>
    %433 = vector.broadcast %44 : vector<1x256xf32> to vector<32x256xf32>
    %434 = arith.mulf %432, %433 : vector<32x256xf32>
    %435 = arith.truncf %434 : vector<32x256xf32> to vector<32x256xbf16>
    %c96_253 = arith.constant 96 : index
    %c0_254 = arith.constant 0 : index
    %436 = vector.load %arg6[%c96_253, %c0_254] : memref<288x256xbf16, #tpu.memory_space<vmem>>, vector<32x256xbf16>
    tpu.vector_store %arg6[%c96_253, %c0_254], %435 {strides = array<i32>} : memref<288x256xbf16, #tpu.memory_space<vmem>>, vector<32x256xbf16>,
    %437 = arith.truncf %416 : vector<32x256xf32> to vector<32x256xbf16>
    %c128_255 = arith.constant 128 : index
    %c0_256 = arith.constant 0 : index
    %438 = vector.load %arg6[%c128_255, %c0_256] : memref<288x256xbf16, #tpu.memory_space<vmem>>, vector<32x256xbf16>
    tpu.vector_store %arg6[%c128_255, %c0_256], %437 {strides = array<i32>} : memref<288x256xbf16, #tpu.memory_space<vmem>>, vector<32x256xbf16>,
    %c255_i32_257 = arith.constant 255 : i32
    %439 = tpu.dynamic_rotate %416 by %c255_i32_257 dim 1 : vector<32x256xf32>, i32 -> vector<32x256xf32>
    %440 = vector.broadcast %48 : vector<1x256xf32> to vector<32x256xf32>
    %441 = arith.mulf %439, %440 : vector<32x256xf32>
    %442 = arith.truncf %441 : vector<32x256xf32> to vector<32x256xbf16>
    %c160_258 = arith.constant 160 : index
    %c0_259 = arith.constant 0 : index
    %443 = vector.load %arg6[%c160_258, %c0_259] : memref<288x256xbf16, #tpu.memory_space<vmem>>, vector<32x256xbf16>
    tpu.vector_store %arg6[%c160_258, %c0_259], %442 {strides = array<i32>} : memref<288x256xbf16, #tpu.memory_space<vmem>>, vector<32x256xbf16>,
    %c241_i32_260 = arith.constant 241 : i32
    %444 = tpu.dynamic_rotate %416 by %c241_i32_260 dim 1 : vector<32x256xf32>, i32 -> vector<32x256xf32>
    %445 = vector.broadcast %51 : vector<1x256xf32> to vector<32x256xf32>
    %446 = arith.mulf %444, %445 : vector<32x256xf32>
    %447 = arith.truncf %446 : vector<32x256xf32> to vector<32x256xbf16>
    %c192_261 = arith.constant 192 : index
    %c0_262 = arith.constant 0 : index
    %448 = vector.load %arg6[%c192_261, %c0_262] : memref<288x256xbf16, #tpu.memory_space<vmem>>, vector<32x256xbf16>
    tpu.vector_store %arg6[%c192_261, %c0_262], %447 {strides = array<i32>} : memref<288x256xbf16, #tpu.memory_space<vmem>>, vector<32x256xbf16>,
    %c240_i32_263 = arith.constant 240 : i32
    %449 = tpu.dynamic_rotate %416 by %c240_i32_263 dim 1 : vector<32x256xf32>, i32 -> vector<32x256xf32>
    %450 = vector.broadcast %40 : vector<1x256xf32> to vector<32x256xf32>
    %451 = arith.mulf %449, %450 : vector<32x256xf32>
    %452 = arith.truncf %451 : vector<32x256xf32> to vector<32x256xbf16>
    %c224_264 = arith.constant 224 : index
    %c0_265 = arith.constant 0 : index
    %453 = vector.load %arg6[%c224_264, %c0_265] : memref<288x256xbf16, #tpu.memory_space<vmem>>, vector<32x256xbf16>
    tpu.vector_store %arg6[%c224_264, %c0_265], %452 {strides = array<i32>} : memref<288x256xbf16, #tpu.memory_space<vmem>>, vector<32x256xbf16>,
    %c239_i32_266 = arith.constant 239 : i32
    %454 = tpu.dynamic_rotate %416 by %c239_i32_266 dim 1 : vector<32x256xf32>, i32 -> vector<32x256xf32>
    %455 = vector.broadcast %52 : vector<1x256xf32> to vector<32x256xf32>
    %456 = arith.mulf %454, %455 : vector<32x256xf32>
    %457 = arith.truncf %456 : vector<32x256xf32> to vector<32x256xbf16>
    %c256_267 = arith.constant 256 : index
    %c0_268 = arith.constant 0 : index
    %458 = vector.load %arg6[%c256_267, %c0_268] : memref<288x256xbf16, #tpu.memory_space<vmem>>, vector<32x256xbf16>
    tpu.vector_store %arg6[%c256_267, %c0_268], %457 {strides = array<i32>} : memref<288x256xbf16, #tpu.memory_space<vmem>>, vector<32x256xbf16>,
    %c7 = arith.constant 7 : index
    %c0_269 = arith.constant 0 : index
    %c0_270 = arith.constant 0 : index
    %459 = vector.load %arg2[%c7, %c0_269, %c0_270] : memref<13x32x288xbf16, #tpu.memory_space<vmem>>, vector<1x32x288xbf16>
    %460 = vector.shape_cast %459 : vector<1x32x288xbf16> to vector<32x288xbf16>
    %c0_271 = arith.constant 0 : index
    %c0_272 = arith.constant 0 : index
    %461 = vector.load %arg6[%c0_271, %c0_272] : memref<288x256xbf16, #tpu.memory_space<vmem>>, vector<288x256xbf16>
    %cst_273 = arith.constant dense<0.000000e+00> : vector<32x256xf32>
    %462 = tpu.matmul %460, %461, %cst_273 {dimension_numbers = #tpu.dot_dimension_numbers<[1], [0], [0], [1], [0, 0, 1, 1], [], []>} : vector<32x288xbf16>, vector<288x256xbf16>, vector<32x256xf32> -> vector<32x256xf32>
    %c7_274 = arith.constant 7 : index
    %c0_275 = arith.constant 0 : index
    %c0_276 = arith.constant 0 : index
    %463 = vector.load %arg3[%c7_274, %c0_275, %c0_276] : memref<13x32x1xf32, #tpu.memory_space<vmem>>, vector<1x32x1xf32>
    %464 = vector.shape_cast %463 : vector<1x32x1xf32> to vector<32x1xf32>
    %465 = vector.broadcast %464 : vector<32x1xf32> to vector<32x256xf32>
    %466 = arith.addf %462, %465 : vector<32x256xf32>
    %cst_277 = arith.constant 0.000000e+00 : f32
    %467 = vector.broadcast %cst_277 : f32 to vector<32x256xf32>
    %468 = arith.maximumf %466, %467 : vector<32x256xf32>
    %c17_i32_278 = arith.constant 17 : i32
    %469 = tpu.dynamic_rotate %468 by %c17_i32_278 dim 1 : vector<32x256xf32>, i32 -> vector<32x256xf32>
    %470 = vector.broadcast %49 : vector<1x256xf32> to vector<32x256xf32>
    %471 = arith.mulf %469, %470 : vector<32x256xf32>
    %472 = arith.truncf %471 : vector<32x256xf32> to vector<32x256xbf16>
    %c0_279 = arith.constant 0 : index
    %c0_280 = arith.constant 0 : index
    %473 = vector.load %arg6[%c0_279, %c0_280] : memref<288x256xbf16, #tpu.memory_space<vmem>>, vector<32x256xbf16>
    tpu.vector_store %arg6[%c0_279, %c0_280], %472 {strides = array<i32>} : memref<288x256xbf16, #tpu.memory_space<vmem>>, vector<32x256xbf16>,
    %c16_i32_281 = arith.constant 16 : i32
    %474 = tpu.dynamic_rotate %468 by %c16_i32_281 dim 1 : vector<32x256xf32>, i32 -> vector<32x256xf32>
    %475 = vector.broadcast %36 : vector<1x256xf32> to vector<32x256xf32>
    %476 = arith.mulf %474, %475 : vector<32x256xf32>
    %477 = arith.truncf %476 : vector<32x256xf32> to vector<32x256xbf16>
    %c32_282 = arith.constant 32 : index
    %c0_283 = arith.constant 0 : index
    %478 = vector.load %arg6[%c32_282, %c0_283] : memref<288x256xbf16, #tpu.memory_space<vmem>>, vector<32x256xbf16>
    tpu.vector_store %arg6[%c32_282, %c0_283], %477 {strides = array<i32>} : memref<288x256xbf16, #tpu.memory_space<vmem>>, vector<32x256xbf16>,
    %c15_i32_284 = arith.constant 15 : i32
    %479 = tpu.dynamic_rotate %468 by %c15_i32_284 dim 1 : vector<32x256xf32>, i32 -> vector<32x256xf32>
    %480 = vector.broadcast %50 : vector<1x256xf32> to vector<32x256xf32>
    %481 = arith.mulf %479, %480 : vector<32x256xf32>
    %482 = arith.truncf %481 : vector<32x256xf32> to vector<32x256xbf16>
    %c64_285 = arith.constant 64 : index
    %c0_286 = arith.constant 0 : index
    %483 = vector.load %arg6[%c64_285, %c0_286] : memref<288x256xbf16, #tpu.memory_space<vmem>>, vector<32x256xbf16>
    tpu.vector_store %arg6[%c64_285, %c0_286], %482 {strides = array<i32>} : memref<288x256xbf16, #tpu.memory_space<vmem>>, vector<32x256xbf16>,
    %c1_i32_287 = arith.constant 1 : i32
    %484 = tpu.dynamic_rotate %468 by %c1_i32_287 dim 1 : vector<32x256xf32>, i32 -> vector<32x256xf32>
    %485 = vector.broadcast %44 : vector<1x256xf32> to vector<32x256xf32>
    %486 = arith.mulf %484, %485 : vector<32x256xf32>
    %487 = arith.truncf %486 : vector<32x256xf32> to vector<32x256xbf16>
    %c96_288 = arith.constant 96 : index
    %c0_289 = arith.constant 0 : index
    %488 = vector.load %arg6[%c96_288, %c0_289] : memref<288x256xbf16, #tpu.memory_space<vmem>>, vector<32x256xbf16>
    tpu.vector_store %arg6[%c96_288, %c0_289], %487 {strides = array<i32>} : memref<288x256xbf16, #tpu.memory_space<vmem>>, vector<32x256xbf16>,
    %489 = arith.truncf %468 : vector<32x256xf32> to vector<32x256xbf16>
    %c128_290 = arith.constant 128 : index
    %c0_291 = arith.constant 0 : index
    %490 = vector.load %arg6[%c128_290, %c0_291] : memref<288x256xbf16, #tpu.memory_space<vmem>>, vector<32x256xbf16>
    tpu.vector_store %arg6[%c128_290, %c0_291], %489 {strides = array<i32>} : memref<288x256xbf16, #tpu.memory_space<vmem>>, vector<32x256xbf16>,
    %c255_i32_292 = arith.constant 255 : i32
    %491 = tpu.dynamic_rotate %468 by %c255_i32_292 dim 1 : vector<32x256xf32>, i32 -> vector<32x256xf32>
    %492 = vector.broadcast %48 : vector<1x256xf32> to vector<32x256xf32>
    %493 = arith.mulf %491, %492 : vector<32x256xf32>
    %494 = arith.truncf %493 : vector<32x256xf32> to vector<32x256xbf16>
    %c160_293 = arith.constant 160 : index
    %c0_294 = arith.constant 0 : index
    %495 = vector.load %arg6[%c160_293, %c0_294] : memref<288x256xbf16, #tpu.memory_space<vmem>>, vector<32x256xbf16>
    tpu.vector_store %arg6[%c160_293, %c0_294], %494 {strides = array<i32>} : memref<288x256xbf16, #tpu.memory_space<vmem>>, vector<32x256xbf16>,
    %c241_i32_295 = arith.constant 241 : i32
    %496 = tpu.dynamic_rotate %468 by %c241_i32_295 dim 1 : vector<32x256xf32>, i32 -> vector<32x256xf32>
    %497 = vector.broadcast %51 : vector<1x256xf32> to vector<32x256xf32>
    %498 = arith.mulf %496, %497 : vector<32x256xf32>
    %499 = arith.truncf %498 : vector<32x256xf32> to vector<32x256xbf16>
    %c192_296 = arith.constant 192 : index
    %c0_297 = arith.constant 0 : index
    %500 = vector.load %arg6[%c192_296, %c0_297] : memref<288x256xbf16, #tpu.memory_space<vmem>>, vector<32x256xbf16>
    tpu.vector_store %arg6[%c192_296, %c0_297], %499 {strides = array<i32>} : memref<288x256xbf16, #tpu.memory_space<vmem>>, vector<32x256xbf16>,
    %c240_i32_298 = arith.constant 240 : i32
    %501 = tpu.dynamic_rotate %468 by %c240_i32_298 dim 1 : vector<32x256xf32>, i32 -> vector<32x256xf32>
    %502 = vector.broadcast %40 : vector<1x256xf32> to vector<32x256xf32>
    %503 = arith.mulf %501, %502 : vector<32x256xf32>
    %504 = arith.truncf %503 : vector<32x256xf32> to vector<32x256xbf16>
    %c224_299 = arith.constant 224 : index
    %c0_300 = arith.constant 0 : index
    %505 = vector.load %arg6[%c224_299, %c0_300] : memref<288x256xbf16, #tpu.memory_space<vmem>>, vector<32x256xbf16>
    tpu.vector_store %arg6[%c224_299, %c0_300], %504 {strides = array<i32>} : memref<288x256xbf16, #tpu.memory_space<vmem>>, vector<32x256xbf16>,
    %c239_i32_301 = arith.constant 239 : i32
    %506 = tpu.dynamic_rotate %468 by %c239_i32_301 dim 1 : vector<32x256xf32>, i32 -> vector<32x256xf32>
    %507 = vector.broadcast %52 : vector<1x256xf32> to vector<32x256xf32>
    %508 = arith.mulf %506, %507 : vector<32x256xf32>
    %509 = arith.truncf %508 : vector<32x256xf32> to vector<32x256xbf16>
    %c256_302 = arith.constant 256 : index
    %c0_303 = arith.constant 0 : index
    %510 = vector.load %arg6[%c256_302, %c0_303] : memref<288x256xbf16, #tpu.memory_space<vmem>>, vector<32x256xbf16>
    tpu.vector_store %arg6[%c256_302, %c0_303], %509 {strides = array<i32>} : memref<288x256xbf16, #tpu.memory_space<vmem>>, vector<32x256xbf16>,
    %c8 = arith.constant 8 : index
    %c0_304 = arith.constant 0 : index
    %c0_305 = arith.constant 0 : index
    %511 = vector.load %arg2[%c8, %c0_304, %c0_305] : memref<13x32x288xbf16, #tpu.memory_space<vmem>>, vector<1x32x288xbf16>
    %512 = vector.shape_cast %511 : vector<1x32x288xbf16> to vector<32x288xbf16>
    %c0_306 = arith.constant 0 : index
    %c0_307 = arith.constant 0 : index
    %513 = vector.load %arg6[%c0_306, %c0_307] : memref<288x256xbf16, #tpu.memory_space<vmem>>, vector<288x256xbf16>
    %cst_308 = arith.constant dense<0.000000e+00> : vector<32x256xf32>
    %514 = tpu.matmul %512, %513, %cst_308 {dimension_numbers = #tpu.dot_dimension_numbers<[1], [0], [0], [1], [0, 0, 1, 1], [], []>} : vector<32x288xbf16>, vector<288x256xbf16>, vector<32x256xf32> -> vector<32x256xf32>
    %c8_309 = arith.constant 8 : index
    %c0_310 = arith.constant 0 : index
    %c0_311 = arith.constant 0 : index
    %515 = vector.load %arg3[%c8_309, %c0_310, %c0_311] : memref<13x32x1xf32, #tpu.memory_space<vmem>>, vector<1x32x1xf32>
    %516 = vector.shape_cast %515 : vector<1x32x1xf32> to vector<32x1xf32>
    %517 = vector.broadcast %516 : vector<32x1xf32> to vector<32x256xf32>
    %518 = arith.addf %514, %517 : vector<32x256xf32>
    %519 = arith.addf %416, %518 : vector<32x256xf32>
    %c17_i32_312 = arith.constant 17 : i32
    %520 = tpu.dynamic_rotate %519 by %c17_i32_312 dim 1 : vector<32x256xf32>, i32 -> vector<32x256xf32>
    %521 = vector.broadcast %49 : vector<1x256xf32> to vector<32x256xf32>
    %522 = arith.mulf %520, %521 : vector<32x256xf32>
    %523 = arith.truncf %522 : vector<32x256xf32> to vector<32x256xbf16>
    %c0_313 = arith.constant 0 : index
    %c0_314 = arith.constant 0 : index
    %524 = vector.load %arg6[%c0_313, %c0_314] : memref<288x256xbf16, #tpu.memory_space<vmem>>, vector<32x256xbf16>
    tpu.vector_store %arg6[%c0_313, %c0_314], %523 {strides = array<i32>} : memref<288x256xbf16, #tpu.memory_space<vmem>>, vector<32x256xbf16>,
    %c16_i32_315 = arith.constant 16 : i32
    %525 = tpu.dynamic_rotate %519 by %c16_i32_315 dim 1 : vector<32x256xf32>, i32 -> vector<32x256xf32>
    %526 = vector.broadcast %36 : vector<1x256xf32> to vector<32x256xf32>
    %527 = arith.mulf %525, %526 : vector<32x256xf32>
    %528 = arith.truncf %527 : vector<32x256xf32> to vector<32x256xbf16>
    %c32_316 = arith.constant 32 : index
    %c0_317 = arith.constant 0 : index
    %529 = vector.load %arg6[%c32_316, %c0_317] : memref<288x256xbf16, #tpu.memory_space<vmem>>, vector<32x256xbf16>
    tpu.vector_store %arg6[%c32_316, %c0_317], %528 {strides = array<i32>} : memref<288x256xbf16, #tpu.memory_space<vmem>>, vector<32x256xbf16>,
    %c15_i32_318 = arith.constant 15 : i32
    %530 = tpu.dynamic_rotate %519 by %c15_i32_318 dim 1 : vector<32x256xf32>, i32 -> vector<32x256xf32>
    %531 = vector.broadcast %50 : vector<1x256xf32> to vector<32x256xf32>
    %532 = arith.mulf %530, %531 : vector<32x256xf32>
    %533 = arith.truncf %532 : vector<32x256xf32> to vector<32x256xbf16>
    %c64_319 = arith.constant 64 : index
    %c0_320 = arith.constant 0 : index
    %534 = vector.load %arg6[%c64_319, %c0_320] : memref<288x256xbf16, #tpu.memory_space<vmem>>, vector<32x256xbf16>
    tpu.vector_store %arg6[%c64_319, %c0_320], %533 {strides = array<i32>} : memref<288x256xbf16, #tpu.memory_space<vmem>>, vector<32x256xbf16>,
    %c1_i32_321 = arith.constant 1 : i32
    %535 = tpu.dynamic_rotate %519 by %c1_i32_321 dim 1 : vector<32x256xf32>, i32 -> vector<32x256xf32>
    %536 = vector.broadcast %44 : vector<1x256xf32> to vector<32x256xf32>
    %537 = arith.mulf %535, %536 : vector<32x256xf32>
    %538 = arith.truncf %537 : vector<32x256xf32> to vector<32x256xbf16>
    %c96_322 = arith.constant 96 : index
    %c0_323 = arith.constant 0 : index
    %539 = vector.load %arg6[%c96_322, %c0_323] : memref<288x256xbf16, #tpu.memory_space<vmem>>, vector<32x256xbf16>
    tpu.vector_store %arg6[%c96_322, %c0_323], %538 {strides = array<i32>} : memref<288x256xbf16, #tpu.memory_space<vmem>>, vector<32x256xbf16>,
    %540 = arith.truncf %519 : vector<32x256xf32> to vector<32x256xbf16>
    %c128_324 = arith.constant 128 : index
    %c0_325 = arith.constant 0 : index
    %541 = vector.load %arg6[%c128_324, %c0_325] : memref<288x256xbf16, #tpu.memory_space<vmem>>, vector<32x256xbf16>
    tpu.vector_store %arg6[%c128_324, %c0_325], %540 {strides = array<i32>} : memref<288x256xbf16, #tpu.memory_space<vmem>>, vector<32x256xbf16>,
    %c255_i32_326 = arith.constant 255 : i32
    %542 = tpu.dynamic_rotate %519 by %c255_i32_326 dim 1 : vector<32x256xf32>, i32 -> vector<32x256xf32>
    %543 = vector.broadcast %48 : vector<1x256xf32> to vector<32x256xf32>
    %544 = arith.mulf %542, %543 : vector<32x256xf32>
    %545 = arith.truncf %544 : vector<32x256xf32> to vector<32x256xbf16>
    %c160_327 = arith.constant 160 : index
    %c0_328 = arith.constant 0 : index
    %546 = vector.load %arg6[%c160_327, %c0_328] : memref<288x256xbf16, #tpu.memory_space<vmem>>, vector<32x256xbf16>
    tpu.vector_store %arg6[%c160_327, %c0_328], %545 {strides = array<i32>} : memref<288x256xbf16, #tpu.memory_space<vmem>>, vector<32x256xbf16>,
    %c241_i32_329 = arith.constant 241 : i32
    %547 = tpu.dynamic_rotate %519 by %c241_i32_329 dim 1 : vector<32x256xf32>, i32 -> vector<32x256xf32>
    %548 = vector.broadcast %51 : vector<1x256xf32> to vector<32x256xf32>
    %549 = arith.mulf %547, %548 : vector<32x256xf32>
    %550 = arith.truncf %549 : vector<32x256xf32> to vector<32x256xbf16>
    %c192_330 = arith.constant 192 : index
    %c0_331 = arith.constant 0 : index
    %551 = vector.load %arg6[%c192_330, %c0_331] : memref<288x256xbf16, #tpu.memory_space<vmem>>, vector<32x256xbf16>
    tpu.vector_store %arg6[%c192_330, %c0_331], %550 {strides = array<i32>} : memref<288x256xbf16, #tpu.memory_space<vmem>>, vector<32x256xbf16>,
    %c240_i32_332 = arith.constant 240 : i32
    %552 = tpu.dynamic_rotate %519 by %c240_i32_332 dim 1 : vector<32x256xf32>, i32 -> vector<32x256xf32>
    %553 = vector.broadcast %40 : vector<1x256xf32> to vector<32x256xf32>
    %554 = arith.mulf %552, %553 : vector<32x256xf32>
    %555 = arith.truncf %554 : vector<32x256xf32> to vector<32x256xbf16>
    %c224_333 = arith.constant 224 : index
    %c0_334 = arith.constant 0 : index
    %556 = vector.load %arg6[%c224_333, %c0_334] : memref<288x256xbf16, #tpu.memory_space<vmem>>, vector<32x256xbf16>
    tpu.vector_store %arg6[%c224_333, %c0_334], %555 {strides = array<i32>} : memref<288x256xbf16, #tpu.memory_space<vmem>>, vector<32x256xbf16>,
    %c239_i32_335 = arith.constant 239 : i32
    %557 = tpu.dynamic_rotate %519 by %c239_i32_335 dim 1 : vector<32x256xf32>, i32 -> vector<32x256xf32>
    %558 = vector.broadcast %52 : vector<1x256xf32> to vector<32x256xf32>
    %559 = arith.mulf %557, %558 : vector<32x256xf32>
    %560 = arith.truncf %559 : vector<32x256xf32> to vector<32x256xbf16>
    %c256_336 = arith.constant 256 : index
    %c0_337 = arith.constant 0 : index
    %561 = vector.load %arg6[%c256_336, %c0_337] : memref<288x256xbf16, #tpu.memory_space<vmem>>, vector<32x256xbf16>
    tpu.vector_store %arg6[%c256_336, %c0_337], %560 {strides = array<i32>} : memref<288x256xbf16, #tpu.memory_space<vmem>>, vector<32x256xbf16>,
    %c9 = arith.constant 9 : index
    %c0_338 = arith.constant 0 : index
    %c0_339 = arith.constant 0 : index
    %562 = vector.load %arg2[%c9, %c0_338, %c0_339] : memref<13x32x288xbf16, #tpu.memory_space<vmem>>, vector<1x32x288xbf16>
    %563 = vector.shape_cast %562 : vector<1x32x288xbf16> to vector<32x288xbf16>
    %c0_340 = arith.constant 0 : index
    %c0_341 = arith.constant 0 : index
    %564 = vector.load %arg6[%c0_340, %c0_341] : memref<288x256xbf16, #tpu.memory_space<vmem>>, vector<288x256xbf16>
    %cst_342 = arith.constant dense<0.000000e+00> : vector<32x256xf32>
    %565 = tpu.matmul %563, %564, %cst_342 {dimension_numbers = #tpu.dot_dimension_numbers<[1], [0], [0], [1], [0, 0, 1, 1], [], []>} : vector<32x288xbf16>, vector<288x256xbf16>, vector<32x256xf32> -> vector<32x256xf32>
    %c9_343 = arith.constant 9 : index
    %c0_344 = arith.constant 0 : index
    %c0_345 = arith.constant 0 : index
    %566 = vector.load %arg3[%c9_343, %c0_344, %c0_345] : memref<13x32x1xf32, #tpu.memory_space<vmem>>, vector<1x32x1xf32>
    %567 = vector.shape_cast %566 : vector<1x32x1xf32> to vector<32x1xf32>
    %568 = vector.broadcast %567 : vector<32x1xf32> to vector<32x256xf32>
    %569 = arith.addf %565, %568 : vector<32x256xf32>
    %cst_346 = arith.constant 0.000000e+00 : f32
    %570 = vector.broadcast %cst_346 : f32 to vector<32x256xf32>
    %571 = arith.maximumf %569, %570 : vector<32x256xf32>
    %c17_i32_347 = arith.constant 17 : i32
    %572 = tpu.dynamic_rotate %571 by %c17_i32_347 dim 1 : vector<32x256xf32>, i32 -> vector<32x256xf32>
    %573 = vector.broadcast %49 : vector<1x256xf32> to vector<32x256xf32>
    %574 = arith.mulf %572, %573 : vector<32x256xf32>
    %575 = arith.truncf %574 : vector<32x256xf32> to vector<32x256xbf16>
    %c0_348 = arith.constant 0 : index
    %c0_349 = arith.constant 0 : index
    %576 = vector.load %arg6[%c0_348, %c0_349] : memref<288x256xbf16, #tpu.memory_space<vmem>>, vector<32x256xbf16>
    tpu.vector_store %arg6[%c0_348, %c0_349], %575 {strides = array<i32>} : memref<288x256xbf16, #tpu.memory_space<vmem>>, vector<32x256xbf16>,
    %c16_i32_350 = arith.constant 16 : i32
    %577 = tpu.dynamic_rotate %571 by %c16_i32_350 dim 1 : vector<32x256xf32>, i32 -> vector<32x256xf32>
    %578 = vector.broadcast %36 : vector<1x256xf32> to vector<32x256xf32>
    %579 = arith.mulf %577, %578 : vector<32x256xf32>
    %580 = arith.truncf %579 : vector<32x256xf32> to vector<32x256xbf16>
    %c32_351 = arith.constant 32 : index
    %c0_352 = arith.constant 0 : index
    %581 = vector.load %arg6[%c32_351, %c0_352] : memref<288x256xbf16, #tpu.memory_space<vmem>>, vector<32x256xbf16>
    tpu.vector_store %arg6[%c32_351, %c0_352], %580 {strides = array<i32>} : memref<288x256xbf16, #tpu.memory_space<vmem>>, vector<32x256xbf16>,
    %c15_i32_353 = arith.constant 15 : i32
    %582 = tpu.dynamic_rotate %571 by %c15_i32_353 dim 1 : vector<32x256xf32>, i32 -> vector<32x256xf32>
    %583 = vector.broadcast %50 : vector<1x256xf32> to vector<32x256xf32>
    %584 = arith.mulf %582, %583 : vector<32x256xf32>
    %585 = arith.truncf %584 : vector<32x256xf32> to vector<32x256xbf16>
    %c64_354 = arith.constant 64 : index
    %c0_355 = arith.constant 0 : index
    %586 = vector.load %arg6[%c64_354, %c0_355] : memref<288x256xbf16, #tpu.memory_space<vmem>>, vector<32x256xbf16>
    tpu.vector_store %arg6[%c64_354, %c0_355], %585 {strides = array<i32>} : memref<288x256xbf16, #tpu.memory_space<vmem>>, vector<32x256xbf16>,
    %c1_i32_356 = arith.constant 1 : i32
    %587 = tpu.dynamic_rotate %571 by %c1_i32_356 dim 1 : vector<32x256xf32>, i32 -> vector<32x256xf32>
    %588 = vector.broadcast %44 : vector<1x256xf32> to vector<32x256xf32>
    %589 = arith.mulf %587, %588 : vector<32x256xf32>
    %590 = arith.truncf %589 : vector<32x256xf32> to vector<32x256xbf16>
    %c96_357 = arith.constant 96 : index
    %c0_358 = arith.constant 0 : index
    %591 = vector.load %arg6[%c96_357, %c0_358] : memref<288x256xbf16, #tpu.memory_space<vmem>>, vector<32x256xbf16>
    tpu.vector_store %arg6[%c96_357, %c0_358], %590 {strides = array<i32>} : memref<288x256xbf16, #tpu.memory_space<vmem>>, vector<32x256xbf16>,
    %592 = arith.truncf %571 : vector<32x256xf32> to vector<32x256xbf16>
    %c128_359 = arith.constant 128 : index
    %c0_360 = arith.constant 0 : index
    %593 = vector.load %arg6[%c128_359, %c0_360] : memref<288x256xbf16, #tpu.memory_space<vmem>>, vector<32x256xbf16>
    tpu.vector_store %arg6[%c128_359, %c0_360], %592 {strides = array<i32>} : memref<288x256xbf16, #tpu.memory_space<vmem>>, vector<32x256xbf16>,
    %c255_i32_361 = arith.constant 255 : i32
    %594 = tpu.dynamic_rotate %571 by %c255_i32_361 dim 1 : vector<32x256xf32>, i32 -> vector<32x256xf32>
    %595 = vector.broadcast %48 : vector<1x256xf32> to vector<32x256xf32>
    %596 = arith.mulf %594, %595 : vector<32x256xf32>
    %597 = arith.truncf %596 : vector<32x256xf32> to vector<32x256xbf16>
    %c160_362 = arith.constant 160 : index
    %c0_363 = arith.constant 0 : index
    %598 = vector.load %arg6[%c160_362, %c0_363] : memref<288x256xbf16, #tpu.memory_space<vmem>>, vector<32x256xbf16>
    tpu.vector_store %arg6[%c160_362, %c0_363], %597 {strides = array<i32>} : memref<288x256xbf16, #tpu.memory_space<vmem>>, vector<32x256xbf16>,
    %c241_i32_364 = arith.constant 241 : i32
    %599 = tpu.dynamic_rotate %571 by %c241_i32_364 dim 1 : vector<32x256xf32>, i32 -> vector<32x256xf32>
    %600 = vector.broadcast %51 : vector<1x256xf32> to vector<32x256xf32>
    %601 = arith.mulf %599, %600 : vector<32x256xf32>
    %602 = arith.truncf %601 : vector<32x256xf32> to vector<32x256xbf16>
    %c192_365 = arith.constant 192 : index
    %c0_366 = arith.constant 0 : index
    %603 = vector.load %arg6[%c192_365, %c0_366] : memref<288x256xbf16, #tpu.memory_space<vmem>>, vector<32x256xbf16>
    tpu.vector_store %arg6[%c192_365, %c0_366], %602 {strides = array<i32>} : memref<288x256xbf16, #tpu.memory_space<vmem>>, vector<32x256xbf16>,
    %c240_i32_367 = arith.constant 240 : i32
    %604 = tpu.dynamic_rotate %571 by %c240_i32_367 dim 1 : vector<32x256xf32>, i32 -> vector<32x256xf32>
    %605 = vector.broadcast %40 : vector<1x256xf32> to vector<32x256xf32>
    %606 = arith.mulf %604, %605 : vector<32x256xf32>
    %607 = arith.truncf %606 : vector<32x256xf32> to vector<32x256xbf16>
    %c224_368 = arith.constant 224 : index
    %c0_369 = arith.constant 0 : index
    %608 = vector.load %arg6[%c224_368, %c0_369] : memref<288x256xbf16, #tpu.memory_space<vmem>>, vector<32x256xbf16>
    tpu.vector_store %arg6[%c224_368, %c0_369], %607 {strides = array<i32>} : memref<288x256xbf16, #tpu.memory_space<vmem>>, vector<32x256xbf16>,
    %c239_i32_370 = arith.constant 239 : i32
    %609 = tpu.dynamic_rotate %571 by %c239_i32_370 dim 1 : vector<32x256xf32>, i32 -> vector<32x256xf32>
    %610 = vector.broadcast %52 : vector<1x256xf32> to vector<32x256xf32>
    %611 = arith.mulf %609, %610 : vector<32x256xf32>
    %612 = arith.truncf %611 : vector<32x256xf32> to vector<32x256xbf16>
    %c256_371 = arith.constant 256 : index
    %c0_372 = arith.constant 0 : index
    %613 = vector.load %arg6[%c256_371, %c0_372] : memref<288x256xbf16, #tpu.memory_space<vmem>>, vector<32x256xbf16>
    tpu.vector_store %arg6[%c256_371, %c0_372], %612 {strides = array<i32>} : memref<288x256xbf16, #tpu.memory_space<vmem>>, vector<32x256xbf16>,
    %c10 = arith.constant 10 : index
    %c0_373 = arith.constant 0 : index
    %c0_374 = arith.constant 0 : index
    %614 = vector.load %arg2[%c10, %c0_373, %c0_374] : memref<13x32x288xbf16, #tpu.memory_space<vmem>>, vector<1x32x288xbf16>
    %615 = vector.shape_cast %614 : vector<1x32x288xbf16> to vector<32x288xbf16>
    %c0_375 = arith.constant 0 : index
    %c0_376 = arith.constant 0 : index
    %616 = vector.load %arg6[%c0_375, %c0_376] : memref<288x256xbf16, #tpu.memory_space<vmem>>, vector<288x256xbf16>
    %cst_377 = arith.constant dense<0.000000e+00> : vector<32x256xf32>
    %617 = tpu.matmul %615, %616, %cst_377 {dimension_numbers = #tpu.dot_dimension_numbers<[1], [0], [0], [1], [0, 0, 1, 1], [], []>} : vector<32x288xbf16>, vector<288x256xbf16>, vector<32x256xf32> -> vector<32x256xf32>
    %c10_378 = arith.constant 10 : index
    %c0_379 = arith.constant 0 : index
    %c0_380 = arith.constant 0 : index
    %618 = vector.load %arg3[%c10_378, %c0_379, %c0_380] : memref<13x32x1xf32, #tpu.memory_space<vmem>>, vector<1x32x1xf32>
    %619 = vector.shape_cast %618 : vector<1x32x1xf32> to vector<32x1xf32>
    %620 = vector.broadcast %619 : vector<32x1xf32> to vector<32x256xf32>
    %621 = arith.addf %617, %620 : vector<32x256xf32>
    %622 = arith.addf %519, %621 : vector<32x256xf32>
    %c0_381 = arith.constant 0 : index
    %c0_382 = arith.constant 0 : index
    %c0_383 = arith.constant 0 : index
    %c0_384 = arith.constant 0 : index
    %623 = vector.load %arg4[%c0_381, %c0_382, %c0_383, %c0_384] : memref<2x2x32x1xf32, #tpu.memory_space<vmem>>, vector<1x1x32x1xf32>
    %624 = vector.shape_cast %623 : vector<1x1x32x1xf32> to vector<32x1xf32>
    %625 = vector.broadcast %624 : vector<32x1xf32> to vector<32x256xf32>
    %626 = arith.mulf %622, %625 : vector<32x256xf32>
    %c0_385 = arith.constant 0 : index
    %c1_386 = arith.constant 1 : index
    %c0_387 = arith.constant 0 : index
    %c0_388 = arith.constant 0 : index
    %627 = vector.load %arg4[%c0_385, %c1_386, %c0_387, %c0_388] : memref<2x2x32x1xf32, #tpu.memory_space<vmem>>, vector<1x1x32x1xf32>
    %628 = vector.shape_cast %627 : vector<1x1x32x1xf32> to vector<32x1xf32>
    %629 = vector.broadcast %628 : vector<32x1xf32> to vector<32x256xf32>
    %630 = arith.addf %626, %629 : vector<32x256xf32>
    %c17_i32_389 = arith.constant 17 : i32
    %631 = tpu.dynamic_rotate %630 by %c17_i32_389 dim 1 : vector<32x256xf32>, i32 -> vector<32x256xf32>
    %632 = vector.broadcast %49 : vector<1x256xf32> to vector<32x256xf32>
    %633 = arith.mulf %631, %632 : vector<32x256xf32>
    %634 = arith.truncf %633 : vector<32x256xf32> to vector<32x256xbf16>
    %c0_390 = arith.constant 0 : index
    %c0_391 = arith.constant 0 : index
    %635 = vector.load %arg6[%c0_390, %c0_391] : memref<288x256xbf16, #tpu.memory_space<vmem>>, vector<32x256xbf16>
    tpu.vector_store %arg6[%c0_390, %c0_391], %634 {strides = array<i32>} : memref<288x256xbf16, #tpu.memory_space<vmem>>, vector<32x256xbf16>,
    %c16_i32_392 = arith.constant 16 : i32
    %636 = tpu.dynamic_rotate %630 by %c16_i32_392 dim 1 : vector<32x256xf32>, i32 -> vector<32x256xf32>
    %637 = vector.broadcast %36 : vector<1x256xf32> to vector<32x256xf32>
    %638 = arith.mulf %636, %637 : vector<32x256xf32>
    %639 = arith.truncf %638 : vector<32x256xf32> to vector<32x256xbf16>
    %c32_393 = arith.constant 32 : index
    %c0_394 = arith.constant 0 : index
    %640 = vector.load %arg6[%c32_393, %c0_394] : memref<288x256xbf16, #tpu.memory_space<vmem>>, vector<32x256xbf16>
    tpu.vector_store %arg6[%c32_393, %c0_394], %639 {strides = array<i32>} : memref<288x256xbf16, #tpu.memory_space<vmem>>, vector<32x256xbf16>,
    %c15_i32_395 = arith.constant 15 : i32
    %641 = tpu.dynamic_rotate %630 by %c15_i32_395 dim 1 : vector<32x256xf32>, i32 -> vector<32x256xf32>
    %642 = vector.broadcast %50 : vector<1x256xf32> to vector<32x256xf32>
    %643 = arith.mulf %641, %642 : vector<32x256xf32>
    %644 = arith.truncf %643 : vector<32x256xf32> to vector<32x256xbf16>
    %c64_396 = arith.constant 64 : index
    %c0_397 = arith.constant 0 : index
    %645 = vector.load %arg6[%c64_396, %c0_397] : memref<288x256xbf16, #tpu.memory_space<vmem>>, vector<32x256xbf16>
    tpu.vector_store %arg6[%c64_396, %c0_397], %644 {strides = array<i32>} : memref<288x256xbf16, #tpu.memory_space<vmem>>, vector<32x256xbf16>,
    %c1_i32_398 = arith.constant 1 : i32
    %646 = tpu.dynamic_rotate %630 by %c1_i32_398 dim 1 : vector<32x256xf32>, i32 -> vector<32x256xf32>
    %647 = vector.broadcast %44 : vector<1x256xf32> to vector<32x256xf32>
    %648 = arith.mulf %646, %647 : vector<32x256xf32>
    %649 = arith.truncf %648 : vector<32x256xf32> to vector<32x256xbf16>
    %c96_399 = arith.constant 96 : index
    %c0_400 = arith.constant 0 : index
    %650 = vector.load %arg6[%c96_399, %c0_400] : memref<288x256xbf16, #tpu.memory_space<vmem>>, vector<32x256xbf16>
    tpu.vector_store %arg6[%c96_399, %c0_400], %649 {strides = array<i32>} : memref<288x256xbf16, #tpu.memory_space<vmem>>, vector<32x256xbf16>,
    %651 = arith.truncf %630 : vector<32x256xf32> to vector<32x256xbf16>
    %c128_401 = arith.constant 128 : index
    %c0_402 = arith.constant 0 : index
    %652 = vector.load %arg6[%c128_401, %c0_402] : memref<288x256xbf16, #tpu.memory_space<vmem>>, vector<32x256xbf16>
    tpu.vector_store %arg6[%c128_401, %c0_402], %651 {strides = array<i32>} : memref<288x256xbf16, #tpu.memory_space<vmem>>, vector<32x256xbf16>,
    %c255_i32_403 = arith.constant 255 : i32
    %653 = tpu.dynamic_rotate %630 by %c255_i32_403 dim 1 : vector<32x256xf32>, i32 -> vector<32x256xf32>
    %654 = vector.broadcast %48 : vector<1x256xf32> to vector<32x256xf32>
    %655 = arith.mulf %653, %654 : vector<32x256xf32>
    %656 = arith.truncf %655 : vector<32x256xf32> to vector<32x256xbf16>
    %c160_404 = arith.constant 160 : index
    %c0_405 = arith.constant 0 : index
    %657 = vector.load %arg6[%c160_404, %c0_405] : memref<288x256xbf16, #tpu.memory_space<vmem>>, vector<32x256xbf16>
    tpu.vector_store %arg6[%c160_404, %c0_405], %656 {strides = array<i32>} : memref<288x256xbf16, #tpu.memory_space<vmem>>, vector<32x256xbf16>,
    %c241_i32_406 = arith.constant 241 : i32
    %658 = tpu.dynamic_rotate %630 by %c241_i32_406 dim 1 : vector<32x256xf32>, i32 -> vector<32x256xf32>
    %659 = vector.broadcast %51 : vector<1x256xf32> to vector<32x256xf32>
    %660 = arith.mulf %658, %659 : vector<32x256xf32>
    %661 = arith.truncf %660 : vector<32x256xf32> to vector<32x256xbf16>
    %c192_407 = arith.constant 192 : index
    %c0_408 = arith.constant 0 : index
    %662 = vector.load %arg6[%c192_407, %c0_408] : memref<288x256xbf16, #tpu.memory_space<vmem>>, vector<32x256xbf16>
    tpu.vector_store %arg6[%c192_407, %c0_408], %661 {strides = array<i32>} : memref<288x256xbf16, #tpu.memory_space<vmem>>, vector<32x256xbf16>,
    %c240_i32_409 = arith.constant 240 : i32
    %663 = tpu.dynamic_rotate %630 by %c240_i32_409 dim 1 : vector<32x256xf32>, i32 -> vector<32x256xf32>
    %664 = vector.broadcast %40 : vector<1x256xf32> to vector<32x256xf32>
    %665 = arith.mulf %663, %664 : vector<32x256xf32>
    %666 = arith.truncf %665 : vector<32x256xf32> to vector<32x256xbf16>
    %c224_410 = arith.constant 224 : index
    %c0_411 = arith.constant 0 : index
    %667 = vector.load %arg6[%c224_410, %c0_411] : memref<288x256xbf16, #tpu.memory_space<vmem>>, vector<32x256xbf16>
    tpu.vector_store %arg6[%c224_410, %c0_411], %666 {strides = array<i32>} : memref<288x256xbf16, #tpu.memory_space<vmem>>, vector<32x256xbf16>,
    %c239_i32_412 = arith.constant 239 : i32
    %668 = tpu.dynamic_rotate %630 by %c239_i32_412 dim 1 : vector<32x256xf32>, i32 -> vector<32x256xf32>
    %669 = vector.broadcast %52 : vector<1x256xf32> to vector<32x256xf32>
    %670 = arith.mulf %668, %669 : vector<32x256xf32>
    %671 = arith.truncf %670 : vector<32x256xf32> to vector<32x256xbf16>
    %c256_413 = arith.constant 256 : index
    %c0_414 = arith.constant 0 : index
    %672 = vector.load %arg6[%c256_413, %c0_414] : memref<288x256xbf16, #tpu.memory_space<vmem>>, vector<32x256xbf16>
    tpu.vector_store %arg6[%c256_413, %c0_414], %671 {strides = array<i32>} : memref<288x256xbf16, #tpu.memory_space<vmem>>, vector<32x256xbf16>,
    %c11 = arith.constant 11 : index
    %c0_415 = arith.constant 0 : index
    %c0_416 = arith.constant 0 : index
    %673 = vector.load %arg2[%c11, %c0_415, %c0_416] : memref<13x32x288xbf16, #tpu.memory_space<vmem>>, vector<1x32x288xbf16>
    %674 = vector.shape_cast %673 : vector<1x32x288xbf16> to vector<32x288xbf16>
    %c0_417 = arith.constant 0 : index
    %c0_418 = arith.constant 0 : index
    %675 = vector.load %arg6[%c0_417, %c0_418] : memref<288x256xbf16, #tpu.memory_space<vmem>>, vector<288x256xbf16>
    %cst_419 = arith.constant dense<0.000000e+00> : vector<32x256xf32>
    %676 = tpu.matmul %674, %675, %cst_419 {dimension_numbers = #tpu.dot_dimension_numbers<[1], [0], [0], [1], [0, 0, 1, 1], [], []>} : vector<32x288xbf16>, vector<288x256xbf16>, vector<32x256xf32> -> vector<32x256xf32>
    %c11_420 = arith.constant 11 : index
    %c0_421 = arith.constant 0 : index
    %c0_422 = arith.constant 0 : index
    %677 = vector.load %arg3[%c11_420, %c0_421, %c0_422] : memref<13x32x1xf32, #tpu.memory_space<vmem>>, vector<1x32x1xf32>
    %678 = vector.shape_cast %677 : vector<1x32x1xf32> to vector<32x1xf32>
    %679 = vector.broadcast %678 : vector<32x1xf32> to vector<32x256xf32>
    %680 = arith.addf %676, %679 : vector<32x256xf32>
    %cst_423 = arith.constant 0.000000e+00 : f32
    %681 = vector.broadcast %cst_423 : f32 to vector<32x256xf32>
    %682 = arith.maximumf %680, %681 : vector<32x256xf32>
    %c1_424 = arith.constant 1 : index
    %c0_425 = arith.constant 0 : index
    %c0_426 = arith.constant 0 : index
    %c0_427 = arith.constant 0 : index
    %683 = vector.load %arg4[%c1_424, %c0_425, %c0_426, %c0_427] : memref<2x2x32x1xf32, #tpu.memory_space<vmem>>, vector<1x1x32x1xf32>
    %684 = vector.shape_cast %683 : vector<1x1x32x1xf32> to vector<32x1xf32>
    %685 = vector.broadcast %684 : vector<32x1xf32> to vector<32x256xf32>
    %686 = arith.mulf %682, %685 : vector<32x256xf32>
    %c1_428 = arith.constant 1 : index
    %c1_429 = arith.constant 1 : index
    %c0_430 = arith.constant 0 : index
    %c0_431 = arith.constant 0 : index
    %687 = vector.load %arg4[%c1_428, %c1_429, %c0_430, %c0_431] : memref<2x2x32x1xf32, #tpu.memory_space<vmem>>, vector<1x1x32x1xf32>
    %688 = vector.shape_cast %687 : vector<1x1x32x1xf32> to vector<32x1xf32>
    %689 = vector.broadcast %688 : vector<32x1xf32> to vector<32x256xf32>
    %690 = arith.addf %686, %689 : vector<32x256xf32>
    %c17_i32_432 = arith.constant 17 : i32
    %691 = tpu.dynamic_rotate %690 by %c17_i32_432 dim 1 : vector<32x256xf32>, i32 -> vector<32x256xf32>
    %692 = vector.broadcast %49 : vector<1x256xf32> to vector<32x256xf32>
    %693 = arith.mulf %691, %692 : vector<32x256xf32>
    %694 = arith.truncf %693 : vector<32x256xf32> to vector<32x256xbf16>
    %c0_433 = arith.constant 0 : index
    %c0_434 = arith.constant 0 : index
    %695 = vector.load %arg6[%c0_433, %c0_434] : memref<288x256xbf16, #tpu.memory_space<vmem>>, vector<32x256xbf16>
    tpu.vector_store %arg6[%c0_433, %c0_434], %694 {strides = array<i32>} : memref<288x256xbf16, #tpu.memory_space<vmem>>, vector<32x256xbf16>,
    %c16_i32_435 = arith.constant 16 : i32
    %696 = tpu.dynamic_rotate %690 by %c16_i32_435 dim 1 : vector<32x256xf32>, i32 -> vector<32x256xf32>
    %697 = vector.broadcast %36 : vector<1x256xf32> to vector<32x256xf32>
    %698 = arith.mulf %696, %697 : vector<32x256xf32>
    %699 = arith.truncf %698 : vector<32x256xf32> to vector<32x256xbf16>
    %c32_436 = arith.constant 32 : index
    %c0_437 = arith.constant 0 : index
    %700 = vector.load %arg6[%c32_436, %c0_437] : memref<288x256xbf16, #tpu.memory_space<vmem>>, vector<32x256xbf16>
    tpu.vector_store %arg6[%c32_436, %c0_437], %699 {strides = array<i32>} : memref<288x256xbf16, #tpu.memory_space<vmem>>, vector<32x256xbf16>,
    %c15_i32_438 = arith.constant 15 : i32
    %701 = tpu.dynamic_rotate %690 by %c15_i32_438 dim 1 : vector<32x256xf32>, i32 -> vector<32x256xf32>
    %702 = vector.broadcast %50 : vector<1x256xf32> to vector<32x256xf32>
    %703 = arith.mulf %701, %702 : vector<32x256xf32>
    %704 = arith.truncf %703 : vector<32x256xf32> to vector<32x256xbf16>
    %c64_439 = arith.constant 64 : index
    %c0_440 = arith.constant 0 : index
    %705 = vector.load %arg6[%c64_439, %c0_440] : memref<288x256xbf16, #tpu.memory_space<vmem>>, vector<32x256xbf16>
    tpu.vector_store %arg6[%c64_439, %c0_440], %704 {strides = array<i32>} : memref<288x256xbf16, #tpu.memory_space<vmem>>, vector<32x256xbf16>,
    %c1_i32_441 = arith.constant 1 : i32
    %706 = tpu.dynamic_rotate %690 by %c1_i32_441 dim 1 : vector<32x256xf32>, i32 -> vector<32x256xf32>
    %707 = vector.broadcast %44 : vector<1x256xf32> to vector<32x256xf32>
    %708 = arith.mulf %706, %707 : vector<32x256xf32>
    %709 = arith.truncf %708 : vector<32x256xf32> to vector<32x256xbf16>
    %c96_442 = arith.constant 96 : index
    %c0_443 = arith.constant 0 : index
    %710 = vector.load %arg6[%c96_442, %c0_443] : memref<288x256xbf16, #tpu.memory_space<vmem>>, vector<32x256xbf16>
    tpu.vector_store %arg6[%c96_442, %c0_443], %709 {strides = array<i32>} : memref<288x256xbf16, #tpu.memory_space<vmem>>, vector<32x256xbf16>,
    %711 = arith.truncf %690 : vector<32x256xf32> to vector<32x256xbf16>
    %c128_444 = arith.constant 128 : index
    %c0_445 = arith.constant 0 : index
    %712 = vector.load %arg6[%c128_444, %c0_445] : memref<288x256xbf16, #tpu.memory_space<vmem>>, vector<32x256xbf16>
    tpu.vector_store %arg6[%c128_444, %c0_445], %711 {strides = array<i32>} : memref<288x256xbf16, #tpu.memory_space<vmem>>, vector<32x256xbf16>,
    %c255_i32_446 = arith.constant 255 : i32
    %713 = tpu.dynamic_rotate %690 by %c255_i32_446 dim 1 : vector<32x256xf32>, i32 -> vector<32x256xf32>
    %714 = vector.broadcast %48 : vector<1x256xf32> to vector<32x256xf32>
    %715 = arith.mulf %713, %714 : vector<32x256xf32>
    %716 = arith.truncf %715 : vector<32x256xf32> to vector<32x256xbf16>
    %c160_447 = arith.constant 160 : index
    %c0_448 = arith.constant 0 : index
    %717 = vector.load %arg6[%c160_447, %c0_448] : memref<288x256xbf16, #tpu.memory_space<vmem>>, vector<32x256xbf16>
    tpu.vector_store %arg6[%c160_447, %c0_448], %716 {strides = array<i32>} : memref<288x256xbf16, #tpu.memory_space<vmem>>, vector<32x256xbf16>,
    %c241_i32_449 = arith.constant 241 : i32
    %718 = tpu.dynamic_rotate %690 by %c241_i32_449 dim 1 : vector<32x256xf32>, i32 -> vector<32x256xf32>
    %719 = vector.broadcast %51 : vector<1x256xf32> to vector<32x256xf32>
    %720 = arith.mulf %718, %719 : vector<32x256xf32>
    %721 = arith.truncf %720 : vector<32x256xf32> to vector<32x256xbf16>
    %c192_450 = arith.constant 192 : index
    %c0_451 = arith.constant 0 : index
    %722 = vector.load %arg6[%c192_450, %c0_451] : memref<288x256xbf16, #tpu.memory_space<vmem>>, vector<32x256xbf16>
    tpu.vector_store %arg6[%c192_450, %c0_451], %721 {strides = array<i32>} : memref<288x256xbf16, #tpu.memory_space<vmem>>, vector<32x256xbf16>,
    %c240_i32_452 = arith.constant 240 : i32
    %723 = tpu.dynamic_rotate %690 by %c240_i32_452 dim 1 : vector<32x256xf32>, i32 -> vector<32x256xf32>
    %724 = vector.broadcast %40 : vector<1x256xf32> to vector<32x256xf32>
    %725 = arith.mulf %723, %724 : vector<32x256xf32>
    %726 = arith.truncf %725 : vector<32x256xf32> to vector<32x256xbf16>
    %c224_453 = arith.constant 224 : index
    %c0_454 = arith.constant 0 : index
    %727 = vector.load %arg6[%c224_453, %c0_454] : memref<288x256xbf16, #tpu.memory_space<vmem>>, vector<32x256xbf16>
    tpu.vector_store %arg6[%c224_453, %c0_454], %726 {strides = array<i32>} : memref<288x256xbf16, #tpu.memory_space<vmem>>, vector<32x256xbf16>,
    %c239_i32_455 = arith.constant 239 : i32
    %728 = tpu.dynamic_rotate %690 by %c239_i32_455 dim 1 : vector<32x256xf32>, i32 -> vector<32x256xf32>
    %729 = vector.broadcast %52 : vector<1x256xf32> to vector<32x256xf32>
    %730 = arith.mulf %728, %729 : vector<32x256xf32>
    %731 = arith.truncf %730 : vector<32x256xf32> to vector<32x256xbf16>
    %c256_456 = arith.constant 256 : index
    %c0_457 = arith.constant 0 : index
    %732 = vector.load %arg6[%c256_456, %c0_457] : memref<288x256xbf16, #tpu.memory_space<vmem>>, vector<32x256xbf16>
    tpu.vector_store %arg6[%c256_456, %c0_457], %731 {strides = array<i32>} : memref<288x256xbf16, #tpu.memory_space<vmem>>, vector<32x256xbf16>,
    %c12 = arith.constant 12 : index
    %c0_458 = arith.constant 0 : index
    %c0_459 = arith.constant 0 : index
    %733 = vector.load %arg2[%c12, %c0_458, %c0_459] : memref<13x32x288xbf16, #tpu.memory_space<vmem>>, vector<1x32x288xbf16>
    %734 = vector.shape_cast %733 : vector<1x32x288xbf16> to vector<32x288xbf16>
    %c0_460 = arith.constant 0 : index
    %c0_461 = arith.constant 0 : index
    %735 = vector.load %arg6[%c0_460, %c0_461] : memref<288x256xbf16, #tpu.memory_space<vmem>>, vector<288x256xbf16>
    %cst_462 = arith.constant dense<0.000000e+00> : vector<32x256xf32>
    %736 = tpu.matmul %734, %735, %cst_462 {dimension_numbers = #tpu.dot_dimension_numbers<[1], [0], [0], [1], [0, 0, 1, 1], [], []>} : vector<32x288xbf16>, vector<288x256xbf16>, vector<32x256xf32> -> vector<32x256xf32>
    %c12_463 = arith.constant 12 : index
    %c0_464 = arith.constant 0 : index
    %c0_465 = arith.constant 0 : index
    %737 = vector.load %arg3[%c12_463, %c0_464, %c0_465] : memref<13x32x1xf32, #tpu.memory_space<vmem>>, vector<1x32x1xf32>
    %738 = vector.shape_cast %737 : vector<1x32x1xf32> to vector<32x1xf32>
    %739 = vector.broadcast %738 : vector<32x1xf32> to vector<32x256xf32>
    %740 = arith.addf %736, %739 : vector<32x256xf32>
    %741 = vector.extract_strided_slice %740 {offsets = [28, 0], sizes = [4, 256], strides = [1, 1]} : vector<32x256xf32> to vector<4x256xf32>
    %cst_466 = arith.constant -1.000000e+02 : f32
    %cst_467 = arith.constant 1.000000e+02 : f32
    %742 = vector.broadcast %cst_466 : f32 to vector<4x256xf32>
    %743 = arith.maximumf %742, %741 : vector<4x256xf32>
    %744 = vector.broadcast %cst_467 : f32 to vector<4x256xf32>
    %745 = arith.minimumf %744, %743 : vector<4x256xf32>
    %746 = math.absf %745 : vector<4x256xf32>
    %cst_468 = arith.constant 0.000000e+00 : f32
    %747 = vector.broadcast %cst_468 : f32 to vector<4x256xf32>
    %748 = arith.subf %747, %746 : vector<4x256xf32>
    %749 = math.exp %748 : vector<4x256xf32>
    %cst_469 = arith.constant 1.000000e+00 : f32
    %750 = vector.broadcast %cst_469 : f32 to vector<4x256xf32>
    %751 = arith.addf %750, %749 : vector<4x256xf32>
    %cst_470 = arith.constant 1.000000e+00 : f32
    %752 = vector.broadcast %cst_470 : f32 to vector<4x256xf32>
    %753 = arith.divf %752, %751 : vector<4x256xf32>
    %cst_471 = arith.constant 0.000000e+00 : f32
    %754 = vector.broadcast %cst_471 : f32 to vector<4x256xf32>
    %755 = arith.cmpf oge, %745, %754 : vector<4x256xf32>
    %756 = arith.mulf %749, %753 : vector<4x256xf32>
    %757 = arith.select %755, %753, %756 : vector<4x256xi1>, vector<4x256xf32>
    %758 = vector.extract_strided_slice %740 {offsets = [12, 0], sizes = [8, 256], strides = [1, 1]} : vector<32x256xf32> to vector<8x256xf32>
    %cst_472 = arith.constant dense<0xFF800000> : vector<256xf32>
    %759 = vector.multi_reduction <maximumf>, %758, %cst_472 [0] : vector<8x256xf32> to vector<256xf32>
    %760 = vector.shape_cast %759 : vector<256xf32> to vector<1x256xf32>
    %761 = vector.broadcast %760 : vector<1x256xf32> to vector<8x256xf32>
    %762 = arith.subf %758, %761 : vector<8x256xf32>
    %763 = math.exp %762 : vector<8x256xf32>
    %cst_473 = arith.constant dense<0.000000e+00> : vector<256xf32>
    %764 = vector.multi_reduction <add>, %763, %cst_473 [0] : vector<8x256xf32> to vector<256xf32>
    %765 = vector.shape_cast %764 : vector<256xf32> to vector<1x256xf32>
    %766 = vector.broadcast %765 : vector<1x256xf32> to vector<8x256xf32>
    %767 = arith.divf %763, %766 : vector<8x256xf32>
    %768 = vector.extract_strided_slice %740 {offsets = [20, 0], sizes = [8, 256], strides = [1, 1]} : vector<32x256xf32> to vector<8x256xf32>
    %cst_474 = arith.constant dense<0xFF800000> : vector<256xf32>
    %769 = vector.multi_reduction <maximumf>, %768, %cst_474 [0] : vector<8x256xf32> to vector<256xf32>
    %770 = vector.shape_cast %769 : vector<256xf32> to vector<1x256xf32>
    %771 = vector.broadcast %770 : vector<1x256xf32> to vector<8x256xf32>
    %772 = arith.subf %768, %771 : vector<8x256xf32>
    %773 = math.exp %772 : vector<8x256xf32>
    %cst_475 = arith.constant dense<0.000000e+00> : vector<256xf32>
    %774 = vector.multi_reduction <add>, %773, %cst_475 [0] : vector<8x256xf32> to vector<256xf32>
    %775 = vector.shape_cast %774 : vector<256xf32> to vector<1x256xf32>
    %776 = vector.broadcast %775 : vector<1x256xf32> to vector<8x256xf32>
    %777 = arith.divf %773, %776 : vector<8x256xf32>
    %778 = vector.extract_strided_slice %740 {offsets = [0, 0], sizes = [3, 256], strides = [1, 1]} : vector<32x256xf32> to vector<3x256xf32>
    %cst_476 = arith.constant dense<0xFF800000> : vector<256xf32>
    %779 = vector.multi_reduction <maximumf>, %778, %cst_476 [0] : vector<3x256xf32> to vector<256xf32>
    %780 = vector.shape_cast %779 : vector<256xf32> to vector<1x256xf32>
    %781 = vector.broadcast %780 : vector<1x256xf32> to vector<3x256xf32>
    %782 = arith.subf %778, %781 : vector<3x256xf32>
    %783 = math.exp %782 : vector<3x256xf32>
    %cst_477 = arith.constant dense<0.000000e+00> : vector<256xf32>
    %784 = vector.multi_reduction <add>, %783, %cst_477 [0] : vector<3x256xf32> to vector<256xf32>
    %785 = vector.shape_cast %784 : vector<256xf32> to vector<1x256xf32>
    %786 = vector.broadcast %785 : vector<1x256xf32> to vector<3x256xf32>
    %787 = arith.divf %783, %786 : vector<3x256xf32>
    %788 = vector.extract_strided_slice %740 {offsets = [3, 0], sizes = [3, 256], strides = [1, 1]} : vector<32x256xf32> to vector<3x256xf32>
    %cst_478 = arith.constant dense<0xFF800000> : vector<256xf32>
    %789 = vector.multi_reduction <maximumf>, %788, %cst_478 [0] : vector<3x256xf32> to vector<256xf32>
    %790 = vector.shape_cast %789 : vector<256xf32> to vector<1x256xf32>
    %791 = vector.broadcast %790 : vector<1x256xf32> to vector<3x256xf32>
    %792 = arith.subf %788, %791 : vector<3x256xf32>
    %793 = math.exp %792 : vector<3x256xf32>
    %cst_479 = arith.constant dense<0.000000e+00> : vector<256xf32>
    %794 = vector.multi_reduction <add>, %793, %cst_479 [0] : vector<3x256xf32> to vector<256xf32>
    %795 = vector.shape_cast %794 : vector<256xf32> to vector<1x256xf32>
    %796 = vector.broadcast %795 : vector<1x256xf32> to vector<3x256xf32>
    %797 = arith.divf %793, %796 : vector<3x256xf32>
    %798 = vector.extract_strided_slice %740 {offsets = [6, 0], sizes = [3, 256], strides = [1, 1]} : vector<32x256xf32> to vector<3x256xf32>
    %cst_480 = arith.constant dense<0xFF800000> : vector<256xf32>
    %799 = vector.multi_reduction <maximumf>, %798, %cst_480 [0] : vector<3x256xf32> to vector<256xf32>
    %800 = vector.shape_cast %799 : vector<256xf32> to vector<1x256xf32>
    %801 = vector.broadcast %800 : vector<1x256xf32> to vector<3x256xf32>
    %802 = arith.subf %798, %801 : vector<3x256xf32>
    %803 = math.exp %802 : vector<3x256xf32>
    %cst_481 = arith.constant dense<0.000000e+00> : vector<256xf32>
    %804 = vector.multi_reduction <add>, %803, %cst_481 [0] : vector<3x256xf32> to vector<256xf32>
    %805 = vector.shape_cast %804 : vector<256xf32> to vector<1x256xf32>
    %806 = vector.broadcast %805 : vector<1x256xf32> to vector<3x256xf32>
    %807 = arith.divf %803, %806 : vector<3x256xf32>
    %808 = vector.extract_strided_slice %740 {offsets = [9, 0], sizes = [3, 256], strides = [1, 1]} : vector<32x256xf32> to vector<3x256xf32>
    %cst_482 = arith.constant dense<0xFF800000> : vector<256xf32>
    %809 = vector.multi_reduction <maximumf>, %808, %cst_482 [0] : vector<3x256xf32> to vector<256xf32>
    %810 = vector.shape_cast %809 : vector<256xf32> to vector<1x256xf32>
    %811 = vector.broadcast %810 : vector<1x256xf32> to vector<3x256xf32>
    %812 = arith.subf %808, %811 : vector<3x256xf32>
    %813 = math.exp %812 : vector<3x256xf32>
    %cst_483 = arith.constant dense<0.000000e+00> : vector<256xf32>
    %814 = vector.multi_reduction <add>, %813, %cst_483 [0] : vector<3x256xf32> to vector<256xf32>
    %815 = vector.shape_cast %814 : vector<256xf32> to vector<1x256xf32>
    %816 = vector.broadcast %815 : vector<1x256xf32> to vector<3x256xf32>
    %817 = arith.divf %813, %816 : vector<3x256xf32>
    %818 = tpu.concatenate %757, %767, %777, %787, %797, %807, %817 in 0 : vector<4x256xf32>, vector<8x256xf32>, vector<8x256xf32>, vector<3x256xf32>, vector<3x256xf32>, vector<3x256xf32>, vector<3x256xf32> -> vector<32x256xf32>
    %c0_484 = arith.constant 0 : index
    %c0_485 = arith.constant 0 : index
    %c0_486 = arith.constant 0 : index
    %819 = vector.load %arg5[%c0_484, %c0_485, %c0_486] : memref<1x32x256xf32, #tpu.memory_space<vmem>>, vector<1x32x256xf32>
    %820 = vector.shape_cast %819 : vector<1x32x256xf32> to vector<32x256xf32>
    %821 = vector.shape_cast %818 : vector<32x256xf32> to vector<1x32x256xf32>
    tpu.vector_store %arg5[%c0_484, %c0_485, %c0_486], %821 {strides = array<i32>} : memref<1x32x256xf32, #tpu.memory_space<vmem>>, vector<1x32x256xf32>,
    return
  }
  func.func @transform_0(%arg0: i32) -> (i32, i32, i32) {
    %c0_i32 = arith.constant 0 : i32
    %c0_i32_0 = arith.constant 0 : i32
    %c0_i32_1 = arith.constant 0 : i32
    return %arg0, %c0_i32, %c0_i32_0 : i32, i32, i32
  }
  func.func @transform_1(%arg0: i32) -> (i32, i32, i32) {
    %c0_i32 = arith.constant 0 : i32
    %c0_i32_0 = arith.constant 0 : i32
    %c0_i32_1 = arith.constant 0 : i32
    %c0_i32_2 = arith.constant 0 : i32
    return %c0_i32, %c0_i32_0, %c0_i32_1 : i32, i32, i32
  }
  func.func @transform_2(%arg0: i32) -> (i32, i32, i32) {
    %c0_i32 = arith.constant 0 : i32
    %c0_i32_0 = arith.constant 0 : i32
    %c0_i32_1 = arith.constant 0 : i32
    %c0_i32_2 = arith.constant 0 : i32
    return %c0_i32, %c0_i32_0, %c0_i32_1 : i32, i32, i32
  }
  func.func @transform_3(%arg0: i32) -> (i32, i32, i32, i32) {
    %c0_i32 = arith.constant 0 : i32
    %c0_i32_0 = arith.constant 0 : i32
    %c0_i32_1 = arith.constant 0 : i32
    %c0_i32_2 = arith.constant 0 : i32
    %c0_i32_3 = arith.constant 0 : i32
    return %c0_i32, %c0_i32_0, %c0_i32_1, %c0_i32_2 : i32, i32, i32, i32
  }
  func.func @transform_4(%arg0: i32) -> (i32, i32, i32) {
    %c0_i32 = arith.constant 0 : i32
    %c0_i32_0 = arith.constant 0 : i32
    %c0_i32_1 = arith.constant 0 : i32
    return %arg0, %c0_i32, %c0_i32_0 : i32, i32, i32
  }
}

</mosaic_0001>

<bundles_post_ra>
// kernel: _lambda_.1
= control target key start
LH: loop header
LB: loop body
LE: loop exit
PB: predicated region body
PF: predicated region fallthrough
CT: control target
= control target key end

     0   :  { %s8721_s15 = smov 0   ;;  %s14800_s0 = inlined_call_operand.vmem [shape: f32[2,32,256], index: 0, kind: input, shape index: {}]   ;;  %s14801_s1 = inlined_call_operand.vmem [shape: bf16[13,32,288], index: 1, kind: input, shape index: {}]   ;;  %s14802_s2 = inlined_call_operand.vmem [shape: f32[13,32,1], index: 2, kind: input, shape index: {}]   ;;  %s14803_s3 = inlined_call_operand.vmem [shape: f32[2,2,32,1], index: 3, kind: input, shape index: {}]   ;;  %s14804_s4 = inlined_call_operand.vmem [shape: f32[2,32,256], index: 4, kind: output, shape index: {}]  }
   0x1 LB: > { %s7997_s16 = sadd.s32 4294967295, %s8684_s15   ;;  %p8001_p0 = scmp.ge.s32.totalorder %s8684_s15, 1  ;;  %s8684_s15 = sphi %s8721_s15, %s14_s15  }
   0x2   : > { %p162_p1 = scmp.lt.s32.totalorder %s8684_s15, 3 }
   0x4   : > { %p163_p2 = pnand %p8001_p0, %p162_p1 }
   0x6   : > { %166 = sbr.rel (%p163_p2) target bundleno = 6197 (0x1835), region = 36 }
   0xd   : > { %p188_p3 = scmp.lt.s32.totalorder %s7997_s16, 1  ;;  %s8686_s21 = smov 17   ;;  %v199_v8 = vlaneseq  ;;  %v8508_v14 = vld [vmem:[%s14801_s1 + $0x4] ss:$12 sps:$4 sm:$0xff]   ;;  %v8694_v15 = vmov 0.0   ;;  %v14805_v26 = vmov 0  }
   0xe   : > { %s8687_s22 = smov 16   ;;  %s8688_s23 = smov 15   ;;  %763 = vmatprep.mubr.bf16.mxu1 %v8508_v14  ;;  %816 = vmatprep.mubr.bf16.mxu0 %v14805_v26  ;;  %v671_v47 = vld [vmem:[%s14802_s2 + $0x8] sm:$0xff]  ;;  %v670_v48 = vld [vmem:[%s14802_s2] sm:$0xff]  ;;  %v672_v53 = vld [vmem:[%s14802_s2 + $0x10] sm:$0xff]  ;;  %vm724_vm14 = vcmask 261120  }
   0xf   : > { %s14817_s16 = smov (!%p188_p3, %s7997_s16), 1  ;;  %s8689_s24 = smov 1   ;;  %v8857_v9 = vand.u32 127, %v199_v8  ;;  %8505 = vset.pattern.permute.xlu1 %v14805_v26  ;;  %8504 = vset.pattern.permute.xlu0 %v14805_v26  ;;  %v673_v54 = vld [vmem:[%s14802_s2 + $0x18] sm:$0xff]  ;;  %vm7690_vm15 = vcmask 1042432  }
  0x10   : > { %s8276_s17 = sshll.u32 %s14817_s16, 6  ;;  %s8690_s25 = smov 127  }
  0x11   : > { %s192_s20 = scalar_lea.vmem %s14800_s0, %s8276_s17  ;;  %s8691_s26 = smov 113   ;;  %v8864_v10 = vadd.s32 128, %v8857_v9  ;;  %v230_v11 = vand.u32 15, %v8857_v9  ;;  %v206_v12 = vand.u32 255, %v8857_v9  ;;  %vm306_vm2 = vcmp.lt.s32.totalorder %v8857_v9, 17 }
  0x12   : > { %v8737_v0 = vld [vmem:[%s192_s20 + $0x8] sm:$0xff]  ;;  %v8739_v1 = vld [vmem:[%s192_s20] sm:$0xff]  ;;  %v8745_v2 = vld [vmem:[%s192_s20 + $0x18] sm:$0xff]  ;;  %s8692_s27 = smov 112   ;;  %s8693_s28 = smov 111   ;;  %vm347_vm4 = vcmp.lt.s32.totalorder %v8857_v9, 16 }
  0x13   : > { %298 = vrot.lane.b32.xlu1 %v8737_v0, %s8686_s21  ;;  %290 = vrot.lane.b32.xlu0 %v8739_v1, %s8686_s21  ;;  %v8747_v3 = vld [vmem:[%s192_s20 + $0x10] sm:$0xff]  ;;  %v8751_v5 = vld [vmem:[%s192_s20 + $0x20] sm:$0xff]  ;;  %v237_v13 = vand.u32 15, %v8864_v10  ;;  %vm262_vm0 = vcmp.ge.s32.totalorder %v230_v11, 1  ;;  %vm250_vm1 = vcmp.ge.s32.totalorder %v206_v12, 16  ;;  %vm268_vm5 = vcmp.lt.s32.totalorder %v230_v11, 15  ;;  %s14732_s30 = scalar_lea.vmem %s14804_s4, %s8276_s17 }
  0x14   : > { %v8749_v4 = vld [vmem:[%s192_s20 + $0x30] sm:$0xff]  ;;  %v8757_v6 = vld [vmem:[%s192_s20 + $0x38] sm:$0xff]  ;;  %v8759_v7 = vld [vmem:[%s192_s20 + $0x28] sm:$0xff]  ;;  %v8886_v16 = vsel %vm262_vm0, 1.0, %v8694_v15  ;;  %v8889_v17 = vsel %vm250_vm1, 1.0, %v8694_v15  ;;  %v8973_v11 = vsel %vm268_vm5, 1.0, %v8694_v15 }
  0x15   : > { %vm263_vm3 = vcmp.ge.s32.totalorder %v237_v13, 1  ;;  %v8902_v22 = vmul.f32 %v8886_v16, %v8889_v17  ;;  %vm269_vm6 = vcmp.lt.s32.totalorder %v237_v13, 15  ;;  %vm388_vm7 = vcmp.lt.s32.totalorder %v8857_v9, 15 }
  0x16   : > { %v8896_v20 = vsel %vm263_vm3, 1.0, %v8694_v15  ;;  %vm429_vm8 = vcmp.lt.s32.totalorder %v8857_v9, 1  ;;  %vm478_vm9 = vcmp.lt.s32.totalorder %v8857_v9, 127  ;;  %vm519_vm11 = vcmp.lt.s32.totalorder %v8857_v9, 113 }
  0x17   : > { %300 = vrot.lane.b32.xlu1 %v8745_v2, %s8686_s21  ;;  %292 = vrot.lane.b32.xlu0 %v8747_v3, %s8686_s21  ;;  %14811 = vst [vmem:[#allocation3_spill] sm:$0xff] %v8902_v22  ;;  %vm560_vm12 = vcmp.lt.s32.totalorder %v8857_v9, 112  ;;  %vm601_vm13 = vcmp.lt.s32.totalorder %v8857_v9, 111  ;;  %v8609_v9 = vld [vmem:[%s14801_s1 + $0x260] ss:$12 sps:$4 sm:$0xff]   ;;  %vm7729_vm0 = vcmask 1045507  }
  0x18   : > { %vm7774_vm1 = vcmask 1047558   ;;  %vm7839_vm3 = vcmask 1043457   ;;  %vm7570_vm5 = vcmask 1043456  }
  0x1b   : > { %296 = vrot.lane.b32.xlu1 %v8749_v4, %s8686_s21  ;;  %294 = vrot.lane.b32.xlu0 %v8751_v5, %s8686_s21 }
  0x1f   : > { %304 = vrot.lane.b32.xlu1 %v8757_v6, %s8686_s21  ;;  %302 = vrot.lane.b32.xlu0 %v8759_v7, %s8686_s21 }
  0x23   : > { %333 = vrot.lane.b32.xlu1 %v8747_v3, %s8687_s22  ;;  %331 = vrot.lane.b32.xlu0 %v8739_v1, %s8687_s22 }
  0x27   : > { %341 = vrot.lane.b32.xlu1 %v8745_v2, %s8687_s22  ;;  %339 = vrot.lane.b32.xlu0 %v8737_v0, %s8687_s22 }
  0x2b   : > { %337 = vrot.lane.b32.xlu1 %v8749_v4, %s8687_s22  ;;  %335 = vrot.lane.b32.xlu0 %v8751_v5, %s8687_s22 }
  0x2f   : > { %345 = vrot.lane.b32.xlu1 %v8757_v6, %s8687_s22  ;;  %343 = vrot.lane.b32.xlu0 %v8759_v7, %s8687_s22 }
  0x33   : > { %374 = vrot.lane.b32.xlu1 %v8747_v3, %s8688_s23  ;;  %372 = vrot.lane.b32.xlu0 %v8739_v1, %s8688_s23 }
  0x37   : > { %382 = vrot.lane.b32.xlu1 %v8745_v2, %s8688_s23  ;;  %380 = vrot.lane.b32.xlu0 %v8737_v0, %s8688_s23 }
  0x3b   : > { %378 = vrot.lane.b32.xlu1 %v8749_v4, %s8688_s23  ;;  %376 = vrot.lane.b32.xlu0 %v8751_v5, %s8688_s23 }
  0x3f   : > { %386 = vrot.lane.b32.xlu1 %v8757_v6, %s8688_s23  ;;  %384 = vrot.lane.b32.xlu0 %v8759_v7, %s8688_s23 }
  0x43   : > { %415 = vrot.lane.b32.xlu1 %v8747_v3, %s8689_s24  ;;  %413 = vrot.lane.b32.xlu0 %v8739_v1, %s8689_s24 }
  0x47   : > { %423 = vrot.lane.b32.xlu1 %v8745_v2, %s8689_s24  ;;  %421 = vrot.lane.b32.xlu0 %v8737_v0, %s8689_s24 }
  0x4b   : > { %419 = vrot.lane.b32.xlu1 %v8749_v4, %s8689_s24  ;;  %417 = vrot.lane.b32.xlu0 %v8751_v5, %s8689_s24 }
  0x4f   : > { %427 = vrot.lane.b32.xlu1 %v8757_v6, %s8689_s24  ;;  %425 = vrot.lane.b32.xlu0 %v8759_v7, %s8689_s24 }
  0x53   : > { %464 = vrot.lane.b32.xlu1 %v8747_v3, %s8690_s25  ;;  %462 = vrot.lane.b32.xlu0 %v8739_v1, %s8690_s25 }
  0x57   : > { %472 = vrot.lane.b32.xlu1 %v8745_v2, %s8690_s25  ;;  %470 = vrot.lane.b32.xlu0 %v8737_v0, %s8690_s25 }
  0x5b   : > { %468 = vrot.lane.b32.xlu1 %v8749_v4, %s8690_s25  ;;  %466 = vrot.lane.b32.xlu0 %v8751_v5, %s8690_s25 }
  0x5f   : > { %476 = vrot.lane.b32.xlu1 %v8757_v6, %s8690_s25  ;;  %474 = vrot.lane.b32.xlu0 %v8759_v7, %s8690_s25 }
  0x63   : > { %505 = vrot.lane.b32.xlu1 %v8747_v3, %s8691_s26  ;;  %503 = vrot.lane.b32.xlu0 %v8739_v1, %s8691_s26 }
  0x67   : > { %513 = vrot.lane.b32.xlu1 %v8745_v2, %s8691_s26  ;;  %511 = vrot.lane.b32.xlu0 %v8737_v0, %s8691_s26 }
  0x6b   : > { %509 = vrot.lane.b32.xlu1 %v8749_v4, %s8691_s26  ;;  %507 = vrot.lane.b32.xlu0 %v8751_v5, %s8691_s26 }
  0x6f   : > { %517 = vrot.lane.b32.xlu1 %v8757_v6, %s8691_s26  ;;  %515 = vrot.lane.b32.xlu0 %v8759_v7, %s8691_s26 }
  0x73   : > { %546 = vrot.lane.b32.xlu1 %v8747_v3, %s8692_s27  ;;  %544 = vrot.lane.b32.xlu0 %v8739_v1, %s8692_s27 }
  0x77   : > { %554 = vrot.lane.b32.xlu1 %v8745_v2, %s8692_s27  ;;  %552 = vrot.lane.b32.xlu0 %v8737_v0, %s8692_s27 }
  0x7b   : > { %587 = vrot.lane.b32.xlu1 %v8747_v3, %s8693_s28  ;;  %585 = vrot.lane.b32.xlu0 %v8739_v1, %s8693_s28 }
  0x7f   : > { %595 = vrot.lane.b32.xlu1 %v8745_v2, %s8693_s28  ;;  %593 = vrot.lane.b32.xlu0 %v8737_v0, %s8693_s28 }
  0x83   : > { %550 = vrot.lane.b32.xlu1 %v8749_v4, %s8692_s27  ;;  %548 = vrot.lane.b32.xlu0 %v8751_v5, %s8692_s27 }
  0x85   : > { %v299_v18 = vpop.permute.xlu1 %298  ;;  %v291_v19 = vpop.permute.xlu0 %290 }
  0x86   : > { %v307_v21 = vsel %vm306_vm2, %v291_v19, %v299_v18  ;;  %v311_v23 = vsel %vm306_vm2, %v299_v18, %v291_v19 }
  0x87   : > { %558 = vrot.lane.b32.xlu1 %v8757_v6, %s8692_s27  ;;  %556 = vrot.lane.b32.xlu0 %v8759_v7, %s8692_s27  ;;  %v316_v29 = vmul.f32 %v8896_v20, %v307_v21  ;;  %v315_v31 = vmul.f32 %v311_v23, %v8902_v22 }
  0x89   : > { %v301_v24 = vpop.permute.xlu1 %300  ;;  %v293_v25 = vpop.permute.xlu0 %292 }
  0x8a   : > { %v312_v27 = vsel %vm306_vm2, %v301_v24, %v293_v25  ;;  %v308_v28 = vsel %vm306_vm2, %v293_v25, %v301_v24 }
  0x8b   : > { %591 = vrot.lane.b32.xlu1 %v8749_v4, %s8693_s28  ;;  %589 = vrot.lane.b32.xlu0 %v8751_v5, %s8693_s28  ;;  %v318_v30 = vmul.f32 %v8896_v20, %v308_v28  ;;  %v317_v32 = vmul.f32 %v312_v27, %v8902_v22 }
  0x8d   : > { %v297_v33 = vpop.permute.xlu1 %296  ;;  %v295_v34 = vpop.permute.xlu0 %294  ;;  %v324_v35 = vpack.c.bf16 %v318_v30, %v316_v29  ;;  %v323_v36 = vpack.c.bf16 %v317_v32, %v315_v31 }
  0x8f   : > { %599 = vrot.lane.b32.xlu1 %v8757_v6, %s8693_s28  ;;  %597 = vrot.lane.b32.xlu0 %v8759_v7, %s8693_s28 }
  0x90   : > { %731 = vmatprep.subr.bf16.mxu1 %v324_v35 }
  0x91   : > { %732 = vmatpush1.bf16.msra.mxu1 %v323_v36  ;;  %v305_v37 = vpop.permute.xlu1 %304  ;;  %v303_v38 = vpop.permute.xlu0 %302 }
  0x92   : > { %v310_v39 = vsel %vm306_vm2, %v297_v33, %v305_v37  ;;  %v314_v40 = vsel %vm306_vm2, %v305_v37, %v297_v33  ;;  %v309_v41 = vsel %vm306_vm2, %v295_v34, %v303_v38  ;;  %v313_v42 = vsel %vm306_vm2, %v303_v38, %v295_v34 }
  0x93   : > { %v321_v43 = vmul.f32 %v314_v40, %v8902_v22  ;;  %v322_v44 = vmul.f32 %v8896_v20, %v310_v39  ;;  %v319_v45 = vmul.f32 %v313_v42, %v8902_v22  ;;  %v320_v46 = vmul.f32 %v8896_v20, %v309_v41  ;;  %681 = vperm.xlu1 %8505, %v671_v47  }
  0x94   : > { %676 = vperm.xlu0 %8504, %v670_v48   ;;  %v8979_v33 = vmul.f32 %v8973_v11, %v8889_v17  ;;  %v8983_v34 = vsel %vm269_vm6, 1.0, %v8694_v15  ;;  %vm7810_vm6 = vcmask 1041408  }
  0x95   : > { %v334_v49 = vpop.permute.xlu1 %333  ;;  %v332_v50 = vpop.permute.xlu0 %331  ;;  %v326_v51 = vpack.c.bf16 %v322_v44, %v320_v46  ;;  %v325_v52 = vpack.c.bf16 %v321_v43, %v319_v45 }
  0x97   : > { %733 = vmatprep.subr.bf16.mxu1 %v326_v51  ;;  %686 = vperm.xlu1 %8505, %v672_v53  }
  0x98   : > { %734 = vmatpush1.bf16.msra.mxu1 %v325_v52  ;;  %691 = vperm.xlu0 %8504, %v673_v54  }
  0x99   : > { %v342_v55 = vpop.permute.xlu1 %341  ;;  %v340_v56 = vpop.permute.xlu0 %339 }
  0x9a   : > { %v349_v57 = vsel %vm347_vm4, %v334_v49, %v342_v55  ;;  %v353_v58 = vsel %vm347_vm4, %v342_v55, %v334_v49  ;;  %v348_v59 = vsel %vm347_vm4, %v332_v50, %v340_v56  ;;  %v352_v60 = vsel %vm347_vm4, %v340_v56, %v332_v50 }
  0x9b   : > { %v358_v61 = vmul.f32 %v8889_v17, %v353_v58  ;;  %v356_v62 = vmul.f32 %v8889_v17, %v352_v60  ;;  %v365_v63 = vpack.c.bf16 %v349_v57, %v348_v59 }
  0x9d   : > { %v338_v8 = vpop.permute.xlu1 %337  ;;  %735 = vmatprep.subr.bf16.mxu1 %v365_v63  ;;  %v336_v12 = vpop.permute.xlu0 %335  ;;  %v364_v14 = vpack.c.bf16 %v358_v61, %v356_v62 }
  0x9f   : > { %736 = vmatpush1.bf16.msra.mxu1 %v364_v14 }
  0xa1   : > { %v346_v18 = vpop.permute.xlu1 %345  ;;  %v344_v19 = vpop.permute.xlu0 %343 }
  0xa2   : > { %v351_v21 = vsel %vm347_vm4, %v338_v8, %v346_v18  ;;  %v355_v23 = vsel %vm347_vm4, %v346_v18, %v338_v8  ;;  %v350_v24 = vsel %vm347_vm4, %v336_v12, %v344_v19  ;;  %v354_v25 = vsel %vm347_vm4, %v344_v19, %v336_v12 }
  0xa3   : > { %v362_v27 = vmul.f32 %v8889_v17, %v355_v23  ;;  %v360_v28 = vmul.f32 %v8889_v17, %v354_v25  ;;  %v367_v29 = vpack.c.bf16 %v351_v21, %v350_v24 }
  0xa5   : > { %v375_v30 = vpop.permute.xlu1 %374  ;;  %737 = vmatprep.subr.bf16.mxu1 %v367_v29  ;;  %v373_v31 = vpop.permute.xlu0 %372  ;;  %v366_v32 = vpack.c.bf16 %v362_v27, %v360_v28 }
  0xa7   : > { %738 = vmatpush1.bf16.msra.mxu1 %v366_v32 }
  0xa9   : > { %v383_v35 = vpop.permute.xlu1 %382  ;;  %v381_v36 = vpop.permute.xlu0 %380 }
  0xaa   : > { %v390_v37 = vsel %vm388_vm7, %v375_v30, %v383_v35  ;;  %v394_v38 = vsel %vm388_vm7, %v383_v35, %v375_v30  ;;  %v389_v13 = vsel %vm388_vm7, %v373_v31, %v381_v36  ;;  %v393_v39 = vsel %vm388_vm7, %v381_v36, %v373_v31 }
  0xab   : > { %v399_v40 = vmul.f32 %v394_v38, %v8979_v33  ;;  %v400_v41 = vmul.f32 %v8983_v34, %v390_v37  ;;  %v397_v42 = vmul.f32 %v393_v39, %v8979_v33  ;;  %v398_v43 = vmul.f32 %v8983_v34, %v389_v13 }
  0xad   : > { %v379_v44 = vpop.permute.xlu1 %378  ;;  %v377_v45 = vpop.permute.xlu0 %376  ;;  %v406_v46 = vpack.c.bf16 %v400_v41, %v398_v43  ;;  %v405_v47 = vpack.c.bf16 %v399_v40, %v397_v42 }
  0xaf   : > { %739 = vmatprep.subr.bf16.mxu1 %v406_v46  ;;  %v454_v46 = vpack.c.bf16 %v8747_v3, %v8739_v1 }
  0xb0   : > { %740 = vmatpush1.bf16.msra.mxu1 %v405_v47 }
  0xb1   : > { %v387_v48 = vpop.permute.xlu1 %386  ;;  %v385_v49 = vpop.permute.xlu0 %384 }
  0xb2   : > { %v392_v50 = vsel %vm388_vm7, %v379_v44, %v387_v48  ;;  %v396_v51 = vsel %vm388_vm7, %v387_v48, %v379_v44  ;;  %v391_v52 = vsel %vm388_vm7, %v377_v45, %v385_v49  ;;  %v395_v53 = vsel %vm388_vm7, %v385_v49, %v377_v45 }
  0xb3   : > { %v403_v54 = vmul.f32 %v396_v51, %v8979_v33  ;;  %v404_v55 = vmul.f32 %v8983_v34, %v392_v50  ;;  %v401_v56 = vmul.f32 %v395_v53, %v8979_v33  ;;  %v402_v57 = vmul.f32 %v8983_v34, %v391_v52 }
  0xb4   : > { %v455_v45 = vpack.c.bf16 %v8745_v2, %v8737_v0  ;;  %v457_v49 = vpack.c.bf16 %v8757_v6, %v8759_v7  ;;  %v456_v6 = vpack.c.bf16 %v8749_v4, %v8751_v5 }
  0xb5   : > { %v416_v58 = vpop.permute.xlu1 %415  ;;  %v414_v59 = vpop.permute.xlu0 %413  ;;  %v408_v60 = vpack.c.bf16 %v404_v55, %v402_v57  ;;  %v407_v61 = vpack.c.bf16 %v403_v54, %v401_v56  ;;  %v213_v55 = vand.u32 255, %v8864_v10 }
  0xb7   : > { %741 = vmatprep.subr.bf16.mxu1 %v408_v60  ;;  %vm257_vm10 = vcmp.lt.s32.totalorder %v213_v55, 240 }
  0xb8   : > { %742 = vmatpush1.bf16.msra.mxu1 %v407_v61 }
  0xb9   : > { %v424_v62 = vpop.permute.xlu1 %423  ;;  %v422_v63 = vpop.permute.xlu0 %421 }
  0xba   : > { %v431_v8 = vsel %vm429_vm8, %v416_v58, %v424_v62  ;;  %v435_v12 = vsel %vm429_vm8, %v424_v62, %v416_v58  ;;  %v430_v14 = vsel %vm429_vm8, %v414_v59, %v422_v63  ;;  %v434_v18 = vsel %vm429_vm8, %v422_v63, %v414_v59 }
  0xbb   : > { %v440_v19 = vmul.f32 %v8886_v16, %v435_v12  ;;  %v441_v21 = vmul.f32 %v8896_v20, %v431_v8  ;;  %v438_v23 = vmul.f32 %v8886_v16, %v434_v18  ;;  %v439_v24 = vmul.f32 %v8896_v20, %v430_v14 }
  0xbc   : > { %v9069_v12 = vsel %vm257_vm10, 1.0, %v8694_v15  ;;  %vm7926_vm10 = vcmask 1046528  }
  0xbd   : > { %v420_v25 = vpop.permute.xlu1 %419  ;;  %v418_v27 = vpop.permute.xlu0 %417  ;;  %v447_v28 = vpack.c.bf16 %v441_v21, %v439_v24  ;;  %v446_v29 = vpack.c.bf16 %v440_v19, %v438_v23  ;;  %v9073_v23 = vmul.f32 %v8896_v20, %v9069_v12 }
  0xbf   : > { %743 = vmatprep.subr.bf16.mxu1 %v447_v28 }
  0xc0   : > { %744 = vmatpush1.bf16.msra.mxu1 %v446_v29 }
  0xc1   : > { %v428_v30 = vpop.permute.xlu1 %427  ;;  %v426_v31 = vpop.permute.xlu0 %425 }
  0xc2   : > { %v433_v32 = vsel %vm429_vm8, %v420_v25, %v428_v30  ;;  %v437_v35 = vsel %vm429_vm8, %v428_v30, %v420_v25  ;;  %v432_v36 = vsel %vm429_vm8, %v418_v27, %v426_v31  ;;  %v436_v37 = vsel %vm429_vm8, %v426_v31, %v418_v27 }
  0xc3   : > { %v444_v38 = vmul.f32 %v8886_v16, %v437_v35  ;;  %v445_v13 = vmul.f32 %v8896_v20, %v433_v32  ;;  %v442_v39 = vmul.f32 %v8886_v16, %v436_v37  ;;  %v443_v40 = vmul.f32 %v8896_v20, %v432_v36 }
  0xc5   : > { %v465_v41 = vpop.permute.xlu1 %464  ;;  %v463_v42 = vpop.permute.xlu0 %462  ;;  %v449_v43 = vpack.c.bf16 %v445_v13, %v443_v40  ;;  %v448_v44 = vpack.c.bf16 %v444_v38, %v442_v39 }
  0xc7   : > { %745 = vmatprep.subr.bf16.mxu1 %v449_v43 }
  0xc8   : > { %746 = vmatpush1.bf16.msra.mxu1 %v448_v44 }
  0xc9   : > { %v473_v47 = vpop.permute.xlu1 %472  ;;  %v471_v48 = vpop.permute.xlu0 %470  ;;  %747 = vmatprep.subr.bf16.mxu1 %v455_v45 }
  0xca   : > { %v480_v50 = vsel %vm478_vm9, %v465_v41, %v473_v47  ;;  %v484_v51 = vsel %vm478_vm9, %v473_v47, %v465_v41  ;;  %v479_v0 = vsel %vm478_vm9, %v463_v42, %v471_v48  ;;  %v483_v2 = vsel %vm478_vm9, %v471_v48, %v463_v42 }
  0xcb   : > { %v490_v1 = vmul.f32 %v8983_v34, %v484_v51  ;;  %v488_v3 = vmul.f32 %v8983_v34, %v483_v2  ;;  %v489_v7 = vmul.f32 %v8973_v11, %v480_v50  ;;  %v487_v52 = vmul.f32 %v8973_v11, %v479_v0 }
  0xcc   : > { %748 = vmatpush1.bf16.msra.mxu1 %v454_v46 }
  0xcd   : > { %v469_v53 = vpop.permute.xlu1 %468  ;;  %v467_v54 = vpop.permute.xlu0 %466  ;;  %749 = vmatprep.subr.bf16.mxu1 %v457_v49  ;;  %v496_v56 = vpack.c.bf16 %v490_v1, %v488_v3  ;;  %v495_v59 = vpack.c.bf16 %v489_v7, %v487_v52 }
  0xd0   : > { %750 = vmatpush1.bf16.msra.mxu1 %v456_v6 }
  0xd1   : > { %v477_v57 = vpop.permute.xlu1 %476  ;;  %v475_v58 = vpop.permute.xlu0 %474  ;;  %751 = vmatprep.subr.bf16.mxu1 %v496_v56 }
  0xd2   : > { %v482_v60 = vsel %vm478_vm9, %v469_v53, %v477_v57  ;;  %v486_v4 = vsel %vm478_vm9, %v477_v57, %v469_v53  ;;  %v481_v5 = vsel %vm478_vm9, %v467_v54, %v475_v58  ;;  %v485_v61 = vsel %vm478_vm9, %v475_v58, %v467_v54 }
  0xd3   : > { %v493_v10 = vmul.f32 %v8973_v11, %v482_v60  ;;  %v494_v62 = vmul.f32 %v8983_v34, %v486_v4  ;;  %v491_v63 = vmul.f32 %v8973_v11, %v481_v5  ;;  %v492_v8 = vmul.f32 %v8983_v34, %v485_v61 }
  0xd4   : > { %752 = vmatpush1.bf16.msra.mxu1 %v495_v59  ;;  %v9114_v59 = vmul.f32 %v8983_v34, %v9069_v12 }
  0xd5   : > { %v506_v14 = vpop.permute.xlu1 %505  ;;  %v504_v18 = vpop.permute.xlu0 %503  ;;  %v498_v19 = vpack.c.bf16 %v494_v62, %v492_v8  ;;  %v497_v21 = vpack.c.bf16 %v493_v10, %v491_v63 }
  0xd7   : > { %753 = vmatprep.subr.bf16.mxu1 %v498_v19 }
  0xd8   : > { %754 = vmatpush1.bf16.msra.mxu1 %v497_v21 }
  0xd9   : > { %v514_v24 = vpop.permute.xlu1 %513  ;;  %v512_v25 = vpop.permute.xlu0 %511 }
  0xda   : > { %v521_v27 = vsel %vm519_vm11, %v506_v14, %v514_v24  ;;  %v525_v15 = vsel %vm519_vm11, %v514_v24, %v506_v14  ;;  %v520_v28 = vsel %vm519_vm11, %v504_v18, %v512_v25  ;;  %v524_v29 = vsel %vm519_vm11, %v512_v25, %v504_v18 }
  0xdb   : > { %v530_v30 = vmul.f32 %v8886_v16, %v521_v27  ;;  %v531_v31 = vmul.f32 %v525_v15, %v9073_v23  ;;  %v528_v32 = vmul.f32 %v8886_v16, %v520_v28  ;;  %v529_v35 = vmul.f32 %v524_v29, %v9073_v23 }
  0xdd   : > { %v510_v36 = vpop.permute.xlu1 %509  ;;  %v508_v37 = vpop.permute.xlu0 %507  ;;  %v537_v38 = vpack.c.bf16 %v531_v31, %v529_v35  ;;  %v536_v13 = vpack.c.bf16 %v530_v30, %v528_v32 }
  0xdf   : > { %755 = vmatprep.subr.bf16.mxu1 %v537_v38 }
  0xe0   : > { %756 = vmatpush1.bf16.msra.mxu1 %v536_v13 }
  0xe1   : > { %v518_v39 = vpop.permute.xlu1 %517  ;;  %v516_v40 = vpop.permute.xlu0 %515 }
  0xe2   : > { %v523_v41 = vsel %vm519_vm11, %v510_v36, %v518_v39  ;;  %v527_v42 = vsel %vm519_vm11, %v518_v39, %v510_v36  ;;  %v522_v43 = vsel %vm519_vm11, %v508_v37, %v516_v40  ;;  %v526_v44 = vsel %vm519_vm11, %v516_v40, %v508_v37  ;;  %v8506_v39 = vld [vmem:[%s14801_s1] ss:$12 sps:$4 sm:$0xff]   ;;  %v8509_v40 = vld [vmem:[%s14801_s1 + $0x1c] ss:$12 sps:$4 sm:$0xff]  }
  0xe3   : > { %v534_v45 = vmul.f32 %v8886_v16, %v523_v41  ;;  %v535_v46 = vmul.f32 %v527_v42, %v9073_v23  ;;  %v532_v47 = vmul.f32 %v8886_v16, %v522_v43  ;;  %v533_v48 = vmul.f32 %v526_v44, %v9073_v23 }
  0xe5   : > { %v547_v49 = vpop.permute.xlu1 %546  ;;  %v545_v50 = vpop.permute.xlu0 %544  ;;  %v539_v51 = vpack.c.bf16 %v535_v46, %v533_v48  ;;  %v538_v0 = vpack.c.bf16 %v534_v45, %v532_v47 }
  0xe7   : > { %757 = vmatprep.subr.bf16.mxu1 %v539_v51 }
  0xe8   : > { %758 = vmatpush1.bf16.msra.mxu1 %v538_v0 }
  0xe9   : > { %v555_v2 = vpop.permute.xlu1 %554  ;;  %v553_v1 = vpop.permute.xlu0 %552 }
  0xea   : > { %v566_v3 = vsel %vm560_vm12, %v555_v2, %v547_v49  ;;  %v565_v6 = vsel %vm560_vm12, %v553_v1, %v545_v50  ;;  %v562_v7 = vsel %vm560_vm12, %v547_v49, %v555_v2  ;;  %v561_v53 = vsel %vm560_vm12, %v545_v50, %v553_v1  ;;  %v8511_v2 = vld [vmem:[%s14801_s1 + $0x18] ss:$12 sps:$4 sm:$0xff]   ;;  %v8512_v1 = vld [vmem:[%s14801_s1 + $0x8] ss:$12 sps:$4 sm:$0xff]  }
  0xeb   : > { %v572_v52 = vmul.f32 %v9069_v12, %v566_v3  ;;  %v570_v54 = vmul.f32 %v9069_v12, %v565_v6  ;;  %v577_v58 = vpack.c.bf16 %v562_v7, %v561_v53  ;;  %v8513_v3 = vld [vmem:[%s14801_s1 + $0x20] ss:$12 sps:$4 sm:$0xff]  }
  0xed   : > { %v588_v55 = vpop.permute.xlu1 %587  ;;  %v586_v56 = vpop.permute.xlu0 %585  ;;  %v578_v57 = vpack.c.bf16 %v572_v52, %v570_v54 }
  0xef   : > { %759 = vmatprep.subr.bf16.mxu1 %v578_v57 }
  0xf0   : > { %760 = vmatpush1.bf16.msra.mxu1 %v577_v58 }
  0xf1   : > { %v596_v60 = vpop.permute.xlu1 %595  ;;  %v594_v4 = vpop.permute.xlu0 %593 }
  0xf2   : > { %v603_v5 = vsel %vm601_vm13, %v588_v55, %v596_v60  ;;  %v602_v61 = vsel %vm601_vm13, %v586_v56, %v594_v4  ;;  %v606_v10 = vsel %vm601_vm13, %v594_v4, %v586_v56  ;;  %v607_v62 = vsel %vm601_vm13, %v596_v60, %v588_v55 }
  0xf3   : > { %v611_v63 = vmul.f32 %v606_v10, %v9114_v59  ;;  %v613_v8 = vmul.f32 %v607_v62, %v9114_v59  ;;  %v610_v14 = vmul.f32 %v8973_v11, %v602_v61  ;;  %v612_v18 = vmul.f32 %v8973_v11, %v603_v5 }
  0xf5   : > { %v551_v19 = vpop.permute.xlu1 %550  ;;  %v549_v21 = vpop.permute.xlu0 %548  ;;  %v619_v24 = vpack.c.bf16 %v613_v8, %v611_v63  ;;  %v618_v25 = vpack.c.bf16 %v612_v18, %v610_v14 }
  0xf7   : > { %784 = vmatprep.subr.bf16.mxu0 %v619_v24 }
  0xf8   : > { %785 = vmatpush1.bf16.msra.mxu0 %v618_v25 }
  0xf9   : > { %v559_v27 = vpop.permute.xlu1 %558  ;;  %v557_v15 = vpop.permute.xlu0 %556 }
  0xfa   : > { %v568_v28 = vsel %vm560_vm12, %v559_v27, %v551_v19  ;;  %v567_v29 = vsel %vm560_vm12, %v557_v15, %v549_v21  ;;  %v564_v30 = vsel %vm560_vm12, %v551_v19, %v559_v27  ;;  %v563_v32 = vsel %vm560_vm12, %v549_v21, %v557_v15 }
  0xfb   : > { %v576_v31 = vmul.f32 %v9069_v12, %v568_v28  ;;  %v574_v35 = vmul.f32 %v9069_v12, %v567_v29  ;;  %v579_v13 = vpack.c.bf16 %v564_v30, %v563_v32 }
  0xfd   : > { %v592_v36 = vpop.permute.xlu1 %591  ;;  %v590_v37 = vpop.permute.xlu0 %589  ;;  %v580_v38 = vpack.c.bf16 %v576_v31, %v574_v35 }
  0xff   : > { %761 = vmatprep.subr.bf16.mxu1 %v580_v38 }
 0x100   : > { %762 = vmatpush1.bf16.msra.mxu1 %v579_v13 }
 0x101   : > { %v600_v41 = vpop.permute.xlu1 %599  ;;  %v598_v42 = vpop.permute.xlu0 %597 }
 0x102   : > { %v605_v43 = vsel %vm601_vm13, %v592_v36, %v600_v41  ;;  %v609_v44 = vsel %vm601_vm13, %v600_v41, %v592_v36  ;;  %v604_v45 = vsel %vm601_vm13, %v590_v37, %v598_v42  ;;  %v608_v46 = vsel %vm601_vm13, %v598_v42, %v590_v37 }
 0x103   : > { %v616_v47 = vmul.f32 %v8973_v11, %v605_v43  ;;  %v617_v48 = vmul.f32 %v609_v44, %v9114_v59  ;;  %v614_v49 = vmul.f32 %v8973_v11, %v604_v45  ;;  %v615_v50 = vmul.f32 %v608_v46, %v9114_v59  ;;  %764 = vmatmul.mubr.bf16.vlgmr.msra.gmra.mrb[0].mxu1 %v8506_v39 }
 0x104   : > { %773 = vmatprep.mubr.bf16.mxu1 %v8509_v40 }
 0x105   : > { %v621_v51 = vpack.c.bf16 %v617_v48, %v615_v50  ;;  %v620_v0 = vpack.c.bf16 %v616_v47, %v614_v49  ;;  %v8516_v50 = vld [vmem:[%s14801_s1 + $0x34] ss:$12 sps:$4 sm:$0xff]  }
 0x107   : > { %786 = vmatprep.subr.bf16.mxu0 %v621_v51 }
 0x108   : > { %787 = vmatpush1.bf16.msra.mxu0 %v620_v0 }
 0x10b   : > { %774 = vmatmul.mubr.bf16.gmra.mrb[4].mxu1 %v8511_v2  ;;  %8018 = vmatmul.mubr.msk.bf16.vlgmr.msra.gmra.mrb[0].mxu0 %vm724_vm14, %v8512_v1 }
 0x10c   : > { %826 = vmatprep.mubr.bf16.mxu0 %v14805_v26  ;;  %1311 = vmatprep.mubr.bf16.mxu1 %v8516_v50 }
 0x112   : > { %v682_v56 = vpop.permute.xlu1 %681 }
 0x113   : > { %8019 = vmatmul.mubr.msk.bf16.gmra.mrb[4].mxu0 %vm724_vm14, %v8513_v3  ;;  %v677_v54 = vpop.permute.xlu0 %676  ;;  %v8028_v3 = vld [vmem:[%s14802_s2 + $0x20] sm:$0xff] }
 0x114   : > { %1364 = vmatprep.mubr.bf16.mxu0 %v14805_v26 }
 0x116   : > { %v687_v25 = vpop.permute.xlu1 %686 }
 0x117   : > { %v692_v29 = vpop.permute.xlu0 %691 }
 0x1d6   : > { %v765_v6 = vpop.f32.mrb[0].mxu1 }
 0x1d7   : > { %v767_v7 = vpop.f32.mrb[1].mxu1  ;;  %v766_v55 = vadd.f32 %v765_v6, %v677_v54 }
 0x1d8   : > { %v769_v52 = vpop.f32.mrb[2].mxu1  ;;  %v768_v57 = vadd.f32 %v767_v7, %v677_v54  ;;  %v8029_v7 = vld [vmem:[%s14802_s2 + $0x28] sm:$0xff] }
 0x1d9   : > { %v771_v53 = vpop.f32.mrb[3].mxu1  ;;  %v770_v4 = vadd.f32 %v769_v52, %v682_v56 }
 0x1da   : > { %v772_v62 = vadd.f32 %v771_v53, %v682_v56  ;;  %v8030_v53 = vld [vmem:[%s14802_s2 + $0x30] sm:$0xff] }
 0x1de   : > { %v818_v58 = vpop.f32.mrb[0].mxu0  ;;  %v775_v60 = vpop.f32.mrb[4].mxu1 }
 0x1df   : > { %v819_v5 = vadd.f32 %v818_v58, %v766_v55  ;;  %v777_v61 = vpop.f32.mrb[5].mxu1  ;;  %v820_v10 = vpop.f32.mrb[1].mxu0  ;;  %v776_v28 = vadd.f32 %v775_v60, %v687_v25  ;;  %v8031_v55 = vld [vmem:[%s14802_s2 + $0x38] sm:$0xff] }
 0x1e0   : > { %v821_v63 = vadd.f32 %v820_v10, %v768_v57  ;;  %v779_v8 = vpop.f32.mrb[6].mxu1  ;;  %v822_v14 = vpop.f32.mrb[2].mxu0  ;;  %v778_v30 = vadd.f32 %v777_v61, %v687_v25 }
 0x1e1   : > { %v9169_v18 = vmax.f32 %v819_v5, 0.0  ;;  %v823_v19 = vadd.f32 %v822_v14, %v770_v4  ;;  %v781_v21 = vpop.f32.mrb[7].mxu1  ;;  %v824_v24 = vpop.f32.mrb[3].mxu0  ;;  %v780_v32 = vadd.f32 %v779_v8, %v692_v29 }
 0x1e2   : > { %v825_v27 = vadd.f32 %v824_v24, %v772_v62  ;;  %v782_v37 = vadd.f32 %v781_v21, %v692_v29  ;;  %v9195_v42 = vmax.f32 %v821_v63, 0.0 }
 0x1e3   : > { %v9171_v15 = vmax.f32 %v823_v19, 0.0  ;;  %845 = vrot.lane.b32.xlu1 %v9169_v18, %s8686_s21 }
 0x1e4   : > { %v9199_v43 = vmax.f32 %v825_v27, 0.0 }
 0x1e5   : > { %847 = vrot.lane.b32.xlu0 %v9171_v15, %s8686_s21 }
 0x1e6   : > { %v828_v31 = vpop.f32.mrb[4].mxu0 }
 0x1e7   : > { %v829_v35 = vadd.f32 %v828_v31, %v776_v28  ;;  %v830_v36 = vpop.f32.mrb[5].mxu0  ;;  %885 = vrot.lane.b32.xlu1 %v9169_v18, %s8687_s22 }
 0x1e8   : > { %v831_v38 = vadd.f32 %v830_v36, %v778_v30  ;;  %v832_v13 = vpop.f32.mrb[6].mxu0 }
 0x1e9   : > { %v833_v39 = vadd.f32 %v832_v13, %v780_v32  ;;  %v834_v40 = vpop.f32.mrb[7].mxu0  ;;  %887 = vrot.lane.b32.xlu0 %v9171_v15, %s8687_s22  ;;  %v9219_v44 = vmax.f32 %v829_v35, 0.0 }
 0x1ea   : > { %v835_v41 = vadd.f32 %v834_v40, %v782_v37  ;;  %v9243_v46 = vmax.f32 %v831_v38, 0.0 }
 0x1eb   : > { %925 = vrot.lane.b32.xlu1 %v9169_v18, %s8688_s23  ;;  %v9223_v45 = vmax.f32 %v833_v39, 0.0 }
 0x1ec   : > { %v9247_v47 = vmax.f32 %v835_v41, 0.0 }
 0x1ed   : > { %927 = vrot.lane.b32.xlu0 %v9171_v15, %s8688_s23 }
 0x1ef   : > { %965 = vrot.lane.b32.xlu1 %v9169_v18, %s8689_s24 }
 0x1f1   : > { %967 = vrot.lane.b32.xlu0 %v9171_v15, %s8689_s24 }
 0x1f3   : > { %1013 = vrot.lane.b32.xlu1 %v9169_v18, %s8690_s25 }
 0x1f5   : > { %1015 = vrot.lane.b32.xlu0 %v9171_v15, %s8690_s25 }
 0x1f7   : > { %1053 = vrot.lane.b32.xlu1 %v9169_v18, %s8691_s26 }
 0x1f9   : > { %1055 = vrot.lane.b32.xlu0 %v9171_v15, %s8691_s26 }
 0x1fb   : > { %853 = vrot.lane.b32.xlu1 %v9195_v42, %s8686_s21 }
 0x1fd   : > { %855 = vrot.lane.b32.xlu0 %v9199_v43, %s8686_s21 }
 0x1ff   : > { %893 = vrot.lane.b32.xlu1 %v9195_v42, %s8687_s22 }
 0x201   : > { %895 = vrot.lane.b32.xlu0 %v9199_v43, %s8687_s22 }
 0x203   : > { %933 = vrot.lane.b32.xlu1 %v9195_v42, %s8688_s23 }
 0x205   : > { %935 = vrot.lane.b32.xlu0 %v9199_v43, %s8688_s23 }
 0x207   : > { %973 = vrot.lane.b32.xlu1 %v9195_v42, %s8689_s24 }
 0x209   : > { %975 = vrot.lane.b32.xlu0 %v9199_v43, %s8689_s24 }
 0x20b   : > { %1021 = vrot.lane.b32.xlu1 %v9195_v42, %s8690_s25 }
 0x20d   : > { %1023 = vrot.lane.b32.xlu0 %v9199_v43, %s8690_s25 }
 0x20f   : > { %849 = vrot.lane.b32.xlu1 %v9219_v44, %s8686_s21 }
 0x211   : > { %851 = vrot.lane.b32.xlu0 %v9223_v45, %s8686_s21 }
 0x213   : > { %889 = vrot.lane.b32.xlu1 %v9219_v44, %s8687_s22 }
 0x215   : > { %891 = vrot.lane.b32.xlu0 %v9223_v45, %s8687_s22 }
 0x217   : > { %929 = vrot.lane.b32.xlu1 %v9219_v44, %s8688_s23 }
 0x219   : > { %931 = vrot.lane.b32.xlu0 %v9223_v45, %s8688_s23 }
 0x21b   : > { %969 = vrot.lane.b32.xlu1 %v9219_v44, %s8689_s24 }
 0x21d   : > { %971 = vrot.lane.b32.xlu0 %v9223_v45, %s8689_s24 }
 0x21f   : > { %1017 = vrot.lane.b32.xlu1 %v9219_v44, %s8690_s25 }
 0x221   : > { %1019 = vrot.lane.b32.xlu0 %v9223_v45, %s8690_s25 }
 0x223   : > { %857 = vrot.lane.b32.xlu1 %v9243_v46, %s8686_s21 }
 0x225   : > { %859 = vrot.lane.b32.xlu0 %v9247_v47, %s8686_s21 }
 0x227   : > { %1061 = vrot.lane.b32.xlu1 %v9195_v42, %s8691_s26 }
 0x229   : > { %1063 = vrot.lane.b32.xlu0 %v9199_v43, %s8691_s26 }
 0x22b   : > { %897 = vrot.lane.b32.xlu1 %v9243_v46, %s8687_s22 }
 0x22d   : > { %899 = vrot.lane.b32.xlu0 %v9247_v47, %s8687_s22 }
 0x22f   : > { %937 = vrot.lane.b32.xlu1 %v9243_v46, %s8688_s23 }
 0x231   : > { %1059 = vrot.lane.b32.xlu0 %v9223_v45, %s8691_s26 }
 0x233   : > { %977 = vrot.lane.b32.xlu1 %v9243_v46, %s8689_s24 }
 0x235   : > { %939 = vrot.lane.b32.xlu0 %v9247_v47, %s8688_s23 }
 0x237   : > { %1025 = vrot.lane.b32.xlu1 %v9243_v46, %s8690_s25 }
 0x239   : > { %1095 = vrot.lane.b32.xlu0 %v9171_v15, %s8692_s27 }
 0x23b   : > { %1057 = vrot.lane.b32.xlu1 %v9219_v44, %s8691_s26 }
 0x23d   : > { %979 = vrot.lane.b32.xlu0 %v9247_v47, %s8689_s24 }
 0x23f   : > { %1065 = vrot.lane.b32.xlu1 %v9243_v46, %s8691_s26 }
 0x241   : > { %1103 = vrot.lane.b32.xlu0 %v9199_v43, %s8692_s27 }
 0x243   : > { %1093 = vrot.lane.b32.xlu1 %v9169_v18, %s8692_s27 }
 0x245   : > { %1135 = vrot.lane.b32.xlu0 %v9171_v15, %s8693_s28 }
 0x247   : > { %1101 = vrot.lane.b32.xlu1 %v9195_v42, %s8692_s27 }
 0x249   : > { %1143 = vrot.lane.b32.xlu0 %v9199_v43, %s8693_s28 }
 0x24b   : > { %1133 = vrot.lane.b32.xlu1 %v9169_v18, %s8693_s28 }
 0x24d   : > { %1027 = vrot.lane.b32.xlu0 %v9247_v47, %s8690_s25 }
 0x24f   : > { %1141 = vrot.lane.b32.xlu1 %v9195_v42, %s8693_s28 }
 0x251   : > { %1099 = vrot.lane.b32.xlu0 %v9223_v45, %s8692_s27 }
 0x253   : > { %1097 = vrot.lane.b32.xlu1 %v9219_v44, %s8692_s27 }
 0x255   : > { %1067 = vrot.lane.b32.xlu0 %v9247_v47, %s8691_s26  ;;  %v846_v48 = vpop.permute.xlu1 %845 }
 0x257   : > { %v848_v49 = vpop.permute.xlu0 %847  ;;  %1105 = vrot.lane.b32.xlu1 %v9243_v46, %s8692_s27 }
 0x259   : > { %1139 = vrot.lane.b32.xlu0 %v9223_v45, %s8693_s28  ;;  %v9308_v51 = vpop.permute.xlu1 %885 }
 0x25b   : > { %v9310_v0 = vpop.permute.xlu0 %887  ;;  %1137 = vrot.lane.b32.xlu1 %v9219_v44, %s8693_s28 }
 0x25d   : > { %1107 = vrot.lane.b32.xlu0 %v9247_v47, %s8692_s27  ;;  %v9316_v2 = vpop.permute.xlu1 %925 }
 0x25f   : > { %v9318_v1 = vpop.permute.xlu0 %927  ;;  %1145 = vrot.lane.b32.xlu1 %v9243_v46, %s8693_s28 }
 0x261   : > { %1147 = vrot.lane.b32.xlu0 %v9247_v47, %s8693_s28  ;;  %v9327_v6 = vpop.permute.xlu1 %965 }
 0x263   : > { %v9332_v52 = vpop.permute.xlu0 %967  ;;  %1225 = vperm.xlu1 %8505, %v8028_v3  }
 0x265   : > { %1230 = vperm.xlu0 %8504, %v8029_v7   ;;  %v9337_v54 = vpop.permute.xlu1 %1013 }
 0x267   : > { %v9342_v56 = vpop.permute.xlu0 %1015  ;;  %1235 = vperm.xlu1 %8505, %v8030_v53  }
 0x269   : > { %1240 = vperm.xlu0 %8504, %v8031_v55   ;;  %v9344_v57 = vpop.permute.xlu1 %1053 }
 0x26b   : > { %v9346_v58 = vpop.permute.xlu0 %1055 }
 0x26d   : > { %v854_v60 = vpop.permute.xlu1 %853 }
 0x26e   : > { %v861_v4 = vsel %vm306_vm2, %v846_v48, %v854_v60  ;;  %v865_v5 = vsel %vm306_vm2, %v854_v60, %v846_v48 }
 0x26f   : > { %v856_v61 = vpop.permute.xlu0 %855  ;;  %v869_v63 = vmul.f32 %v865_v5, %v8902_v22  ;;  %v870_v8 = vmul.f32 %v8896_v20, %v861_v4 }
 0x270   : > { %v862_v10 = vsel %vm306_vm2, %v848_v49, %v856_v61  ;;  %v866_v62 = vsel %vm306_vm2, %v856_v61, %v848_v49 }
 0x271   : > { %v871_v14 = vmul.f32 %v866_v62, %v8902_v22  ;;  %v872_v19 = vmul.f32 %v8896_v20, %v862_v10  ;;  %v894_v21 = vpop.permute.xlu1 %893 }
 0x273   : > { %v877_v24 = vpack.c.bf16 %v871_v14, %v869_v63  ;;  %v896_v25 = vpop.permute.xlu0 %895  ;;  %v878_v27 = vpack.c.bf16 %v872_v19, %v870_v8  ;;  %v905_v14 = vsel %vm347_vm4, %v894_v21, %v9308_v51 }
 0x274   : > { %v906_v60 = vsel %vm347_vm4, %v896_v25, %v9310_v0  ;;  %v902_v19 = vsel %vm347_vm4, %v9310_v0, %v896_v25 }
 0x275   : > { %1279 = vmatprep.subr.bf16.mxu1 %v878_v27  ;;  %v934_v28 = vpop.permute.xlu1 %933 }
 0x276   : > { %1280 = vmatpush1.bf16.msra.mxu1 %v877_v24  ;;  %v911_v24 = vmul.f32 %v8889_v17, %v906_v60  ;;  %v941_v60 = vsel %vm388_vm7, %v9316_v2, %v934_v28 }
 0x277   : > { %v936_v29 = vpop.permute.xlu0 %935 }
 0x279   : > { %v9360_v30 = vpop.permute.xlu1 %973 }
 0x27b   : > { %v9362_v31 = vpop.permute.xlu0 %975 }
 0x27d   : > { %v9364_v32 = vpop.permute.xlu1 %1021 }
 0x27f   : > { %v9366_v35 = vpop.permute.xlu0 %1023 }
 0x281   : > { %v850_v36 = vpop.permute.xlu1 %849 }
 0x283   : > { %v852_v37 = vpop.permute.xlu0 %851 }
 0x285   : > { %v890_v38 = vpop.permute.xlu1 %889 }
 0x287   : > { %v892_v13 = vpop.permute.xlu0 %891 }
 0x289   : > { %v930_v39 = vpop.permute.xlu1 %929 }
 0x28b   : > { %v9368_v40 = vpop.permute.xlu0 %931 }
 0x28d   : > { %v9370_v41 = vpop.permute.xlu1 %969 }
 0x28f   : > { %v9372_v48 = vpop.permute.xlu0 %971 }
 0x291   : > { %v9374_v49 = vpop.permute.xlu1 %1017 }
 0x293   : > { %v9376_v50 = vpop.permute.xlu0 %1019 }
 0x295   : > { %v858_v3 = vpop.permute.xlu1 %857 }
 0x296   : > { %v863_v7 = vsel %vm306_vm2, %v850_v36, %v858_v3  ;;  %v867_v53 = vsel %vm306_vm2, %v858_v3, %v850_v36  ;;  %v901_v3 = vsel %vm347_vm4, %v9308_v51, %v894_v21  ;;  %v946_v51 = vsel %vm388_vm7, %v936_v29, %v9318_v1 }
 0x297   : > { %v860_v55 = vpop.permute.xlu0 %859  ;;  %v873_v61 = vmul.f32 %v867_v53, %v8902_v22  ;;  %v874_v10 = vmul.f32 %v8896_v20, %v863_v7  ;;  %v909_v7 = vmul.f32 %v8889_v17, %v905_v14 }
 0x298   : > { %v864_v4 = vsel %vm306_vm2, %v852_v37, %v860_v55  ;;  %v868_v5 = vsel %vm306_vm2, %v860_v55, %v852_v37  ;;  %v918_v55 = vpack.c.bf16 %v902_v19, %v901_v3  ;;  %v982_v3 = vsel %vm429_vm8, %v9332_v52, %v9362_v31 }
 0x299   : > { %v875_v62 = vmul.f32 %v868_v5, %v8902_v22  ;;  %v876_v63 = vmul.f32 %v8896_v20, %v864_v4  ;;  %v9393_v8 = vpop.permute.xlu1 %1061  ;;  %v942_v4 = vsel %vm388_vm7, %v9318_v1, %v936_v29  ;;  %v917_v25 = vpack.c.bf16 %v911_v24, %v909_v7 }
 0x29a   : > { %v945_v1 = vsel %vm388_vm7, %v934_v28, %v9316_v2  ;;  %v950_v29 = vmul.f32 %v8983_v34, %v941_v60  ;;  %v992_v60 = vmul.f32 %v8896_v20, %v982_v3 }
 0x29b   : > { %v879_v27 = vpack.c.bf16 %v875_v62, %v873_v61  ;;  %v9402_v36 = vpop.permute.xlu0 %1063  ;;  %v880_v37 = vpack.c.bf16 %v876_v63, %v874_v10  ;;  %v952_v62 = vmul.f32 %v8983_v34, %v942_v4  ;;  %v981_v4 = vsel %vm429_vm8, %v9327_v6, %v9360_v30 }
 0x29d   : > { %1281 = vmatprep.subr.bf16.mxu1 %v880_v37  ;;  %v898_v53 = vpop.permute.xlu1 %897 }
 0x29e   : > { %v907_v0 = vsel %vm347_vm4, %v898_v53, %v890_v38  ;;  %1282 = vmatpush1.bf16.msra.mxu1 %v879_v27  ;;  %v903_v21 = vsel %vm347_vm4, %v890_v38, %v898_v53  ;;  %v951_v38 = vmul.f32 %v946_v51, %v8979_v33  ;;  %v958_v53 = vpack.c.bf16 %v952_v62, %v950_v29 }
 0x29f   : > { %v900_v5 = vpop.permute.xlu0 %899  ;;  %1283 = vmatprep.subr.bf16.mxu1 %v918_v55  ;;  %v913_v63 = vmul.f32 %v8889_v17, %v907_v0 }
 0x2a0   : > { %v904_v61 = vsel %vm347_vm4, %v892_v13, %v900_v5  ;;  %v908_v10 = vsel %vm347_vm4, %v900_v5, %v892_v13  ;;  %v949_v13 = vmul.f32 %v945_v1, %v8979_v33 }
 0x2a1   : > { %v915_v14 = vmul.f32 %v8889_v17, %v908_v10  ;;  %v938_v19 = vpop.permute.xlu1 %937  ;;  %v920_v24 = vpack.c.bf16 %v904_v61, %v903_v21 }
 0x2a2   : > { %1284 = vmatpush1.bf16.msra.mxu1 %v917_v25  ;;  %v943_v2 = vsel %vm388_vm7, %v930_v39, %v938_v19  ;;  %v947_v28 = vsel %vm388_vm7, %v938_v19, %v930_v39  ;;  %v957_v55 = vpack.c.bf16 %v951_v38, %v949_v13  ;;  %v986_v25 = vsel %vm429_vm8, %v9362_v31, %v9332_v52 }
 0x2a3   : > { %v919_v27 = vpack.c.bf16 %v915_v14, %v913_v63  ;;  %v9433_v37 = vpop.permute.xlu0 %1059  ;;  %1285 = vmatprep.subr.bf16.mxu1 %v920_v24  ;;  %v953_v51 = vmul.f32 %v947_v28, %v8979_v33  ;;  %v954_v21 = vmul.f32 %v8983_v34, %v943_v2  ;;  %v985_v52 = vsel %vm429_vm8, %v9360_v30, %v9327_v6 }
 0x2a4   : > { %v990_v31 = vmul.f32 %v8896_v20, %v981_v4  ;;  %v991_v19 = vmul.f32 %v8886_v16, %v986_v25  ;;  %v989_v29 = vmul.f32 %v8886_v16, %v985_v52 }
 0x2a5   : > { %v978_v7 = vpop.permute.xlu1 %977 }
 0x2a6   : > { %1286 = vmatpush1.bf16.msra.mxu1 %v919_v27  ;;  %v998_v1 = vpack.c.bf16 %v992_v60, %v990_v31  ;;  %v983_v38 = vsel %vm429_vm8, %v9370_v41, %v978_v7  ;;  %v987_v6 = vsel %vm429_vm8, %v978_v7, %v9370_v41  ;;  %v997_v27 = vpack.c.bf16 %v991_v19, %v989_v29 }
 0x2a7   : > { %v940_v0 = vpop.permute.xlu0 %939  ;;  %1287 = vmatprep.subr.bf16.mxu1 %v958_v53  ;;  %v993_v53 = vmul.f32 %v8886_v16, %v987_v6  ;;  %v994_v2 = vmul.f32 %v8896_v20, %v983_v38  ;;  %v1034_v60 = vsel %vm478_vm9, %v9366_v35, %v9342_v56 }
 0x2a8   : > { %v944_v39 = vsel %vm388_vm7, %v9368_v40, %v940_v0  ;;  %v948_v5 = vsel %vm388_vm7, %v940_v0, %v9368_v40 }
 0x2a9   : > { %v955_v61 = vmul.f32 %v948_v5, %v8979_v33  ;;  %v956_v10 = vmul.f32 %v8983_v34, %v944_v39  ;;  %v1026_v62 = vpop.permute.xlu1 %1025  ;;  %v1030_v39 = vsel %vm478_vm9, %v9342_v56, %v9366_v35  ;;  %v1008_v56 = vpack.c.bf16 %v9247_v47, %v9243_v46 }
 0x2aa   : > { %1288 = vmatpush1.bf16.msra.mxu1 %v957_v55  ;;  %v1039_v35 = vmul.f32 %v8973_v11, %v1030_v39  ;;  %v1070_v46 = vsel %vm519_vm11, %v9346_v58, %v9402_v36  ;;  %v1074_v47 = vsel %vm519_vm11, %v9402_v36, %v9346_v58 }
 0x2ab   : > { %v959_v63 = vpack.c.bf16 %v955_v61, %v953_v51  ;;  %v9468_v14 = vpop.permute.xlu0 %1095  ;;  %v960_v40 = vpack.c.bf16 %v956_v10, %v954_v21  ;;  %v1033_v51 = vsel %vm478_vm9, %v9364_v32, %v9337_v54  ;;  %v1040_v21 = vmul.f32 %v8983_v34, %v1034_v60 }
 0x2ac   : > { %v1038_v10 = vmul.f32 %v8983_v34, %v1033_v51  ;;  %v1079_v29 = vmul.f32 %v8886_v16, %v1070_v46 }
 0x2ad   : > { %1289 = vmatprep.subr.bf16.mxu1 %v960_v40  ;;  %v9471_v24 = vpop.permute.xlu1 %1057  ;;  %v1031_v40 = vsel %vm478_vm9, %v9374_v49, %v1026_v62 }
 0x2ae   : > { %1290 = vmatpush1.bf16.msra.mxu1 %v959_v63  ;;  %v1046_v31 = vpack.c.bf16 %v1040_v21, %v1038_v10 }
 0x2af   : > { %v980_v30 = vpop.permute.xlu0 %979  ;;  %1291 = vmatprep.subr.bf16.mxu1 %v998_v1 }
 0x2b0   : > { %v984_v13 = vsel %vm429_vm8, %v9372_v48, %v980_v30  ;;  %v988_v3 = vsel %vm429_vm8, %v980_v30, %v9372_v48  ;;  %v1006_v48 = vpack.c.bf16 %v9199_v43, %v9195_v42  ;;  %v1005_v42 = vpack.c.bf16 %v9171_v15, %v9169_v18 }
 0x2b1   : > { %v995_v28 = vmul.f32 %v8886_v16, %v988_v3  ;;  %v996_v41 = vmul.f32 %v8896_v20, %v984_v13  ;;  %v9490_v7 = vpop.permute.xlu1 %1065  ;;  %v1029_v43 = vsel %vm478_vm9, %v9337_v54, %v9364_v32  ;;  %v1073_v15 = vsel %vm519_vm11, %v9393_v8, %v9344_v57 }
 0x2b2   : > { %1292 = vmatpush1.bf16.msra.mxu1 %v997_v27  ;;  %v1037_v18 = vmul.f32 %v8973_v11, %v1029_v43  ;;  %v1007_v54 = vpack.c.bf16 %v9223_v45, %v9219_v44  ;;  %v1035_v44 = vsel %vm478_vm9, %v1026_v62, %v9374_v49  ;;  %v1069_v45 = vsel %vm519_vm11, %v9344_v57, %v9393_v8 }
 0x2b3   : > { %v999_v55 = vpack.c.bf16 %v995_v28, %v993_v53  ;;  %v9492_v4 = vpop.permute.xlu0 %1103  ;;  %v1000_v0 = vpack.c.bf16 %v996_v41, %v994_v2  ;;  %v1078_v19 = vmul.f32 %v1073_v15, %v9073_v23  ;;  %v1080_v49 = vmul.f32 %v1074_v47, %v9073_v23 }
 0x2b4   : > { %v1045_v63 = vpack.c.bf16 %v1039_v35, %v1037_v18  ;;  %v1041_v8 = vmul.f32 %v8973_v11, %v1031_v40  ;;  %v1042_v38 = vmul.f32 %v8983_v34, %v1035_v44  ;;  %v1071_v60 = vsel %vm519_vm11, %v9471_v24, %v9490_v7 }
 0x2b5   : > { %1293 = vmatprep.subr.bf16.mxu1 %v1000_v0  ;;  %v9494_v25 = vpop.permute.xlu1 %1093  ;;  %v1086_v51 = vpack.c.bf16 %v1080_v49, %v1078_v19  ;;  %v1075_v43 = vsel %vm519_vm11, %v9490_v7, %v9471_v24  ;;  %v1081_v10 = vmul.f32 %v8886_v16, %v1071_v60  ;;  %v8521_v60 = vld [vmem:[%s14801_s1 + $0x50] ss:$12 sps:$4 sm:$0xff]  }
 0x2b6   : > { %1294 = vmatpush1.bf16.msra.mxu1 %v999_v55  ;;  %v1082_v18 = vmul.f32 %v1075_v43, %v9073_v23 }
 0x2b7   : > { %v1136_v5 = vpop.permute.xlu0 %1135  ;;  %1295 = vmatprep.subr.bf16.mxu1 %v1006_v48  ;;  %v1077_v48 = vmul.f32 %v8886_v16, %v1069_v45 }
 0x2b9   : > { %v9517_v61 = vpop.permute.xlu1 %1101 }
 0x2ba   : > { %1296 = vmatpush1.bf16.msra.mxu1 %v1005_v42  ;;  %v1113_v21 = vsel %vm560_vm12, %v9517_v61, %v9494_v25 }
 0x2bb   : > { %v1144_v52 = vpop.permute.xlu0 %1143  ;;  %1297 = vmatprep.subr.bf16.mxu1 %v1008_v56  ;;  %v1085_v56 = vpack.c.bf16 %v1079_v29, %v1077_v48  ;;  %v1118_v15 = vmul.f32 %v9069_v12, %v1113_v21  ;;  %v8520_v48 = vld [vmem:[%s14801_s1 + $0x48] ss:$12 sps:$4 sm:$0xff]  }
 0x2bc   : > { %v1150_v58 = vsel %vm601_vm13, %v1136_v5, %v1144_v52  ;;  %v1154_v36 = vsel %vm601_vm13, %v1144_v52, %v1136_v5  ;;  %v1114_v52 = vsel %vm560_vm12, %v9492_v4, %v9468_v14 }
 0x2bd   : > { %v1134_v32 = vpop.permute.xlu1 %1133  ;;  %v1159_v13 = vmul.f32 %v8973_v11, %v1150_v58  ;;  %v1160_v3 = vmul.f32 %v1154_v36, %v9114_v59  ;;  %v1110_v58 = vsel %vm560_vm12, %v9468_v14, %v9492_v4 }
 0x2be   : > { %1298 = vmatpush1.bf16.msra.mxu1 %v1007_v54 }
 0x2bf   : > { %v1028_v1 = vpop.permute.xlu0 %1027  ;;  %1299 = vmatprep.subr.bf16.mxu1 %v1046_v31 }
 0x2c0   : > { %v1032_v62 = vsel %vm478_vm9, %v9376_v50, %v1028_v1  ;;  %v1036_v57 = vsel %vm478_vm9, %v1028_v1, %v9376_v50 }
 0x2c1   : > { %v1043_v6 = vmul.f32 %v8973_v11, %v1032_v62  ;;  %v1044_v30 = vmul.f32 %v8983_v34, %v1036_v57  ;;  %v1142_v27 = vpop.permute.xlu1 %1141 }
 0x2c2   : > { %v1149_v53 = vsel %vm601_vm13, %v1134_v32, %v1142_v27  ;;  %v1153_v2 = vsel %vm601_vm13, %v1142_v27, %v1134_v32  ;;  %1300 = vmatpush1.bf16.msra.mxu1 %v1045_v63  ;;  %v1120_v32 = vmul.f32 %v9069_v12, %v1114_v52 }
 0x2c3   : > { %v1047_v50 = vpack.c.bf16 %v1043_v6, %v1041_v8  ;;  %v1157_v28 = vmul.f32 %v8973_v11, %v1149_v53  ;;  %v1158_v41 = vmul.f32 %v1153_v2, %v9114_v59  ;;  %v1100_v55 = vpop.permute.xlu0 %1099  ;;  %v1048_v0 = vpack.c.bf16 %v1044_v30, %v1042_v38 }
 0x2c4   : > { %v1126_v45 = vpack.c.bf16 %v1120_v32, %v1118_v15 }
 0x2c5   : > { %v1165_v39 = vpack.c.bf16 %v1159_v13, %v1157_v28  ;;  %v1098_v5 = vpop.permute.xlu1 %1097  ;;  %1301 = vmatprep.subr.bf16.mxu1 %v1048_v0  ;;  %v1166_v42 = vpack.c.bf16 %v1160_v3, %v1158_v41  ;;  %v8518_v28 = vld [vmem:[%s14801_s1 + $0x4c] ss:$12 sps:$4 sm:$0xff]  }
 0x2c6   : > { %1302 = vmatpush1.bf16.msra.mxu1 %v1047_v50  ;;  %v8514_v50 = vld [vmem:[%s14801_s1 + $0x30] ss:$12 sps:$4 sm:$0xff]   ;;  %v8517_v0 = vld [vmem:[%s14801_s1 + $0x38] ss:$12 sps:$4 sm:$0xff]  }
 0x2c7   : > { %v1068_v35 = vpop.permute.xlu0 %1067  ;;  %1303 = vmatprep.subr.bf16.mxu1 %v1086_v51  ;;  %1332 = vmatprep.subr.bf16.mxu0 %v1166_v42 }
 0x2c8   : > { %v1072_v24 = vsel %vm519_vm11, %v9433_v37, %v1068_v35  ;;  %v1076_v7 = vsel %vm519_vm11, %v1068_v35, %v9433_v37  ;;  %1333 = vmatpush1.bf16.msra.mxu0 %v1165_v39  ;;  %v1109_v37 = vsel %vm560_vm12, %v9494_v25, %v9517_v61 }
 0x2c9   : > { %v1083_v54 = vmul.f32 %v8886_v16, %v1072_v24  ;;  %v1084_v46 = vmul.f32 %v1076_v7, %v9073_v23  ;;  %v1106_v47 = vpop.permute.xlu1 %1105  ;;  %v1125_v1 = vpack.c.bf16 %v1110_v58, %v1109_v37 }
 0x2ca   : > { %1304 = vmatpush1.bf16.msra.mxu1 %v1085_v56  ;;  %v1115_v19 = vsel %vm560_vm12, %v1106_v47, %v1098_v5  ;;  %v1111_v4 = vsel %vm560_vm12, %v1098_v5, %v1106_v47 }
 0x2cb   : > { %v1087_v31 = vpack.c.bf16 %v1083_v54, %v1081_v10  ;;  %v1140_v63 = vpop.permute.xlu0 %1139  ;;  %v1088_v40 = vpack.c.bf16 %v1084_v46, %v1082_v18  ;;  %v1122_v25 = vmul.f32 %v9069_v12, %v1115_v19 }
 0x2cd   : > { %v1138_v44 = vpop.permute.xlu1 %1137  ;;  %1305 = vmatprep.subr.bf16.mxu1 %v1088_v40 }
 0x2ce   : > { %1306 = vmatpush1.bf16.msra.mxu1 %v1087_v31 }
 0x2cf   : > { %v1108_v36 = vpop.permute.xlu0 %1107  ;;  %1307 = vmatprep.subr.bf16.mxu1 %v1126_v45 }
 0x2d0   : > { %v1116_v29 = vsel %vm560_vm12, %v1108_v36, %v1100_v55  ;;  %v1112_v61 = vsel %vm560_vm12, %v1100_v55, %v1108_v36 }
 0x2d1   : > { %v1124_v49 = vmul.f32 %v9069_v12, %v1116_v29  ;;  %v1146_v62 = vpop.permute.xlu1 %1145  ;;  %v1127_v6 = vpack.c.bf16 %v1112_v61, %v1111_v4 }
 0x2d2   : > { %v1151_v57 = vsel %vm601_vm13, %v1138_v44, %v1146_v62  ;;  %v1155_v14 = vsel %vm601_vm13, %v1146_v62, %v1138_v44  ;;  %1308 = vmatpush1.bf16.msra.mxu1 %v1125_v1 }
 0x2d3   : > { %v1148_v8 = vpop.permute.xlu0 %1147  ;;  %v1128_v38 = vpack.c.bf16 %v1124_v49, %v1122_v25  ;;  %v1161_v13 = vmul.f32 %v8973_v11, %v1151_v57  ;;  %v1162_v3 = vmul.f32 %v1155_v14, %v9114_v59 }
 0x2d4   : > { %v1152_v30 = vsel %vm601_vm13, %v1140_v63, %v1148_v8  ;;  %v1156_v27 = vsel %vm601_vm13, %v1148_v8, %v1140_v63 }
 0x2d5   : > { %v1163_v53 = vmul.f32 %v8973_v11, %v1152_v30  ;;  %v1164_v2 = vmul.f32 %v1156_v27, %v9114_v59  ;;  %1309 = vmatprep.subr.bf16.mxu1 %v1128_v38 }
 0x2d6   : > { %1310 = vmatpush1.bf16.msra.mxu1 %v1127_v6 }
 0x2d7   : > { %v1167_v41 = vpack.c.bf16 %v1163_v53, %v1161_v13  ;;  %v1168_v55 = vpack.c.bf16 %v1164_v2, %v1162_v3  ;;  %v8524_v2 = vld [vmem:[%s14801_s1 + $0x64] ss:$12 sps:$4 sm:$0xff]  }
 0x2d9   : > { %1312 = vmatmul.mubr.bf16.vlgmr.msra.gmra.mrb[8].mxu1 %v8514_v50  ;;  %1334 = vmatprep.subr.bf16.mxu0 %v1168_v55 }
 0x2da   : > { %1335 = vmatpush1.bf16.msra.mxu0 %v1167_v41  ;;  %1321 = vmatprep.mubr.bf16.mxu1 %v8518_v28 }
 0x2dd   : > { %8038 = vmatmul.mubr.msk.bf16.vlgmr.msra.gmra.mrb[8].mxu0 %vm724_vm14, %v8517_v0 }
 0x2de   : > { %1374 = vmatprep.mubr.bf16.mxu0 %v14805_v26 }
 0x2e1   : > { %1322 = vmatmul.mubr.bf16.gmra.mrb[12].mxu1 %v8520_v48 }
 0x2e2   : > { %v1226_v51 = vpop.permute.xlu1 %1225 }
 0x2e4   : > { %v1231_v56 = vpop.permute.xlu0 %1230 }
 0x2e5   : > { %8039 = vmatmul.mubr.msk.bf16.gmra.mrb[12].mxu0 %vm724_vm14, %v8521_v60  ;;  %v8048_v60 = vld [vmem:[%s14802_s2 + $0x40] sm:$0xff] }
 0x2e6   : > { %v1236_v44 = vpop.permute.xlu1 %1235  ;;  %1859 = vmatprep.mubr.bf16.mxu0 %v8524_v2 }
 0x2e8   : > { %v1241_v36 = vpop.permute.xlu0 %1240 }
 0x3ac   : > { %v1313_v39 = vpop.f32.mrb[8].mxu1 }
 0x3ad   : > { %v1315_v5 = vpop.f32.mrb[9].mxu1  ;;  %v1314_v43 = vadd.f32 %v1313_v39, %v1226_v51 }
 0x3ae   : > { %v1317_v42 = vpop.f32.mrb[10].mxu1  ;;  %v1316_v35 = vadd.f32 %v1315_v5, %v1226_v51  ;;  %v8049_v5 = vld [vmem:[%s14802_s2 + $0x48] sm:$0xff] }
 0x3af   : > { %v1319_v21 = vpop.f32.mrb[11].mxu1  ;;  %v1318_v52 = vadd.f32 %v1317_v42, %v1231_v56  ;;  %v8050_v42 = vld [vmem:[%s14802_s2 + $0x50] sm:$0xff] }
 0x3b0   : > { %v1366_v10 = vpop.f32.mrb[8].mxu0  ;;  %v1320_v18 = vadd.f32 %v1319_v21, %v1231_v56  ;;  %v8051_v21 = vld [vmem:[%s14802_s2 + $0x58] sm:$0xff] }
 0x3b1   : > { %v1367_v24 = vadd.f32 %v1366_v10, %v1314_v43  ;;  %v1368_v7 = vpop.f32.mrb[9].mxu0 }
 0x3b2   : > { %v1369_v15 = vadd.f32 %v1368_v7, %v1316_v35  ;;  %v1370_v54 = vpop.f32.mrb[10].mxu0 }
 0x3b3   : > { %v9650_v46 = vmax.f32 %v1367_v24, 0.0  ;;  %v1371_v47 = vadd.f32 %v1370_v54, %v1318_v52  ;;  %v1372_v32 = vpop.f32.mrb[11].mxu0 }
 0x3b4   : > { %v1373_v31 = vadd.f32 %v1372_v32, %v1320_v18  ;;  %v1323_v63 = vpop.f32.mrb[12].mxu1  ;;  %v9672_v6 = vmax.f32 %v1369_v15, 0.0 }
 0x3b5   : > { %v9652_v40 = vmax.f32 %v1371_v47, 0.0  ;;  %v1325_v37 = vpop.f32.mrb[13].mxu1  ;;  %1393 = vrot.lane.b32.xlu1 %v9650_v46, %s8686_s21  ;;  %v1324_v19 = vadd.f32 %v1323_v63, %v1236_v44 }
 0x3b6   : > { %v1327_v45 = vpop.f32.mrb[14].mxu1  ;;  %v1326_v1 = vadd.f32 %v1325_v37, %v1236_v44  ;;  %v9676_v30 = vmax.f32 %v1373_v31, 0.0 }
 0x3b7   : > { %v1329_v58 = vpop.f32.mrb[15].mxu1  ;;  %1395 = vrot.lane.b32.xlu0 %v9652_v40, %s8686_s21  ;;  %v1328_v25 = vadd.f32 %v1327_v45, %v1241_v36 }
 0x3b8   : > { %v1376_v29 = vpop.f32.mrb[12].mxu0  ;;  %v1330_v62 = vadd.f32 %v1329_v58, %v1241_v36 }
 0x3b9   : > { %v1377_v61 = vadd.f32 %v1376_v29, %v1324_v19  ;;  %v1378_v49 = vpop.f32.mrb[13].mxu0  ;;  %1433 = vrot.lane.b32.xlu1 %v9650_v46, %s8687_s22 }
 0x3ba   : > { %v1379_v57 = vadd.f32 %v1378_v49, %v1326_v1  ;;  %v1380_v14 = vpop.f32.mrb[14].mxu0 }
 0x3bb   : > { %v1381_v4 = vadd.f32 %v1380_v14, %v1328_v25  ;;  %v1382_v8 = vpop.f32.mrb[15].mxu0  ;;  %1435 = vrot.lane.b32.xlu0 %v9652_v40, %s8687_s22  ;;  %v9692_v27 = vmax.f32 %v1377_v61, 0.0 }
 0x3bc   : > { %v1383_v38 = vadd.f32 %v1382_v8, %v1330_v62  ;;  %v9712_v3 = vmax.f32 %v1379_v57, 0.0 }
 0x3bd   : > { %1473 = vrot.lane.b32.xlu1 %v9650_v46, %s8688_s23  ;;  %v9696_v13 = vmax.f32 %v1381_v4, 0.0 }
 0x3be   : > { %v9716_v53 = vmax.f32 %v1383_v38, 0.0 }
 0x3bf   : > { %1475 = vrot.lane.b32.xlu0 %v9652_v40, %s8688_s23 }
 0x3c1   : > { %1513 = vrot.lane.b32.xlu1 %v9650_v46, %s8689_s24 }
 0x3c3   : > { %1515 = vrot.lane.b32.xlu0 %v9652_v40, %s8689_s24 }
 0x3c5   : > { %1561 = vrot.lane.b32.xlu1 %v9650_v46, %s8690_s25 }
 0x3c7   : > { %1563 = vrot.lane.b32.xlu0 %v9652_v40, %s8690_s25 }
 0x3c9   : > { %1401 = vrot.lane.b32.xlu1 %v9672_v6, %s8686_s21 }
 0x3cb   : > { %1403 = vrot.lane.b32.xlu0 %v9676_v30, %s8686_s21 }
 0x3cd   : > { %1441 = vrot.lane.b32.xlu1 %v9672_v6, %s8687_s22 }
 0x3cf   : > { %1443 = vrot.lane.b32.xlu0 %v9676_v30, %s8687_s22 }
 0x3d1   : > { %1481 = vrot.lane.b32.xlu1 %v9672_v6, %s8688_s23 }
 0x3d3   : > { %1483 = vrot.lane.b32.xlu0 %v9676_v30, %s8688_s23 }
 0x3d5   : > { %1521 = vrot.lane.b32.xlu1 %v9672_v6, %s8689_s24 }
 0x3d7   : > { %1523 = vrot.lane.b32.xlu0 %v9676_v30, %s8689_s24 }
 0x3d9   : > { %1397 = vrot.lane.b32.xlu1 %v9692_v27, %s8686_s21 }
 0x3db   : > { %1399 = vrot.lane.b32.xlu0 %v9696_v13, %s8686_s21 }
 0x3dd   : > { %1437 = vrot.lane.b32.xlu1 %v9692_v27, %s8687_s22 }
 0x3df   : > { %1439 = vrot.lane.b32.xlu0 %v9696_v13, %s8687_s22 }
 0x3e1   : > { %1477 = vrot.lane.b32.xlu1 %v9692_v27, %s8688_s23 }
 0x3e3   : > { %1479 = vrot.lane.b32.xlu0 %v9696_v13, %s8688_s23 }
 0x3e5   : > { %1517 = vrot.lane.b32.xlu1 %v9692_v27, %s8689_s24 }
 0x3e7   : > { %1519 = vrot.lane.b32.xlu0 %v9696_v13, %s8689_s24 }
 0x3e9   : > { %1405 = vrot.lane.b32.xlu1 %v9712_v3, %s8686_s21 }
 0x3eb   : > { %1407 = vrot.lane.b32.xlu0 %v9716_v53, %s8686_s21 }
 0x3ed   : > { %1569 = vrot.lane.b32.xlu1 %v9672_v6, %s8690_s25 }
 0x3ef   : > { %1571 = vrot.lane.b32.xlu0 %v9676_v30, %s8690_s25 }
 0x3f1   : > { %1445 = vrot.lane.b32.xlu1 %v9712_v3, %s8687_s22 }
 0x3f3   : > { %1447 = vrot.lane.b32.xlu0 %v9716_v53, %s8687_s22 }
 0x3f5   : > { %1485 = vrot.lane.b32.xlu1 %v9712_v3, %s8688_s23 }
 0x3f7   : > { %1567 = vrot.lane.b32.xlu0 %v9696_v13, %s8690_s25 }
 0x3f9   : > { %1525 = vrot.lane.b32.xlu1 %v9712_v3, %s8689_s24 }
 0x3fb   : > { %1487 = vrot.lane.b32.xlu0 %v9716_v53, %s8688_s23 }
 0x3fd   : > { %1565 = vrot.lane.b32.xlu1 %v9692_v27, %s8690_s25 }
 0x3ff   : > { %1603 = vrot.lane.b32.xlu0 %v9652_v40, %s8691_s26 }
 0x401   : > { %1573 = vrot.lane.b32.xlu1 %v9712_v3, %s8690_s25 }
 0x403   : > { %1527 = vrot.lane.b32.xlu0 %v9716_v53, %s8689_s24 }
 0x405   : > { %1601 = vrot.lane.b32.xlu1 %v9650_v46, %s8691_s26 }
 0x407   : > { %1611 = vrot.lane.b32.xlu0 %v9676_v30, %s8691_s26 }
 0x409   : > { %1609 = vrot.lane.b32.xlu1 %v9672_v6, %s8691_s26 }
 0x40b   : > { %1607 = vrot.lane.b32.xlu0 %v9696_v13, %s8691_s26 }
 0x40d   : > { %1605 = vrot.lane.b32.xlu1 %v9692_v27, %s8691_s26 }
 0x40f   : > { %1643 = vrot.lane.b32.xlu0 %v9652_v40, %s8692_s27 }
 0x411   : > { %1613 = vrot.lane.b32.xlu1 %v9712_v3, %s8691_s26 }
 0x413   : > { %1575 = vrot.lane.b32.xlu0 %v9716_v53, %s8690_s25 }
 0x415   : > { %1641 = vrot.lane.b32.xlu1 %v9650_v46, %s8692_s27 }
 0x417   : > { %1651 = vrot.lane.b32.xlu0 %v9676_v30, %s8692_s27 }
 0x419   : > { %1649 = vrot.lane.b32.xlu1 %v9672_v6, %s8692_s27 }
 0x41b   : > { %1615 = vrot.lane.b32.xlu0 %v9716_v53, %s8691_s26 }
 0x41d   : > { %1645 = vrot.lane.b32.xlu1 %v9692_v27, %s8692_s27 }
 0x41f   : > { %1647 = vrot.lane.b32.xlu0 %v9696_v13, %s8692_s27 }
 0x421   : > { %1653 = vrot.lane.b32.xlu1 %v9712_v3, %s8692_s27 }
 0x423   : > { %1655 = vrot.lane.b32.xlu0 %v9716_v53, %s8692_s27 }
 0x425   : > { %1681 = vrot.lane.b32.xlu1 %v9650_v46, %s8693_s28 }
 0x427   : > { %1683 = vrot.lane.b32.xlu0 %v9652_v40, %s8693_s28  ;;  %v1394_v50 = vpop.permute.xlu1 %1393 }
 0x429   : > { %v1396_v28 = vpop.permute.xlu0 %1395  ;;  %1689 = vrot.lane.b32.xlu1 %v9672_v6, %s8693_s28 }
 0x42b   : > { %1691 = vrot.lane.b32.xlu0 %v9676_v30, %s8693_s28  ;;  %v9789_v41 = vpop.permute.xlu1 %1433 }
 0x42d   : > { %v1436_v55 = vpop.permute.xlu0 %1435  ;;  %1685 = vrot.lane.b32.xlu1 %v9692_v27, %s8693_s28 }
 0x42f   : > { %1687 = vrot.lane.b32.xlu0 %v9696_v13, %s8693_s28  ;;  %v9795_v0 = vpop.permute.xlu1 %1473 }
 0x431   : > { %v9797_v48 = vpop.permute.xlu0 %1475  ;;  %1693 = vrot.lane.b32.xlu1 %v9712_v3, %s8693_s28 }
 0x433   : > { %1695 = vrot.lane.b32.xlu0 %v9716_v53, %s8693_s28  ;;  %v9806_v39 = vpop.permute.xlu1 %1513 }
 0x435   : > { %v9811_v51 = vpop.permute.xlu0 %1515  ;;  %1773 = vperm.xlu1 %8505, %v8048_v60  }
 0x437   : > { %1778 = vperm.xlu0 %8504, %v8049_v5   ;;  %v9816_v43 = vpop.permute.xlu1 %1561 }
 0x439   : > { %v9821_v56 = vpop.permute.xlu0 %1563  ;;  %1783 = vperm.xlu1 %8505, %v8050_v42  }
 0x43b   : > { %1788 = vperm.xlu0 %8504, %v8051_v21   ;;  %v1402_v35 = vpop.permute.xlu1 %1401 }
 0x43c   : > { %v1409_v10 = vsel %vm306_vm2, %v1394_v50, %v1402_v35  ;;  %v1413_v52 = vsel %vm306_vm2, %v1402_v35, %v1394_v50 }
 0x43d   : > { %v1404_v24 = vpop.permute.xlu0 %1403  ;;  %v1417_v15 = vmul.f32 %v1413_v52, %v8902_v22  ;;  %v1418_v54 = vmul.f32 %v8896_v20, %v1409_v10 }
 0x43e   : > { %v1410_v7 = vsel %vm306_vm2, %v1396_v28, %v1404_v24  ;;  %v1414_v18 = vsel %vm306_vm2, %v1404_v24, %v1396_v28 }
 0x43f   : > { %v1419_v47 = vmul.f32 %v1414_v18, %v8902_v22  ;;  %v1420_v32 = vmul.f32 %v8896_v20, %v1410_v7  ;;  %v1442_v31 = vpop.permute.xlu1 %1441 }
 0x440   : > { %v1453_v52 = vsel %vm347_vm4, %v1442_v31, %v9789_v41 }
 0x441   : > { %v1425_v63 = vpack.c.bf16 %v1419_v47, %v1417_v15  ;;  %v1444_v37 = vpop.permute.xlu0 %1443  ;;  %v1426_v44 = vpack.c.bf16 %v1420_v32, %v1418_v54  ;;  %v1449_v47 = vsel %vm347_vm4, %v9789_v41, %v1442_v31  ;;  %v1457_v32 = vmul.f32 %v8889_v17, %v1453_v52 }
 0x442   : > { %v1454_v50 = vsel %vm347_vm4, %v1444_v37, %v1436_v55  ;;  %v1450_v24 = vsel %vm347_vm4, %v1436_v55, %v1444_v37 }
 0x443   : > { %1827 = vmatprep.subr.bf16.mxu0 %v1426_v44  ;;  %v1482_v45 = vpop.permute.xlu1 %1481  ;;  %v1459_v7 = vmul.f32 %v8889_v17, %v1454_v50  ;;  %v1466_v44 = vpack.c.bf16 %v1450_v24, %v1449_v47 }
 0x444   : > { %1828 = vmatpush1.bf16.msra.mxu0 %v1425_v63 }
 0x445   : > { %v1484_v19 = vpop.permute.xlu0 %1483  ;;  %v1465_v37 = vpack.c.bf16 %v1459_v7, %v1457_v32 }
 0x446   : > { %v1494_v41 = vsel %vm388_vm7, %v1484_v19, %v9797_v48 }
 0x447   : > { %v9835_v58 = vpop.permute.xlu1 %1521 }
 0x449   : > { %v9837_v36 = vpop.permute.xlu0 %1523 }
 0x44a   : > { %v1534_v47 = vsel %vm429_vm8, %v9837_v36, %v9811_v51 }
 0x44b   : > { %v1398_v1 = vpop.permute.xlu1 %1397 }
 0x44d   : > { %v1400_v29 = vpop.permute.xlu0 %1399 }
 0x44f   : > { %v1438_v25 = vpop.permute.xlu1 %1437 }
 0x451   : > { %v1440_v61 = vpop.permute.xlu0 %1439 }
 0x453   : > { %v1478_v49 = vpop.permute.xlu1 %1477 }
 0x455   : > { %v9839_v62 = vpop.permute.xlu0 %1479 }
 0x457   : > { %v9841_v57 = vpop.permute.xlu1 %1517 }
 0x459   : > { %v9843_v14 = vpop.permute.xlu0 %1519 }
 0x45b   : > { %v1406_v4 = vpop.permute.xlu1 %1405 }
 0x45c   : > { %v1411_v8 = vsel %vm306_vm2, %v1398_v1, %v1406_v4  ;;  %v1415_v38 = vsel %vm306_vm2, %v1406_v4, %v1398_v1  ;;  %v1490_v1 = vsel %vm388_vm7, %v9797_v48, %v1484_v19  ;;  %v1493_v48 = vsel %vm388_vm7, %v1482_v45, %v9795_v0 }
 0x45d   : > { %v1408_v2 = vpop.permute.xlu0 %1407  ;;  %v1421_v5 = vmul.f32 %v1415_v38, %v8902_v22  ;;  %v1422_v42 = vmul.f32 %v8896_v20, %v1411_v8 }
 0x45e   : > { %v1412_v28 = vsel %vm306_vm2, %v1400_v29, %v1408_v2  ;;  %v1416_v60 = vsel %vm306_vm2, %v1408_v2, %v1400_v29  ;;  %v1489_v29 = vsel %vm388_vm7, %v9795_v0, %v1482_v45  ;;  %v1500_v2 = vmul.f32 %v8983_v34, %v1490_v1 }
 0x45f   : > { %v1423_v21 = vmul.f32 %v1416_v60, %v8902_v22  ;;  %v1424_v35 = vmul.f32 %v8896_v20, %v1412_v28  ;;  %v9859_v10 = vpop.permute.xlu1 %1569  ;;  %v1498_v19 = vmul.f32 %v8983_v34, %v1489_v29 }
 0x461   : > { %v1427_v18 = vpack.c.bf16 %v1423_v21, %v1421_v5  ;;  %v9867_v15 = vpop.permute.xlu0 %1571  ;;  %v1428_v54 = vpack.c.bf16 %v1424_v35, %v1422_v42  ;;  %v1530_v35 = vsel %vm429_vm8, %v9811_v51, %v9837_v36  ;;  %v1506_v24 = vpack.c.bf16 %v1500_v2, %v1498_v19 }
 0x462   : > { %v1540_v32 = vmul.f32 %v8896_v20, %v1530_v35  ;;  %v1533_v51 = vsel %vm429_vm8, %v9835_v58, %v9806_v39 }
 0x463   : > { %1829 = vmatprep.subr.bf16.mxu0 %v1428_v54  ;;  %v1446_v63 = vpop.permute.xlu1 %1445  ;;  %v1537_v2 = vmul.f32 %v8886_v16, %v1533_v51 }
 0x464   : > { %v1455_v55 = vsel %vm347_vm4, %v1446_v63, %v1438_v25  ;;  %1830 = vmatpush1.bf16.msra.mxu0 %v1427_v18  ;;  %v1451_v31 = vsel %vm347_vm4, %v1438_v25, %v1446_v63  ;;  %v1499_v25 = vmul.f32 %v1494_v41, %v8979_v33  ;;  %v1529_v18 = vsel %vm429_vm8, %v9806_v39, %v9835_v58 }
 0x465   : > { %v1448_v4 = vpop.permute.xlu0 %1447  ;;  %1831 = vmatprep.subr.bf16.mxu0 %v1466_v44  ;;  %v1461_v50 = vmul.f32 %v8889_v17, %v1455_v55  ;;  %v1538_v36 = vmul.f32 %v8896_v20, %v1529_v18  ;;  %v1578_v18 = vsel %vm478_vm9, %v9821_v56, %v9867_v15 }
 0x466   : > { %v1452_v8 = vsel %vm347_vm4, %v1440_v61, %v1448_v4  ;;  %v1456_v38 = vsel %vm347_vm4, %v1448_v4, %v1440_v61  ;;  %v1497_v61 = vmul.f32 %v1493_v48, %v8979_v33 }
 0x467   : > { %v1463_v28 = vmul.f32 %v8889_v17, %v1456_v38  ;;  %v1486_v60 = vpop.permute.xlu1 %1485  ;;  %v1468_v5 = vpack.c.bf16 %v1452_v8, %v1451_v31  ;;  %v1539_v31 = vmul.f32 %v8886_v16, %v1534_v47  ;;  %v1546_v38 = vpack.c.bf16 %v1540_v32, %v1538_v36 }
 0x468   : > { %1832 = vmatpush1.bf16.msra.mxu0 %v1465_v37  ;;  %v1491_v0 = vsel %vm388_vm7, %v1478_v49, %v1486_v60  ;;  %v1495_v45 = vsel %vm388_vm7, %v1486_v60, %v1478_v49  ;;  %v1505_v7 = vpack.c.bf16 %v1499_v25, %v1497_v61  ;;  %v1556_v47 = vpack.c.bf16 %v9716_v53, %v9712_v3 }
 0x469   : > { %v1467_v42 = vpack.c.bf16 %v1463_v28, %v1461_v50  ;;  %v9898_v21 = vpop.permute.xlu0 %1567  ;;  %1833 = vmatprep.subr.bf16.mxu0 %v1468_v5  ;;  %v1501_v44 = vmul.f32 %v1495_v45, %v8979_v33  ;;  %v1502_v1 = vmul.f32 %v8983_v34, %v1491_v0  ;;  %v1545_v28 = vpack.c.bf16 %v1539_v31, %v1537_v2 }
 0x46a   : > { %v1554_v0 = vpack.c.bf16 %v9676_v30, %v9672_v6  ;;  %v1553_v6 = vpack.c.bf16 %v9652_v40, %v9650_v46  ;;  %v1577_v32 = vsel %vm478_vm9, %v9816_v43, %v9859_v10  ;;  %v1555_v40 = vpack.c.bf16 %v9696_v13, %v9692_v27 }
 0x46b   : > { %v1526_v52 = vpop.permute.xlu1 %1525  ;;  %v1585_v3 = vmul.f32 %v8973_v11, %v1577_v32 }
 0x46c   : > { %1834 = vmatpush1.bf16.msra.mxu0 %v1467_v42  ;;  %v1531_v50 = vsel %vm429_vm8, %v9841_v57, %v1526_v52  ;;  %v1535_v39 = vsel %vm429_vm8, %v1526_v52, %v9841_v57 }
 0x46d   : > { %v1488_v54 = vpop.permute.xlu0 %1487  ;;  %1835 = vmatprep.subr.bf16.mxu0 %v1506_v24  ;;  %v1541_v48 = vmul.f32 %v8886_v16, %v1535_v39  ;;  %v1542_v19 = vmul.f32 %v8896_v20, %v1531_v50 }
 0x46e   : > { %v1492_v49 = vsel %vm388_vm7, %v9839_v62, %v1488_v54  ;;  %v1496_v63 = vsel %vm388_vm7, %v1488_v54, %v9839_v62 }
 0x46f   : > { %v1503_v55 = vmul.f32 %v1496_v63, %v8979_v33  ;;  %v1504_v37 = vmul.f32 %v8983_v34, %v1492_v49  ;;  %v1566_v29 = vpop.permute.xlu1 %1565  ;;  %v1587_v63 = vmul.f32 %v8973_v11, %v1578_v18 }
 0x470   : > { %1836 = vmatpush1.bf16.msra.mxu0 %v1505_v7  ;;  %v1581_v7 = vsel %vm478_vm9, %v9859_v10, %v9816_v43 }
 0x471   : > { %v1507_v4 = vpack.c.bf16 %v1503_v55, %v1501_v44  ;;  %v9933_v41 = vpop.permute.xlu0 %1603  ;;  %v1508_v62 = vpack.c.bf16 %v1504_v37, %v1502_v1  ;;  %v1586_v49 = vmul.f32 %v8983_v34, %v1581_v7  ;;  %v1593_v44 = vpack.c.bf16 %v1587_v63, %v1585_v3 }
 0x473   : > { %1837 = vmatprep.subr.bf16.mxu0 %v1508_v62  ;;  %v1574_v8 = vpop.permute.xlu1 %1573 }
 0x474   : > { %1838 = vmatpush1.bf16.msra.mxu0 %v1507_v4  ;;  %v1579_v46 = vsel %vm478_vm9, %v1566_v29, %v1574_v8  ;;  %v1583_v43 = vsel %vm478_vm9, %v1574_v8, %v1566_v29 }
 0x475   : > { %v1528_v58 = vpop.permute.xlu0 %1527  ;;  %1839 = vmatprep.subr.bf16.mxu0 %v1546_v38  ;;  %v1589_v1 = vmul.f32 %v8973_v11, %v1579_v46  ;;  %v1590_v51 = vmul.f32 %v8983_v34, %v1583_v43 }
 0x476   : > { %v1532_v60 = vsel %vm429_vm8, %v9843_v14, %v1528_v58  ;;  %v1536_v5 = vsel %vm429_vm8, %v1528_v58, %v9843_v14  ;;  %v1582_v14 = vsel %vm478_vm9, %v9867_v15, %v9821_v56 }
 0x477   : > { %v1543_v25 = vmul.f32 %v8886_v16, %v1536_v5  ;;  %v1544_v57 = vmul.f32 %v8896_v20, %v1532_v60  ;;  %v1602_v42 = vpop.permute.xlu1 %1601  ;;  %v1588_v30 = vmul.f32 %v8983_v34, %v1582_v14 }
 0x478   : > { %1840 = vmatpush1.bf16.msra.mxu0 %v1545_v28 }
 0x479   : > { %v1547_v61 = vpack.c.bf16 %v1543_v25, %v1541_v48  ;;  %v1612_v35 = vpop.permute.xlu0 %1611  ;;  %v1548_v52 = vpack.c.bf16 %v1544_v57, %v1542_v19  ;;  %v1594_v15 = vpack.c.bf16 %v1588_v30, %v1586_v49 }
 0x47a   : > { %v1622_v27 = vsel %vm519_vm11, %v1612_v35, %v9933_v41  ;;  %v1618_v8 = vsel %vm519_vm11, %v9933_v41, %v1612_v35 }
 0x47b   : > { %1841 = vmatprep.subr.bf16.mxu0 %v1548_v52  ;;  %v1610_v24 = vpop.permute.xlu1 %1609  ;;  %v1628_v38 = vmul.f32 %v1622_v27, %v9073_v23  ;;  %v1627_v58 = vmul.f32 %v8886_v16, %v1618_v8 }
 0x47c   : > { %1842 = vmatpush1.bf16.msra.mxu0 %v1547_v61  ;;  %v1621_v10 = vsel %vm519_vm11, %v1610_v24, %v1602_v42  ;;  %v1617_v13 = vsel %vm519_vm11, %v1602_v42, %v1610_v24 }
 0x47d   : > { %v1608_v45 = vpop.permute.xlu0 %1607  ;;  %1843 = vmatprep.subr.bf16.mxu0 %v1554_v0  ;;  %v1626_v36 = vmul.f32 %v1621_v10, %v9073_v23  ;;  %v1625_v2 = vmul.f32 %v8886_v16, %v1617_v13  ;;  %v8522_v13 = vld [vmem:[%s14801_s1 + $0x60] ss:$12 sps:$4 sm:$0xff]  }
 0x47f   : > { %v1606_v54 = vpop.permute.xlu1 %1605  ;;  %v1634_v5 = vpack.c.bf16 %v1628_v38, %v1626_v36  ;;  %v1633_v19 = vpack.c.bf16 %v1627_v58, %v1625_v2 }
 0x480   : > { %1844 = vmatpush1.bf16.msra.mxu0 %v1553_v6 }
 0x481   : > { %v1644_v56 = vpop.permute.xlu0 %1643  ;;  %1845 = vmatprep.subr.bf16.mxu0 %v1556_v47 }
 0x483   : > { %v1614_v53 = vpop.permute.xlu1 %1613 }
 0x484   : > { %1846 = vmatpush1.bf16.msra.mxu0 %v1555_v40  ;;  %v1619_v28 = vsel %vm519_vm11, %v1606_v54, %v1614_v53  ;;  %v1623_v48 = vsel %vm519_vm11, %v1614_v53, %v1606_v54 }
 0x485   : > { %v1576_v55 = vpop.permute.xlu0 %1575  ;;  %1847 = vmatprep.subr.bf16.mxu0 %v1594_v15  ;;  %v1629_v57 = vmul.f32 %v8886_v16, %v1619_v28  ;;  %v1630_v52 = vmul.f32 %v1623_v48, %v9073_v23 }
 0x486   : > { %v1580_v37 = vsel %vm478_vm9, %v9898_v21, %v1576_v55  ;;  %v1584_v29 = vsel %vm478_vm9, %v1576_v55, %v9898_v21 }
 0x487   : > { %v1591_v4 = vmul.f32 %v8973_v11, %v1580_v37  ;;  %v1592_v62 = vmul.f32 %v8983_v34, %v1584_v29  ;;  %v1642_v31 = vpop.permute.xlu1 %1641 }
 0x488   : > { %1848 = vmatpush1.bf16.msra.mxu0 %v1593_v44 }
 0x489   : > { %v1595_v50 = vpack.c.bf16 %v1591_v4, %v1589_v1  ;;  %v1652_v21 = vpop.permute.xlu0 %1651  ;;  %v1596_v39 = vpack.c.bf16 %v1592_v62, %v1590_v51  ;;  %v8525_v51 = vld [vmem:[%s14801_s1 + $0x7c] ss:$12 sps:$4 sm:$0xff]  }
 0x48a   : > { %v1662_v42 = vsel %vm560_vm12, %v1652_v21, %v1644_v56  ;;  %v1658_v63 = vsel %vm560_vm12, %v1644_v56, %v1652_v21 }
 0x48b   : > { %v1650_v60 = vpop.permute.xlu1 %1649  ;;  %1849 = vmatprep.subr.bf16.mxu0 %v1596_v39  ;;  %v1668_v18 = vmul.f32 %v9069_v12, %v1662_v42 }
 0x48c   : > { %v1661_v41 = vsel %vm560_vm12, %v1650_v60, %v1642_v31  ;;  %1850 = vmatpush1.bf16.msra.mxu0 %v1595_v50  ;;  %v1657_v47 = vsel %vm560_vm12, %v1642_v31, %v1650_v60  ;;  %v8527_v60 = vld [vmem:[%s14801_s1 + $0x78] ss:$12 sps:$4 sm:$0xff]  }
 0x48d   : > { %v1616_v25 = vpop.permute.xlu0 %1615  ;;  %1851 = vmatprep.subr.bf16.mxu0 %v1634_v5  ;;  %v1666_v24 = vmul.f32 %v9069_v12, %v1661_v41  ;;  %v1673_v40 = vpack.c.bf16 %v1658_v63, %v1657_v47 }
 0x48e   : > { %v1620_v61 = vsel %vm519_vm11, %v1608_v45, %v1616_v25  ;;  %v1624_v35 = vsel %vm519_vm11, %v1616_v25, %v1608_v45 }
 0x48f   : > { %v1631_v0 = vmul.f32 %v8886_v16, %v1620_v61  ;;  %v1632_v14 = vmul.f32 %v1624_v35, %v9073_v23  ;;  %v1646_v7 = vpop.permute.xlu1 %1645  ;;  %v1674_v45 = vpack.c.bf16 %v1668_v18, %v1666_v24 }
 0x490   : > { %1852 = vmatpush1.bf16.msra.mxu0 %v1633_v19 }
 0x491   : > { %v1635_v6 = vpack.c.bf16 %v1631_v0, %v1629_v57  ;;  %v1648_v30 = vpop.permute.xlu0 %1647  ;;  %v1636_v54 = vpack.c.bf16 %v1632_v14, %v1630_v52  ;;  %v8528_v0 = vld [vmem:[%s14801_s1 + $0x68] ss:$12 sps:$4 sm:$0xff]   ;;  %v8529_v14 = vld [vmem:[%s14801_s1 + $0x80] ss:$12 sps:$4 sm:$0xff]  }
 0x493   : > { %v1654_v32 = vpop.permute.xlu1 %1653  ;;  %1853 = vmatprep.subr.bf16.mxu0 %v1636_v54 }
 0x494   : > { %v1663_v49 = vsel %vm560_vm12, %v1654_v32, %v1646_v7  ;;  %1854 = vmatpush1.bf16.msra.mxu0 %v1635_v6  ;;  %v1659_v44 = vsel %vm560_vm12, %v1646_v7, %v1654_v32 }
 0x495   : > { %v1656_v46 = vpop.permute.xlu0 %1655  ;;  %1855 = vmatprep.subr.bf16.mxu0 %v1674_v45  ;;  %v1670_v53 = vmul.f32 %v9069_v12, %v1663_v49 }
 0x496   : > { %v1664_v3 = vsel %vm560_vm12, %v1656_v46, %v1648_v30  ;;  %v1660_v15 = vsel %vm560_vm12, %v1648_v30, %v1656_v46 }
 0x497   : > { %v1672_v43 = vmul.f32 %v9069_v12, %v1664_v3  ;;  %v1682_v10 = vpop.permute.xlu1 %1681  ;;  %v1675_v55 = vpack.c.bf16 %v1660_v15, %v1659_v44 }
 0x498   : > { %1856 = vmatpush1.bf16.msra.mxu0 %v1673_v40 }
 0x499   : > { %v1684_v1 = vpop.permute.xlu0 %1683  ;;  %v1676_v56 = vpack.c.bf16 %v1672_v43, %v1670_v53 }
 0x49b   : > { %v1690_v27 = vpop.permute.xlu1 %1689  ;;  %1857 = vmatprep.subr.bf16.mxu0 %v1676_v56 }
 0x49c   : > { %v1697_v37 = vsel %vm601_vm13, %v1682_v10, %v1690_v27  ;;  %v1701_v29 = vsel %vm601_vm13, %v1690_v27, %v1682_v10  ;;  %1858 = vmatpush1.bf16.msra.mxu0 %v1675_v55 }
 0x49d   : > { %v1692_v36 = vpop.permute.xlu0 %1691  ;;  %v1705_v31 = vmul.f32 %v8973_v11, %v1697_v37  ;;  %v1706_v8 = vmul.f32 %v1701_v29, %v9114_v59 }
 0x49e   : > { %v1698_v4 = vsel %vm601_vm13, %v1684_v1, %v1692_v36  ;;  %v1702_v62 = vsel %vm601_vm13, %v1692_v36, %v1684_v1 }
 0x49f   : > { %v1707_v38 = vmul.f32 %v8973_v11, %v1698_v4  ;;  %v1708_v2 = vmul.f32 %v1702_v62, %v9114_v59  ;;  %v1686_v50 = vpop.permute.xlu1 %1685  ;;  %1860 = vmatmul.mubr.bf16.vlgmr.msra.gmra.mrb[16].mxu0 %v8522_v13 }
 0x4a0   : > { %1869 = vmatprep.mubr.bf16.mxu0 %v8525_v51 }
 0x4a1   : > { %v1713_v21 = vpack.c.bf16 %v1707_v38, %v1705_v31  ;;  %v1688_v39 = vpop.permute.xlu0 %1687  ;;  %v1714_v58 = vpack.c.bf16 %v1708_v2, %v1706_v8  ;;  %v8532_v8 = vld [vmem:[%s14801_s1 + $0x94] ss:$12 sps:$4 sm:$0xff]  }
 0x4a2   : > { %2407 = vmatprep.mubr.bf16.mxu1 %v8532_v8 }
 0x4a3   : > { %v1694_v28 = vpop.permute.xlu1 %1693  ;;  %1880 = vmatprep.subr.bf16.mxu0 %v1714_v58 }
 0x4a4   : > { %v1699_v5 = vsel %vm601_vm13, %v1686_v50, %v1694_v28  ;;  %v1703_v48 = vsel %vm601_vm13, %v1694_v28, %v1686_v50  ;;  %1881 = vmatpush1.bf16.msra.mxu0 %v1713_v21  ;;  %v8069_v28 = vld [vmem:[%s14802_s2 + $0x68] sm:$0xff] }
 0x4a5   : > { %v1696_v41 = vpop.permute.xlu0 %1695  ;;  %v1709_v57 = vmul.f32 %v8973_v11, %v1699_v5  ;;  %v1710_v42 = vmul.f32 %v1703_v48, %v9114_v59  ;;  %v8070_v5 = vld [vmem:[%s14802_s2 + $0x70] sm:$0xff] }
 0x4a6   : > { %v1700_v19 = vsel %vm601_vm13, %v1688_v39, %v1696_v41  ;;  %v1704_v25 = vsel %vm601_vm13, %v1696_v41, %v1688_v39  ;;  %v8068_v39 = vld [vmem:[%s14802_s2 + $0x60] sm:$0xff]  ;;  %v8071_v41 = vld [vmem:[%s14802_s2 + $0x78] sm:$0xff] }
 0x4a7   : > { %v1711_v61 = vmul.f32 %v8973_v11, %v1700_v19  ;;  %v1712_v35 = vmul.f32 %v1704_v25, %v9114_v59  ;;  %1870 = vmatmul.mubr.bf16.gmra.mrb[20].mxu0 %v8527_v60 }
 0x4a8   : > { %1912 = vmatprep.mubr.bf16.mxu0 %v14805_v26 }
 0x4a9   : > { %v1715_v52 = vpack.c.bf16 %v1711_v61, %v1709_v57  ;;  %v1716_v24 = vpack.c.bf16 %v1712_v35, %v1710_v42 }
 0x4ab   : > { %1882 = vmatprep.subr.bf16.mxu0 %v1716_v24 }
 0x4ac   : > { %1883 = vmatpush1.bf16.msra.mxu0 %v1715_v52 }
 0x4af   : > { %8058 = vmatmul.mubr.msk.bf16.vlgmr.msra.gmra.mrb[16].mxu0 %vm724_vm14, %v8528_v0 }
 0x4b0   : > { %1922 = vmatprep.mubr.bf16.mxu0 %v14805_v26 }
 0x4b4   : > { %v1774_v7 = vpop.permute.xlu1 %1773 }
 0x4b6   : > { %v1779_v54 = vpop.permute.xlu0 %1778 }
 0x4b7   : > { %8059 = vmatmul.mubr.msk.bf16.gmra.mrb[20].mxu0 %vm724_vm14, %v8529_v14 }
 0x4b8   : > { %2460 = vmatprep.mubr.bf16.mxu0 %v14805_v26  ;;  %v1784_v1 = vpop.permute.xlu1 %1783 }
 0x4ba   : > { %v1789_v55 = vpop.permute.xlu0 %1788 }
 0x582   : > { %v1914_v18 = vpop.f32.mrb[16].mxu0 }
 0x583   : > { %v8310_v6 = vadd.f32 %v1914_v18, %v1774_v7  ;;  %v1916_v30 = vpop.f32.mrb[17].mxu0 }
 0x584   : > { %v1918_v47 = vpop.f32.mrb[18].mxu0  ;;  %v8311_v15 = vadd.f32 %v1916_v30, %v1774_v7 }
 0x585   : > { %v10085_v32 = vmax.f32 %v8310_v6, 0.0  ;;  %v8312_v45 = vadd.f32 %v1918_v47, %v1779_v54  ;;  %v1920_v49 = vpop.f32.mrb[19].mxu0 }
 0x586   : > { %v8313_v43 = vadd.f32 %v1920_v49, %v1779_v54  ;;  %v10111_v10 = vmax.f32 %v8311_v15, 0.0 }
 0x587   : > { %v10087_v63 = vmax.f32 %v8312_v45, 0.0  ;;  %1941 = vrot.lane.b32.xlu1 %v10085_v32, %s8686_s21 }
 0x588   : > { %v10115_v44 = vmax.f32 %v8313_v43, 0.0 }
 0x589   : > { %1943 = vrot.lane.b32.xlu0 %v10087_v63, %s8686_s21 }
 0x58a   : > { %v1924_v46 = vpop.f32.mrb[20].mxu0 }
 0x58b   : > { %v1926_v40 = vpop.f32.mrb[21].mxu0  ;;  %1981 = vrot.lane.b32.xlu1 %v10085_v32, %s8687_s22  ;;  %v8314_v56 = vadd.f32 %v1924_v46, %v1784_v1 }
 0x58c   : > { %v1928_v3 = vpop.f32.mrb[22].mxu0  ;;  %v8315_v29 = vadd.f32 %v1926_v40, %v1784_v1 }
 0x58d   : > { %v1930_v53 = vpop.f32.mrb[23].mxu0  ;;  %1983 = vrot.lane.b32.xlu0 %v10087_v63, %s8687_s22  ;;  %v8316_v27 = vadd.f32 %v1928_v3, %v1789_v55  ;;  %v10135_v13 = vmax.f32 %v8314_v56, 0.0 }
 0x58e   : > { %v8317_v51 = vadd.f32 %v1930_v53, %v1789_v55  ;;  %v10159_v36 = vmax.f32 %v8315_v29, 0.0 }
 0x58f   : > { %2021 = vrot.lane.b32.xlu1 %v10085_v32, %s8688_s23  ;;  %v10139_v37 = vmax.f32 %v8316_v27, 0.0 }
 0x590   : > { %v10163_v4 = vmax.f32 %v8317_v51, 0.0 }
 0x591   : > { %2023 = vrot.lane.b32.xlu0 %v10087_v63, %s8688_s23 }
 0x593   : > { %2061 = vrot.lane.b32.xlu1 %v10085_v32, %s8689_s24 }
 0x595   : > { %2063 = vrot.lane.b32.xlu0 %v10087_v63, %s8689_s24 }
 0x597   : > { %2109 = vrot.lane.b32.xlu1 %v10085_v32, %s8690_s25 }
 0x599   : > { %2111 = vrot.lane.b32.xlu0 %v10087_v63, %s8690_s25 }
 0x59b   : > { %2149 = vrot.lane.b32.xlu1 %v10085_v32, %s8691_s26 }
 0x59d   : > { %2151 = vrot.lane.b32.xlu0 %v10087_v63, %s8691_s26 }
 0x59f   : > { %1949 = vrot.lane.b32.xlu1 %v10111_v10, %s8686_s21 }
 0x5a1   : > { %1951 = vrot.lane.b32.xlu0 %v10115_v44, %s8686_s21 }
 0x5a3   : > { %1989 = vrot.lane.b32.xlu1 %v10111_v10, %s8687_s22 }
 0x5a5   : > { %1991 = vrot.lane.b32.xlu0 %v10115_v44, %s8687_s22 }
 0x5a7   : > { %2029 = vrot.lane.b32.xlu1 %v10111_v10, %s8688_s23 }
 0x5a9   : > { %2031 = vrot.lane.b32.xlu0 %v10115_v44, %s8688_s23 }
 0x5ab   : > { %2069 = vrot.lane.b32.xlu1 %v10111_v10, %s8689_s24 }
 0x5ad   : > { %2071 = vrot.lane.b32.xlu0 %v10115_v44, %s8689_s24 }
 0x5af   : > { %2117 = vrot.lane.b32.xlu1 %v10111_v10, %s8690_s25 }
 0x5b1   : > { %2119 = vrot.lane.b32.xlu0 %v10115_v44, %s8690_s25 }
 0x5b3   : > { %1945 = vrot.lane.b32.xlu1 %v10135_v13, %s8686_s21 }
 0x5b5   : > { %1947 = vrot.lane.b32.xlu0 %v10139_v37, %s8686_s21 }
 0x5b7   : > { %1985 = vrot.lane.b32.xlu1 %v10135_v13, %s8687_s22 }
 0x5b9   : > { %1987 = vrot.lane.b32.xlu0 %v10139_v37, %s8687_s22 }
 0x5bb   : > { %2025 = vrot.lane.b32.xlu1 %v10135_v13, %s8688_s23 }
 0x5bd   : > { %2027 = vrot.lane.b32.xlu0 %v10139_v37, %s8688_s23 }
 0x5bf   : > { %2065 = vrot.lane.b32.xlu1 %v10135_v13, %s8689_s24 }
 0x5c1   : > { %2067 = vrot.lane.b32.xlu0 %v10139_v37, %s8689_s24 }
 0x5c3   : > { %2113 = vrot.lane.b32.xlu1 %v10135_v13, %s8690_s25 }
 0x5c5   : > { %2115 = vrot.lane.b32.xlu0 %v10139_v37, %s8690_s25 }
 0x5c7   : > { %1953 = vrot.lane.b32.xlu1 %v10159_v36, %s8686_s21 }
 0x5c9   : > { %1955 = vrot.lane.b32.xlu0 %v10163_v4, %s8686_s21 }
 0x5cb   : > { %2157 = vrot.lane.b32.xlu1 %v10111_v10, %s8691_s26 }
 0x5cd   : > { %2159 = vrot.lane.b32.xlu0 %v10115_v44, %s8691_s26 }
 0x5cf   : > { %1993 = vrot.lane.b32.xlu1 %v10159_v36, %s8687_s22 }
 0x5d1   : > { %1995 = vrot.lane.b32.xlu0 %v10163_v4, %s8687_s22 }
 0x5d3   : > { %2033 = vrot.lane.b32.xlu1 %v10159_v36, %s8688_s23 }
 0x5d5   : > { %2155 = vrot.lane.b32.xlu0 %v10139_v37, %s8691_s26 }
 0x5d7   : > { %2073 = vrot.lane.b32.xlu1 %v10159_v36, %s8689_s24 }
 0x5d9   : > { %2035 = vrot.lane.b32.xlu0 %v10163_v4, %s8688_s23 }
 0x5db   : > { %2121 = vrot.lane.b32.xlu1 %v10159_v36, %s8690_s25 }
 0x5dd   : > { %2191 = vrot.lane.b32.xlu0 %v10087_v63, %s8692_s27 }
 0x5df   : > { %2153 = vrot.lane.b32.xlu1 %v10135_v13, %s8691_s26 }
 0x5e1   : > { %2075 = vrot.lane.b32.xlu0 %v10163_v4, %s8689_s24 }
 0x5e3   : > { %2161 = vrot.lane.b32.xlu1 %v10159_v36, %s8691_s26 }
 0x5e5   : > { %2199 = vrot.lane.b32.xlu0 %v10115_v44, %s8692_s27 }
 0x5e7   : > { %2189 = vrot.lane.b32.xlu1 %v10085_v32, %s8692_s27 }
 0x5e9   : > { %2231 = vrot.lane.b32.xlu0 %v10087_v63, %s8693_s28 }
 0x5eb   : > { %2197 = vrot.lane.b32.xlu1 %v10111_v10, %s8692_s27 }
 0x5ed   : > { %2239 = vrot.lane.b32.xlu0 %v10115_v44, %s8693_s28 }
 0x5ef   : > { %2229 = vrot.lane.b32.xlu1 %v10085_v32, %s8693_s28 }
 0x5f1   : > { %2123 = vrot.lane.b32.xlu0 %v10163_v4, %s8690_s25 }
 0x5f3   : > { %2237 = vrot.lane.b32.xlu1 %v10111_v10, %s8693_s28 }
 0x5f5   : > { %2195 = vrot.lane.b32.xlu0 %v10139_v37, %s8692_s27 }
 0x5f7   : > { %2193 = vrot.lane.b32.xlu1 %v10135_v13, %s8692_s27 }
 0x5f9   : > { %2163 = vrot.lane.b32.xlu0 %v10163_v4, %s8691_s26  ;;  %v1942_v62 = vpop.permute.xlu1 %1941 }
 0x5fb   : > { %v1944_v31 = vpop.permute.xlu0 %1943  ;;  %2201 = vrot.lane.b32.xlu1 %v10159_v36, %s8692_s27 }
 0x5fd   : > { %2235 = vrot.lane.b32.xlu0 %v10139_v37, %s8693_s28  ;;  %v10224_v38 = vpop.permute.xlu1 %1981 }
 0x5ff   : > { %v10226_v2 = vpop.permute.xlu0 %1983  ;;  %2233 = vrot.lane.b32.xlu1 %v10135_v13, %s8693_s28 }
 0x601   : > { %2203 = vrot.lane.b32.xlu0 %v10163_v4, %s8692_s27  ;;  %v10232_v50 = vpop.permute.xlu1 %2021 }
 0x603   : > { %v10234_v21 = vpop.permute.xlu0 %2023  ;;  %2241 = vrot.lane.b32.xlu1 %v10159_v36, %s8693_s28 }
 0x605   : > { %2243 = vrot.lane.b32.xlu0 %v10163_v4, %s8693_s28  ;;  %v10243_v58 = vpop.permute.xlu1 %2061 }
 0x607   : > { %v10248_v60 = vpop.permute.xlu0 %2063  ;;  %2321 = vperm.xlu1 %8505, %v8068_v39  }
 0x609   : > { %2326 = vperm.xlu0 %8504, %v8069_v28   ;;  %v10253_v48 = vpop.permute.xlu1 %2109 }
 0x60b   : > { %v10258_v19 = vpop.permute.xlu0 %2111  ;;  %2331 = vperm.xlu1 %8505, %v8070_v5  }
 0x60d   : > { %2336 = vperm.xlu0 %8504, %v8071_v41   ;;  %v10260_v25 = vpop.permute.xlu1 %2149 }
 0x60f   : > { %v10262_v57 = vpop.permute.xlu0 %2151 }
 0x611   : > { %v1950_v42 = vpop.permute.xlu1 %1949 }
 0x612   : > { %v1957_v61 = vsel %vm306_vm2, %v1942_v62, %v1950_v42  ;;  %v1961_v35 = vsel %vm306_vm2, %v1950_v42, %v1942_v62 }
 0x613   : > { %v1952_v52 = vpop.permute.xlu0 %1951  ;;  %v1965_v14 = vmul.f32 %v1961_v35, %v8902_v22  ;;  %v1966_v7 = vmul.f32 %v8896_v20, %v1957_v61 }
 0x614   : > { %v1958_v24 = vsel %vm306_vm2, %v1944_v31, %v1952_v52  ;;  %v1962_v0 = vsel %vm306_vm2, %v1952_v52, %v1944_v31 }
 0x615   : > { %v1967_v18 = vmul.f32 %v1962_v0, %v8902_v22  ;;  %v1968_v6 = vmul.f32 %v8896_v20, %v1958_v24  ;;  %v1990_v30 = vpop.permute.xlu1 %1989 }
 0x617   : > { %v1973_v54 = vpack.c.bf16 %v1967_v18, %v1965_v14  ;;  %v1992_v47 = vpop.permute.xlu0 %1991  ;;  %v1974_v45 = vpack.c.bf16 %v1968_v6, %v1966_v7  ;;  %v2001_v18 = vsel %vm347_vm4, %v1990_v30, %v10224_v38 }
 0x618   : > { %v2002_v42 = vsel %vm347_vm4, %v1992_v47, %v10226_v2  ;;  %v1998_v6 = vsel %vm347_vm4, %v10226_v2, %v1992_v47 }
 0x619   : > { %2375 = vmatprep.subr.bf16.mxu1 %v1974_v45  ;;  %v2030_v49 = vpop.permute.xlu1 %2029 }
 0x61a   : > { %2376 = vmatpush1.bf16.msra.mxu1 %v1973_v54  ;;  %v2007_v54 = vmul.f32 %v8889_v17, %v2002_v42  ;;  %v2037_v42 = vsel %vm388_vm7, %v10232_v50, %v2030_v49 }
 0x61b   : > { %v2032_v46 = vpop.permute.xlu0 %2031 }
 0x61d   : > { %v10276_v40 = vpop.permute.xlu1 %2069 }
 0x61f   : > { %v10278_v3 = vpop.permute.xlu0 %2071 }
 0x621   : > { %v10280_v53 = vpop.permute.xlu1 %2117 }
 0x623   : > { %v10282_v15 = vpop.permute.xlu0 %2119 }
 0x625   : > { %v1946_v43 = vpop.permute.xlu1 %1945 }
 0x627   : > { %v1948_v1 = vpop.permute.xlu0 %1947 }
 0x629   : > { %v1986_v56 = vpop.permute.xlu1 %1985 }
 0x62b   : > { %v1988_v55 = vpop.permute.xlu0 %1987 }
 0x62d   : > { %v2026_v27 = vpop.permute.xlu1 %2025 }
 0x62f   : > { %v10284_v29 = vpop.permute.xlu0 %2027 }
 0x631   : > { %v10286_v51 = vpop.permute.xlu1 %2065 }
 0x633   : > { %v10288_v62 = vpop.permute.xlu0 %2067 }
 0x635   : > { %v10290_v31 = vpop.permute.xlu1 %2113 }
 0x637   : > { %v10292_v8 = vpop.permute.xlu0 %2115 }
 0x639   : > { %v1954_v39 = vpop.permute.xlu1 %1953 }
 0x63a   : > { %v1959_v28 = vsel %vm306_vm2, %v1946_v43, %v1954_v39  ;;  %v1963_v5 = vsel %vm306_vm2, %v1954_v39, %v1946_v43  ;;  %v1997_v39 = vsel %vm347_vm4, %v10224_v38, %v1990_v30  ;;  %v2042_v38 = vsel %vm388_vm7, %v2032_v46, %v10234_v21 }
 0x63b   : > { %v1956_v41 = vpop.permute.xlu0 %1955  ;;  %v1969_v52 = vmul.f32 %v1963_v5, %v8902_v22  ;;  %v1970_v24 = vmul.f32 %v8896_v20, %v1959_v28  ;;  %v2005_v28 = vmul.f32 %v8889_v17, %v2001_v18 }
 0x63c   : > { %v1960_v61 = vsel %vm306_vm2, %v1948_v1, %v1956_v41  ;;  %v1964_v35 = vsel %vm306_vm2, %v1956_v41, %v1948_v1  ;;  %v2014_v41 = vpack.c.bf16 %v1998_v6, %v1997_v39  ;;  %v2078_v39 = vsel %vm429_vm8, %v10248_v60, %v10278_v3 }
 0x63d   : > { %v1971_v0 = vmul.f32 %v1964_v35, %v8902_v22  ;;  %v1972_v14 = vmul.f32 %v8896_v20, %v1960_v61  ;;  %v10309_v7 = vpop.permute.xlu1 %2157  ;;  %v2038_v61 = vsel %vm388_vm7, %v10234_v21, %v2032_v46  ;;  %v2013_v47 = vpack.c.bf16 %v2007_v54, %v2005_v28 }
 0x63e   : > { %v2041_v21 = vsel %vm388_vm7, %v2030_v49, %v10232_v50  ;;  %v2046_v46 = vmul.f32 %v8983_v34, %v2037_v42  ;;  %v2088_v42 = vmul.f32 %v8896_v20, %v2078_v39 }
 0x63f   : > { %v1975_v45 = vpack.c.bf16 %v1971_v0, %v1969_v52  ;;  %v10318_v43 = vpop.permute.xlu0 %2159  ;;  %v1976_v1 = vpack.c.bf16 %v1972_v14, %v1970_v24  ;;  %v2048_v0 = vmul.f32 %v8983_v34, %v2038_v61  ;;  %v2077_v61 = vsel %vm429_vm8, %v10243_v58, %v10276_v40 }
 0x641   : > { %2377 = vmatprep.subr.bf16.mxu1 %v1976_v1  ;;  %v1994_v5 = vpop.permute.xlu1 %1993 }
 0x642   : > { %v2003_v2 = vsel %vm347_vm4, %v1994_v5, %v1986_v56  ;;  %2378 = vmatpush1.bf16.msra.mxu1 %v1975_v45  ;;  %v1999_v30 = vsel %vm347_vm4, %v1986_v56, %v1994_v5  ;;  %v2047_v56 = vmul.f32 %v2042_v38, %v8979_v33  ;;  %v2054_v5 = vpack.c.bf16 %v2048_v0, %v2046_v46 }
 0x643   : > { %v1996_v35 = vpop.permute.xlu0 %1995  ;;  %2379 = vmatprep.subr.bf16.mxu1 %v2014_v41  ;;  %v2009_v14 = vmul.f32 %v8889_v17, %v2003_v2 }
 0x644   : > { %v2000_v52 = vsel %vm347_vm4, %v1988_v55, %v1996_v35  ;;  %v2004_v24 = vsel %vm347_vm4, %v1996_v35, %v1988_v55  ;;  %v2045_v55 = vmul.f32 %v2041_v21, %v8979_v33 }
 0x645   : > { %v2011_v18 = vmul.f32 %v8889_v17, %v2004_v24  ;;  %v2034_v6 = vpop.permute.xlu1 %2033  ;;  %v2016_v54 = vpack.c.bf16 %v2000_v52, %v1999_v30 }
 0x646   : > { %2380 = vmatpush1.bf16.msra.mxu1 %v2013_v47  ;;  %v2039_v50 = vsel %vm388_vm7, %v2026_v27, %v2034_v6  ;;  %v2043_v49 = vsel %vm388_vm7, %v2034_v6, %v2026_v27  ;;  %v2053_v41 = vpack.c.bf16 %v2047_v56, %v2045_v55  ;;  %v2082_v47 = vsel %vm429_vm8, %v10278_v3, %v10248_v60 }
 0x647   : > { %v2015_v45 = vpack.c.bf16 %v2011_v18, %v2009_v14  ;;  %v10349_v1 = vpop.permute.xlu0 %2155  ;;  %2381 = vmatprep.subr.bf16.mxu1 %v2016_v54  ;;  %v2049_v38 = vmul.f32 %v2043_v49, %v8979_v33  ;;  %v2050_v30 = vmul.f32 %v8983_v34, %v2039_v50  ;;  %v2081_v60 = vsel %vm429_vm8, %v10276_v40, %v10243_v58 }
 0x648   : > { %v2086_v3 = vmul.f32 %v8896_v20, %v2077_v61  ;;  %v2087_v6 = vmul.f32 %v8886_v16, %v2082_v47  ;;  %v2085_v46 = vmul.f32 %v8886_v16, %v2081_v60 }
 0x649   : > { %v2074_v28 = vpop.permute.xlu1 %2073 }
 0x64a   : > { %2382 = vmatpush1.bf16.msra.mxu1 %v2015_v45  ;;  %v2094_v21 = vpack.c.bf16 %v2088_v42, %v2086_v3  ;;  %v2079_v56 = vsel %vm429_vm8, %v10286_v51, %v2074_v28  ;;  %v2083_v58 = vsel %vm429_vm8, %v2074_v28, %v10286_v51  ;;  %v2093_v45 = vpack.c.bf16 %v2087_v6, %v2085_v46 }
 0x64b   : > { %v2036_v2 = vpop.permute.xlu0 %2035  ;;  %2383 = vmatprep.subr.bf16.mxu1 %v2054_v5  ;;  %v2089_v5 = vmul.f32 %v8886_v16, %v2083_v58  ;;  %v2090_v50 = vmul.f32 %v8896_v20, %v2079_v56  ;;  %v2130_v42 = vsel %vm478_vm9, %v10282_v15, %v10258_v19  ;;  %v2166_v6 = vsel %vm519_vm11, %v10262_v57, %v10318_v43 }
 0x64c   : > { %v2040_v27 = vsel %vm388_vm7, %v10284_v29, %v2036_v2  ;;  %v2044_v35 = vsel %vm388_vm7, %v2036_v2, %v10284_v29 }
 0x64d   : > { %v2051_v52 = vmul.f32 %v2044_v35, %v8979_v33  ;;  %v2052_v24 = vmul.f32 %v8983_v34, %v2040_v27  ;;  %v2122_v0 = vpop.permute.xlu1 %2121  ;;  %v2126_v27 = vsel %vm478_vm9, %v10258_v19, %v10282_v15  ;;  %v2104_v19 = vpack.c.bf16 %v10163_v4, %v10159_v36 }
 0x64e   : > { %2384 = vmatpush1.bf16.msra.mxu1 %v2053_v41  ;;  %v2135_v15 = vmul.f32 %v8973_v11, %v2126_v27 }
 0x64f   : > { %v2055_v14 = vpack.c.bf16 %v2051_v52, %v2049_v38  ;;  %v10384_v18 = vpop.permute.xlu0 %2191  ;;  %v2056_v29 = vpack.c.bf16 %v2052_v24, %v2050_v30  ;;  %v2129_v38 = vsel %vm478_vm9, %v10280_v53, %v10253_v48  ;;  %v2101_v30 = vpack.c.bf16 %v10087_v63, %v10085_v32 }
 0x650   : > { %v2125_v52 = vsel %vm478_vm9, %v10253_v48, %v10280_v53  ;;  %v2136_v24 = vmul.f32 %v8983_v34, %v2130_v42  ;;  %v2134_v3 = vmul.f32 %v8983_v34, %v2129_v38  ;;  %v2169_v48 = vsel %vm519_vm11, %v10309_v7, %v10260_v25 }
 0x651   : > { %2385 = vmatprep.subr.bf16.mxu1 %v2056_v29  ;;  %v10387_v54 = vpop.permute.xlu1 %2153  ;;  %v2133_v29 = vmul.f32 %v8973_v11, %v2125_v52  ;;  %v2103_v53 = vpack.c.bf16 %v10139_v37, %v10135_v13 }
 0x652   : > { %2386 = vmatpush1.bf16.msra.mxu1 %v2055_v14  ;;  %v2142_v56 = vpack.c.bf16 %v2136_v24, %v2134_v3 }
 0x653   : > { %v2076_v40 = vpop.permute.xlu0 %2075  ;;  %2387 = vmatprep.subr.bf16.mxu1 %v2094_v21  ;;  %v2170_v21 = vsel %vm519_vm11, %v10318_v43, %v10262_v57  ;;  %v2141_v58 = vpack.c.bf16 %v2135_v15, %v2133_v29 }
 0x654   : > { %v2080_v55 = vsel %vm429_vm8, %v10288_v62, %v2076_v40  ;;  %v2084_v39 = vsel %vm429_vm8, %v2076_v40, %v10288_v62  ;;  %v2102_v62 = vpack.c.bf16 %v10115_v44, %v10111_v10  ;;  %v2127_v40 = vsel %vm478_vm9, %v10290_v31, %v2122_v0 }
 0x655   : > { %v2091_v49 = vmul.f32 %v8886_v16, %v2084_v39  ;;  %v2092_v51 = vmul.f32 %v8896_v20, %v2080_v55  ;;  %v10406_v28 = vpop.permute.xlu1 %2161  ;;  %v2165_v55 = vsel %vm519_vm11, %v10260_v25, %v10309_v7  ;;  %v2174_v39 = vmul.f32 %v2169_v48, %v9073_v23 }
 0x656   : > { %2388 = vmatpush1.bf16.msra.mxu1 %v2093_v45  ;;  %v2131_v45 = vsel %vm478_vm9, %v2122_v0, %v10290_v31  ;;  %v2176_v31 = vmul.f32 %v2170_v21, %v9073_v23  ;;  %v2137_v7 = vmul.f32 %v8973_v11, %v2127_v40  ;;  %v2167_v15 = vsel %vm519_vm11, %v10387_v54, %v10406_v28 }
 0x657   : > { %v2095_v41 = vpack.c.bf16 %v2091_v49, %v2089_v5  ;;  %v10408_v61 = vpop.permute.xlu0 %2199  ;;  %v2096_v2 = vpack.c.bf16 %v2092_v51, %v2090_v50  ;;  %v2175_v50 = vmul.f32 %v8886_v16, %v2166_v6  ;;  %v2138_v49 = vmul.f32 %v8983_v34, %v2131_v45 }
 0x658   : > { %v2182_v29 = vpack.c.bf16 %v2176_v31, %v2174_v39 }
 0x659   : > { %2389 = vmatprep.subr.bf16.mxu1 %v2096_v2  ;;  %v10410_v47 = vpop.permute.xlu1 %2189 }
 0x65a   : > { %2390 = vmatpush1.bf16.msra.mxu1 %v2095_v41 }
 0x65b   : > { %v2232_v35 = vpop.permute.xlu0 %2231  ;;  %2391 = vmatprep.subr.bf16.mxu1 %v2102_v62 }
 0x65d   : > { %v10433_v60 = vpop.permute.xlu1 %2197 }
 0x65e   : > { %2392 = vmatpush1.bf16.msra.mxu1 %v2101_v30  ;;  %v2209_v6 = vsel %vm560_vm12, %v10433_v60, %v10410_v47 }
 0x65f   : > { %v2240_v14 = vpop.permute.xlu0 %2239  ;;  %2393 = vmatprep.subr.bf16.mxu1 %v2104_v19  ;;  %v2173_v19 = vmul.f32 %v8886_v16, %v2165_v55  ;;  %v2214_v45 = vmul.f32 %v9069_v12, %v2209_v6  ;;  %v8533_v6 = vld [vmem:[%s14801_s1 + $0x98] ss:$12 sps:$4 sm:$0xff]  }
 0x660   : > { %v2246_v57 = vsel %vm601_vm13, %v2232_v35, %v2240_v14  ;;  %v2250_v43 = vsel %vm601_vm13, %v2240_v14, %v2232_v35 }
 0x661   : > { %v2230_v46 = vpop.permute.xlu1 %2229  ;;  %v2255_v62 = vmul.f32 %v8973_v11, %v2246_v57  ;;  %v2256_v42 = vmul.f32 %v2250_v43, %v9114_v59  ;;  %v2181_v21 = vpack.c.bf16 %v2175_v50, %v2173_v19 }
 0x662   : > { %2394 = vmatpush1.bf16.msra.mxu1 %v2103_v53  ;;  %v2171_v53 = vsel %vm519_vm11, %v10406_v28, %v10387_v54 }
 0x663   : > { %v2124_v5 = vpop.permute.xlu0 %2123  ;;  %2395 = vmatprep.subr.bf16.mxu1 %v2142_v56  ;;  %v2177_v56 = vmul.f32 %v8886_v16, %v2167_v15  ;;  %v2178_v40 = vmul.f32 %v2171_v53, %v9073_v23 }
 0x664   : > { %v2128_v0 = vsel %vm478_vm9, %v10292_v8, %v2124_v5  ;;  %v2132_v25 = vsel %vm478_vm9, %v2124_v5, %v10292_v8 }
 0x665   : > { %v2139_v51 = vmul.f32 %v8973_v11, %v2128_v0  ;;  %v2140_v41 = vmul.f32 %v8983_v34, %v2132_v25  ;;  %v2238_v2 = vpop.permute.xlu1 %2237 }
 0x666   : > { %v2245_v27 = vsel %vm601_vm13, %v2230_v46, %v2238_v2  ;;  %v2249_v35 = vsel %vm601_vm13, %v2238_v2, %v2230_v46  ;;  %2396 = vmatpush1.bf16.msra.mxu1 %v2141_v58  ;;  %v2210_v58 = vsel %vm560_vm12, %v10408_v61, %v10384_v18 }
 0x667   : > { %v2143_v8 = vpack.c.bf16 %v2139_v51, %v2137_v7  ;;  %v2253_v38 = vmul.f32 %v8973_v11, %v2245_v27  ;;  %v2254_v30 = vmul.f32 %v2249_v35, %v9114_v59  ;;  %v2196_v52 = vpop.permute.xlu0 %2195  ;;  %v2144_v24 = vpack.c.bf16 %v2140_v41, %v2138_v49 }
 0x668   : > { %v2216_v43 = vmul.f32 %v9069_v12, %v2210_v58  ;;  %v2206_v49 = vsel %vm560_vm12, %v10384_v18, %v10408_v61 }
 0x669   : > { %v2261_v3 = vpack.c.bf16 %v2255_v62, %v2253_v38  ;;  %v2194_v14 = vpop.permute.xlu1 %2193  ;;  %2397 = vmatprep.subr.bf16.mxu1 %v2144_v24  ;;  %v2262_v48 = vpack.c.bf16 %v2256_v42, %v2254_v30 }
 0x66a   : > { %2398 = vmatpush1.bf16.msra.mxu1 %v2143_v8  ;;  %v2222_v25 = vpack.c.bf16 %v2216_v43, %v2214_v45 }
 0x66b   : > { %v2164_v46 = vpop.permute.xlu0 %2163  ;;  %2399 = vmatprep.subr.bf16.mxu1 %v2182_v29  ;;  %2428 = vmatprep.subr.bf16.mxu0 %v2262_v48  ;;  %v8534_v29 = vld [vmem:[%s14801_s1 + $0xac] ss:$12 sps:$4 sm:$0xff]  }
 0x66c   : > { %v2168_v54 = vsel %vm519_vm11, %v10349_v1, %v2164_v46  ;;  %v2172_v28 = vsel %vm519_vm11, %v2164_v46, %v10349_v1  ;;  %2429 = vmatpush1.bf16.msra.mxu0 %v2261_v3  ;;  %v2205_v1 = vsel %vm560_vm12, %v10410_v47, %v10433_v60  ;;  %v8537_v46 = vld [vmem:[%s14801_s1 + $0xb0] ss:$12 sps:$4 sm:$0xff]  }
 0x66d   : > { %v2179_v55 = vmul.f32 %v8886_v16, %v2168_v54  ;;  %v2180_v39 = vmul.f32 %v2172_v28, %v9073_v23  ;;  %v2202_v57 = vpop.permute.xlu1 %2201  ;;  %v2221_v41 = vpack.c.bf16 %v2206_v49, %v2205_v1 }
 0x66e   : > { %2400 = vmatpush1.bf16.msra.mxu1 %v2181_v21  ;;  %v2211_v7 = vsel %vm560_vm12, %v2202_v57, %v2194_v14  ;;  %v2207_v61 = vsel %vm560_vm12, %v2194_v14, %v2202_v57  ;;  %v8530_v14 = vld [vmem:[%s14801_s1 + $0x90] ss:$12 sps:$4 sm:$0xff]   ;;  %v8536_v21 = vld [vmem:[%s14801_s1 + $0xa8] ss:$12 sps:$4 sm:$0xff]  }
 0x66f   : > { %v2183_v5 = vpack.c.bf16 %v2179_v55, %v2177_v56  ;;  %v2236_v50 = vpop.permute.xlu0 %2235  ;;  %v2184_v31 = vpack.c.bf16 %v2180_v39, %v2178_v40  ;;  %v2218_v47 = vmul.f32 %v9069_v12, %v2211_v7 }
 0x671   : > { %v2234_v0 = vpop.permute.xlu1 %2233  ;;  %2401 = vmatprep.subr.bf16.mxu1 %v2184_v31 }
 0x672   : > { %2402 = vmatpush1.bf16.msra.mxu1 %v2183_v5 }
 0x673   : > { %v2204_v51 = vpop.permute.xlu0 %2203  ;;  %2403 = vmatprep.subr.bf16.mxu1 %v2222_v25 }
 0x674   : > { %v2212_v2 = vsel %vm560_vm12, %v2204_v51, %v2196_v52  ;;  %v2208_v60 = vsel %vm560_vm12, %v2196_v52, %v2204_v51 }
 0x675   : > { %v2220_v62 = vmul.f32 %v9069_v12, %v2212_v2  ;;  %v2242_v42 = vpop.permute.xlu1 %2241  ;;  %v2223_v38 = vpack.c.bf16 %v2208_v60, %v2207_v61 }
 0x676   : > { %v2247_v27 = vsel %vm601_vm13, %v2234_v0, %v2242_v42  ;;  %v2251_v18 = vsel %vm601_vm13, %v2242_v42, %v2234_v0  ;;  %2404 = vmatpush1.bf16.msra.mxu1 %v2221_v41 }
 0x677   : > { %v2244_v35 = vpop.permute.xlu0 %2243  ;;  %v2224_v8 = vpack.c.bf16 %v2220_v62, %v2218_v47  ;;  %v2257_v24 = vmul.f32 %v8973_v11, %v2247_v27  ;;  %v2258_v19 = vmul.f32 %v2251_v18, %v9114_v59 }
 0x678   : > { %v2248_v30 = vsel %vm601_vm13, %v2236_v50, %v2244_v35  ;;  %v2252_v52 = vsel %vm601_vm13, %v2244_v35, %v2236_v50 }
 0x679   : > { %v2259_v15 = vmul.f32 %v8973_v11, %v2248_v30  ;;  %v2260_v3 = vmul.f32 %v2252_v52, %v9114_v59  ;;  %2405 = vmatprep.subr.bf16.mxu1 %v2224_v8 }
 0x67a   : > { %2406 = vmatpush1.bf16.msra.mxu1 %v2223_v38 }
 0x67b   : > { %v2263_v48 = vpack.c.bf16 %v2259_v15, %v2257_v24  ;;  %v2264_v53 = vpack.c.bf16 %v2260_v3, %v2258_v19 }
 0x67d   : > { %2408 = vmatmul.mubr.bf16.vlgmr.msra.gmra.mrb[16].mxu1 %v8530_v14  ;;  %2430 = vmatprep.subr.bf16.mxu0 %v2264_v53 }
 0x67e   : > { %2431 = vmatpush1.bf16.msra.mxu0 %v2263_v48  ;;  %2417 = vmatprep.mubr.bf16.mxu1 %v8534_v29 }
 0x681   : > { %8078 = vmatmul.mubr.msk.bf16.vlgmr.msra.gmra.mrb[24].mxu0 %vm724_vm14, %v8533_v6 }
 0x682   : > { %2470 = vmatprep.mubr.bf16.mxu0 %v14805_v26 }
 0x685   : > { %2418 = vmatmul.mubr.bf16.gmra.mrb[20].mxu1 %v8536_v21 }
 0x686   : > { %v2322_v54 = vpop.permute.xlu1 %2321 }
 0x688   : > { %v2327_v55 = vpop.permute.xlu0 %2326 }
 0x689   : > { %8079 = vmatmul.mubr.msk.bf16.gmra.mrb[28].mxu0 %vm724_vm14, %v8537_v46 }
 0x68a   : > { %v2332_v60 = vpop.permute.xlu1 %2331 }
 0x68c   : > { %v2337_v18 = vpop.permute.xlu0 %2336 }
 0x750   : > { %v2409_v56 = vpop.f32.mrb[16].mxu1 }
 0x751   : > { %v2411_v58 = vpop.f32.mrb[17].mxu1  ;;  %v2410_v40 = vadd.f32 %v2409_v56, %v2322_v54  ;;  %v8540_v56 = vld [vmem:[%s14801_s1 + $0xc4] ss:$12 sps:$4 sm:$0xff]  }
 0x752   : > { %v2413_v28 = vpop.f32.mrb[18].mxu1  ;;  %v2412_v39 = vadd.f32 %v2411_v58, %v2322_v54  ;;  %2955 = vmatprep.mubr.bf16.mxu0 %v8540_v56 }
 0x753   : > { %v2415_v45 = vpop.f32.mrb[19].mxu1  ;;  %v2414_v43 = vadd.f32 %v2413_v28, %v2327_v55 }
 0x754   : > { %v2462_v57 = vpop.f32.mrb[24].mxu0  ;;  %v2416_v31 = vadd.f32 %v2415_v45, %v2327_v55 }
 0x755   : > { %v2463_v5 = vadd.f32 %v2462_v57, %v2410_v40  ;;  %v2464_v50 = vpop.f32.mrb[25].mxu0 }
 0x756   : > { %v2465_v1 = vadd.f32 %v2464_v50, %v2412_v39  ;;  %v2466_v0 = vpop.f32.mrb[26].mxu0  ;;  %v8088_v39 = vld [vmem:[%s14802_s2 + $0x80] sm:$0xff]  ;;  %v8090_v50 = vld [vmem:[%s14802_s2 + $0x90] sm:$0xff] }
 0x757   : > { %v10566_v25 = vmax.f32 %v2463_v5, 0.0  ;;  %v2467_v7 = vadd.f32 %v2466_v0, %v2414_v43  ;;  %v2468_v49 = vpop.f32.mrb[27].mxu0  ;;  %v8089_v43 = vld [vmem:[%s14802_s2 + $0x88] sm:$0xff] }
 0x758   : > { %v2469_v51 = vadd.f32 %v2468_v49, %v2416_v31  ;;  %v2419_v41 = vpop.f32.mrb[20].mxu1  ;;  %v10588_v29 = vmax.f32 %v2465_v1, 0.0  ;;  %v8091_v1 = vld [vmem:[%s14802_s2 + $0x98] sm:$0xff] }
 0x759   : > { %v10568_v2 = vmax.f32 %v2467_v7, 0.0  ;;  %v2421_v47 = vpop.f32.mrb[21].mxu1  ;;  %2489 = vrot.lane.b32.xlu1 %v10566_v25, %s8686_s21  ;;  %v2420_v42 = vadd.f32 %v2419_v41, %v2332_v60 }
 0x75a   : > { %v2423_v62 = vpop.f32.mrb[22].mxu1  ;;  %v2422_v61 = vadd.f32 %v2421_v47, %v2332_v60  ;;  %v10592_v48 = vmax.f32 %v2469_v51, 0.0 }
 0x75b   : > { %v2425_v27 = vpop.f32.mrb[23].mxu1  ;;  %2491 = vrot.lane.b32.xlu0 %v10568_v2, %s8686_s21  ;;  %v2424_v8 = vadd.f32 %v2423_v62, %v2337_v18 }
 0x75c   : > { %v2472_v35 = vpop.f32.mrb[28].mxu0  ;;  %v2426_v52 = vadd.f32 %v2425_v27, %v2337_v18 }
 0x75d   : > { %v2473_v38 = vadd.f32 %v2472_v35, %v2420_v42  ;;  %v2474_v30 = vpop.f32.mrb[29].mxu0  ;;  %2529 = vrot.lane.b32.xlu1 %v10566_v25, %s8687_s22 }
 0x75e   : > { %v2475_v24 = vadd.f32 %v2474_v30, %v2422_v61  ;;  %v2476_v19 = vpop.f32.mrb[30].mxu0 }
 0x75f   : > { %v2477_v15 = vadd.f32 %v2476_v19, %v2424_v8  ;;  %v2478_v3 = vpop.f32.mrb[31].mxu0  ;;  %2531 = vrot.lane.b32.xlu0 %v10568_v2, %s8687_s22  ;;  %v10608_v53 = vmax.f32 %v2473_v38, 0.0 }
 0x760   : > { %v2479_v14 = vadd.f32 %v2478_v3, %v2426_v52  ;;  %v10628_v21 = vmax.f32 %v2475_v24, 0.0 }
 0x761   : > { %2569 = vrot.lane.b32.xlu1 %v10566_v25, %s8688_s23  ;;  %v10612_v6 = vmax.f32 %v2477_v15, 0.0 }
 0x762   : > { %v10632_v46 = vmax.f32 %v2479_v14, 0.0 }
 0x763   : > { %2571 = vrot.lane.b32.xlu0 %v10568_v2, %s8688_s23 }
 0x765   : > { %2609 = vrot.lane.b32.xlu1 %v10566_v25, %s8689_s24 }
 0x767   : > { %2611 = vrot.lane.b32.xlu0 %v10568_v2, %s8689_s24 }
 0x769   : > { %2657 = vrot.lane.b32.xlu1 %v10566_v25, %s8690_s25 }
 0x76b   : > { %2659 = vrot.lane.b32.xlu0 %v10568_v2, %s8690_s25 }
 0x76d   : > { %2497 = vrot.lane.b32.xlu1 %v10588_v29, %s8686_s21 }
 0x76f   : > { %2499 = vrot.lane.b32.xlu0 %v10592_v48, %s8686_s21 }
 0x771   : > { %2537 = vrot.lane.b32.xlu1 %v10588_v29, %s8687_s22 }
 0x773   : > { %2539 = vrot.lane.b32.xlu0 %v10592_v48, %s8687_s22 }
 0x775   : > { %2577 = vrot.lane.b32.xlu1 %v10588_v29, %s8688_s23 }
 0x777   : > { %2579 = vrot.lane.b32.xlu0 %v10592_v48, %s8688_s23 }
 0x779   : > { %2617 = vrot.lane.b32.xlu1 %v10588_v29, %s8689_s24 }
 0x77b   : > { %2619 = vrot.lane.b32.xlu0 %v10592_v48, %s8689_s24 }
 0x77d   : > { %2493 = vrot.lane.b32.xlu1 %v10608_v53, %s8686_s21 }
 0x77f   : > { %2495 = vrot.lane.b32.xlu0 %v10612_v6, %s8686_s21 }
 0x781   : > { %2533 = vrot.lane.b32.xlu1 %v10608_v53, %s8687_s22 }
 0x783   : > { %2535 = vrot.lane.b32.xlu0 %v10612_v6, %s8687_s22 }
 0x785   : > { %2573 = vrot.lane.b32.xlu1 %v10608_v53, %s8688_s23 }
 0x787   : > { %2575 = vrot.lane.b32.xlu0 %v10612_v6, %s8688_s23 }
 0x789   : > { %2613 = vrot.lane.b32.xlu1 %v10608_v53, %s8689_s24 }
 0x78b   : > { %2615 = vrot.lane.b32.xlu0 %v10612_v6, %s8689_s24 }
 0x78d   : > { %2501 = vrot.lane.b32.xlu1 %v10628_v21, %s8686_s21 }
 0x78f   : > { %2503 = vrot.lane.b32.xlu0 %v10632_v46, %s8686_s21 }
 0x791   : > { %2665 = vrot.lane.b32.xlu1 %v10588_v29, %s8690_s25 }
 0x793   : > { %2667 = vrot.lane.b32.xlu0 %v10592_v48, %s8690_s25 }
 0x795   : > { %2541 = vrot.lane.b32.xlu1 %v10628_v21, %s8687_s22 }
 0x797   : > { %2543 = vrot.lane.b32.xlu0 %v10632_v46, %s8687_s22 }
 0x799   : > { %2581 = vrot.lane.b32.xlu1 %v10628_v21, %s8688_s23 }
 0x79b   : > { %2663 = vrot.lane.b32.xlu0 %v10612_v6, %s8690_s25 }
 0x79d   : > { %2621 = vrot.lane.b32.xlu1 %v10628_v21, %s8689_s24 }
 0x79f   : > { %2583 = vrot.lane.b32.xlu0 %v10632_v46, %s8688_s23 }
 0x7a1   : > { %2661 = vrot.lane.b32.xlu1 %v10608_v53, %s8690_s25 }
 0x7a3   : > { %2699 = vrot.lane.b32.xlu0 %v10568_v2, %s8691_s26 }
 0x7a5   : > { %2669 = vrot.lane.b32.xlu1 %v10628_v21, %s8690_s25 }
 0x7a7   : > { %2623 = vrot.lane.b32.xlu0 %v10632_v46, %s8689_s24 }
 0x7a9   : > { %2697 = vrot.lane.b32.xlu1 %v10566_v25, %s8691_s26 }
 0x7ab   : > { %2707 = vrot.lane.b32.xlu0 %v10592_v48, %s8691_s26 }
 0x7ad   : > { %2705 = vrot.lane.b32.xlu1 %v10588_v29, %s8691_s26 }
 0x7af   : > { %2703 = vrot.lane.b32.xlu0 %v10612_v6, %s8691_s26 }
 0x7b1   : > { %2701 = vrot.lane.b32.xlu1 %v10608_v53, %s8691_s26 }
 0x7b3   : > { %2739 = vrot.lane.b32.xlu0 %v10568_v2, %s8692_s27 }
 0x7b5   : > { %2709 = vrot.lane.b32.xlu1 %v10628_v21, %s8691_s26 }
 0x7b7   : > { %2671 = vrot.lane.b32.xlu0 %v10632_v46, %s8690_s25 }
 0x7b9   : > { %2737 = vrot.lane.b32.xlu1 %v10566_v25, %s8692_s27 }
 0x7bb   : > { %2747 = vrot.lane.b32.xlu0 %v10592_v48, %s8692_s27 }
 0x7bd   : > { %2745 = vrot.lane.b32.xlu1 %v10588_v29, %s8692_s27 }
 0x7bf   : > { %2711 = vrot.lane.b32.xlu0 %v10632_v46, %s8691_s26 }
 0x7c1   : > { %2741 = vrot.lane.b32.xlu1 %v10608_v53, %s8692_s27 }
 0x7c3   : > { %2743 = vrot.lane.b32.xlu0 %v10612_v6, %s8692_s27 }
 0x7c5   : > { %2749 = vrot.lane.b32.xlu1 %v10628_v21, %s8692_s27 }
 0x7c7   : > { %2751 = vrot.lane.b32.xlu0 %v10632_v46, %s8692_s27 }
 0x7c9   : > { %2777 = vrot.lane.b32.xlu1 %v10566_v25, %s8693_s28 }
 0x7cb   : > { %2779 = vrot.lane.b32.xlu0 %v10568_v2, %s8693_s28  ;;  %v2490_v58 = vpop.permute.xlu1 %2489 }
 0x7cd   : > { %v2492_v54 = vpop.permute.xlu0 %2491  ;;  %2785 = vrot.lane.b32.xlu1 %v10588_v29, %s8693_s28 }
 0x7cf   : > { %2787 = vrot.lane.b32.xlu0 %v10592_v48, %s8693_s28  ;;  %v10705_v28 = vpop.permute.xlu1 %2529 }
 0x7d1   : > { %v2532_v40 = vpop.permute.xlu0 %2531  ;;  %2781 = vrot.lane.b32.xlu1 %v10608_v53, %s8693_s28 }
 0x7d3   : > { %2783 = vrot.lane.b32.xlu0 %v10612_v6, %s8693_s28  ;;  %v10711_v45 = vpop.permute.xlu1 %2569 }
 0x7d5   : > { %v10713_v55 = vpop.permute.xlu0 %2571  ;;  %2789 = vrot.lane.b32.xlu1 %v10628_v21, %s8693_s28 }
 0x7d7   : > { %2791 = vrot.lane.b32.xlu0 %v10632_v46, %s8693_s28  ;;  %v10722_v57 = vpop.permute.xlu1 %2609 }
 0x7d9   : > { %v10727_v5 = vpop.permute.xlu0 %2611  ;;  %2869 = vperm.xlu1 %8505, %v8088_v39  }
 0x7db   : > { %2874 = vperm.xlu0 %8504, %v8089_v43   ;;  %v10732_v31 = vpop.permute.xlu1 %2657 }
 0x7dd   : > { %v10737_v0 = vpop.permute.xlu0 %2659  ;;  %2879 = vperm.xlu1 %8505, %v8090_v50  }
 0x7df   : > { %2884 = vperm.xlu0 %8504, %v8091_v1   ;;  %v2498_v7 = vpop.permute.xlu1 %2497 }
 0x7e0   : > { %v2505_v49 = vsel %vm306_vm2, %v2490_v58, %v2498_v7  ;;  %v2509_v51 = vsel %vm306_vm2, %v2498_v7, %v2490_v58 }
 0x7e1   : > { %v2500_v41 = vpop.permute.xlu0 %2499  ;;  %v2513_v62 = vmul.f32 %v2509_v51, %v8902_v22  ;;  %v2514_v42 = vmul.f32 %v8896_v20, %v2505_v49 }
 0x7e2   : > { %v2506_v47 = vsel %vm306_vm2, %v2492_v54, %v2500_v41  ;;  %v2510_v60 = vsel %vm306_vm2, %v2500_v41, %v2492_v54 }
 0x7e3   : > { %v2515_v27 = vmul.f32 %v2510_v60, %v8902_v22  ;;  %v2516_v18 = vmul.f32 %v8896_v20, %v2506_v47  ;;  %v2538_v61 = vpop.permute.xlu1 %2537 }
 0x7e5   : > { %v2521_v35 = vpack.c.bf16 %v2515_v27, %v2513_v62  ;;  %v2540_v8 = vpop.permute.xlu0 %2539  ;;  %v2522_v38 = vpack.c.bf16 %v2516_v18, %v2514_v42 }
 0x7e6   : > { %v2550_v51 = vsel %vm347_vm4, %v2540_v8, %v2532_v40 }
 0x7e7   : > { %2923 = vmatprep.subr.bf16.mxu0 %v2522_v38  ;;  %v2578_v30 = vpop.permute.xlu1 %2577  ;;  %v2546_v38 = vsel %vm347_vm4, %v2532_v40, %v2540_v8 }
 0x7e8   : > { %2924 = vmatpush1.bf16.msra.mxu0 %v2521_v35  ;;  %v2549_v35 = vsel %vm347_vm4, %v2538_v61, %v10705_v28 }
 0x7e9   : > { %v2580_v52 = vpop.permute.xlu0 %2579 }
 0x7ea   : > { %v2586_v26 = vsel %vm388_vm7, %v10713_v55, %v2580_v52 }
 0x7eb   : > { %v10751_v24 = vpop.permute.xlu1 %2617 }
 0x7ed   : > { %v10753_v19 = vpop.permute.xlu0 %2619 }
 0x7ef   : > { %v2494_v15 = vpop.permute.xlu1 %2493 }
 0x7f1   : > { %v2496_v3 = vpop.permute.xlu0 %2495 }
 0x7f3   : > { %v2534_v14 = vpop.permute.xlu1 %2533 }
 0x7f5   : > { %v2536_v56 = vpop.permute.xlu0 %2535 }
 0x7f7   : > { %v2574_v58 = vpop.permute.xlu1 %2573 }
 0x7f9   : > { %v10755_v54 = vpop.permute.xlu0 %2575 }
 0x7fb   : > { %v10757_v39 = vpop.permute.xlu1 %2613 }
 0x7fd   : > { %v10759_v43 = vpop.permute.xlu0 %2615 }
 0x7ff   : > { %v2502_v50 = vpop.permute.xlu1 %2501 }
 0x800   : > { %v2507_v1 = vsel %vm306_vm2, %v2494_v15, %v2502_v50  ;;  %v2511_v7 = vsel %vm306_vm2, %v2502_v50, %v2494_v15  ;;  %v2555_v15 = vmul.f32 %v8889_v17, %v2550_v51  ;;  %v2585_v51 = vsel %vm388_vm7, %v10711_v45, %v2578_v30 }
 0x801   : > { %v2504_v49 = vpop.permute.xlu0 %2503  ;;  %v2517_v60 = vmul.f32 %v2511_v7, %v8902_v22  ;;  %v2518_v62 = vmul.f32 %v8896_v20, %v2507_v1  ;;  %v2545_v1 = vsel %vm347_vm4, %v10705_v28, %v2538_v61  ;;  %v2590_v28 = vsel %vm388_vm7, %v2580_v52, %v10713_v55 }
 0x802   : > { %v2508_v41 = vsel %vm306_vm2, %v2496_v3, %v2504_v49  ;;  %v2512_v47 = vsel %vm306_vm2, %v2504_v49, %v2496_v3  ;;  %v2553_v49 = vmul.f32 %v8889_v17, %v2549_v35  ;;  %v2589_v55 = vsel %vm388_vm7, %v2578_v30, %v10711_v45 }
 0x803   : > { %v2519_v42 = vmul.f32 %v2512_v47, %v8902_v22  ;;  %v2520_v27 = vmul.f32 %v8896_v20, %v2508_v41  ;;  %v10775_v18 = vpop.permute.xlu1 %2665  ;;  %v2562_v47 = vpack.c.bf16 %v2546_v38, %v2545_v1  ;;  %v2594_v52 = vmul.f32 %v8983_v34, %v2585_v51 }
 0x804   : > { %v2561_v8 = vpack.c.bf16 %v2555_v15, %v2553_v49  ;;  %v2630_v51 = vsel %vm429_vm8, %v10753_v19, %v10727_v5 }
 0x805   : > { %v2523_v3 = vpack.c.bf16 %v2519_v42, %v2517_v60  ;;  %v10783_v50 = vpop.permute.xlu0 %2667  ;;  %v2524_v7 = vpack.c.bf16 %v2520_v27, %v2518_v62  ;;  %v2596_v27 = vmul.f32 %v8983_v34, %v2586_v26  ;;  %v2593_v26 = vmul.f32 %v2589_v55, %v8979_v33 }
 0x807   : > { %2925 = vmatprep.subr.bf16.mxu0 %v2524_v7  ;;  %v2542_v41 = vpop.permute.xlu1 %2541 }
 0x808   : > { %v2551_v40 = vsel %vm347_vm4, %v2542_v41, %v2534_v14  ;;  %2926 = vmatpush1.bf16.msra.mxu0 %v2523_v3  ;;  %v2547_v61 = vsel %vm347_vm4, %v2534_v14, %v2542_v41  ;;  %v2595_v14 = vmul.f32 %v2590_v28, %v8979_v33  ;;  %v2602_v41 = vpack.c.bf16 %v2596_v27, %v2594_v52 }
 0x809   : > { %v2544_v60 = vpop.permute.xlu0 %2543  ;;  %2927 = vmatprep.subr.bf16.mxu0 %v2562_v47  ;;  %v2557_v35 = vmul.f32 %v8889_v17, %v2551_v40  ;;  %v2625_v40 = vsel %vm429_vm8, %v10722_v57, %v10751_v24 }
 0x80a   : > { %v2548_v62 = vsel %vm347_vm4, %v2536_v56, %v2544_v60  ;;  %v2552_v42 = vsel %vm347_vm4, %v2544_v60, %v2536_v56  ;;  %v2626_v56 = vsel %vm429_vm8, %v10727_v5, %v10753_v19  ;;  %v2601_v47 = vpack.c.bf16 %v2595_v14, %v2593_v26 }
 0x80b   : > { %v2559_v38 = vmul.f32 %v8889_v17, %v2552_v42  ;;  %v2582_v15 = vpop.permute.xlu1 %2581  ;;  %v2564_v3 = vpack.c.bf16 %v2548_v62, %v2547_v61  ;;  %v2636_v60 = vmul.f32 %v8896_v20, %v2626_v56  ;;  %v2629_v5 = vsel %vm429_vm8, %v10751_v24, %v10722_v57 }
 0x80c   : > { %2928 = vmatpush1.bf16.msra.mxu0 %v2561_v8  ;;  %v2587_v45 = vsel %vm388_vm7, %v2574_v58, %v2582_v15  ;;  %v2591_v30 = vsel %vm388_vm7, %v2582_v15, %v2574_v58  ;;  %v2634_v19 = vmul.f32 %v8896_v20, %v2625_v40  ;;  %v2633_v14 = vmul.f32 %v8886_v16, %v2629_v5 }
 0x80d   : > { %v2563_v7 = vpack.c.bf16 %v2559_v38, %v2557_v35  ;;  %v10814_v1 = vpop.permute.xlu0 %2663  ;;  %2929 = vmatprep.subr.bf16.mxu0 %v2564_v3  ;;  %v2597_v61 = vmul.f32 %v2591_v30, %v8979_v33  ;;  %v2598_v62 = vmul.f32 %v8983_v34, %v2587_v45  ;;  %v2635_v3 = vmul.f32 %v8886_v16, %v2630_v51 }
 0x80e   : > { %v2642_v52 = vpack.c.bf16 %v2636_v60, %v2634_v19  ;;  %v2673_v5 = vsel %vm478_vm9, %v10732_v31, %v10775_v18 }
 0x80f   : > { %v2622_v49 = vpop.permute.xlu1 %2621  ;;  %v2641_v26 = vpack.c.bf16 %v2635_v3, %v2633_v14 }
 0x810   : > { %2930 = vmatpush1.bf16.msra.mxu0 %v2563_v7  ;;  %v2627_v7 = vsel %vm429_vm8, %v10757_v39, %v2622_v49  ;;  %v2631_v57 = vsel %vm429_vm8, %v2622_v49, %v10757_v39 }
 0x811   : > { %v2584_v8 = vpop.permute.xlu0 %2583  ;;  %2931 = vmatprep.subr.bf16.mxu0 %v2602_v41  ;;  %v2637_v45 = vmul.f32 %v8886_v16, %v2631_v57  ;;  %v2638_v30 = vmul.f32 %v8896_v20, %v2627_v7 }
 0x812   : > { %v2588_v58 = vsel %vm388_vm7, %v10755_v54, %v2584_v8  ;;  %v2592_v28 = vsel %vm388_vm7, %v2584_v8, %v10755_v54 }
 0x813   : > { %v2599_v42 = vmul.f32 %v2592_v28, %v8979_v33  ;;  %v2600_v27 = vmul.f32 %v8983_v34, %v2588_v58  ;;  %v2662_v35 = vpop.permute.xlu1 %2661  ;;  %v2650_v58 = vpack.c.bf16 %v10592_v48, %v10588_v29  ;;  %v2649_v29 = vpack.c.bf16 %v10568_v2, %v10566_v25 }
 0x814   : > { %2932 = vmatpush1.bf16.msra.mxu0 %v2601_v47  ;;  %v2651_v2 = vpack.c.bf16 %v10612_v6, %v10608_v53 }
 0x815   : > { %v2603_v38 = vpack.c.bf16 %v2599_v42, %v2597_v61  ;;  %v10849_v15 = vpop.permute.xlu0 %2699  ;;  %v2604_v54 = vpack.c.bf16 %v2600_v27, %v2598_v62  ;;  %v2677_v61 = vsel %vm478_vm9, %v10775_v18, %v10732_v31  ;;  %v2674_v62 = vsel %vm478_vm9, %v10737_v0, %v10783_v50 }
 0x816   : > { %v2652_v27 = vpack.c.bf16 %v10632_v46, %v10628_v21  ;;  %v2682_v19 = vmul.f32 %v8983_v34, %v2677_v61  ;;  %v2681_v21 = vmul.f32 %v8973_v11, %v2673_v5 }
 0x817   : > { %2933 = vmatprep.subr.bf16.mxu0 %v2604_v54  ;;  %v2670_v55 = vpop.permute.xlu1 %2669 }
 0x818   : > { %2934 = vmatpush1.bf16.msra.mxu0 %v2603_v38  ;;  %v2683_v38 = vmul.f32 %v8973_v11, %v2674_v62  ;;  %v2675_v25 = vsel %vm478_vm9, %v2662_v35, %v2670_v55  ;;  %v2679_v31 = vsel %vm478_vm9, %v2670_v55, %v2662_v35 }
 0x819   : > { %v2624_v24 = vpop.permute.xlu0 %2623  ;;  %2935 = vmatprep.subr.bf16.mxu0 %v2642_v52  ;;  %v2685_v3 = vmul.f32 %v8973_v11, %v2675_v25  ;;  %v2686_v14 = vmul.f32 %v8983_v34, %v2679_v31 }
 0x81a   : > { %v2628_v56 = vsel %vm429_vm8, %v10759_v43, %v2624_v24  ;;  %v2632_v41 = vsel %vm429_vm8, %v2624_v24, %v10759_v43  ;;  %v2678_v43 = vsel %vm478_vm9, %v10783_v50, %v10737_v0  ;;  %v2689_v54 = vpack.c.bf16 %v2683_v38, %v2681_v21 }
 0x81b   : > { %v2639_v47 = vmul.f32 %v8886_v16, %v2632_v41  ;;  %v2640_v39 = vmul.f32 %v8896_v20, %v2628_v56  ;;  %v2698_v49 = vpop.permute.xlu1 %2697  ;;  %v2684_v48 = vmul.f32 %v8983_v34, %v2678_v43 }
 0x81c   : > { %2936 = vmatpush1.bf16.msra.mxu0 %v2641_v26 }
 0x81d   : > { %v2643_v40 = vpack.c.bf16 %v2639_v47, %v2637_v45  ;;  %v2708_v8 = vpop.permute.xlu0 %2707  ;;  %v2644_v51 = vpack.c.bf16 %v2640_v39, %v2638_v30  ;;  %v2690_v50 = vpack.c.bf16 %v2684_v48, %v2682_v19 }
 0x81e   : > { %v2718_v53 = vsel %vm519_vm11, %v2708_v8, %v10849_v15  ;;  %v2714_v56 = vsel %vm519_vm11, %v10849_v15, %v2708_v8 }
 0x81f   : > { %2937 = vmatprep.subr.bf16.mxu0 %v2644_v51  ;;  %v2706_v60 = vpop.permute.xlu1 %2705  ;;  %v2724_v41 = vmul.f32 %v2718_v53, %v9073_v23  ;;  %v2723_v39 = vmul.f32 %v8886_v16, %v2714_v56 }
 0x820   : > { %2938 = vmatpush1.bf16.msra.mxu0 %v2643_v40  ;;  %v2717_v18 = vsel %vm519_vm11, %v2706_v60, %v2698_v49  ;;  %v2713_v6 = vsel %vm519_vm11, %v2698_v49, %v2706_v60 }
 0x821   : > { %v2704_v28 = vpop.permute.xlu0 %2703  ;;  %2939 = vmatprep.subr.bf16.mxu0 %v2650_v58  ;;  %v2722_v7 = vmul.f32 %v2717_v18, %v9073_v23  ;;  %v2721_v45 = vmul.f32 %v8886_v16, %v2713_v6 }
 0x823   : > { %v2702_v42 = vpop.permute.xlu1 %2701  ;;  %v2730_v51 = vpack.c.bf16 %v2724_v41, %v2722_v7  ;;  %v2729_v8 = vpack.c.bf16 %v2723_v39, %v2721_v45  ;;  %v8541_v45 = vld [vmem:[%s14801_s1 + $0xdc] ss:$12 sps:$4 sm:$0xff]  }
 0x824   : > { %2940 = vmatpush1.bf16.msra.mxu0 %v2649_v29 }
 0x825   : > { %v2740_v0 = vpop.permute.xlu0 %2739  ;;  %2941 = vmatprep.subr.bf16.mxu0 %v2652_v27 }
 0x827   : > { %v2710_v46 = vpop.permute.xlu1 %2709 }
 0x828   : > { %2942 = vmatpush1.bf16.msra.mxu0 %v2651_v2  ;;  %v2715_v49 = vsel %vm519_vm11, %v2702_v42, %v2710_v46  ;;  %v2719_v60 = vsel %vm519_vm11, %v2710_v46, %v2702_v42 }
 0x829   : > { %v2672_v52 = vpop.permute.xlu0 %2671  ;;  %2943 = vmatprep.subr.bf16.mxu0 %v2690_v50  ;;  %v2725_v43 = vmul.f32 %v8886_v16, %v2715_v49  ;;  %v2726_v48 = vmul.f32 %v2719_v60, %v9073_v23 }
 0x82a   : > { %v2676_v35 = vsel %vm478_vm9, %v10814_v1, %v2672_v52  ;;  %v2680_v55 = vsel %vm478_vm9, %v2672_v52, %v10814_v1 }
 0x82b   : > { %v2687_v57 = vmul.f32 %v8973_v11, %v2676_v35  ;;  %v2688_v24 = vmul.f32 %v8983_v34, %v2680_v55  ;;  %v2738_v26 = vpop.permute.xlu1 %2737 }
 0x82c   : > { %2944 = vmatpush1.bf16.msra.mxu0 %v2689_v54 }
 0x82d   : > { %v2691_v30 = vpack.c.bf16 %v2687_v57, %v2685_v3  ;;  %v2748_v1 = vpop.permute.xlu0 %2747  ;;  %v2692_v47 = vpack.c.bf16 %v2688_v24, %v2686_v14 }
 0x82e   : > { %v2758_v61 = vsel %vm560_vm12, %v2748_v1, %v2740_v0  ;;  %v2754_v18 = vsel %vm560_vm12, %v2740_v0, %v2748_v1 }
 0x82f   : > { %v2746_v40 = vpop.permute.xlu1 %2745  ;;  %2945 = vmatprep.subr.bf16.mxu0 %v2692_v47  ;;  %v2764_v38 = vmul.f32 %v9069_v12, %v2758_v61  ;;  %v8543_v61 = vld [vmem:[%s14801_s1 + $0xd8] ss:$12 sps:$4 sm:$0xff]  }
 0x830   : > { %v2757_v15 = vsel %vm560_vm12, %v2746_v40, %v2738_v26  ;;  %2946 = vmatpush1.bf16.msra.mxu0 %v2691_v30  ;;  %v2753_v46 = vsel %vm560_vm12, %v2738_v26, %v2746_v40  ;;  %v8538_v26 = vld [vmem:[%s14801_s1 + $0xc0] ss:$12 sps:$4 sm:$0xff]  }
 0x831   : > { %v2712_v58 = vpop.permute.xlu0 %2711  ;;  %2947 = vmatprep.subr.bf16.mxu0 %v2730_v51  ;;  %v2762_v42 = vmul.f32 %v9069_v12, %v2757_v15  ;;  %v2769_v3 = vpack.c.bf16 %v2754_v18, %v2753_v46 }
 0x832   : > { %v2716_v62 = vsel %vm519_vm11, %v2704_v28, %v2712_v58  ;;  %v2720_v29 = vsel %vm519_vm11, %v2712_v58, %v2704_v28 }
 0x833   : > { %v2727_v27 = vmul.f32 %v8886_v16, %v2716_v62  ;;  %v2728_v5 = vmul.f32 %v2720_v29, %v9073_v23  ;;  %v2742_v19 = vpop.permute.xlu1 %2741  ;;  %v2770_v28 = vpack.c.bf16 %v2764_v38, %v2762_v42 }
 0x834   : > { %2948 = vmatpush1.bf16.msra.mxu0 %v2729_v8 }
 0x835   : > { %v2731_v25 = vpack.c.bf16 %v2727_v27, %v2725_v43  ;;  %v2744_v2 = vpop.permute.xlu0 %2743  ;;  %v2732_v21 = vpack.c.bf16 %v2728_v5, %v2726_v48 }
 0x837   : > { %v2750_v50 = vpop.permute.xlu1 %2749  ;;  %2949 = vmatprep.subr.bf16.mxu0 %v2732_v21 }
 0x838   : > { %v2759_v31 = vsel %vm560_vm12, %v2750_v50, %v2742_v19  ;;  %2950 = vmatpush1.bf16.msra.mxu0 %v2731_v25  ;;  %v2755_v14 = vsel %vm560_vm12, %v2742_v19, %v2750_v50  ;;  %v8544_v50 = vld [vmem:[%s14801_s1 + $0xc8] ss:$12 sps:$4 sm:$0xff]  }
 0x839   : > { %v2752_v54 = vpop.permute.xlu0 %2751  ;;  %2951 = vmatprep.subr.bf16.mxu0 %v2770_v28  ;;  %v2766_v53 = vmul.f32 %v9069_v12, %v2759_v31  ;;  %v8545_v28 = vld [vmem:[%s14801_s1 + $0xe0] ss:$12 sps:$4 sm:$0xff]  }
 0x83a   : > { %v2760_v52 = vsel %vm560_vm12, %v2752_v54, %v2744_v2  ;;  %v2756_v6 = vsel %vm560_vm12, %v2744_v2, %v2752_v54  ;;  %v14812_v2 = vmov 0  }
 0x83b   : > { %v2768_v35 = vmul.f32 %v9069_v12, %v2760_v52  ;;  %v2778_v55 = vpop.permute.xlu1 %2777  ;;  %v2771_v57 = vpack.c.bf16 %v2756_v6, %v2755_v14 }
 0x83c   : > { %2952 = vmatpush1.bf16.msra.mxu0 %v2769_v3 }
 0x83d   : > { %v2780_v7 = vpop.permute.xlu0 %2779  ;;  %v2772_v0 = vpack.c.bf16 %v2768_v35, %v2766_v53 }
 0x83f   : > { %v2786_v24 = vpop.permute.xlu1 %2785  ;;  %2953 = vmatprep.subr.bf16.mxu0 %v2772_v0 }
 0x840   : > { %v2793_v56 = vsel %vm601_vm13, %v2778_v55, %v2786_v24  ;;  %v2797_v41 = vsel %vm601_vm13, %v2786_v24, %v2778_v55  ;;  %2954 = vmatpush1.bf16.msra.mxu0 %v2771_v57 }
 0x841   : > { %v2788_v30 = vpop.permute.xlu0 %2787  ;;  %v2801_v39 = vmul.f32 %v8973_v11, %v2793_v56  ;;  %v2802_v49 = vmul.f32 %v2797_v41, %v9114_v59 }
 0x842   : > { %v2794_v1 = vsel %vm601_vm13, %v2780_v7, %v2788_v30  ;;  %v2798_v47 = vsel %vm601_vm13, %v2788_v30, %v2780_v7 }
 0x843   : > { %v2803_v40 = vmul.f32 %v8973_v11, %v2794_v1  ;;  %v2804_v51 = vmul.f32 %v2798_v47, %v9114_v59  ;;  %v2782_v60 = vpop.permute.xlu1 %2781  ;;  %2956 = vmatmul.mubr.bf16.vlgmr.msra.gmra.mrb[32].mxu0 %v8538_v26 }
 0x844   : > { %2965 = vmatprep.mubr.bf16.mxu0 %v8541_v45 }
 0x845   : > { %v2809_v15 = vpack.c.bf16 %v2803_v40, %v2801_v39  ;;  %v2784_v8 = vpop.permute.xlu0 %2783  ;;  %v2810_v58 = vpack.c.bf16 %v2804_v51, %v2802_v49 }
 0x847   : > { %v2790_v43 = vpop.permute.xlu1 %2789  ;;  %2976 = vmatprep.subr.bf16.mxu0 %v2810_v58 }
 0x848   : > { %v2795_v62 = vsel %vm601_vm13, %v2782_v60, %v2790_v43  ;;  %v2799_v29 = vsel %vm601_vm13, %v2790_v43, %v2782_v60  ;;  %2977 = vmatpush1.bf16.msra.mxu0 %v2809_v15  ;;  %v8109_v43 = vld [vmem:[%s14802_s2 + $0xa8] sm:$0xff] }
 0x849   : > { %v2792_v48 = vpop.permute.xlu0 %2791  ;;  %v2805_v5 = vmul.f32 %v8973_v11, %v2795_v62  ;;  %v2806_v19 = vmul.f32 %v2799_v29, %v9114_v59  ;;  %v8110_v62 = vld [vmem:[%s14802_s2 + $0xb0] sm:$0xff] }
 0x84a   : > { %v2796_v42 = vsel %vm601_vm13, %v2784_v8, %v2792_v48  ;;  %v2800_v27 = vsel %vm601_vm13, %v2792_v48, %v2784_v8  ;;  %v8108_v8 = vld [vmem:[%s14802_s2 + $0xa0] sm:$0xff]  ;;  %v8111_v48 = vld [vmem:[%s14802_s2 + $0xb8] sm:$0xff] }
 0x84b   : > { %v2807_v38 = vmul.f32 %v8973_v11, %v2796_v42  ;;  %v2808_v25 = vmul.f32 %v2800_v27, %v9114_v59  ;;  %2966 = vmatmul.mubr.bf16.gmra.mrb[36].mxu0 %v8543_v61 }
 0x84c   : > { %3008 = vmatprep.mubr.bf16.mxu0 %v14812_v2 }
 0x84d   : > { %v2811_v21 = vpack.c.bf16 %v2807_v38, %v2805_v5  ;;  %v2812_v46 = vpack.c.bf16 %v2808_v25, %v2806_v19 }
 0x84f   : > { %2978 = vmatprep.subr.bf16.mxu0 %v2812_v46 }
 0x850   : > { %2979 = vmatpush1.bf16.msra.mxu0 %v2811_v21 }
 0x853   : > { %8098 = vmatmul.mubr.msk.bf16.vlgmr.msra.gmra.mrb[32].mxu0 %vm724_vm14, %v8544_v50 }
 0x854   : > { %3018 = vmatprep.mubr.bf16.mxu0 %v14812_v2 }
 0x858   : > { %v2870_v31 = vpop.permute.xlu1 %2869 }
 0x85a   : > { %v2875_v52 = vpop.permute.xlu0 %2874 }
 0x85b   : > { %8099 = vmatmul.mubr.msk.bf16.gmra.mrb[36].mxu0 %vm724_vm14, %v8545_v28 }
 0x926   : > { %v3010_v18 = vpop.f32.mrb[32].mxu0 }
 0x927   : > { %v8334_v54 = vadd.f32 %v3010_v18, %v2870_v31  ;;  %v3012_v3 = vpop.f32.mrb[33].mxu0 }
 0x928   : > { %v3014_v53 = vpop.f32.mrb[34].mxu0 }
 0x929   : > { %v11001_v6 = vadd.f32 %v8334_v54, %v10085_v32  ;;  %v8336_v35 = vadd.f32 %v3014_v53, %v2875_v52  ;;  %v3016_v55 = vpop.f32.mrb[35].mxu0  ;;  %v8335_v32 = vadd.f32 %v3012_v3, %v2870_v31 }
 0x92b   : > { %v11004_v14 = vadd.f32 %v8336_v35, %v10087_v63  ;;  %3037 = vrot.lane.b32.xlu1 %v11001_v6, %s8686_s21  ;;  %v8337_v63 = vadd.f32 %v3016_v55, %v2875_v52  ;;  %v11025_v26 = vadd.f32 %v8335_v32, %v10111_v10  ;;  %v2880_v10 = vpop.permute.xlu1 %2879 }
 0x92d   : > { %3039 = vrot.lane.b32.xlu0 %v11004_v14, %s8686_s21  ;;  %v11030_v56 = vadd.f32 %v8337_v63, %v10115_v44  ;;  %v2885_v44 = vpop.permute.xlu0 %2884 }
 0x92e   : > { %v3020_v7 = vpop.f32.mrb[36].mxu0 }
 0x92f   : > { %v3022_v0 = vpop.f32.mrb[37].mxu0  ;;  %3077 = vrot.lane.b32.xlu1 %v11001_v6, %s8687_s22  ;;  %v8338_v41 = vadd.f32 %v3020_v7, %v2880_v10 }
 0x930   : > { %v3024_v57 = vpop.f32.mrb[38].mxu0 }
 0x931   : > { %v3026_v24 = vpop.f32.mrb[39].mxu0  ;;  %3079 = vrot.lane.b32.xlu0 %v11004_v14, %s8687_s22  ;;  %v8340_v45 = vadd.f32 %v3024_v57, %v2885_v44  ;;  %v11047_v30 = vadd.f32 %v8338_v41, %v10135_v13  ;;  %v8339_v13 = vadd.f32 %v3022_v0, %v2880_v10 }
 0x933   : > { %3117 = vrot.lane.b32.xlu1 %v11001_v6, %s8688_s23  ;;  %v11052_v1 = vadd.f32 %v8340_v45, %v10139_v37  ;;  %v8341_v37 = vadd.f32 %v3026_v24, %v2885_v44  ;;  %v11069_v47 = vadd.f32 %v8339_v13, %v10159_v36  ;;  %v8548_v36 = vld [vmem:[%s14801_s1 + $0xf4] ss:$12 sps:$4 sm:$0xff]  }
 0x934   : > { %3503 = vmatprep.mubr.bf16.mxu1 %v8548_v36 }
 0x935   : > { %3119 = vrot.lane.b32.xlu0 %v11004_v14, %s8688_s23  ;;  %v11074_v39 = vadd.f32 %v8341_v37, %v10163_v4 }
 0x937   : > { %3157 = vrot.lane.b32.xlu1 %v11001_v6, %s8689_s24 }
 0x939   : > { %3159 = vrot.lane.b32.xlu0 %v11004_v14, %s8689_s24 }
 0x93b   : > { %3205 = vrot.lane.b32.xlu1 %v11001_v6, %s8690_s25 }
 0x93d   : > { %3207 = vrot.lane.b32.xlu0 %v11004_v14, %s8690_s25 }
 0x93f   : > { %3045 = vrot.lane.b32.xlu1 %v11025_v26, %s8686_s21 }
 0x941   : > { %3047 = vrot.lane.b32.xlu0 %v11030_v56, %s8686_s21 }
 0x943   : > { %3085 = vrot.lane.b32.xlu1 %v11025_v26, %s8687_s22 }
 0x945   : > { %3087 = vrot.lane.b32.xlu0 %v11030_v56, %s8687_s22 }
 0x947   : > { %3125 = vrot.lane.b32.xlu1 %v11025_v26, %s8688_s23 }
 0x949   : > { %3127 = vrot.lane.b32.xlu0 %v11030_v56, %s8688_s23 }
 0x94b   : > { %3165 = vrot.lane.b32.xlu1 %v11025_v26, %s8689_s24 }
 0x94d   : > { %3167 = vrot.lane.b32.xlu0 %v11030_v56, %s8689_s24 }
 0x94f   : > { %3041 = vrot.lane.b32.xlu1 %v11047_v30, %s8686_s21 }
 0x951   : > { %3043 = vrot.lane.b32.xlu0 %v11052_v1, %s8686_s21 }
 0x953   : > { %3081 = vrot.lane.b32.xlu1 %v11047_v30, %s8687_s22 }
 0x955   : > { %3083 = vrot.lane.b32.xlu0 %v11052_v1, %s8687_s22 }
 0x957   : > { %3121 = vrot.lane.b32.xlu1 %v11047_v30, %s8688_s23 }
 0x959   : > { %3123 = vrot.lane.b32.xlu0 %v11052_v1, %s8688_s23 }
 0x95b   : > { %3161 = vrot.lane.b32.xlu1 %v11047_v30, %s8689_s24 }
 0x95d   : > { %3163 = vrot.lane.b32.xlu0 %v11052_v1, %s8689_s24 }
 0x95f   : > { %3049 = vrot.lane.b32.xlu1 %v11069_v47, %s8686_s21 }
 0x961   : > { %3051 = vrot.lane.b32.xlu0 %v11074_v39, %s8686_s21 }
 0x963   : > { %3213 = vrot.lane.b32.xlu1 %v11025_v26, %s8690_s25 }
 0x965   : > { %3215 = vrot.lane.b32.xlu0 %v11030_v56, %s8690_s25 }
 0x967   : > { %3089 = vrot.lane.b32.xlu1 %v11069_v47, %s8687_s22 }
 0x969   : > { %3091 = vrot.lane.b32.xlu0 %v11074_v39, %s8687_s22 }
 0x96b   : > { %3129 = vrot.lane.b32.xlu1 %v11069_v47, %s8688_s23 }
 0x96d   : > { %3211 = vrot.lane.b32.xlu0 %v11052_v1, %s8690_s25 }
 0x96f   : > { %3169 = vrot.lane.b32.xlu1 %v11069_v47, %s8689_s24 }
 0x971   : > { %3131 = vrot.lane.b32.xlu0 %v11074_v39, %s8688_s23 }
 0x973   : > { %3209 = vrot.lane.b32.xlu1 %v11047_v30, %s8690_s25 }
 0x975   : > { %3247 = vrot.lane.b32.xlu0 %v11004_v14, %s8691_s26 }
 0x977   : > { %3217 = vrot.lane.b32.xlu1 %v11069_v47, %s8690_s25 }
 0x979   : > { %3171 = vrot.lane.b32.xlu0 %v11074_v39, %s8689_s24 }
 0x97b   : > { %3245 = vrot.lane.b32.xlu1 %v11001_v6, %s8691_s26 }
 0x97d   : > { %3255 = vrot.lane.b32.xlu0 %v11030_v56, %s8691_s26 }
 0x97f   : > { %3253 = vrot.lane.b32.xlu1 %v11025_v26, %s8691_s26 }
 0x981   : > { %3251 = vrot.lane.b32.xlu0 %v11052_v1, %s8691_s26 }
 0x983   : > { %3249 = vrot.lane.b32.xlu1 %v11047_v30, %s8691_s26 }
 0x985   : > { %3287 = vrot.lane.b32.xlu0 %v11004_v14, %s8692_s27 }
 0x987   : > { %3257 = vrot.lane.b32.xlu1 %v11069_v47, %s8691_s26 }
 0x989   : > { %3219 = vrot.lane.b32.xlu0 %v11074_v39, %s8690_s25 }
 0x98b   : > { %3285 = vrot.lane.b32.xlu1 %v11001_v6, %s8692_s27 }
 0x98d   : > { %3295 = vrot.lane.b32.xlu0 %v11030_v56, %s8692_s27 }
 0x98f   : > { %3293 = vrot.lane.b32.xlu1 %v11025_v26, %s8692_s27 }
 0x991   : > { %3259 = vrot.lane.b32.xlu0 %v11074_v39, %s8691_s26 }
 0x993   : > { %3289 = vrot.lane.b32.xlu1 %v11047_v30, %s8692_s27 }
 0x995   : > { %3291 = vrot.lane.b32.xlu0 %v11052_v1, %s8692_s27 }
 0x997   : > { %3297 = vrot.lane.b32.xlu1 %v11069_v47, %s8692_s27 }
 0x999   : > { %3299 = vrot.lane.b32.xlu0 %v11074_v39, %s8692_s27 }
 0x99b   : > { %3325 = vrot.lane.b32.xlu1 %v11001_v6, %s8693_s28 }
 0x99d   : > { %3327 = vrot.lane.b32.xlu0 %v11004_v14, %s8693_s28  ;;  %v3038_v4 = vpop.permute.xlu1 %3037 }
 0x99f   : > { %v3040_v49 = vpop.permute.xlu0 %3039  ;;  %3333 = vrot.lane.b32.xlu1 %v11025_v26, %s8693_s28 }
 0x9a1   : > { %3335 = vrot.lane.b32.xlu0 %v11030_v56, %s8693_s28  ;;  %v11147_v40 = vpop.permute.xlu1 %3077 }
 0x9a3   : > { %v3080_v51 = vpop.permute.xlu0 %3079  ;;  %3329 = vrot.lane.b32.xlu1 %v11047_v30, %s8693_s28 }
 0x9a5   : > { %3331 = vrot.lane.b32.xlu0 %v11052_v1, %s8693_s28  ;;  %v11153_v60 = vpop.permute.xlu1 %3117 }
 0x9a7   : > { %v11155_v15 = vpop.permute.xlu0 %3119  ;;  %3337 = vrot.lane.b32.xlu1 %v11069_v47, %s8693_s28 }
 0x9a9   : > { %3339 = vrot.lane.b32.xlu0 %v11074_v39, %s8693_s28  ;;  %v11164_v58 = vpop.permute.xlu1 %3157 }
 0x9ab   : > { %v11169_v61 = vpop.permute.xlu0 %3159  ;;  %3417 = vperm.xlu1 %8505, %v8108_v8  }
 0x9ad   : > { %3422 = vperm.xlu0 %8504, %v8109_v43   ;;  %v11174_v29 = vpop.permute.xlu1 %3205 }
 0x9af   : > { %v11179_v42 = vpop.permute.xlu0 %3207  ;;  %3427 = vperm.xlu1 %8505, %v8110_v62  }
 0x9b1   : > { %3432 = vperm.xlu0 %8504, %v8111_v48   ;;  %v3046_v27 = vpop.permute.xlu1 %3045 }
 0x9b2   : > { %v3053_v5 = vsel %vm306_vm2, %v3038_v4, %v3046_v27  ;;  %v3057_v19 = vsel %vm306_vm2, %v3046_v27, %v3038_v4 }
 0x9b3   : > { %v3048_v38 = vpop.permute.xlu0 %3047  ;;  %v3061_v46 = vmul.f32 %v3057_v19, %v8902_v22  ;;  %v3062_v50 = vmul.f32 %v8896_v20, %v3053_v5 }
 0x9b4   : > { %v3054_v25 = vsel %vm306_vm2, %v3040_v49, %v3048_v38  ;;  %v3058_v21 = vsel %vm306_vm2, %v3048_v38, %v3040_v49 }
 0x9b5   : > { %v3063_v28 = vmul.f32 %v3058_v21, %v8902_v22  ;;  %v3064_v31 = vmul.f32 %v8896_v20, %v3054_v25  ;;  %v3086_v18 = vpop.permute.xlu1 %3085 }
 0x9b6   : > { %v3097_v19 = vsel %vm347_vm4, %v3086_v18, %v11147_v40 }
 0x9b7   : > { %v3069_v54 = vpack.c.bf16 %v3063_v28, %v3061_v46  ;;  %v3088_v3 = vpop.permute.xlu0 %3087  ;;  %v3070_v52 = vpack.c.bf16 %v3064_v31, %v3062_v50  ;;  %v3093_v28 = vsel %vm347_vm4, %v11147_v40, %v3086_v18  ;;  %v3101_v31 = vmul.f32 %v8889_v17, %v3097_v19 }
 0x9b8   : > { %v3098_v4 = vsel %vm347_vm4, %v3088_v3, %v3080_v51  ;;  %v3094_v38 = vsel %vm347_vm4, %v3080_v51, %v3088_v3 }
 0x9b9   : > { %3471 = vmatprep.subr.bf16.mxu1 %v3070_v52  ;;  %v3126_v53 = vpop.permute.xlu1 %3125  ;;  %v3103_v25 = vmul.f32 %v8889_v17, %v3098_v4  ;;  %v3110_v52 = vpack.c.bf16 %v3094_v38, %v3093_v28 }
 0x9ba   : > { %3472 = vmatpush1.bf16.msra.mxu1 %v3069_v54 }
 0x9bb   : > { %v3128_v35 = vpop.permute.xlu0 %3127  ;;  %v3109_v3 = vpack.c.bf16 %v3103_v25, %v3101_v31 }
 0x9bc   : > { %v3138_v40 = vsel %vm388_vm7, %v3128_v35, %v11155_v15 }
 0x9bd   : > { %v11193_v55 = vpop.permute.xlu1 %3165 }
 0x9bf   : > { %v11195_v7 = vpop.permute.xlu0 %3167 }
 0x9c0   : > { %v3178_v28 = vsel %vm429_vm8, %v11195_v7, %v11169_v61 }
 0x9c1   : > { %v3042_v0 = vpop.permute.xlu1 %3041 }
 0x9c3   : > { %v3044_v57 = vpop.permute.xlu0 %3043 }
 0x9c5   : > { %v3082_v24 = vpop.permute.xlu1 %3081 }
 0x9c7   : > { %v3084_v32 = vpop.permute.xlu0 %3083 }
 0x9c9   : > { %v3122_v63 = vpop.permute.xlu1 %3121 }
 0x9cb   : > { %v11197_v10 = vpop.permute.xlu0 %3123 }
 0x9cd   : > { %v11199_v41 = vpop.permute.xlu1 %3161 }
 0x9cf   : > { %v11201_v44 = vpop.permute.xlu0 %3163 }
 0x9d1   : > { %v3050_v45 = vpop.permute.xlu1 %3049 }
 0x9d2   : > { %v3055_v13 = vsel %vm306_vm2, %v3042_v0, %v3050_v45  ;;  %v3059_v37 = vsel %vm306_vm2, %v3050_v45, %v3042_v0  ;;  %v3134_v0 = vsel %vm388_vm7, %v11155_v15, %v3128_v35  ;;  %v3137_v15 = vsel %vm388_vm7, %v3126_v53, %v11153_v60 }
 0x9d3   : > { %v3052_v36 = vpop.permute.xlu0 %3051  ;;  %v3065_v43 = vmul.f32 %v3059_v37, %v8902_v22  ;;  %v3066_v62 = vmul.f32 %v8896_v20, %v3055_v13 }
 0x9d4   : > { %v3056_v49 = vsel %vm306_vm2, %v3044_v57, %v3052_v36  ;;  %v3060_v8 = vsel %vm306_vm2, %v3052_v36, %v3044_v57  ;;  %v3133_v57 = vsel %vm388_vm7, %v11153_v60, %v3126_v53  ;;  %v3144_v36 = vmul.f32 %v8983_v34, %v3134_v0 }
 0x9d5   : > { %v3067_v48 = vmul.f32 %v3060_v8, %v8902_v22  ;;  %v3068_v27 = vmul.f32 %v8896_v20, %v3056_v49  ;;  %v11217_v5 = vpop.permute.xlu1 %3213  ;;  %v3142_v35 = vmul.f32 %v8983_v34, %v3133_v57 }
 0x9d7   : > { %v3071_v21 = vpack.c.bf16 %v3067_v48, %v3065_v43  ;;  %v11225_v46 = vpop.permute.xlu0 %3215  ;;  %v3072_v50 = vpack.c.bf16 %v3068_v27, %v3066_v62  ;;  %v3174_v27 = vsel %vm429_vm8, %v11169_v61, %v11195_v7  ;;  %v3150_v38 = vpack.c.bf16 %v3144_v36, %v3142_v35 }
 0x9d8   : > { %v3184_v31 = vmul.f32 %v8896_v20, %v3174_v27  ;;  %v3177_v61 = vsel %vm429_vm8, %v11193_v55, %v11164_v58 }
 0x9d9   : > { %3473 = vmatprep.subr.bf16.mxu1 %v3072_v50  ;;  %v3090_v54 = vpop.permute.xlu1 %3089  ;;  %v3181_v36 = vmul.f32 %v8886_v16, %v3177_v61 }
 0x9da   : > { %v3099_v51 = vsel %vm347_vm4, %v3090_v54, %v3082_v24  ;;  %3474 = vmatpush1.bf16.msra.mxu1 %v3071_v21  ;;  %v3095_v18 = vsel %vm347_vm4, %v3082_v24, %v3090_v54  ;;  %v3143_v24 = vmul.f32 %v3138_v40, %v8979_v33  ;;  %v3173_v21 = vsel %vm429_vm8, %v11164_v58, %v11193_v55 }
 0x9db   : > { %v3092_v45 = vpop.permute.xlu0 %3091  ;;  %3475 = vmatprep.subr.bf16.mxu1 %v3110_v52  ;;  %v3105_v4 = vmul.f32 %v8889_v17, %v3099_v51  ;;  %v3182_v7 = vmul.f32 %v8896_v20, %v3173_v21  ;;  %v3222_v21 = vsel %vm478_vm9, %v11179_v42, %v11225_v46 }
 0x9dc   : > { %v3096_v13 = vsel %vm347_vm4, %v3084_v32, %v3092_v45  ;;  %v3100_v37 = vsel %vm347_vm4, %v3092_v45, %v3084_v32  ;;  %v3141_v32 = vmul.f32 %v3137_v15, %v8979_v33 }
 0x9dd   : > { %v3107_v49 = vmul.f32 %v8889_v17, %v3100_v37  ;;  %v3130_v8 = vpop.permute.xlu1 %3129  ;;  %v3112_v43 = vpack.c.bf16 %v3096_v13, %v3095_v18  ;;  %v3183_v18 = vmul.f32 %v8886_v16, %v3178_v28  ;;  %v3190_v37 = vpack.c.bf16 %v3184_v31, %v3182_v7 }
 0x9de   : > { %3476 = vmatpush1.bf16.msra.mxu1 %v3109_v3  ;;  %v3135_v60 = vsel %vm388_vm7, %v3122_v63, %v3130_v8  ;;  %v3139_v53 = vsel %vm388_vm7, %v3130_v8, %v3122_v63  ;;  %v3149_v25 = vpack.c.bf16 %v3143_v24, %v3141_v32 }
 0x9df   : > { %v3111_v62 = vpack.c.bf16 %v3107_v49, %v3105_v4  ;;  %v11256_v48 = vpop.permute.xlu0 %3211  ;;  %3477 = vmatprep.subr.bf16.mxu1 %v3112_v43  ;;  %v3145_v52 = vmul.f32 %v3139_v53, %v8979_v33  ;;  %v3146_v0 = vmul.f32 %v8983_v34, %v3135_v60  ;;  %v3189_v49 = vpack.c.bf16 %v3183_v18, %v3181_v36 }
 0x9e0   : > { %v3198_v60 = vpack.c.bf16 %v11030_v56, %v11025_v26 }
 0x9e1   : > { %v3170_v19 = vpop.permute.xlu1 %3169 }
 0x9e2   : > { %3478 = vmatpush1.bf16.msra.mxu1 %v3111_v62  ;;  %v3175_v4 = vsel %vm429_vm8, %v11199_v41, %v3170_v19  ;;  %v3179_v58 = vsel %vm429_vm8, %v3170_v19, %v11199_v41 }
 0x9e3   : > { %v3132_v50 = vpop.permute.xlu0 %3131  ;;  %3479 = vmatprep.subr.bf16.mxu1 %v3150_v38  ;;  %v3185_v15 = vmul.f32 %v8886_v16, %v3179_v58  ;;  %v3186_v35 = vmul.f32 %v8896_v20, %v3175_v4 }
 0x9e4   : > { %v3136_v63 = vsel %vm388_vm7, %v11197_v10, %v3132_v50  ;;  %v3140_v54 = vsel %vm388_vm7, %v3132_v50, %v11197_v10  ;;  %v3197_v50 = vpack.c.bf16 %v11004_v14, %v11001_v6 }
 0x9e5   : > { %v3147_v51 = vmul.f32 %v3140_v54, %v8979_v33  ;;  %v3148_v3 = vmul.f32 %v8983_v34, %v3136_v63  ;;  %v3210_v57 = vpop.permute.xlu1 %3209  ;;  %v3200_v63 = vpack.c.bf16 %v11074_v39, %v11069_v47  ;;  %v3221_v54 = vsel %vm478_vm9, %v11174_v29, %v11217_v5 }
 0x9e6   : > { %3480 = vmatpush1.bf16.msra.mxu1 %v3149_v25  ;;  %v3225_v25 = vsel %vm478_vm9, %v11217_v5, %v11174_v29 }
 0x9e7   : > { %v3151_v45 = vpack.c.bf16 %v3147_v51, %v3145_v52  ;;  %v11291_v40 = vpop.permute.xlu0 %3247  ;;  %v3152_v10 = vpack.c.bf16 %v3148_v3, %v3146_v0  ;;  %v3230_v52 = vmul.f32 %v8983_v34, %v3225_v25  ;;  %v3231_v0 = vmul.f32 %v8973_v11, %v3222_v21 }
 0x9e8   : > { %v3199_v51 = vpack.c.bf16 %v11052_v1, %v11047_v30  ;;  %v3229_v3 = vmul.f32 %v8973_v11, %v3221_v54 }
 0x9e9   : > { %3481 = vmatprep.subr.bf16.mxu1 %v3152_v10  ;;  %v3218_v13 = vpop.permute.xlu1 %3217 }
 0x9ea   : > { %3482 = vmatpush1.bf16.msra.mxu1 %v3151_v45  ;;  %v3227_v29 = vsel %vm478_vm9, %v3218_v13, %v3210_v57  ;;  %v3237_v45 = vpack.c.bf16 %v3231_v0, %v3229_v3 }
 0x9eb   : > { %v3172_v55 = vpop.permute.xlu0 %3171  ;;  %3483 = vmatprep.subr.bf16.mxu1 %v3190_v37  ;;  %v3234_v4 = vmul.f32 %v8983_v34, %v3227_v29 }
 0x9ec   : > { %v3176_v8 = vsel %vm429_vm8, %v11201_v44, %v3172_v55  ;;  %v3180_v43 = vsel %vm429_vm8, %v3172_v55, %v11201_v44  ;;  %v3226_v44 = vsel %vm478_vm9, %v11225_v46, %v11179_v42  ;;  %v3223_v46 = vsel %vm478_vm9, %v3210_v57, %v3218_v13 }
 0x9ed   : > { %v3187_v24 = vmul.f32 %v8886_v16, %v3180_v43  ;;  %v3188_v41 = vmul.f32 %v8896_v20, %v3176_v8  ;;  %v3246_v62 = vpop.permute.xlu1 %3245  ;;  %v3232_v28 = vmul.f32 %v8983_v34, %v3226_v44  ;;  %v3233_v10 = vmul.f32 %v8973_v11, %v3223_v46 }
 0x9ee   : > { %3484 = vmatpush1.bf16.msra.mxu1 %v3189_v49 }
 0x9ef   : > { %v3191_v32 = vpack.c.bf16 %v3187_v24, %v3185_v15  ;;  %v3256_v27 = vpop.permute.xlu0 %3255  ;;  %v3192_v19 = vpack.c.bf16 %v3188_v41, %v3186_v35  ;;  %v3238_v7 = vpack.c.bf16 %v3232_v28, %v3230_v52 }
 0x9f0   : > { %v3266_v37 = vsel %vm519_vm11, %v3256_v27, %v11291_v40  ;;  %v3262_v43 = vsel %vm519_vm11, %v11291_v40, %v3256_v27 }
 0x9f1   : > { %3485 = vmatprep.subr.bf16.mxu1 %v3192_v19  ;;  %v3254_v38 = vpop.permute.xlu1 %3253  ;;  %v3272_v15 = vmul.f32 %v3266_v37, %v9073_v23 }
 0x9f2   : > { %3486 = vmatpush1.bf16.msra.mxu1 %v3191_v32  ;;  %v3265_v5 = vsel %vm519_vm11, %v3254_v38, %v3246_v62  ;;  %v3261_v36 = vsel %vm519_vm11, %v3246_v62, %v3254_v38  ;;  %v3271_v62 = vmul.f32 %v8886_v16, %v3262_v43  ;;  %v8546_v43 = vld [vmem:[%s14801_s1 + $0xf0] ss:$12 sps:$4 sm:$0xff]  }
 0x9f3   : > { %v3252_v53 = vpop.permute.xlu0 %3251  ;;  %3487 = vmatprep.subr.bf16.mxu1 %v3198_v60  ;;  %v3270_v58 = vmul.f32 %v3265_v5, %v9073_v23  ;;  %v3269_v35 = vmul.f32 %v8886_v16, %v3261_v36 }
 0x9f5   : > { %v3250_v31 = vpop.permute.xlu1 %3249  ;;  %v3278_v38 = vpack.c.bf16 %v3272_v15, %v3270_v58  ;;  %v3277_v27 = vpack.c.bf16 %v3271_v62, %v3269_v35 }
 0x9f6   : > { %3488 = vmatpush1.bf16.msra.mxu1 %v3197_v50 }
 0x9f7   : > { %v3288_v42 = vpop.permute.xlu0 %3287  ;;  %3489 = vmatprep.subr.bf16.mxu1 %v3200_v63 }
 0x9f9   : > { %v3258_v61 = vpop.permute.xlu1 %3257 }
 0x9fa   : > { %3490 = vmatpush1.bf16.msra.mxu1 %v3199_v51  ;;  %v3263_v32 = vsel %vm519_vm11, %v3250_v31, %v3258_v61  ;;  %v3267_v60 = vsel %vm519_vm11, %v3258_v61, %v3250_v31 }
 0x9fb   : > { %v3220_v18 = vpop.permute.xlu0 %3219  ;;  %3491 = vmatprep.subr.bf16.mxu1 %v3238_v7  ;;  %v3273_v25 = vmul.f32 %v8886_v16, %v3263_v32  ;;  %v3274_v31 = vmul.f32 %v3267_v60, %v9073_v23 }
 0x9fc   : > { %v3224_v57 = vsel %vm478_vm9, %v11256_v48, %v3220_v18  ;;  %v3228_v13 = vsel %vm478_vm9, %v3220_v18, %v11256_v48 }
 0x9fd   : > { %v3235_v55 = vmul.f32 %v8973_v11, %v3224_v57  ;;  %v3236_v49 = vmul.f32 %v8983_v34, %v3228_v13  ;;  %v3286_v8 = vpop.permute.xlu1 %3285 }
 0x9fe   : > { %3492 = vmatpush1.bf16.msra.mxu1 %v3237_v45 }
 0x9ff   : > { %v3239_v24 = vpack.c.bf16 %v3235_v55, %v3233_v10  ;;  %v3296_v48 = vpop.permute.xlu0 %3295  ;;  %v3240_v41 = vpack.c.bf16 %v3236_v49, %v3234_v4 }
 0xa00   : > { %v3306_v21 = vsel %vm560_vm12, %v3296_v48, %v3288_v42  ;;  %v3302_v45 = vsel %vm560_vm12, %v3288_v42, %v3296_v48 }
 0xa01   : > { %v3294_v19 = vpop.permute.xlu1 %3293  ;;  %3493 = vmatprep.subr.bf16.mxu1 %v3240_v41  ;;  %v3312_v46 = vmul.f32 %v9069_v12, %v3306_v21 }
 0xa02   : > { %v3305_v40 = vsel %vm560_vm12, %v3294_v19, %v3286_v8  ;;  %3494 = vmatpush1.bf16.msra.mxu1 %v3239_v24  ;;  %v3301_v7 = vsel %vm560_vm12, %v3286_v8, %v3294_v19  ;;  %v8549_v24 = vld [vmem:[%s14801_s1 + $0x10c] ss:$12 sps:$4 sm:$0xff]  }
 0xa03   : > { %v3260_v44 = vpop.permute.xlu0 %3259  ;;  %3495 = vmatprep.subr.bf16.mxu1 %v3278_v38  ;;  %v3310_v63 = vmul.f32 %v9069_v12, %v3305_v40  ;;  %v3317_v18 = vpack.c.bf16 %v3302_v45, %v3301_v7 }
 0xa04   : > { %v3264_v50 = vsel %vm519_vm11, %v3252_v53, %v3260_v44  ;;  %v3268_v28 = vsel %vm519_vm11, %v3260_v44, %v3252_v53 }
 0xa05   : > { %v3275_v54 = vmul.f32 %v8886_v16, %v3264_v50  ;;  %v3276_v52 = vmul.f32 %v3268_v28, %v9073_v23  ;;  %v3290_v0 = vpop.permute.xlu1 %3289  ;;  %v3318_v53 = vpack.c.bf16 %v3312_v46, %v3310_v63  ;;  %v8551_v50 = vld [vmem:[%s14801_s1 + $0x108] ss:$12 sps:$4 sm:$0xff]  }
 0xa06   : > { %3496 = vmatpush1.bf16.msra.mxu1 %v3277_v27 }
 0xa07   : > { %v3279_v51 = vpack.c.bf16 %v3275_v54, %v3273_v25  ;;  %v3292_v3 = vpop.permute.xlu0 %3291  ;;  %v3280_v61 = vpack.c.bf16 %v3276_v52, %v3274_v31 }
 0xa09   : > { %v3298_v29 = vpop.permute.xlu1 %3297  ;;  %3497 = vmatprep.subr.bf16.mxu1 %v3280_v61 }
 0xa0a   : > { %v3307_v5 = vsel %vm560_vm12, %v3298_v29, %v3290_v0  ;;  %3498 = vmatpush1.bf16.msra.mxu1 %v3279_v51  ;;  %v3303_v58 = vsel %vm560_vm12, %v3290_v0, %v3298_v29  ;;  %v8552_v29 = vld [vmem:[%s14801_s1 + $0xf8] ss:$12 sps:$4 sm:$0xff]  }
 0xa0b   : > { %v3300_v10 = vpop.permute.xlu0 %3299  ;;  %3499 = vmatprep.subr.bf16.mxu1 %v3318_v53  ;;  %v3314_v36 = vmul.f32 %v9069_v12, %v3307_v5  ;;  %v8553_v53 = vld [vmem:[%s14801_s1 + $0x110] ss:$12 sps:$4 sm:$0xff]  }
 0xa0c   : > { %v3308_v37 = vsel %vm560_vm12, %v3300_v10, %v3292_v3  ;;  %v3304_v57 = vsel %vm560_vm12, %v3292_v3, %v3300_v10 }
 0xa0d   : > { %v3316_v13 = vmul.f32 %v9069_v12, %v3308_v37  ;;  %v3326_v4 = vpop.permute.xlu1 %3325  ;;  %v3319_v49 = vpack.c.bf16 %v3304_v57, %v3303_v58 }
 0xa0e   : > { %3500 = vmatpush1.bf16.msra.mxu1 %v3317_v18 }
 0xa0f   : > { %v3328_v55 = vpop.permute.xlu0 %3327  ;;  %v3320_v42 = vpack.c.bf16 %v3316_v13, %v3314_v36 }
 0xa11   : > { %v3334_v8 = vpop.permute.xlu1 %3333  ;;  %3501 = vmatprep.subr.bf16.mxu1 %v3320_v42 }
 0xa12   : > { %v3341_v15 = vsel %vm601_vm13, %v3326_v4, %v3334_v8  ;;  %v3345_v35 = vsel %vm601_vm13, %v3334_v8, %v3326_v4  ;;  %3502 = vmatpush1.bf16.msra.mxu1 %v3319_v49 }
 0xa13   : > { %v3336_v48 = vpop.permute.xlu0 %3335  ;;  %v3349_v32 = vmul.f32 %v8973_v11, %v3341_v15  ;;  %v3350_v19 = vmul.f32 %v3345_v35, %v9114_v59 }
 0xa14   : > { %v3342_v41 = vsel %vm601_vm13, %v3328_v55, %v3336_v48  ;;  %v3346_v62 = vsel %vm601_vm13, %v3336_v48, %v3328_v55 }
 0xa15   : > { %v3351_v38 = vmul.f32 %v8973_v11, %v3342_v41  ;;  %v3352_v60 = vmul.f32 %v3346_v62, %v9114_v59  ;;  %v3330_v40 = vpop.permute.xlu1 %3329  ;;  %3504 = vmatmul.mubr.bf16.vlgmr.msra.gmra.mrb[24].mxu1 %v8546_v43 }
 0xa16   : > { %3513 = vmatprep.mubr.bf16.mxu1 %v8549_v24 }
 0xa17   : > { %v3357_v27 = vpack.c.bf16 %v3351_v38, %v3349_v32  ;;  %v3332_v44 = vpop.permute.xlu0 %3331  ;;  %v3358_v25 = vpack.c.bf16 %v3352_v60, %v3350_v19 }
 0xa19   : > { %v3338_v21 = vpop.permute.xlu1 %3337  ;;  %3524 = vmatprep.subr.bf16.mxu1 %v3358_v25  ;;  %v8556_v25 = vld [vmem:[%s14801_s1 + $0x124] ss:$12 sps:$4 sm:$0xff]  }
 0xa1a   : > { %v3343_v28 = vsel %vm601_vm13, %v3330_v40, %v3338_v21  ;;  %v3347_v31 = vsel %vm601_vm13, %v3338_v21, %v3330_v40  ;;  %3525 = vmatpush1.bf16.msra.mxu1 %v3357_v27  ;;  %4051 = vmatprep.mubr.bf16.mxu0 %v8556_v25 }
 0xa1b   : > { %v3340_v63 = vpop.permute.xlu0 %3339  ;;  %v3353_v0 = vmul.f32 %v8973_v11, %v3343_v28  ;;  %v3354_v46 = vmul.f32 %v3347_v31, %v9114_v59 }
 0xa1c   : > { %v3344_v54 = vsel %vm601_vm13, %v3332_v44, %v3340_v63  ;;  %v3348_v52 = vsel %vm601_vm13, %v3340_v63, %v3332_v44 }
 0xa1d   : > { %v3355_v51 = vmul.f32 %v8973_v11, %v3344_v54  ;;  %v3356_v3 = vmul.f32 %v3348_v52, %v9114_v59  ;;  %3514 = vmatmul.mubr.bf16.gmra.mrb[28].mxu1 %v8551_v50  ;;  %v8128_v52 = vld [vmem:[%s14802_s2 + $0xc0] sm:$0xff] }
 0xa1e   : > { %3556 = vmatprep.mubr.bf16.mxu1 %v14812_v2 }
 0xa1f   : > { %v3359_v61 = vpack.c.bf16 %v3355_v51, %v3353_v0  ;;  %v3360_v7 = vpack.c.bf16 %v3356_v3, %v3354_v46  ;;  %v8129_v46 = vld [vmem:[%s14802_s2 + $0xc8] sm:$0xff]  ;;  %v8130_v3 = vld [vmem:[%s14802_s2 + $0xd0] sm:$0xff] }
 0xa21   : > { %3526 = vmatprep.subr.bf16.mxu1 %v3360_v7  ;;  %v8131_v7 = vld [vmem:[%s14802_s2 + $0xd8] sm:$0xff] }
 0xa22   : > { %3527 = vmatpush1.bf16.msra.mxu1 %v3359_v61 }
 0xa25   : > { %8118 = vmatmul.mubr.msk.bf16.vlgmr.msra.gmra.mrb[24].mxu1 %vm724_vm14, %v8552_v29 }
 0xa26   : > { %3566 = vmatprep.mubr.bf16.mxu1 %v14812_v2 }
 0xa2a   : > { %v3418_v5 = vpop.permute.xlu1 %3417 }
 0xa2c   : > { %v3423_v37 = vpop.permute.xlu0 %3422 }
 0xa2d   : > { %8119 = vmatmul.mubr.msk.bf16.gmra.mrb[28].mxu1 %vm724_vm14, %v8553_v53 }
 0xa2e   : > { %v3428_v48 = vpop.permute.xlu1 %3427 }
 0xa30   : > { %v3433_v62 = vpop.permute.xlu0 %3432 }
 0xaf8   : > { %v3558_v45 = vpop.f32.mrb[24].mxu1 }
 0xaf9   : > { %v8342_v10 = vadd.f32 %v3558_v45, %v3418_v5  ;;  %v3560_v18 = vpop.f32.mrb[25].mxu1 }
 0xafa   : > { %v3562_v36 = vpop.f32.mrb[26].mxu1  ;;  %v8343_v43 = vadd.f32 %v3560_v18, %v3418_v5 }
 0xafb   : > { %v11442_v57 = vmax.f32 %v8342_v10, 0.0  ;;  %v8344_v13 = vadd.f32 %v3562_v36, %v3423_v37  ;;  %v3564_v4 = vpop.f32.mrb[27].mxu1 }
 0xafc   : > { %v8345_v15 = vadd.f32 %v3564_v4, %v3423_v37  ;;  %v11464_v35 = vmax.f32 %v8343_v43, 0.0 }
 0xafd   : > { %v11444_v58 = vmax.f32 %v8344_v13, 0.0  ;;  %3585 = vrot.lane.b32.xlu1 %v11442_v57, %s8686_s21 }
 0xafe   : > { %v11468_v24 = vmax.f32 %v8345_v15, 0.0 }
 0xaff   : > { %3587 = vrot.lane.b32.xlu0 %v11444_v58, %s8686_s21 }
 0xb00   : > { %v3568_v55 = vpop.f32.mrb[28].mxu1 }
 0xb01   : > { %v3570_v42 = vpop.f32.mrb[29].mxu1  ;;  %3625 = vrot.lane.b32.xlu1 %v11442_v57, %s8687_s22  ;;  %v8346_v41 = vadd.f32 %v3568_v55, %v3428_v48 }
 0xb02   : > { %v3572_v49 = vpop.f32.mrb[30].mxu1  ;;  %v8347_v60 = vadd.f32 %v3570_v42, %v3428_v48 }
 0xb03   : > { %v3574_v8 = vpop.f32.mrb[31].mxu1  ;;  %3627 = vrot.lane.b32.xlu0 %v11444_v58, %s8687_s22  ;;  %v8348_v32 = vadd.f32 %v3572_v49, %v3433_v62  ;;  %v11484_v19 = vmax.f32 %v8346_v41, 0.0 }
 0xb04   : > { %v8349_v40 = vadd.f32 %v3574_v8, %v3433_v62  ;;  %v11504_v27 = vmax.f32 %v8347_v60, 0.0 }
 0xb05   : > { %3665 = vrot.lane.b32.xlu1 %v11442_v57, %s8688_s23  ;;  %v11488_v38 = vmax.f32 %v8348_v32, 0.0 }
 0xb06   : > { %v11508_v44 = vmax.f32 %v8349_v40, 0.0 }
 0xb07   : > { %3667 = vrot.lane.b32.xlu0 %v11444_v58, %s8688_s23 }
 0xb09   : > { %3705 = vrot.lane.b32.xlu1 %v11442_v57, %s8689_s24 }
 0xb0b   : > { %3707 = vrot.lane.b32.xlu0 %v11444_v58, %s8689_s24 }
 0xb0d   : > { %3753 = vrot.lane.b32.xlu1 %v11442_v57, %s8690_s25 }
 0xb0f   : > { %3755 = vrot.lane.b32.xlu0 %v11444_v58, %s8690_s25 }
 0xb11   : > { %3593 = vrot.lane.b32.xlu1 %v11464_v35, %s8686_s21 }
 0xb13   : > { %3595 = vrot.lane.b32.xlu0 %v11468_v24, %s8686_s21 }
 0xb15   : > { %3633 = vrot.lane.b32.xlu1 %v11464_v35, %s8687_s22 }
 0xb17   : > { %3635 = vrot.lane.b32.xlu0 %v11468_v24, %s8687_s22 }
 0xb19   : > { %3673 = vrot.lane.b32.xlu1 %v11464_v35, %s8688_s23 }
 0xb1b   : > { %3675 = vrot.lane.b32.xlu0 %v11468_v24, %s8688_s23 }
 0xb1d   : > { %3713 = vrot.lane.b32.xlu1 %v11464_v35, %s8689_s24 }
 0xb1f   : > { %3715 = vrot.lane.b32.xlu0 %v11468_v24, %s8689_s24 }
 0xb21   : > { %3589 = vrot.lane.b32.xlu1 %v11484_v19, %s8686_s21 }
 0xb23   : > { %3591 = vrot.lane.b32.xlu0 %v11488_v38, %s8686_s21 }
 0xb25   : > { %3629 = vrot.lane.b32.xlu1 %v11484_v19, %s8687_s22 }
 0xb27   : > { %3631 = vrot.lane.b32.xlu0 %v11488_v38, %s8687_s22 }
 0xb29   : > { %3669 = vrot.lane.b32.xlu1 %v11484_v19, %s8688_s23 }
 0xb2b   : > { %3671 = vrot.lane.b32.xlu0 %v11488_v38, %s8688_s23 }
 0xb2d   : > { %3709 = vrot.lane.b32.xlu1 %v11484_v19, %s8689_s24 }
 0xb2f   : > { %3711 = vrot.lane.b32.xlu0 %v11488_v38, %s8689_s24 }
 0xb31   : > { %3597 = vrot.lane.b32.xlu1 %v11504_v27, %s8686_s21 }
 0xb33   : > { %3599 = vrot.lane.b32.xlu0 %v11508_v44, %s8686_s21 }
 0xb35   : > { %3761 = vrot.lane.b32.xlu1 %v11464_v35, %s8690_s25 }
 0xb37   : > { %3763 = vrot.lane.b32.xlu0 %v11468_v24, %s8690_s25 }
 0xb39   : > { %3637 = vrot.lane.b32.xlu1 %v11504_v27, %s8687_s22 }
 0xb3b   : > { %3639 = vrot.lane.b32.xlu0 %v11508_v44, %s8687_s22 }
 0xb3d   : > { %3677 = vrot.lane.b32.xlu1 %v11504_v27, %s8688_s23 }
 0xb3f   : > { %3759 = vrot.lane.b32.xlu0 %v11488_v38, %s8690_s25 }
 0xb41   : > { %3717 = vrot.lane.b32.xlu1 %v11504_v27, %s8689_s24 }
 0xb43   : > { %3679 = vrot.lane.b32.xlu0 %v11508_v44, %s8688_s23 }
 0xb45   : > { %3757 = vrot.lane.b32.xlu1 %v11484_v19, %s8690_s25 }
 0xb47   : > { %3795 = vrot.lane.b32.xlu0 %v11444_v58, %s8691_s26 }
 0xb49   : > { %3765 = vrot.lane.b32.xlu1 %v11504_v27, %s8690_s25 }
 0xb4b   : > { %3719 = vrot.lane.b32.xlu0 %v11508_v44, %s8689_s24 }
 0xb4d   : > { %3793 = vrot.lane.b32.xlu1 %v11442_v57, %s8691_s26 }
 0xb4f   : > { %3803 = vrot.lane.b32.xlu0 %v11468_v24, %s8691_s26 }
 0xb51   : > { %3801 = vrot.lane.b32.xlu1 %v11464_v35, %s8691_s26 }
 0xb53   : > { %3799 = vrot.lane.b32.xlu0 %v11488_v38, %s8691_s26 }
 0xb55   : > { %3797 = vrot.lane.b32.xlu1 %v11484_v19, %s8691_s26 }
 0xb57   : > { %3835 = vrot.lane.b32.xlu0 %v11444_v58, %s8692_s27 }
 0xb59   : > { %3805 = vrot.lane.b32.xlu1 %v11504_v27, %s8691_s26 }
 0xb5b   : > { %3767 = vrot.lane.b32.xlu0 %v11508_v44, %s8690_s25 }
 0xb5d   : > { %3833 = vrot.lane.b32.xlu1 %v11442_v57, %s8692_s27 }
 0xb5f   : > { %3843 = vrot.lane.b32.xlu0 %v11468_v24, %s8692_s27 }
 0xb61   : > { %3841 = vrot.lane.b32.xlu1 %v11464_v35, %s8692_s27 }
 0xb63   : > { %3807 = vrot.lane.b32.xlu0 %v11508_v44, %s8691_s26 }
 0xb65   : > { %3837 = vrot.lane.b32.xlu1 %v11484_v19, %s8692_s27 }
 0xb67   : > { %3839 = vrot.lane.b32.xlu0 %v11488_v38, %s8692_s27 }
 0xb69   : > { %3845 = vrot.lane.b32.xlu1 %v11504_v27, %s8692_s27 }
 0xb6b   : > { %3847 = vrot.lane.b32.xlu0 %v11508_v44, %s8692_s27 }
 0xb6d   : > { %3873 = vrot.lane.b32.xlu1 %v11442_v57, %s8693_s28 }
 0xb6f   : > { %3875 = vrot.lane.b32.xlu0 %v11444_v58, %s8693_s28  ;;  %v3586_v21 = vpop.permute.xlu1 %3585 }
 0xb71   : > { %v3588_v50 = vpop.permute.xlu0 %3587  ;;  %3881 = vrot.lane.b32.xlu1 %v11464_v35, %s8693_s28 }
 0xb73   : > { %3883 = vrot.lane.b32.xlu0 %v11468_v24, %s8693_s28  ;;  %v11581_v28 = vpop.permute.xlu1 %3625 }
 0xb75   : > { %v3628_v31 = vpop.permute.xlu0 %3627  ;;  %3877 = vrot.lane.b32.xlu1 %v11484_v19, %s8693_s28 }
 0xb77   : > { %3879 = vrot.lane.b32.xlu0 %v11488_v38, %s8693_s28  ;;  %v11587_v63 = vpop.permute.xlu1 %3665 }
 0xb79   : > { %v11589_v54 = vpop.permute.xlu0 %3667  ;;  %3885 = vrot.lane.b32.xlu1 %v11504_v27, %s8693_s28 }
 0xb7b   : > { %3887 = vrot.lane.b32.xlu0 %v11508_v44, %s8693_s28  ;;  %v11598_v0 = vpop.permute.xlu1 %3705 }
 0xb7d   : > { %v11603_v51 = vpop.permute.xlu0 %3707  ;;  %3965 = vperm.xlu1 %8505, %v8128_v52  }
 0xb7f   : > { %3970 = vperm.xlu0 %8504, %v8129_v46   ;;  %v11608_v61 = vpop.permute.xlu1 %3753 }
 0xb81   : > { %v11613_v29 = vpop.permute.xlu0 %3755  ;;  %3975 = vperm.xlu1 %8505, %v8130_v3  }
 0xb83   : > { %3980 = vperm.xlu0 %8504, %v8131_v7   ;;  %v3594_v53 = vpop.permute.xlu1 %3593 }
 0xb84   : > { %v3601_v5 = vsel %vm306_vm2, %v3586_v21, %v3594_v53  ;;  %v3605_v45 = vsel %vm306_vm2, %v3594_v53, %v3586_v21 }
 0xb85   : > { %v3596_v10 = vpop.permute.xlu0 %3595  ;;  %v3609_v36 = vmul.f32 %v3605_v45, %v8902_v22  ;;  %v3610_v13 = vmul.f32 %v8896_v20, %v3601_v5 }
 0xb86   : > { %v3602_v18 = vsel %vm306_vm2, %v3588_v50, %v3596_v10  ;;  %v3606_v37 = vsel %vm306_vm2, %v3596_v10, %v3588_v50 }
 0xb87   : > { %v3611_v4 = vmul.f32 %v3606_v37, %v8902_v22  ;;  %v3612_v55 = vmul.f32 %v8896_v20, %v3602_v18  ;;  %v3634_v42 = vpop.permute.xlu1 %3633 }
 0xb89   : > { %v3617_v49 = vpack.c.bf16 %v3611_v4, %v3609_v36  ;;  %v3636_v8 = vpop.permute.xlu0 %3635  ;;  %v3618_v43 = vpack.c.bf16 %v3612_v55, %v3610_v13 }
 0xb8a   : > { %v3646_v45 = vsel %vm347_vm4, %v3636_v8, %v3628_v31 }
 0xb8b   : > { %4019 = vmatprep.subr.bf16.mxu0 %v3618_v43  ;;  %v3674_v15 = vpop.permute.xlu1 %3673  ;;  %v3642_v43 = vsel %vm347_vm4, %v3628_v31, %v3636_v8 }
 0xb8c   : > { %4020 = vmatpush1.bf16.msra.mxu0 %v3617_v49  ;;  %v3645_v49 = vsel %vm347_vm4, %v3634_v42, %v11581_v28 }
 0xb8d   : > { %v3676_v48 = vpop.permute.xlu0 %3675 }
 0xb8f   : > { %v11627_v41 = vpop.permute.xlu1 %3713 }
 0xb91   : > { %v11629_v62 = vpop.permute.xlu0 %3715 }
 0xb93   : > { %v3590_v32 = vpop.permute.xlu1 %3589 }
 0xb95   : > { %v3592_v60 = vpop.permute.xlu0 %3591 }
 0xb97   : > { %v3630_v40 = vpop.permute.xlu1 %3629 }
 0xb99   : > { %v3632_v25 = vpop.permute.xlu0 %3631 }
 0xb9b   : > { %v3670_v21 = vpop.permute.xlu1 %3669 }
 0xb9d   : > { %v11631_v50 = vpop.permute.xlu0 %3671 }
 0xb9f   : > { %v11633_v52 = vpop.permute.xlu1 %3709 }
 0xba1   : > { %v11635_v46 = vpop.permute.xlu0 %3711 }
 0xba3   : > { %v3598_v3 = vpop.permute.xlu1 %3597 }
 0xba4   : > { %v3603_v7 = vsel %vm306_vm2, %v3590_v32, %v3598_v3  ;;  %v3607_v53 = vsel %vm306_vm2, %v3598_v3, %v3590_v32  ;;  %v3651_v32 = vmul.f32 %v8889_v17, %v3646_v45  ;;  %v3681_v45 = vsel %vm388_vm7, %v11587_v63, %v3674_v15 }
 0xba5   : > { %v3600_v5 = vpop.permute.xlu0 %3599  ;;  %v3613_v37 = vmul.f32 %v3607_v53, %v8902_v22  ;;  %v3614_v36 = vmul.f32 %v8896_v20, %v3603_v7  ;;  %v3641_v7 = vsel %vm347_vm4, %v11581_v28, %v3634_v42  ;;  %v3686_v28 = vsel %vm388_vm7, %v3676_v48, %v11589_v54 }
 0xba6   : > { %v3604_v10 = vsel %vm306_vm2, %v3592_v60, %v3600_v5  ;;  %v3608_v18 = vsel %vm306_vm2, %v3600_v5, %v3592_v60  ;;  %v3649_v5 = vmul.f32 %v8889_v17, %v3645_v49 }
 0xba7   : > { %v3615_v13 = vmul.f32 %v3608_v18, %v8902_v22  ;;  %v3616_v4 = vmul.f32 %v8896_v20, %v3604_v10  ;;  %v11651_v55 = vpop.permute.xlu1 %3761  ;;  %v3658_v18 = vpack.c.bf16 %v3642_v43, %v3641_v7  ;;  %v3682_v22 = vsel %vm388_vm7, %v11589_v54, %v3676_v48 }
 0xba8   : > { %v3657_v8 = vpack.c.bf16 %v3651_v32, %v3649_v5  ;;  %v3685_v54 = vsel %vm388_vm7, %v3674_v15, %v11587_v63  ;;  %v3690_v48 = vmul.f32 %v8983_v34, %v3681_v45  ;;  %v3726_v45 = vsel %vm429_vm8, %v11629_v62, %v11603_v51 }
 0xba9   : > { %v3619_v60 = vpack.c.bf16 %v3615_v13, %v3613_v37  ;;  %v11659_v3 = vpop.permute.xlu0 %3763  ;;  %v3620_v53 = vpack.c.bf16 %v3616_v4, %v3614_v36  ;;  %v3692_v4 = vmul.f32 %v8983_v34, %v3682_v22  ;;  %v3689_v22 = vmul.f32 %v3685_v54, %v8979_v33 }
 0xbab   : > { %4021 = vmatprep.subr.bf16.mxu0 %v3620_v53  ;;  %v3638_v10 = vpop.permute.xlu1 %3637 }
 0xbac   : > { %v3647_v31 = vsel %vm347_vm4, %v3638_v10, %v3630_v40  ;;  %4022 = vmatpush1.bf16.msra.mxu0 %v3619_v60  ;;  %v3643_v42 = vsel %vm347_vm4, %v3630_v40, %v3638_v10  ;;  %v3691_v40 = vmul.f32 %v3686_v28, %v8979_v33  ;;  %v3698_v10 = vpack.c.bf16 %v3692_v4, %v3690_v48 }
 0xbad   : > { %v3640_v37 = vpop.permute.xlu0 %3639  ;;  %4023 = vmatprep.subr.bf16.mxu0 %v3658_v18  ;;  %v3653_v49 = vmul.f32 %v8889_v17, %v3647_v31  ;;  %v3721_v31 = vsel %vm429_vm8, %v11598_v0, %v11627_v41 }
 0xbae   : > { %v3644_v36 = vsel %vm347_vm4, %v3632_v25, %v3640_v37  ;;  %v3648_v13 = vsel %vm347_vm4, %v3640_v37, %v3632_v25  ;;  %v3722_v25 = vsel %vm429_vm8, %v11603_v51, %v11629_v62  ;;  %v3697_v18 = vpack.c.bf16 %v3691_v40, %v3689_v22 }
 0xbaf   : > { %v3655_v43 = vmul.f32 %v8889_v17, %v3648_v13  ;;  %v3678_v32 = vpop.permute.xlu1 %3677  ;;  %v3660_v60 = vpack.c.bf16 %v3644_v36, %v3643_v42  ;;  %v3732_v37 = vmul.f32 %v8896_v20, %v3722_v25  ;;  %v3725_v51 = vsel %vm429_vm8, %v11627_v41, %v11598_v0 }
 0xbb0   : > { %4024 = vmatpush1.bf16.msra.mxu0 %v3657_v8  ;;  %v3683_v63 = vsel %vm388_vm7, %v3670_v21, %v3678_v32  ;;  %v3687_v15 = vsel %vm388_vm7, %v3678_v32, %v3670_v21  ;;  %v3730_v62 = vmul.f32 %v8896_v20, %v3721_v31  ;;  %v3729_v40 = vmul.f32 %v8886_v16, %v3725_v51 }
 0xbb1   : > { %v3659_v53 = vpack.c.bf16 %v3655_v43, %v3653_v49  ;;  %v11690_v7 = vpop.permute.xlu0 %3759  ;;  %4025 = vmatprep.subr.bf16.mxu0 %v3660_v60  ;;  %v3693_v42 = vmul.f32 %v3687_v15, %v8979_v33  ;;  %v3694_v36 = vmul.f32 %v8983_v34, %v3683_v63  ;;  %v3731_v60 = vmul.f32 %v8886_v16, %v3726_v45 }
 0xbb2   : > { %v3738_v48 = vpack.c.bf16 %v3732_v37, %v3730_v62  ;;  %v3769_v51 = vsel %vm478_vm9, %v11608_v61, %v11651_v55 }
 0xbb3   : > { %v3718_v5 = vpop.permute.xlu1 %3717  ;;  %v3737_v22 = vpack.c.bf16 %v3731_v60, %v3729_v40 }
 0xbb4   : > { %4026 = vmatpush1.bf16.msra.mxu0 %v3659_v53  ;;  %v3723_v53 = vsel %vm429_vm8, %v11633_v52, %v3718_v5  ;;  %v3727_v0 = vsel %vm429_vm8, %v3718_v5, %v11633_v52 }
 0xbb5   : > { %v3680_v8 = vpop.permute.xlu0 %3679  ;;  %4027 = vmatprep.subr.bf16.mxu0 %v3698_v10  ;;  %v3733_v63 = vmul.f32 %v8886_v16, %v3727_v0  ;;  %v3734_v15 = vmul.f32 %v8896_v20, %v3723_v53 }
 0xbb6   : > { %v3684_v21 = vsel %vm388_vm7, %v11631_v50, %v3680_v8  ;;  %v3688_v28 = vsel %vm388_vm7, %v3680_v8, %v11631_v50 }
 0xbb7   : > { %v3695_v13 = vmul.f32 %v3688_v28, %v8979_v33  ;;  %v3696_v4 = vmul.f32 %v8983_v34, %v3684_v21  ;;  %v3758_v49 = vpop.permute.xlu1 %3757  ;;  %v3746_v21 = vpack.c.bf16 %v11468_v24, %v11464_v35  ;;  %v3745_v35 = vpack.c.bf16 %v11444_v58, %v11442_v57 }
 0xbb8   : > { %4028 = vmatpush1.bf16.msra.mxu0 %v3697_v18  ;;  %v3747_v58 = vpack.c.bf16 %v11488_v38, %v11484_v19 }
 0xbb9   : > { %v3699_v43 = vpack.c.bf16 %v3695_v13, %v3693_v42  ;;  %v11725_v32 = vpop.permute.xlu0 %3795  ;;  %v3700_v50 = vpack.c.bf16 %v3696_v4, %v3694_v36  ;;  %v3773_v42 = vsel %vm478_vm9, %v11651_v55, %v11608_v61  ;;  %v3770_v36 = vsel %vm478_vm9, %v11613_v29, %v11659_v3 }
 0xbba   : > { %v3748_v4 = vpack.c.bf16 %v11508_v44, %v11504_v27  ;;  %v3778_v62 = vmul.f32 %v8983_v34, %v3773_v42  ;;  %v3777_v27 = vmul.f32 %v8973_v11, %v3769_v51 }
 0xbbb   : > { %4029 = vmatprep.subr.bf16.mxu0 %v3700_v50  ;;  %v3766_v54 = vpop.permute.xlu1 %3765 }
 0xbbc   : > { %4030 = vmatpush1.bf16.msra.mxu0 %v3699_v43  ;;  %v3779_v43 = vmul.f32 %v8973_v11, %v3770_v36  ;;  %v3771_v57 = vsel %vm478_vm9, %v3758_v49, %v3766_v54  ;;  %v3775_v61 = vsel %vm478_vm9, %v3766_v54, %v3758_v49 }
 0xbbd   : > { %v3720_v41 = vpop.permute.xlu0 %3719  ;;  %4031 = vmatprep.subr.bf16.mxu0 %v3738_v48  ;;  %v3781_v60 = vmul.f32 %v8973_v11, %v3771_v57  ;;  %v3782_v40 = vmul.f32 %v8983_v34, %v3775_v61 }
 0xbbe   : > { %v3724_v25 = vsel %vm429_vm8, %v11635_v46, %v3720_v41  ;;  %v3728_v10 = vsel %vm429_vm8, %v3720_v41, %v11635_v46  ;;  %v3774_v46 = vsel %vm478_vm9, %v11659_v3, %v11613_v29  ;;  %v3785_v50 = vpack.c.bf16 %v3779_v43, %v3777_v27 }
 0xbbf   : > { %v3735_v18 = vmul.f32 %v8886_v16, %v3728_v10  ;;  %v3736_v52 = vmul.f32 %v8896_v20, %v3724_v25  ;;  %v3794_v5 = vpop.permute.xlu1 %3793  ;;  %v3780_v24 = vmul.f32 %v8983_v34, %v3774_v46 }
 0xbc0   : > { %4032 = vmatpush1.bf16.msra.mxu0 %v3737_v22 }
 0xbc1   : > { %v3739_v31 = vpack.c.bf16 %v3735_v18, %v3733_v63  ;;  %v3804_v8 = vpop.permute.xlu0 %3803  ;;  %v3740_v45 = vpack.c.bf16 %v3736_v52, %v3734_v15  ;;  %v3786_v3 = vpack.c.bf16 %v3780_v24, %v3778_v62 }
 0xbc2   : > { %v3814_v19 = vsel %vm519_vm11, %v3804_v8, %v11725_v32  ;;  %v3810_v25 = vsel %vm519_vm11, %v11725_v32, %v3804_v8 }
 0xbc3   : > { %4033 = vmatprep.subr.bf16.mxu0 %v3740_v45  ;;  %v3802_v37 = vpop.permute.xlu1 %3801  ;;  %v3820_v10 = vmul.f32 %v3814_v19, %v9073_v23  ;;  %v3819_v52 = vmul.f32 %v8886_v16, %v3810_v25 }
 0xbc4   : > { %4034 = vmatpush1.bf16.msra.mxu0 %v3739_v31  ;;  %v3813_v55 = vsel %vm519_vm11, %v3802_v37, %v3794_v5  ;;  %v3809_v38 = vsel %vm519_vm11, %v3794_v5, %v3802_v37 }
 0xbc5   : > { %v3800_v28 = vpop.permute.xlu0 %3799  ;;  %4035 = vmatprep.subr.bf16.mxu0 %v3746_v21  ;;  %v3818_v53 = vmul.f32 %v3813_v55, %v9073_v23  ;;  %v3817_v63 = vmul.f32 %v8886_v16, %v3809_v38 }
 0xbc7   : > { %v3798_v13 = vpop.permute.xlu1 %3797  ;;  %v3826_v45 = vpack.c.bf16 %v3820_v10, %v3818_v53  ;;  %v3825_v8 = vpack.c.bf16 %v3819_v52, %v3817_v63  ;;  %v8557_v63 = vld [vmem:[%s14801_s1 + $0x13c] ss:$12 sps:$4 sm:$0xff]  }
 0xbc8   : > { %4036 = vmatpush1.bf16.msra.mxu0 %v3745_v35 }
 0xbc9   : > { %v3836_v29 = vpop.permute.xlu0 %3835  ;;  %4037 = vmatprep.subr.bf16.mxu0 %v3748_v4 }
 0xbcb   : > { %v3806_v44 = vpop.permute.xlu1 %3805 }
 0xbcc   : > { %4038 = vmatpush1.bf16.msra.mxu0 %v3747_v58  ;;  %v3811_v5 = vsel %vm519_vm11, %v3798_v13, %v3806_v44  ;;  %v3815_v37 = vsel %vm519_vm11, %v3806_v44, %v3798_v13 }
 0xbcd   : > { %v3768_v48 = vpop.permute.xlu0 %3767  ;;  %4039 = vmatprep.subr.bf16.mxu0 %v3786_v3  ;;  %v3821_v46 = vmul.f32 %v8886_v16, %v3811_v5  ;;  %v3822_v24 = vmul.f32 %v3815_v37, %v9073_v23 }
 0xbce   : > { %v3772_v49 = vsel %vm478_vm9, %v11690_v7, %v3768_v48  ;;  %v3776_v54 = vsel %vm478_vm9, %v3768_v48, %v11690_v7 }
 0xbcf   : > { %v3783_v0 = vmul.f32 %v8973_v11, %v3772_v49  ;;  %v3784_v41 = vmul.f32 %v8983_v34, %v3776_v54  ;;  %v3834_v22 = vpop.permute.xlu1 %3833 }
 0xbd0   : > { %4040 = vmatpush1.bf16.msra.mxu0 %v3785_v50 }
 0xbd1   : > { %v3787_v15 = vpack.c.bf16 %v3783_v0, %v3781_v60  ;;  %v3844_v7 = vpop.permute.xlu0 %3843  ;;  %v3788_v18 = vpack.c.bf16 %v3784_v41, %v3782_v40 }
 0xbd2   : > { %v3854_v42 = vsel %vm560_vm12, %v3844_v7, %v3836_v29  ;;  %v3850_v55 = vsel %vm560_vm12, %v3836_v29, %v3844_v7 }
 0xbd3   : > { %v3842_v31 = vpop.permute.xlu1 %3841  ;;  %4041 = vmatprep.subr.bf16.mxu0 %v3788_v18  ;;  %v3860_v43 = vmul.f32 %v9069_v12, %v3854_v42  ;;  %v8559_v42 = vld [vmem:[%s14801_s1 + $0x138] ss:$12 sps:$4 sm:$0xff]  }
 0xbd4   : > { %v3853_v32 = vsel %vm560_vm12, %v3842_v31, %v3834_v22  ;;  %4042 = vmatpush1.bf16.msra.mxu0 %v3787_v15  ;;  %v3849_v44 = vsel %vm560_vm12, %v3834_v22, %v3842_v31  ;;  %v8554_v22 = vld [vmem:[%s14801_s1 + $0x120] ss:$12 sps:$4 sm:$0xff]  }
 0xbd5   : > { %v3808_v21 = vpop.permute.xlu0 %3807  ;;  %4043 = vmatprep.subr.bf16.mxu0 %v3826_v45  ;;  %v3858_v13 = vmul.f32 %v9069_v12, %v3853_v32  ;;  %v3865_v60 = vpack.c.bf16 %v3850_v55, %v3849_v44  ;;  %v8560_v44 = vld [vmem:[%s14801_s1 + $0x128] ss:$12 sps:$4 sm:$0xff]  }
 0xbd6   : > { %v3812_v36 = vsel %vm519_vm11, %v3800_v28, %v3808_v21  ;;  %v3816_v35 = vsel %vm519_vm11, %v3808_v21, %v3800_v28 }
 0xbd7   : > { %v3823_v4 = vmul.f32 %v8886_v16, %v3812_v36  ;;  %v3824_v51 = vmul.f32 %v3816_v35, %v9073_v23  ;;  %v3838_v62 = vpop.permute.xlu1 %3837  ;;  %v3866_v28 = vpack.c.bf16 %v3860_v43, %v3858_v13 }
 0xbd8   : > { %4044 = vmatpush1.bf16.msra.mxu0 %v3825_v8 }
 0xbd9   : > { %v3827_v57 = vpack.c.bf16 %v3823_v4, %v3821_v46  ;;  %v3840_v58 = vpop.permute.xlu0 %3839  ;;  %v3828_v27 = vpack.c.bf16 %v3824_v51, %v3822_v24 }
 0xbdb   : > { %v3846_v3 = vpop.permute.xlu1 %3845  ;;  %4045 = vmatprep.subr.bf16.mxu0 %v3828_v27 }
 0xbdc   : > { %v3855_v61 = vsel %vm560_vm12, %v3846_v3, %v3838_v62  ;;  %4046 = vmatpush1.bf16.msra.mxu0 %v3827_v57  ;;  %v3851_v40 = vsel %vm560_vm12, %v3838_v62, %v3846_v3  ;;  %v8561_v3 = vld [vmem:[%s14801_s1 + $0x140] ss:$12 sps:$4 sm:$0xff]  }
 0xbdd   : > { %v3848_v50 = vpop.permute.xlu0 %3847  ;;  %4047 = vmatprep.subr.bf16.mxu0 %v3866_v28  ;;  %v3862_v19 = vmul.f32 %v9069_v12, %v3855_v61 }
 0xbde   : > { %v3856_v48 = vsel %vm560_vm12, %v3848_v50, %v3840_v58  ;;  %v3852_v38 = vsel %vm560_vm12, %v3840_v58, %v3848_v50 }
 0xbdf   : > { %v3864_v49 = vmul.f32 %v9069_v12, %v3856_v48  ;;  %v3874_v54 = vpop.permute.xlu1 %3873  ;;  %v3867_v0 = vpack.c.bf16 %v3852_v38, %v3851_v40 }
 0xbe0   : > { %4048 = vmatpush1.bf16.msra.mxu0 %v3865_v60 }
 0xbe1   : > { %v3876_v53 = vpop.permute.xlu0 %3875  ;;  %v3868_v29 = vpack.c.bf16 %v3864_v49, %v3862_v19 }
 0xbe3   : > { %v3882_v41 = vpop.permute.xlu1 %3881  ;;  %4049 = vmatprep.subr.bf16.mxu0 %v3868_v29 }
 0xbe4   : > { %v3889_v25 = vsel %vm601_vm13, %v3874_v54, %v3882_v41  ;;  %v3893_v10 = vsel %vm601_vm13, %v3882_v41, %v3874_v54  ;;  %4050 = vmatpush1.bf16.msra.mxu0 %v3867_v0 }
 0xbe5   : > { %v3884_v15 = vpop.permute.xlu0 %3883  ;;  %v3897_v52 = vmul.f32 %v8973_v11, %v3889_v25  ;;  %v3898_v5 = vmul.f32 %v3893_v10, %v9114_v59 }
 0xbe6   : > { %v3890_v7 = vsel %vm601_vm13, %v3876_v53, %v3884_v15  ;;  %v3894_v18 = vsel %vm601_vm13, %v3884_v15, %v3876_v53 }
 0xbe7   : > { %v3899_v31 = vmul.f32 %v8973_v11, %v3890_v7  ;;  %v3900_v45 = vmul.f32 %v3894_v18, %v9114_v59  ;;  %v3878_v37 = vpop.permute.xlu1 %3877  ;;  %4052 = vmatmul.mubr.bf16.vlgmr.msra.gmra.mrb[40].mxu0 %v8554_v22 }
 0xbe8   : > { %4061 = vmatprep.mubr.bf16.mxu0 %v8557_v63 }
 0xbe9   : > { %v3905_v32 = vpack.c.bf16 %v3899_v31, %v3897_v52  ;;  %v3880_v8 = vpop.permute.xlu0 %3879  ;;  %v3906_v21 = vpack.c.bf16 %v3900_v45, %v3898_v5 }
 0xbeb   : > { %v3886_v46 = vpop.permute.xlu1 %3885  ;;  %4072 = vmatprep.subr.bf16.mxu0 %v3906_v21  ;;  %v8149_v21 = vld [vmem:[%s14802_s2 + $0xe8] sm:$0xff] }
 0xbec   : > { %v3891_v36 = vsel %vm601_vm13, %v3878_v37, %v3886_v46  ;;  %v3895_v35 = vsel %vm601_vm13, %v3886_v46, %v3878_v37  ;;  %4073 = vmatpush1.bf16.msra.mxu0 %v3905_v32  ;;  %v8148_v32 = vld [vmem:[%s14802_s2 + $0xe0] sm:$0xff] }
 0xbed   : > { %v3888_v24 = vpop.permute.xlu0 %3887  ;;  %v3901_v51 = vmul.f32 %v8973_v11, %v3891_v36  ;;  %v3902_v62 = vmul.f32 %v3895_v35, %v9114_v59  ;;  %v8151_v35 = vld [vmem:[%s14802_s2 + $0xf8] sm:$0xff] }
 0xbee   : > { %v3892_v13 = vsel %vm601_vm13, %v3880_v8, %v3888_v24  ;;  %v3896_v4 = vsel %vm601_vm13, %v3888_v24, %v3880_v8 }
 0xbef   : > { %v3903_v43 = vmul.f32 %v8973_v11, %v3892_v13  ;;  %v3904_v57 = vmul.f32 %v3896_v4, %v9114_v59  ;;  %4062 = vmatmul.mubr.bf16.gmra.mrb[44].mxu0 %v8559_v42  ;;  %v8150_v42 = vld [vmem:[%s14802_s2 + $0xf0] sm:$0xff] }
 0xbf0   : > { %4104 = vmatprep.mubr.bf16.mxu0 %v14812_v2 }
 0xbf1   : > { %v3907_v58 = vpack.c.bf16 %v3903_v43, %v3901_v51  ;;  %v3908_v27 = vpack.c.bf16 %v3904_v57, %v3902_v62 }
 0xbf3   : > { %4074 = vmatprep.subr.bf16.mxu0 %v3908_v27 }
 0xbf4   : > { %4075 = vmatpush1.bf16.msra.mxu0 %v3907_v58  ;;  %v14813_v58 = vld [vmem:[#allocation3_spill] sm:$0xff] }
 0xbf7   : > { %8138 = vmatmul.mubr.msk.bf16.vlgmr.msra.gmra.mrb[40].mxu0 %vm724_vm14, %v8560_v44 }
 0xbf8   : > { %4114 = vmatprep.mubr.bf16.mxu0 %v14812_v2 }
 0xbfc   : > { %v3966_v28 = vpop.permute.xlu1 %3965 }
 0xbfe   : > { %v3971_v60 = vpop.permute.xlu0 %3970 }
 0xbff   : > { %8139 = vmatmul.mubr.msk.bf16.gmra.mrb[44].mxu0 %vm724_vm14, %v8561_v3 }
 0xcca   : > { %v4106_v61 = vpop.f32.mrb[40].mxu0 }
 0xccb   : > { %v8350_v55 = vadd.f32 %v4106_v61, %v3966_v28  ;;  %v4108_v50 = vpop.f32.mrb[41].mxu0 }
 0xccc   : > { %v4110_v48 = vpop.f32.mrb[42].mxu0 }
 0xccd   : > { %v11877_v19 = vadd.f32 %v8350_v55, %v11001_v6  ;;  %v8352_v38 = vadd.f32 %v4110_v48, %v3971_v60  ;;  %v4112_v49 = vpop.f32.mrb[43].mxu0  ;;  %v8351_v6 = vadd.f32 %v4108_v50, %v3966_v28 }
 0xccf   : > { %v11880_v54 = vadd.f32 %v8352_v38, %v11004_v14  ;;  %4133 = vrot.lane.b32.xlu1 %v11877_v19, %s8686_s21  ;;  %v8353_v14 = vadd.f32 %v4112_v49, %v3971_v60  ;;  %v11901_v41 = vadd.f32 %v8351_v6, %v11025_v26  ;;  %v3976_v26 = vpop.permute.xlu1 %3975 }
 0xcd1   : > { %4135 = vrot.lane.b32.xlu0 %v11880_v54, %s8686_s21  ;;  %v11906_v22 = vadd.f32 %v8353_v14, %v11030_v56  ;;  %v3981_v56 = vpop.permute.xlu0 %3980 }
 0xcd2   : > { %v4116_v40 = vpop.f32.mrb[44].mxu0 }
 0xcd3   : > { %v4118_v53 = vpop.f32.mrb[45].mxu0  ;;  %4173 = vrot.lane.b32.xlu1 %v11877_v19, %s8687_s22  ;;  %v8354_v25 = vadd.f32 %v4116_v40, %v3976_v26 }
 0xcd4   : > { %v4120_v29 = vpop.f32.mrb[46].mxu0 }
 0xcd5   : > { %v4122_v0 = vpop.f32.mrb[47].mxu0  ;;  %4175 = vrot.lane.b32.xlu0 %v11880_v54, %s8687_s22  ;;  %v8356_v10 = vadd.f32 %v4120_v29, %v3981_v56  ;;  %v11923_v63 = vadd.f32 %v8354_v25, %v11047_v30  ;;  %v8355_v30 = vadd.f32 %v4118_v53, %v3976_v26 }
 0xcd7   : > { %4213 = vrot.lane.b32.xlu1 %v11877_v19, %s8688_s23  ;;  %v11928_v15 = vadd.f32 %v8356_v10, %v11052_v1  ;;  %v8357_v1 = vadd.f32 %v4122_v0, %v3981_v56  ;;  %v11945_v7 = vadd.f32 %v8355_v30, %v11069_v47  ;;  %v8564_v47 = vld [vmem:[%s14801_s1 + $0x154] ss:$12 sps:$4 sm:$0xff]  }
 0xcd8   : > { %4599 = vmatprep.mubr.bf16.mxu1 %v8564_v47 }
 0xcd9   : > { %4215 = vrot.lane.b32.xlu0 %v11880_v54, %s8688_s23  ;;  %v11950_v18 = vadd.f32 %v8357_v1, %v11074_v39 }
 0xcdb   : > { %4253 = vrot.lane.b32.xlu1 %v11877_v19, %s8689_s24 }
 0xcdd   : > { %4255 = vrot.lane.b32.xlu0 %v11880_v54, %s8689_s24 }
 0xcdf   : > { %4301 = vrot.lane.b32.xlu1 %v11877_v19, %s8690_s25 }
 0xce1   : > { %4303 = vrot.lane.b32.xlu0 %v11880_v54, %s8690_s25 }
 0xce3   : > { %4141 = vrot.lane.b32.xlu1 %v11901_v41, %s8686_s21 }
 0xce5   : > { %4143 = vrot.lane.b32.xlu0 %v11906_v22, %s8686_s21 }
 0xce7   : > { %4181 = vrot.lane.b32.xlu1 %v11901_v41, %s8687_s22 }
 0xce9   : > { %4183 = vrot.lane.b32.xlu0 %v11906_v22, %s8687_s22 }
 0xceb   : > { %4221 = vrot.lane.b32.xlu1 %v11901_v41, %s8688_s23 }
 0xced   : > { %4223 = vrot.lane.b32.xlu0 %v11906_v22, %s8688_s23 }
 0xcef   : > { %4261 = vrot.lane.b32.xlu1 %v11901_v41, %s8689_s24 }
 0xcf1   : > { %4263 = vrot.lane.b32.xlu0 %v11906_v22, %s8689_s24 }
 0xcf3   : > { %4137 = vrot.lane.b32.xlu1 %v11923_v63, %s8686_s21 }
 0xcf5   : > { %4139 = vrot.lane.b32.xlu0 %v11928_v15, %s8686_s21 }
 0xcf7   : > { %4177 = vrot.lane.b32.xlu1 %v11923_v63, %s8687_s22 }
 0xcf9   : > { %4179 = vrot.lane.b32.xlu0 %v11928_v15, %s8687_s22 }
 0xcfb   : > { %4217 = vrot.lane.b32.xlu1 %v11923_v63, %s8688_s23 }
 0xcfd   : > { %4219 = vrot.lane.b32.xlu0 %v11928_v15, %s8688_s23 }
 0xcff   : > { %4257 = vrot.lane.b32.xlu1 %v11923_v63, %s8689_s24 }
 0xd01   : > { %4259 = vrot.lane.b32.xlu0 %v11928_v15, %s8689_s24 }
 0xd03   : > { %4145 = vrot.lane.b32.xlu1 %v11945_v7, %s8686_s21 }
 0xd05   : > { %4147 = vrot.lane.b32.xlu0 %v11950_v18, %s8686_s21 }
 0xd07   : > { %4309 = vrot.lane.b32.xlu1 %v11901_v41, %s8690_s25 }
 0xd09   : > { %4311 = vrot.lane.b32.xlu0 %v11906_v22, %s8690_s25 }
 0xd0b   : > { %4185 = vrot.lane.b32.xlu1 %v11945_v7, %s8687_s22 }
 0xd0d   : > { %4187 = vrot.lane.b32.xlu0 %v11950_v18, %s8687_s22 }
 0xd0f   : > { %4225 = vrot.lane.b32.xlu1 %v11945_v7, %s8688_s23 }
 0xd11   : > { %4307 = vrot.lane.b32.xlu0 %v11928_v15, %s8690_s25 }
 0xd13   : > { %4265 = vrot.lane.b32.xlu1 %v11945_v7, %s8689_s24 }
 0xd15   : > { %4227 = vrot.lane.b32.xlu0 %v11950_v18, %s8688_s23 }
 0xd17   : > { %4305 = vrot.lane.b32.xlu1 %v11923_v63, %s8690_s25 }
 0xd19   : > { %4343 = vrot.lane.b32.xlu0 %v11880_v54, %s8691_s26 }
 0xd1b   : > { %4313 = vrot.lane.b32.xlu1 %v11945_v7, %s8690_s25 }
 0xd1d   : > { %4267 = vrot.lane.b32.xlu0 %v11950_v18, %s8689_s24 }
 0xd1f   : > { %4341 = vrot.lane.b32.xlu1 %v11877_v19, %s8691_s26 }
 0xd21   : > { %4351 = vrot.lane.b32.xlu0 %v11906_v22, %s8691_s26 }
 0xd23   : > { %4349 = vrot.lane.b32.xlu1 %v11901_v41, %s8691_s26 }
 0xd25   : > { %4347 = vrot.lane.b32.xlu0 %v11928_v15, %s8691_s26 }
 0xd27   : > { %4345 = vrot.lane.b32.xlu1 %v11923_v63, %s8691_s26 }
 0xd29   : > { %4383 = vrot.lane.b32.xlu0 %v11880_v54, %s8692_s27 }
 0xd2b   : > { %4353 = vrot.lane.b32.xlu1 %v11945_v7, %s8691_s26 }
 0xd2d   : > { %4315 = vrot.lane.b32.xlu0 %v11950_v18, %s8690_s25 }
 0xd2f   : > { %4381 = vrot.lane.b32.xlu1 %v11877_v19, %s8692_s27 }
 0xd31   : > { %4391 = vrot.lane.b32.xlu0 %v11906_v22, %s8692_s27 }
 0xd33   : > { %4389 = vrot.lane.b32.xlu1 %v11901_v41, %s8692_s27 }
 0xd35   : > { %4355 = vrot.lane.b32.xlu0 %v11950_v18, %s8691_s26 }
 0xd37   : > { %4385 = vrot.lane.b32.xlu1 %v11923_v63, %s8692_s27 }
 0xd39   : > { %4387 = vrot.lane.b32.xlu0 %v11928_v15, %s8692_s27 }
 0xd3b   : > { %4393 = vrot.lane.b32.xlu1 %v11945_v7, %s8692_s27 }
 0xd3d   : > { %4395 = vrot.lane.b32.xlu0 %v11950_v18, %s8692_s27 }
 0xd3f   : > { %4421 = vrot.lane.b32.xlu1 %v11877_v19, %s8693_s28 }
 0xd41   : > { %4423 = vrot.lane.b32.xlu0 %v11880_v54, %s8693_s28  ;;  %v4134_v39 = vpop.permute.xlu1 %4133 }
 0xd43   : > { %v4136_v52 = vpop.permute.xlu0 %4135  ;;  %4429 = vrot.lane.b32.xlu1 %v11901_v41, %s8693_s28 }
 0xd45   : > { %4431 = vrot.lane.b32.xlu0 %v11906_v22, %s8693_s28  ;;  %v12023_v5 = vpop.permute.xlu1 %4173 }
 0xd47   : > { %v4176_v31 = vpop.permute.xlu0 %4175  ;;  %4425 = vrot.lane.b32.xlu1 %v11923_v63, %s8693_s28 }
 0xd49   : > { %4427 = vrot.lane.b32.xlu0 %v11928_v15, %s8693_s28  ;;  %v12029_v45 = vpop.permute.xlu1 %4213 }
 0xd4b   : > { %v12031_v37 = vpop.permute.xlu0 %4215  ;;  %4433 = vrot.lane.b32.xlu1 %v11945_v7, %s8693_s28 }
 0xd4d   : > { %4435 = vrot.lane.b32.xlu0 %v11950_v18, %s8693_s28  ;;  %v12040_v8 = vpop.permute.xlu1 %4253 }
 0xd4f   : > { %v12045_v46 = vpop.permute.xlu0 %4255  ;;  %4513 = vperm.xlu1 %8505, %v8148_v32  }
 0xd51   : > { %4518 = vperm.xlu0 %8504, %v8149_v21   ;;  %v12050_v36 = vpop.permute.xlu1 %4301 }
 0xd53   : > { %v12055_v24 = vpop.permute.xlu0 %4303  ;;  %4523 = vperm.xlu1 %8505, %v8150_v42  }
 0xd55   : > { %4528 = vperm.xlu0 %8504, %v8151_v35   ;;  %v4142_v13 = vpop.permute.xlu1 %4141 }
 0xd56   : > { %v4149_v4 = vsel %vm306_vm2, %v4134_v39, %v4142_v13  ;;  %v4153_v51 = vsel %vm306_vm2, %v4142_v13, %v4134_v39 }
 0xd57   : > { %v4144_v62 = vpop.permute.xlu0 %4143  ;;  %v4157_v27 = vmul.f32 %v4153_v51, %v14813_v58  ;;  %v4158_v44 = vmul.f32 %v8896_v20, %v4149_v4 }
 0xd58   : > { %v4150_v43 = vsel %vm306_vm2, %v4136_v52, %v4144_v62  ;;  %v4154_v57 = vsel %vm306_vm2, %v4144_v62, %v4136_v52 }
 0xd59   : > { %v4159_v3 = vmul.f32 %v4154_v57, %v14813_v58  ;;  %v4160_v28 = vmul.f32 %v8896_v20, %v4150_v43  ;;  %v4182_v61 = vpop.permute.xlu1 %4181 }
 0xd5a   : > { %v4193_v51 = vsel %vm347_vm4, %v4182_v61, %v12023_v5 }
 0xd5b   : > { %v4165_v55 = vpack.c.bf16 %v4159_v3, %v4157_v27  ;;  %v4184_v50 = vpop.permute.xlu0 %4183  ;;  %v4166_v60 = vpack.c.bf16 %v4160_v28, %v4158_v44  ;;  %v4189_v3 = vsel %vm347_vm4, %v12023_v5, %v4182_v61  ;;  %v4197_v28 = vmul.f32 %v8889_v17, %v4193_v51 }
 0xd5c   : > { %v4194_v39 = vsel %vm347_vm4, %v4184_v50, %v4176_v31  ;;  %v4190_v62 = vsel %vm347_vm4, %v4176_v31, %v4184_v50 }
 0xd5d   : > { %4567 = vmatprep.subr.bf16.mxu1 %v4166_v60  ;;  %v4222_v48 = vpop.permute.xlu1 %4221  ;;  %v4199_v43 = vmul.f32 %v8889_v17, %v4194_v39  ;;  %v4206_v60 = vpack.c.bf16 %v4190_v62, %v4189_v3 }
 0xd5e   : > { %4568 = vmatpush1.bf16.msra.mxu1 %v4165_v55 }
 0xd5f   : > { %v4224_v38 = vpop.permute.xlu0 %4223  ;;  %v4205_v50 = vpack.c.bf16 %v4199_v43, %v4197_v28 }
 0xd60   : > { %v4234_v5 = vsel %vm388_vm7, %v4224_v38, %v12031_v37 }
 0xd61   : > { %v12069_v49 = vpop.permute.xlu1 %4261 }
 0xd63   : > { %v12071_v40 = vpop.permute.xlu0 %4263 }
 0xd64   : > { %v4274_v3 = vsel %vm429_vm8, %v12071_v40, %v12045_v46 }
 0xd65   : > { %v4138_v53 = vpop.permute.xlu1 %4137 }
 0xd67   : > { %v4140_v29 = vpop.permute.xlu0 %4139 }
 0xd69   : > { %v4178_v0 = vpop.permute.xlu1 %4177 }
 0xd6b   : > { %v4180_v6 = vpop.permute.xlu0 %4179 }
 0xd6d   : > { %v4218_v14 = vpop.permute.xlu1 %4217 }
 0xd6f   : > { %v12073_v26 = vpop.permute.xlu0 %4219 }
 0xd71   : > { %v12075_v25 = vpop.permute.xlu1 %4257 }
 0xd73   : > { %v12077_v56 = vpop.permute.xlu0 %4259 }
 0xd75   : > { %v4146_v10 = vpop.permute.xlu1 %4145 }
 0xd76   : > { %v4151_v30 = vsel %vm306_vm2, %v4138_v53, %v4146_v10  ;;  %v4155_v1 = vsel %vm306_vm2, %v4146_v10, %v4138_v53  ;;  %v4230_v53 = vsel %vm388_vm7, %v12031_v37, %v4224_v38  ;;  %v4233_v37 = vsel %vm388_vm7, %v4222_v48, %v12029_v45 }
 0xd77   : > { %v4148_v47 = vpop.permute.xlu0 %4147  ;;  %v4161_v21 = vmul.f32 %v4155_v1, %v14813_v58  ;;  %v4162_v42 = vmul.f32 %v8896_v20, %v4151_v30 }
 0xd78   : > { %v4152_v52 = vsel %vm306_vm2, %v4140_v29, %v4148_v47  ;;  %v4156_v32 = vsel %vm306_vm2, %v4148_v47, %v4140_v29  ;;  %v4229_v29 = vsel %vm388_vm7, %v12029_v45, %v4222_v48  ;;  %v4240_v47 = vmul.f32 %v8983_v34, %v4230_v53 }
 0xd79   : > { %v4163_v35 = vmul.f32 %v4156_v32, %v14813_v58  ;;  %v4164_v13 = vmul.f32 %v8896_v20, %v4152_v52  ;;  %v12093_v4 = vpop.permute.xlu1 %4309  ;;  %v4238_v38 = vmul.f32 %v8983_v34, %v4229_v29 }
 0xd7b   : > { %v4167_v57 = vpack.c.bf16 %v4163_v35, %v4161_v21  ;;  %v12101_v27 = vpop.permute.xlu0 %4311  ;;  %v4168_v44 = vpack.c.bf16 %v4164_v13, %v4162_v42  ;;  %v4270_v13 = vsel %vm429_vm8, %v12045_v46, %v12071_v40  ;;  %v4246_v62 = vpack.c.bf16 %v4240_v47, %v4238_v38 }
 0xd7c   : > { %v4280_v28 = vmul.f32 %v8896_v20, %v4270_v13  ;;  %v4273_v46 = vsel %vm429_vm8, %v12069_v49, %v12040_v8 }
 0xd7d   : > { %4569 = vmatprep.subr.bf16.mxu1 %v4168_v44  ;;  %v4186_v55 = vpop.permute.xlu1 %4185  ;;  %v4277_v47 = vmul.f32 %v8886_v16, %v4273_v46 }
 0xd7e   : > { %v4195_v31 = vsel %vm347_vm4, %v4186_v55, %v4178_v0  ;;  %4570 = vmatpush1.bf16.msra.mxu1 %v4167_v57  ;;  %v4191_v61 = vsel %vm347_vm4, %v4178_v0, %v4186_v55  ;;  %v4239_v0 = vmul.f32 %v4234_v5, %v8979_v33  ;;  %v4269_v57 = vsel %vm429_vm8, %v12040_v8, %v12069_v49 }
 0xd7f   : > { %v4188_v10 = vpop.permute.xlu0 %4187  ;;  %4571 = vmatprep.subr.bf16.mxu1 %v4206_v60  ;;  %v4201_v39 = vmul.f32 %v8889_v17, %v4195_v31  ;;  %v4278_v40 = vmul.f32 %v8896_v20, %v4269_v57  ;;  %v4318_v57 = vsel %vm478_vm9, %v12055_v24, %v12101_v27 }
 0xd80   : > { %v4192_v30 = vsel %vm347_vm4, %v4180_v6, %v4188_v10  ;;  %v4196_v1 = vsel %vm347_vm4, %v4188_v10, %v4180_v6  ;;  %v4237_v6 = vmul.f32 %v4233_v37, %v8979_v33 }
 0xd81   : > { %v4203_v52 = vmul.f32 %v8889_v17, %v4196_v1  ;;  %v4226_v32 = vpop.permute.xlu1 %4225  ;;  %v4208_v21 = vpack.c.bf16 %v4192_v30, %v4191_v61  ;;  %v4279_v61 = vmul.f32 %v8886_v16, %v4274_v3  ;;  %v4286_v1 = vpack.c.bf16 %v4280_v28, %v4278_v40 }
 0xd82   : > { %4572 = vmatpush1.bf16.msra.mxu1 %v4205_v50  ;;  %v4231_v45 = vsel %vm388_vm7, %v4218_v14, %v4226_v32  ;;  %v4235_v48 = vsel %vm388_vm7, %v4226_v32, %v4218_v14  ;;  %v4245_v43 = vpack.c.bf16 %v4239_v0, %v4237_v6 }
 0xd83   : > { %v4207_v42 = vpack.c.bf16 %v4203_v52, %v4201_v39  ;;  %v12132_v35 = vpop.permute.xlu0 %4307  ;;  %4573 = vmatprep.subr.bf16.mxu1 %v4208_v21  ;;  %v4241_v60 = vmul.f32 %v4235_v48, %v8979_v33  ;;  %v4242_v53 = vmul.f32 %v8983_v34, %v4231_v45  ;;  %v4285_v52 = vpack.c.bf16 %v4279_v61, %v4277_v47 }
 0xd84   : > { %v4294_v45 = vpack.c.bf16 %v11906_v22, %v11901_v41 }
 0xd85   : > { %v4266_v51 = vpop.permute.xlu1 %4265 }
 0xd86   : > { %4574 = vmatpush1.bf16.msra.mxu1 %v4207_v42  ;;  %v4271_v39 = vsel %vm429_vm8, %v12075_v25, %v4266_v51  ;;  %v4275_v8 = vsel %vm429_vm8, %v4266_v51, %v12075_v25 }
 0xd87   : > { %v4228_v44 = vpop.permute.xlu0 %4227  ;;  %4575 = vmatprep.subr.bf16.mxu1 %v4246_v62  ;;  %v4281_v37 = vmul.f32 %v8886_v16, %v4275_v8  ;;  %v4282_v38 = vmul.f32 %v8896_v20, %v4271_v39 }
 0xd88   : > { %v4232_v14 = vsel %vm388_vm7, %v12073_v26, %v4228_v44  ;;  %v4236_v55 = vsel %vm388_vm7, %v4228_v44, %v12073_v26  ;;  %v4293_v44 = vpack.c.bf16 %v11880_v54, %v11877_v19 }
 0xd89   : > { %v4243_v31 = vmul.f32 %v4236_v55, %v8979_v33  ;;  %v4244_v50 = vmul.f32 %v8983_v34, %v4232_v14  ;;  %v4306_v29 = vpop.permute.xlu1 %4305  ;;  %v4296_v14 = vpack.c.bf16 %v11950_v18, %v11945_v7  ;;  %v4317_v55 = vsel %vm478_vm9, %v12050_v36, %v12093_v4 }
 0xd8a   : > { %4576 = vmatpush1.bf16.msra.mxu1 %v4245_v43  ;;  %v4321_v43 = vsel %vm478_vm9, %v12093_v4, %v12050_v36 }
 0xd8b   : > { %v4247_v10 = vpack.c.bf16 %v4243_v31, %v4241_v60  ;;  %v12167_v5 = vpop.permute.xlu0 %4343  ;;  %v4248_v26 = vpack.c.bf16 %v4244_v50, %v4242_v53  ;;  %v4326_v60 = vmul.f32 %v8983_v34, %v4321_v43  ;;  %v4327_v53 = vmul.f32 %v8973_v11, %v4318_v57 }
 0xd8c   : > { %v4295_v31 = vpack.c.bf16 %v11928_v15, %v11923_v63  ;;  %v4325_v50 = vmul.f32 %v8973_v11, %v4317_v55 }
 0xd8d   : > { %4577 = vmatprep.subr.bf16.mxu1 %v4248_v26  ;;  %v4314_v30 = vpop.permute.xlu1 %4313 }
 0xd8e   : > { %4578 = vmatpush1.bf16.msra.mxu1 %v4247_v10  ;;  %v4323_v36 = vsel %vm478_vm9, %v4314_v30, %v4306_v29  ;;  %v4333_v10 = vpack.c.bf16 %v4327_v53, %v4325_v50 }
 0xd8f   : > { %v4268_v49 = vpop.permute.xlu0 %4267  ;;  %4579 = vmatprep.subr.bf16.mxu1 %v4286_v1  ;;  %v4330_v39 = vmul.f32 %v8983_v34, %v4323_v36 }
 0xd90   : > { %v4272_v32 = vsel %vm429_vm8, %v12077_v56, %v4268_v49  ;;  %v4276_v21 = vsel %vm429_vm8, %v4268_v49, %v12077_v56  ;;  %v4322_v56 = vsel %vm478_vm9, %v12101_v27, %v12055_v24  ;;  %v4319_v27 = vsel %vm478_vm9, %v4306_v29, %v4314_v30 }
 0xd91   : > { %v4283_v0 = vmul.f32 %v8886_v16, %v4276_v21  ;;  %v4284_v25 = vmul.f32 %v8896_v20, %v4272_v32  ;;  %v4342_v42 = vpop.permute.xlu1 %4341  ;;  %v4328_v3 = vmul.f32 %v8983_v34, %v4322_v56  ;;  %v4329_v26 = vmul.f32 %v8973_v11, %v4319_v27 }
 0xd92   : > { %4580 = vmatpush1.bf16.msra.mxu1 %v4285_v52 }
 0xd93   : > { %v4287_v6 = vpack.c.bf16 %v4283_v0, %v4281_v37  ;;  %v4352_v13 = vpop.permute.xlu0 %4351  ;;  %v4288_v51 = vpack.c.bf16 %v4284_v25, %v4282_v38  ;;  %v4334_v40 = vpack.c.bf16 %v4328_v3, %v4326_v60 }
 0xd94   : > { %v4362_v1 = vsel %vm519_vm11, %v4352_v13, %v12167_v5  ;;  %v4358_v21 = vsel %vm519_vm11, %v12167_v5, %v4352_v13 }
 0xd95   : > { %4581 = vmatprep.subr.bf16.mxu1 %v4288_v51  ;;  %v4350_v62 = vpop.permute.xlu1 %4349  ;;  %v4368_v37 = vmul.f32 %v4362_v1, %v9073_v23 }
 0xd96   : > { %4582 = vmatpush1.bf16.msra.mxu1 %v4287_v6  ;;  %v4361_v4 = vsel %vm519_vm11, %v4350_v62, %v4342_v42  ;;  %v4357_v47 = vsel %vm519_vm11, %v4342_v42, %v4350_v62  ;;  %v4367_v42 = vmul.f32 %v8886_v16, %v4358_v21  ;;  %v8562_v21 = vld [vmem:[%s14801_s1 + $0x150] ss:$12 sps:$4 sm:$0xff]  }
 0xd97   : > { %v4348_v48 = vpop.permute.xlu0 %4347  ;;  %4583 = vmatprep.subr.bf16.mxu1 %v4294_v45  ;;  %v4366_v8 = vmul.f32 %v4361_v4, %v9073_v23  ;;  %v4365_v38 = vmul.f32 %v8886_v16, %v4357_v47 }
 0xd99   : > { %v4346_v28 = vpop.permute.xlu1 %4345  ;;  %v4374_v62 = vpack.c.bf16 %v4368_v37, %v4366_v8  ;;  %v4373_v13 = vpack.c.bf16 %v4367_v42, %v4365_v38 }
 0xd9a   : > { %4584 = vmatpush1.bf16.msra.mxu1 %v4293_v44 }
 0xd9b   : > { %v4384_v24 = vpop.permute.xlu0 %4383  ;;  %4585 = vmatprep.subr.bf16.mxu1 %v4296_v14 }
 0xd9d   : > { %v4354_v46 = vpop.permute.xlu1 %4353 }
 0xd9e   : > { %4586 = vmatpush1.bf16.msra.mxu1 %v4295_v31  ;;  %v4359_v6 = vsel %vm519_vm11, %v4346_v28, %v4354_v46  ;;  %v4363_v45 = vsel %vm519_vm11, %v4354_v46, %v4346_v28 }
 0xd9f   : > { %v4316_v61 = vpop.permute.xlu0 %4315  ;;  %4587 = vmatprep.subr.bf16.mxu1 %v4334_v40  ;;  %v4369_v43 = vmul.f32 %v8886_v16, %v4359_v6  ;;  %v4370_v28 = vmul.f32 %v4363_v45, %v9073_v23 }
 0xda0   : > { %v4320_v29 = vsel %vm478_vm9, %v12132_v35, %v4316_v61  ;;  %v4324_v30 = vsel %vm478_vm9, %v4316_v61, %v12132_v35 }
 0xda1   : > { %v4331_v49 = vmul.f32 %v8973_v11, %v4320_v29  ;;  %v4332_v52 = vmul.f32 %v8983_v34, %v4324_v30  ;;  %v4382_v32 = vpop.permute.xlu1 %4381 }
 0xda2   : > { %4588 = vmatpush1.bf16.msra.mxu1 %v4333_v10 }
 0xda3   : > { %v4335_v0 = vpack.c.bf16 %v4331_v49, %v4329_v26  ;;  %v4392_v35 = vpop.permute.xlu0 %4391  ;;  %v4336_v25 = vpack.c.bf16 %v4332_v52, %v4330_v39 }
 0xda4   : > { %v4402_v57 = vsel %vm560_vm12, %v4392_v35, %v4384_v24  ;;  %v4398_v10 = vsel %vm560_vm12, %v4384_v24, %v4392_v35 }
 0xda5   : > { %v4390_v51 = vpop.permute.xlu1 %4389  ;;  %4589 = vmatprep.subr.bf16.mxu1 %v4336_v25  ;;  %v4408_v27 = vmul.f32 %v9069_v12, %v4402_v57 }
 0xda6   : > { %v4401_v5 = vsel %vm560_vm12, %v4390_v51, %v4382_v32  ;;  %4590 = vmatpush1.bf16.msra.mxu1 %v4335_v0  ;;  %v4397_v40 = vsel %vm560_vm12, %v4382_v32, %v4390_v51  ;;  %v8565_v0 = vld [vmem:[%s14801_s1 + $0x16c] ss:$12 sps:$4 sm:$0xff]  }
 0xda7   : > { %v4356_v56 = vpop.permute.xlu0 %4355  ;;  %4591 = vmatprep.subr.bf16.mxu1 %v4374_v62  ;;  %v4406_v14 = vmul.f32 %v9069_v12, %v4401_v5  ;;  %v4413_v61 = vpack.c.bf16 %v4398_v10, %v4397_v40 }
 0xda8   : > { %v4360_v44 = vsel %vm519_vm11, %v4348_v48, %v4356_v56  ;;  %v4364_v3 = vsel %vm519_vm11, %v4356_v56, %v4348_v48 }
 0xda9   : > { %v4371_v55 = vmul.f32 %v8886_v16, %v4360_v44  ;;  %v4372_v60 = vmul.f32 %v4364_v3, %v9073_v23  ;;  %v4386_v53 = vpop.permute.xlu1 %4385  ;;  %v4414_v48 = vpack.c.bf16 %v4408_v27, %v4406_v14  ;;  %v8567_v44 = vld [vmem:[%s14801_s1 + $0x168] ss:$12 sps:$4 sm:$0xff]  }
 0xdaa   : > { %4592 = vmatpush1.bf16.msra.mxu1 %v4373_v13 }
 0xdab   : > { %v4375_v31 = vpack.c.bf16 %v4371_v55, %v4369_v43  ;;  %v4388_v50 = vpop.permute.xlu0 %4387  ;;  %v4376_v46 = vpack.c.bf16 %v4372_v60, %v4370_v28 }
 0xdad   : > { %v4394_v36 = vpop.permute.xlu1 %4393  ;;  %4593 = vmatprep.subr.bf16.mxu1 %v4376_v46 }
 0xdae   : > { %v4403_v4 = vsel %vm560_vm12, %v4394_v36, %v4386_v53  ;;  %4594 = vmatpush1.bf16.msra.mxu1 %v4375_v31  ;;  %v4399_v8 = vsel %vm560_vm12, %v4386_v53, %v4394_v36  ;;  %v8568_v36 = vld [vmem:[%s14801_s1 + $0x158] ss:$12 sps:$4 sm:$0xff]  }
 0xdaf   : > { %v4396_v26 = vpop.permute.xlu0 %4395  ;;  %4595 = vmatprep.subr.bf16.mxu1 %v4414_v48  ;;  %v4410_v47 = vmul.f32 %v9069_v12, %v4403_v4  ;;  %v8569_v48 = vld [vmem:[%s14801_s1 + $0x170] ss:$12 sps:$4 sm:$0xff]  }
 0xdb0   : > { %v4404_v1 = vsel %vm560_vm12, %v4396_v26, %v4388_v50  ;;  %v4400_v29 = vsel %vm560_vm12, %v4388_v50, %v4396_v26 }
 0xdb1   : > { %v4412_v30 = vmul.f32 %v9069_v12, %v4404_v1  ;;  %v4422_v39 = vpop.permute.xlu1 %4421  ;;  %v4415_v52 = vpack.c.bf16 %v4400_v29, %v4399_v8 }
 0xdb2   : > { %4596 = vmatpush1.bf16.msra.mxu1 %v4413_v61 }
 0xdb3   : > { %v4424_v49 = vpop.permute.xlu0 %4423  ;;  %v4416_v24 = vpack.c.bf16 %v4412_v30, %v4410_v47 }
 0xdb5   : > { %v4430_v32 = vpop.permute.xlu1 %4429  ;;  %4597 = vmatprep.subr.bf16.mxu1 %v4416_v24 }
 0xdb6   : > { %v4437_v37 = vsel %vm601_vm13, %v4422_v39, %v4430_v32  ;;  %v4441_v38 = vsel %vm601_vm13, %v4430_v32, %v4422_v39  ;;  %4598 = vmatpush1.bf16.msra.mxu1 %v4415_v52 }
 0xdb7   : > { %v4432_v35 = vpop.permute.xlu0 %4431  ;;  %v4445_v6 = vmul.f32 %v8973_v11, %v4437_v37  ;;  %v4446_v51 = vmul.f32 %v4441_v38, %v9114_v59 }
 0xdb8   : > { %v4438_v25 = vsel %vm601_vm13, %v4424_v49, %v4432_v35  ;;  %v4442_v42 = vsel %vm601_vm13, %v4432_v35, %v4424_v49 }
 0xdb9   : > { %v4447_v62 = vmul.f32 %v8973_v11, %v4438_v25  ;;  %v4448_v45 = vmul.f32 %v4442_v42, %v9114_v59  ;;  %v4426_v5 = vpop.permute.xlu1 %4425  ;;  %4600 = vmatmul.mubr.bf16.vlgmr.msra.gmra.mrb[32].mxu1 %v8562_v21 }
 0xdba   : > { %4609 = vmatprep.mubr.bf16.mxu1 %v8565_v0 }
 0xdbb   : > { %v4453_v13 = vpack.c.bf16 %v4447_v62, %v4445_v6  ;;  %v4428_v56 = vpop.permute.xlu0 %4427  ;;  %v4454_v43 = vpack.c.bf16 %v4448_v45, %v4446_v51 }
 0xdbd   : > { %v4434_v57 = vpop.permute.xlu1 %4433  ;;  %4620 = vmatprep.subr.bf16.mxu1 %v4454_v43  ;;  %v8572_v43 = vld [vmem:[%s14801_s1 + $0x184] ss:$12 sps:$4 sm:$0xff]  }
 0xdbe   : > { %v4439_v3 = vsel %vm601_vm13, %v4426_v5, %v4434_v57  ;;  %v4443_v28 = vsel %vm601_vm13, %v4434_v57, %v4426_v5  ;;  %4621 = vmatpush1.bf16.msra.mxu1 %v4453_v13  ;;  %5147 = vmatprep.mubr.bf16.mxu0 %v8572_v43 }
 0xdbf   : > { %v4436_v14 = vpop.permute.xlu0 %4435  ;;  %v4449_v53 = vmul.f32 %v8973_v11, %v4439_v3  ;;  %v4450_v27 = vmul.f32 %v4443_v28, %v9114_v59 }
 0xdc0   : > { %v4440_v55 = vsel %vm601_vm13, %v4428_v56, %v4436_v14  ;;  %v4444_v60 = vsel %vm601_vm13, %v4436_v14, %v4428_v56 }
 0xdc1   : > { %v4451_v31 = vmul.f32 %v8973_v11, %v4440_v55  ;;  %v4452_v50 = vmul.f32 %v4444_v60, %v9114_v59  ;;  %4610 = vmatmul.mubr.bf16.gmra.mrb[36].mxu1 %v8567_v44  ;;  %v8168_v60 = vld [vmem:[%s14802_s2 + $0x100] sm:$0xff] }
 0xdc2   : > { %4652 = vmatprep.mubr.bf16.mxu1 %v14812_v2 }
 0xdc3   : > { %v4455_v46 = vpack.c.bf16 %v4451_v31, %v4449_v53  ;;  %v4456_v40 = vpack.c.bf16 %v4452_v50, %v4450_v27  ;;  %v8169_v27 = vld [vmem:[%s14802_s2 + $0x108] sm:$0xff]  ;;  %v8170_v50 = vld [vmem:[%s14802_s2 + $0x110] sm:$0xff] }
 0xdc5   : > { %4622 = vmatprep.subr.bf16.mxu1 %v4456_v40  ;;  %v8171_v40 = vld [vmem:[%s14802_s2 + $0x118] sm:$0xff] }
 0xdc6   : > { %4623 = vmatpush1.bf16.msra.mxu1 %v4455_v46 }
 0xdc9   : > { %8158 = vmatmul.mubr.msk.bf16.vlgmr.msra.gmra.mrb[32].mxu1 %vm724_vm14, %v8568_v36 }
 0xdca   : > { %4662 = vmatprep.mubr.bf16.mxu1 %v14812_v2 }
 0xdce   : > { %v4514_v4 = vpop.permute.xlu1 %4513 }
 0xdd0   : > { %v4519_v1 = vpop.permute.xlu0 %4518 }
 0xdd1   : > { %8159 = vmatmul.mubr.msk.bf16.gmra.mrb[36].mxu1 %vm724_vm14, %v8569_v48 }
 0xdd2   : > { %v4524_v35 = vpop.permute.xlu1 %4523 }
 0xdd4   : > { %v4529_v42 = vpop.permute.xlu0 %4528 }
 0xe9c   : > { %v4654_v10 = vpop.f32.mrb[32].mxu1 }
 0xe9d   : > { %v8358_v26 = vadd.f32 %v4654_v10, %v4514_v4  ;;  %v4656_v61 = vpop.f32.mrb[33].mxu1 }
 0xe9e   : > { %v4658_v47 = vpop.f32.mrb[34].mxu1  ;;  %v8359_v21 = vadd.f32 %v4656_v61, %v4514_v4 }
 0xe9f   : > { %v12318_v29 = vmax.f32 %v8358_v26, 0.0  ;;  %v8360_v30 = vadd.f32 %v4658_v47, %v4519_v1  ;;  %v4660_v39 = vpop.f32.mrb[35].mxu1 }
 0xea0   : > { %v8361_v37 = vadd.f32 %v4660_v39, %v4519_v1  ;;  %v12340_v38 = vmax.f32 %v8359_v21, 0.0 }
 0xea1   : > { %v12320_v8 = vmax.f32 %v8360_v30, 0.0  ;;  %4681 = vrot.lane.b32.xlu1 %v12318_v29, %s8686_s21 }
 0xea2   : > { %v12344_v0 = vmax.f32 %v8361_v37, 0.0 }
 0xea3   : > { %4683 = vrot.lane.b32.xlu0 %v12320_v8, %s8686_s21 }
 0xea4   : > { %v4664_v49 = vpop.f32.mrb[36].mxu1 }
 0xea5   : > { %v4666_v24 = vpop.f32.mrb[37].mxu1  ;;  %4721 = vrot.lane.b32.xlu1 %v12318_v29, %s8687_s22  ;;  %v8362_v25 = vadd.f32 %v4664_v49, %v4524_v35 }
 0xea6   : > { %v4668_v52 = vpop.f32.mrb[38].mxu1  ;;  %v8363_v45 = vadd.f32 %v4666_v24, %v4524_v35 }
 0xea7   : > { %v4670_v32 = vpop.f32.mrb[39].mxu1  ;;  %4723 = vrot.lane.b32.xlu0 %v12320_v8, %s8687_s22  ;;  %v8364_v6 = vadd.f32 %v4668_v52, %v4529_v42  ;;  %v12360_v51 = vmax.f32 %v8362_v25, 0.0 }
 0xea8   : > { %v8365_v5 = vadd.f32 %v4670_v32, %v4529_v42  ;;  %v12380_v13 = vmax.f32 %v8363_v45, 0.0 }
 0xea9   : > { %4761 = vrot.lane.b32.xlu1 %v12318_v29, %s8688_s23  ;;  %v12364_v62 = vmax.f32 %v8364_v6, 0.0 }
 0xeaa   : > { %v12384_v56 = vmax.f32 %v8365_v5, 0.0 }
 0xeab   : > { %4763 = vrot.lane.b32.xlu0 %v12320_v8, %s8688_s23 }
 0xead   : > { %4801 = vrot.lane.b32.xlu1 %v12318_v29, %s8689_s24 }
 0xeaf   : > { %4803 = vrot.lane.b32.xlu0 %v12320_v8, %s8689_s24 }
 0xeb1   : > { %4849 = vrot.lane.b32.xlu1 %v12318_v29, %s8690_s25 }
 0xeb3   : > { %4851 = vrot.lane.b32.xlu0 %v12320_v8, %s8690_s25 }
 0xeb5   : > { %4689 = vrot.lane.b32.xlu1 %v12340_v38, %s8686_s21 }
 0xeb7   : > { %4691 = vrot.lane.b32.xlu0 %v12344_v0, %s8686_s21 }
 0xeb9   : > { %4729 = vrot.lane.b32.xlu1 %v12340_v38, %s8687_s22 }
 0xebb   : > { %4731 = vrot.lane.b32.xlu0 %v12344_v0, %s8687_s22 }
 0xebd   : > { %4769 = vrot.lane.b32.xlu1 %v12340_v38, %s8688_s23 }
 0xebf   : > { %4771 = vrot.lane.b32.xlu0 %v12344_v0, %s8688_s23 }
 0xec1   : > { %4809 = vrot.lane.b32.xlu1 %v12340_v38, %s8689_s24 }
 0xec3   : > { %4811 = vrot.lane.b32.xlu0 %v12344_v0, %s8689_s24 }
 0xec5   : > { %4685 = vrot.lane.b32.xlu1 %v12360_v51, %s8686_s21 }
 0xec7   : > { %4687 = vrot.lane.b32.xlu0 %v12364_v62, %s8686_s21 }
 0xec9   : > { %4725 = vrot.lane.b32.xlu1 %v12360_v51, %s8687_s22 }
 0xecb   : > { %4727 = vrot.lane.b32.xlu0 %v12364_v62, %s8687_s22 }
 0xecd   : > { %4765 = vrot.lane.b32.xlu1 %v12360_v51, %s8688_s23 }
 0xecf   : > { %4767 = vrot.lane.b32.xlu0 %v12364_v62, %s8688_s23 }
 0xed1   : > { %4805 = vrot.lane.b32.xlu1 %v12360_v51, %s8689_s24 }
 0xed3   : > { %4807 = vrot.lane.b32.xlu0 %v12364_v62, %s8689_s24 }
 0xed5   : > { %4693 = vrot.lane.b32.xlu1 %v12380_v13, %s8686_s21 }
 0xed7   : > { %4695 = vrot.lane.b32.xlu0 %v12384_v56, %s8686_s21 }
 0xed9   : > { %4857 = vrot.lane.b32.xlu1 %v12340_v38, %s8690_s25 }
 0xedb   : > { %4859 = vrot.lane.b32.xlu0 %v12344_v0, %s8690_s25 }
 0xedd   : > { %4733 = vrot.lane.b32.xlu1 %v12380_v13, %s8687_s22 }
 0xedf   : > { %4735 = vrot.lane.b32.xlu0 %v12384_v56, %s8687_s22 }
 0xee1   : > { %4773 = vrot.lane.b32.xlu1 %v12380_v13, %s8688_s23 }
 0xee3   : > { %4855 = vrot.lane.b32.xlu0 %v12364_v62, %s8690_s25 }
 0xee5   : > { %4813 = vrot.lane.b32.xlu1 %v12380_v13, %s8689_s24 }
 0xee7   : > { %4775 = vrot.lane.b32.xlu0 %v12384_v56, %s8688_s23 }
 0xee9   : > { %4853 = vrot.lane.b32.xlu1 %v12360_v51, %s8690_s25 }
 0xeeb   : > { %4891 = vrot.lane.b32.xlu0 %v12320_v8, %s8691_s26 }
 0xeed   : > { %4861 = vrot.lane.b32.xlu1 %v12380_v13, %s8690_s25 }
 0xeef   : > { %4815 = vrot.lane.b32.xlu0 %v12384_v56, %s8689_s24 }
 0xef1   : > { %4889 = vrot.lane.b32.xlu1 %v12318_v29, %s8691_s26 }
 0xef3   : > { %4899 = vrot.lane.b32.xlu0 %v12344_v0, %s8691_s26 }
 0xef5   : > { %4897 = vrot.lane.b32.xlu1 %v12340_v38, %s8691_s26 }
 0xef7   : > { %4895 = vrot.lane.b32.xlu0 %v12364_v62, %s8691_s26 }
 0xef9   : > { %4893 = vrot.lane.b32.xlu1 %v12360_v51, %s8691_s26 }
 0xefb   : > { %4931 = vrot.lane.b32.xlu0 %v12320_v8, %s8692_s27 }
 0xefd   : > { %4901 = vrot.lane.b32.xlu1 %v12380_v13, %s8691_s26 }
 0xeff   : > { %4863 = vrot.lane.b32.xlu0 %v12384_v56, %s8690_s25 }
 0xf01   : > { %4929 = vrot.lane.b32.xlu1 %v12318_v29, %s8692_s27 }
 0xf03   : > { %4939 = vrot.lane.b32.xlu0 %v12344_v0, %s8692_s27 }
 0xf05   : > { %4937 = vrot.lane.b32.xlu1 %v12340_v38, %s8692_s27 }
 0xf07   : > { %4903 = vrot.lane.b32.xlu0 %v12384_v56, %s8691_s26 }
 0xf09   : > { %4933 = vrot.lane.b32.xlu1 %v12360_v51, %s8692_s27 }
 0xf0b   : > { %4935 = vrot.lane.b32.xlu0 %v12364_v62, %s8692_s27 }
 0xf0d   : > { %4941 = vrot.lane.b32.xlu1 %v12380_v13, %s8692_s27 }
 0xf0f   : > { %4943 = vrot.lane.b32.xlu0 %v12384_v56, %s8692_s27 }
 0xf11   : > { %4969 = vrot.lane.b32.xlu1 %v12318_v29, %s8693_s28 }
 0xf13   : > { %4971 = vrot.lane.b32.xlu0 %v12320_v8, %s8693_s28  ;;  %v4682_v57 = vpop.permute.xlu1 %4681 }
 0xf15   : > { %v4684_v44 = vpop.permute.xlu0 %4683  ;;  %4977 = vrot.lane.b32.xlu1 %v12340_v38, %s8693_s28 }
 0xf17   : > { %4979 = vrot.lane.b32.xlu0 %v12344_v0, %s8693_s28  ;;  %v12457_v3 = vpop.permute.xlu1 %4721 }
 0xf19   : > { %v4724_v28 = vpop.permute.xlu0 %4723  ;;  %4973 = vrot.lane.b32.xlu1 %v12360_v51, %s8693_s28 }
 0xf1b   : > { %4975 = vrot.lane.b32.xlu0 %v12364_v62, %s8693_s28  ;;  %v12463_v14 = vpop.permute.xlu1 %4761 }
 0xf1d   : > { %v12465_v55 = vpop.permute.xlu0 %4763  ;;  %4981 = vrot.lane.b32.xlu1 %v12380_v13, %s8693_s28 }
 0xf1f   : > { %4983 = vrot.lane.b32.xlu0 %v12384_v56, %s8693_s28  ;;  %v12474_v53 = vpop.permute.xlu1 %4801 }
 0xf21   : > { %v12479_v31 = vpop.permute.xlu0 %4803  ;;  %5061 = vperm.xlu1 %8505, %v8168_v60  }
 0xf23   : > { %5066 = vperm.xlu0 %8504, %v8169_v27   ;;  %v12484_v46 = vpop.permute.xlu1 %4849 }
 0xf25   : > { %v12489_v36 = vpop.permute.xlu0 %4851  ;;  %5071 = vperm.xlu1 %8505, %v8170_v50  }
 0xf27   : > { %5076 = vperm.xlu0 %8504, %v8171_v40   ;;  %v4690_v48 = vpop.permute.xlu1 %4689 }
 0xf28   : > { %v4697_v4 = vsel %vm306_vm2, %v4682_v57, %v4690_v48  ;;  %v4701_v10 = vsel %vm306_vm2, %v4690_v48, %v4682_v57 }
 0xf29   : > { %v4692_v26 = vpop.permute.xlu0 %4691  ;;  %v4705_v47 = vmul.f32 %v4701_v10, %v14813_v58  ;;  %v4706_v30 = vmul.f32 %v8896_v20, %v4697_v4 }
 0xf2a   : > { %v4698_v61 = vsel %vm306_vm2, %v4684_v44, %v4692_v26  ;;  %v4702_v1 = vsel %vm306_vm2, %v4692_v26, %v4684_v44 }
 0xf2b   : > { %v4707_v39 = vmul.f32 %v4702_v1, %v14813_v58  ;;  %v4708_v49 = vmul.f32 %v8896_v20, %v4698_v61  ;;  %v4730_v24 = vpop.permute.xlu1 %4729 }
 0xf2d   : > { %v4713_v52 = vpack.c.bf16 %v4707_v39, %v4705_v47  ;;  %v4732_v32 = vpop.permute.xlu0 %4731  ;;  %v4714_v21 = vpack.c.bf16 %v4708_v49, %v4706_v30 }
 0xf2e   : > { %v4742_v10 = vsel %vm347_vm4, %v4732_v32, %v4724_v28 }
 0xf2f   : > { %5115 = vmatprep.subr.bf16.mxu0 %v4714_v21  ;;  %v4770_v37 = vpop.permute.xlu1 %4769  ;;  %v4738_v21 = vsel %vm347_vm4, %v4724_v28, %v4732_v32 }
 0xf30   : > { %5116 = vmatpush1.bf16.msra.mxu0 %v4713_v52  ;;  %v4741_v52 = vsel %vm347_vm4, %v4730_v24, %v12457_v3 }
 0xf31   : > { %v4772_v35 = vpop.permute.xlu0 %4771 }
 0xf33   : > { %v12503_v25 = vpop.permute.xlu1 %4809 }
 0xf35   : > { %v12505_v42 = vpop.permute.xlu0 %4811 }
 0xf37   : > { %v4686_v6 = vpop.permute.xlu1 %4685 }
 0xf39   : > { %v4688_v45 = vpop.permute.xlu0 %4687 }
 0xf3b   : > { %v4726_v5 = vpop.permute.xlu1 %4725 }
 0xf3d   : > { %v4728_v43 = vpop.permute.xlu0 %4727 }
 0xf3f   : > { %v4766_v57 = vpop.permute.xlu1 %4765 }
 0xf41   : > { %v12507_v44 = vpop.permute.xlu0 %4767 }
 0xf43   : > { %v12509_v60 = vpop.permute.xlu1 %4805 }
 0xf45   : > { %v12511_v27 = vpop.permute.xlu0 %4807 }
 0xf47   : > { %v4694_v50 = vpop.permute.xlu1 %4693 }
 0xf48   : > { %v4699_v40 = vsel %vm306_vm2, %v4686_v6, %v4694_v50  ;;  %v4703_v48 = vsel %vm306_vm2, %v4694_v50, %v4686_v6  ;;  %v4747_v6 = vmul.f32 %v8889_v17, %v4742_v10  ;;  %v4777_v10 = vsel %vm388_vm7, %v12463_v14, %v4770_v37 }
 0xf49   : > { %v4696_v4 = vpop.permute.xlu0 %4695  ;;  %v4709_v1 = vmul.f32 %v4703_v48, %v14813_v58  ;;  %v4710_v47 = vmul.f32 %v8896_v20, %v4699_v40  ;;  %v4737_v40 = vsel %vm347_vm4, %v12457_v3, %v4730_v24  ;;  %v4782_v3 = vsel %vm388_vm7, %v4772_v35, %v12465_v55 }
 0xf4a   : > { %v4700_v26 = vsel %vm306_vm2, %v4688_v45, %v4696_v4  ;;  %v4704_v61 = vsel %vm306_vm2, %v4696_v4, %v4688_v45  ;;  %v4745_v4 = vmul.f32 %v8889_v17, %v4741_v52 }
 0xf4b   : > { %v4711_v30 = vmul.f32 %v4704_v61, %v14813_v58  ;;  %v4712_v39 = vmul.f32 %v8896_v20, %v4700_v26  ;;  %v12527_v49 = vpop.permute.xlu1 %4857  ;;  %v4754_v61 = vpack.c.bf16 %v4738_v21, %v4737_v40  ;;  %v4778_v58 = vsel %vm388_vm7, %v12465_v55, %v4772_v35 }
 0xf4c   : > { %v4753_v32 = vpack.c.bf16 %v4747_v6, %v4745_v4  ;;  %v4781_v55 = vsel %vm388_vm7, %v4770_v37, %v12463_v14  ;;  %v4786_v35 = vmul.f32 %v8983_v34, %v4777_v10  ;;  %v4822_v10 = vsel %vm429_vm8, %v12505_v42, %v12479_v31 }
 0xf4d   : > { %v4715_v45 = vpack.c.bf16 %v4711_v30, %v4709_v1  ;;  %v12535_v50 = vpop.permute.xlu0 %4859  ;;  %v4716_v48 = vpack.c.bf16 %v4712_v39, %v4710_v47  ;;  %v4788_v39 = vmul.f32 %v8983_v34, %v4778_v58  ;;  %v4785_v58 = vmul.f32 %v4781_v55, %v8979_v33 }
 0xf4f   : > { %5117 = vmatprep.subr.bf16.mxu0 %v4716_v48  ;;  %v4734_v26 = vpop.permute.xlu1 %4733 }
 0xf50   : > { %v4743_v28 = vsel %vm347_vm4, %v4734_v26, %v4726_v5  ;;  %5118 = vmatpush1.bf16.msra.mxu0 %v4715_v45  ;;  %v4739_v24 = vsel %vm347_vm4, %v4726_v5, %v4734_v26  ;;  %v4787_v5 = vmul.f32 %v4782_v3, %v8979_v33  ;;  %v4794_v26 = vpack.c.bf16 %v4788_v39, %v4786_v35 }
 0xf51   : > { %v4736_v1 = vpop.permute.xlu0 %4735  ;;  %5119 = vmatprep.subr.bf16.mxu0 %v4754_v61  ;;  %v4749_v52 = vmul.f32 %v8889_v17, %v4743_v28  ;;  %v4817_v28 = vsel %vm429_vm8, %v12474_v53, %v12503_v25 }
 0xf52   : > { %v4740_v47 = vsel %vm347_vm4, %v4728_v43, %v4736_v1  ;;  %v4744_v30 = vsel %vm347_vm4, %v4736_v1, %v4728_v43  ;;  %v4818_v43 = vsel %vm429_vm8, %v12479_v31, %v12505_v42  ;;  %v4793_v61 = vpack.c.bf16 %v4787_v5, %v4785_v58 }
 0xf53   : > { %v4751_v21 = vmul.f32 %v8889_v17, %v4744_v30  ;;  %v4774_v6 = vpop.permute.xlu1 %4773  ;;  %v4756_v45 = vpack.c.bf16 %v4740_v47, %v4739_v24  ;;  %v4828_v1 = vmul.f32 %v8896_v20, %v4818_v43  ;;  %v4821_v31 = vsel %vm429_vm8, %v12503_v25, %v12474_v53 }
 0xf54   : > { %5120 = vmatpush1.bf16.msra.mxu0 %v4753_v32  ;;  %v4779_v14 = vsel %vm388_vm7, %v4766_v57, %v4774_v6  ;;  %v4783_v37 = vsel %vm388_vm7, %v4774_v6, %v4766_v57  ;;  %v4826_v42 = vmul.f32 %v8896_v20, %v4817_v28  ;;  %v4825_v5 = vmul.f32 %v8886_v16, %v4821_v31 }
 0xf55   : > { %v4755_v48 = vpack.c.bf16 %v4751_v21, %v4749_v52  ;;  %v12566_v40 = vpop.permute.xlu0 %4855  ;;  %5121 = vmatprep.subr.bf16.mxu0 %v4756_v45  ;;  %v4789_v24 = vmul.f32 %v4783_v37, %v8979_v33  ;;  %v4790_v47 = vmul.f32 %v8983_v34, %v4779_v14  ;;  %v4827_v45 = vmul.f32 %v8886_v16, %v4822_v10 }
 0xf56   : > { %v4834_v35 = vpack.c.bf16 %v4828_v1, %v4826_v42  ;;  %v4865_v31 = vsel %vm478_vm9, %v12484_v46, %v12527_v49 }
 0xf57   : > { %v4814_v4 = vpop.permute.xlu1 %4813  ;;  %v4833_v58 = vpack.c.bf16 %v4827_v45, %v4825_v5 }
 0xf58   : > { %5122 = vmatpush1.bf16.msra.mxu0 %v4755_v48  ;;  %v4819_v48 = vsel %vm429_vm8, %v12509_v60, %v4814_v4  ;;  %v4823_v53 = vsel %vm429_vm8, %v4814_v4, %v12509_v60 }
 0xf59   : > { %v4776_v32 = vpop.permute.xlu0 %4775  ;;  %5123 = vmatprep.subr.bf16.mxu0 %v4794_v26  ;;  %v4829_v14 = vmul.f32 %v8886_v16, %v4823_v53  ;;  %v4830_v37 = vmul.f32 %v8896_v20, %v4819_v48 }
 0xf5a   : > { %v4780_v57 = vsel %vm388_vm7, %v12507_v44, %v4776_v32  ;;  %v4784_v3 = vsel %vm388_vm7, %v4776_v32, %v12507_v44 }
 0xf5b   : > { %v4791_v30 = vmul.f32 %v4784_v3, %v8979_v33  ;;  %v4792_v39 = vmul.f32 %v8983_v34, %v4780_v57  ;;  %v4854_v52 = vpop.permute.xlu1 %4853  ;;  %v4842_v57 = vpack.c.bf16 %v12344_v0, %v12340_v38  ;;  %v4841_v38 = vpack.c.bf16 %v12320_v8, %v12318_v29 }
 0xf5c   : > { %5124 = vmatpush1.bf16.msra.mxu0 %v4793_v61  ;;  %v4843_v8 = vpack.c.bf16 %v12364_v62, %v12360_v51 }
 0xf5d   : > { %v4795_v21 = vpack.c.bf16 %v4791_v30, %v4789_v24  ;;  %v12601_v6 = vpop.permute.xlu0 %4891  ;;  %v4796_v44 = vpack.c.bf16 %v4792_v39, %v4790_v47  ;;  %v4869_v24 = vsel %vm478_vm9, %v12527_v49, %v12484_v46  ;;  %v4866_v47 = vsel %vm478_vm9, %v12489_v36, %v12535_v50 }
 0xf5e   : > { %v4844_v39 = vpack.c.bf16 %v12384_v56, %v12380_v13  ;;  %v4874_v42 = vmul.f32 %v8983_v34, %v4869_v24  ;;  %v4873_v13 = vmul.f32 %v8973_v11, %v4865_v31 }
 0xf5f   : > { %5125 = vmatprep.subr.bf16.mxu0 %v4796_v44  ;;  %v4862_v55 = vpop.permute.xlu1 %4861 }
 0xf60   : > { %5126 = vmatpush1.bf16.msra.mxu0 %v4795_v21  ;;  %v4875_v21 = vmul.f32 %v8973_v11, %v4866_v47  ;;  %v4867_v29 = vsel %vm478_vm9, %v4854_v52, %v4862_v55  ;;  %v4871_v46 = vsel %vm478_vm9, %v4862_v55, %v4854_v52 }
 0xf61   : > { %v4816_v25 = vpop.permute.xlu0 %4815  ;;  %5127 = vmatprep.subr.bf16.mxu0 %v4834_v35  ;;  %v4877_v45 = vmul.f32 %v8973_v11, %v4867_v29  ;;  %v4878_v5 = vmul.f32 %v8983_v34, %v4871_v46 }
 0xf62   : > { %v4820_v43 = vsel %vm429_vm8, %v12511_v27, %v4816_v25  ;;  %v4824_v26 = vsel %vm429_vm8, %v4816_v25, %v12511_v27  ;;  %v4870_v27 = vsel %vm478_vm9, %v12535_v50, %v12489_v36  ;;  %v4881_v44 = vpack.c.bf16 %v4875_v21, %v4873_v13 }
 0xf63   : > { %v4831_v61 = vmul.f32 %v8886_v16, %v4824_v26  ;;  %v4832_v60 = vmul.f32 %v8896_v20, %v4820_v43  ;;  %v4890_v4 = vpop.permute.xlu1 %4889  ;;  %v4876_v0 = vmul.f32 %v8983_v34, %v4870_v27 }
 0xf64   : > { %5128 = vmatpush1.bf16.msra.mxu0 %v4833_v58 }
 0xf65   : > { %v4835_v28 = vpack.c.bf16 %v4831_v61, %v4829_v14  ;;  %v4900_v32 = vpop.permute.xlu0 %4899  ;;  %v4836_v10 = vpack.c.bf16 %v4832_v60, %v4830_v37  ;;  %v4882_v50 = vpack.c.bf16 %v4876_v0, %v4874_v42 }
 0xf66   : > { %v4910_v51 = vsel %vm519_vm11, %v4900_v32, %v12601_v6  ;;  %v4906_v43 = vsel %vm519_vm11, %v12601_v6, %v4900_v32 }
 0xf67   : > { %5129 = vmatprep.subr.bf16.mxu0 %v4836_v10  ;;  %v4898_v1 = vpop.permute.xlu1 %4897  ;;  %v4916_v26 = vmul.f32 %v4910_v51, %v9073_v23  ;;  %v4915_v60 = vmul.f32 %v8886_v16, %v4906_v43 }
 0xf68   : > { %5130 = vmatpush1.bf16.msra.mxu0 %v4835_v28  ;;  %v4909_v49 = vsel %vm519_vm11, %v4898_v1, %v4890_v4  ;;  %v4905_v62 = vsel %vm519_vm11, %v4890_v4, %v4898_v1 }
 0xf69   : > { %v4896_v3 = vpop.permute.xlu0 %4895  ;;  %5131 = vmatprep.subr.bf16.mxu0 %v4842_v57  ;;  %v4914_v48 = vmul.f32 %v4909_v49, %v9073_v23  ;;  %v4913_v14 = vmul.f32 %v8886_v16, %v4905_v62 }
 0xf6b   : > { %v4894_v30 = vpop.permute.xlu1 %4893  ;;  %v4922_v10 = vpack.c.bf16 %v4916_v26, %v4914_v48  ;;  %v4921_v32 = vpack.c.bf16 %v4915_v60, %v4913_v14  ;;  %v8573_v14 = vld [vmem:[%s14801_s1 + $0x19c] ss:$12 sps:$4 sm:$0xff]  }
 0xf6c   : > { %5132 = vmatpush1.bf16.msra.mxu0 %v4841_v38 }
 0xf6d   : > { %v4932_v36 = vpop.permute.xlu0 %4931  ;;  %5133 = vmatprep.subr.bf16.mxu0 %v4844_v39 }
 0xf6f   : > { %v4902_v56 = vpop.permute.xlu1 %4901 }
 0xf70   : > { %5134 = vmatpush1.bf16.msra.mxu0 %v4843_v8  ;;  %v4907_v4 = vsel %vm519_vm11, %v4894_v30, %v4902_v56  ;;  %v4911_v1 = vsel %vm519_vm11, %v4902_v56, %v4894_v30 }
 0xf71   : > { %v4864_v35 = vpop.permute.xlu0 %4863  ;;  %5135 = vmatprep.subr.bf16.mxu0 %v4882_v50  ;;  %v4917_v27 = vmul.f32 %v8886_v16, %v4907_v4  ;;  %v4918_v0 = vmul.f32 %v4911_v1, %v9073_v23 }
 0xf72   : > { %v4868_v52 = vsel %vm478_vm9, %v12566_v40, %v4864_v35  ;;  %v4872_v55 = vsel %vm478_vm9, %v4864_v35, %v12566_v40 }
 0xf73   : > { %v4879_v53 = vmul.f32 %v8973_v11, %v4868_v52  ;;  %v4880_v25 = vmul.f32 %v8983_v34, %v4872_v55  ;;  %v4930_v58 = vpop.permute.xlu1 %4929 }
 0xf74   : > { %5136 = vmatpush1.bf16.msra.mxu0 %v4881_v44 }
 0xf75   : > { %v4883_v37 = vpack.c.bf16 %v4879_v53, %v4877_v45  ;;  %v4940_v40 = vpop.permute.xlu0 %4939  ;;  %v4884_v61 = vpack.c.bf16 %v4880_v25, %v4878_v5 }
 0xf76   : > { %v4950_v24 = vsel %vm560_vm12, %v4940_v40, %v4932_v36  ;;  %v4946_v49 = vsel %vm560_vm12, %v4932_v36, %v4940_v40 }
 0xf77   : > { %v4938_v28 = vpop.permute.xlu1 %4937  ;;  %5137 = vmatprep.subr.bf16.mxu0 %v4884_v61  ;;  %v4956_v21 = vmul.f32 %v9069_v12, %v4950_v24  ;;  %v8575_v24 = vld [vmem:[%s14801_s1 + $0x198] ss:$12 sps:$4 sm:$0xff]  }
 0xf78   : > { %v4949_v6 = vsel %vm560_vm12, %v4938_v28, %v4930_v58  ;;  %5138 = vmatpush1.bf16.msra.mxu0 %v4883_v37  ;;  %v4945_v56 = vsel %vm560_vm12, %v4930_v58, %v4938_v28  ;;  %v8570_v58 = vld [vmem:[%s14801_s1 + $0x180] ss:$12 sps:$4 sm:$0xff]  }
 0xf79   : > { %v4904_v57 = vpop.permute.xlu0 %4903  ;;  %5139 = vmatprep.subr.bf16.mxu0 %v4922_v10  ;;  %v4954_v30 = vmul.f32 %v9069_v12, %v4949_v6  ;;  %v4961_v45 = vpack.c.bf16 %v4946_v49, %v4945_v56  ;;  %v8576_v56 = vld [vmem:[%s14801_s1 + $0x188] ss:$12 sps:$4 sm:$0xff]  }
 0xf7a   : > { %v4908_v47 = vsel %vm519_vm11, %v4896_v3, %v4904_v57  ;;  %v4912_v38 = vsel %vm519_vm11, %v4904_v57, %v4896_v3 }
 0xf7b   : > { %v4919_v39 = vmul.f32 %v8886_v16, %v4908_v47  ;;  %v4920_v31 = vmul.f32 %v4912_v38, %v9073_v23  ;;  %v4934_v42 = vpop.permute.xlu1 %4933  ;;  %v4962_v3 = vpack.c.bf16 %v4956_v21, %v4954_v30 }
 0xf7c   : > { %5140 = vmatpush1.bf16.msra.mxu0 %v4921_v32 }
 0xf7d   : > { %v4923_v29 = vpack.c.bf16 %v4919_v39, %v4917_v27  ;;  %v4936_v8 = vpop.permute.xlu0 %4935  ;;  %v4924_v13 = vpack.c.bf16 %v4920_v31, %v4918_v0 }
 0xf7f   : > { %v4942_v50 = vpop.permute.xlu1 %4941  ;;  %5141 = vmatprep.subr.bf16.mxu0 %v4924_v13 }
 0xf80   : > { %v4951_v46 = vsel %vm560_vm12, %v4942_v50, %v4934_v42  ;;  %5142 = vmatpush1.bf16.msra.mxu0 %v4923_v29  ;;  %v4947_v5 = vsel %vm560_vm12, %v4934_v42, %v4942_v50  ;;  %v8577_v50 = vld [vmem:[%s14801_s1 + $0x1a0] ss:$12 sps:$4 sm:$0xff]  }
 0xf81   : > { %v4944_v44 = vpop.permute.xlu0 %4943  ;;  %5143 = vmatprep.subr.bf16.mxu0 %v4962_v3  ;;  %v4958_v51 = vmul.f32 %v9069_v12, %v4951_v46 }
 0xf82   : > { %v4952_v35 = vsel %vm560_vm12, %v4944_v44, %v4936_v8  ;;  %v4948_v62 = vsel %vm560_vm12, %v4936_v8, %v4944_v44 }
 0xf83   : > { %v4960_v52 = vmul.f32 %v9069_v12, %v4952_v35  ;;  %v4970_v55 = vpop.permute.xlu1 %4969  ;;  %v4963_v53 = vpack.c.bf16 %v4948_v62, %v4947_v5 }
 0xf84   : > { %5144 = vmatpush1.bf16.msra.mxu0 %v4961_v45 }
 0xf85   : > { %v4972_v48 = vpop.permute.xlu0 %4971  ;;  %v4964_v36 = vpack.c.bf16 %v4960_v52, %v4958_v51 }
 0xf87   : > { %v4978_v25 = vpop.permute.xlu1 %4977  ;;  %5145 = vmatprep.subr.bf16.mxu0 %v4964_v36 }
 0xf88   : > { %v4985_v43 = vsel %vm601_vm13, %v4970_v55, %v4978_v25  ;;  %v4989_v26 = vsel %vm601_vm13, %v4978_v25, %v4970_v55  ;;  %5146 = vmatpush1.bf16.msra.mxu0 %v4963_v53 }
 0xf89   : > { %v4980_v37 = vpop.permute.xlu0 %4979  ;;  %v4993_v60 = vmul.f32 %v8973_v11, %v4985_v43  ;;  %v4994_v4 = vmul.f32 %v4989_v26, %v9114_v59 }
 0xf8a   : > { %v4986_v40 = vsel %vm601_vm13, %v4972_v48, %v4980_v37  ;;  %v4990_v61 = vsel %vm601_vm13, %v4980_v37, %v4972_v48 }
 0xf8b   : > { %v4995_v28 = vmul.f32 %v8973_v11, %v4986_v40  ;;  %v4996_v10 = vmul.f32 %v4990_v61, %v9114_v59  ;;  %v4974_v1 = vpop.permute.xlu1 %4973  ;;  %5148 = vmatmul.mubr.bf16.vlgmr.msra.gmra.mrb[48].mxu0 %v8570_v58 }
 0xf8c   : > { %5157 = vmatprep.mubr.bf16.mxu0 %v8573_v14 }
 0xf8d   : > { %v5001_v6 = vpack.c.bf16 %v4995_v28, %v4993_v60  ;;  %v4976_v32 = vpop.permute.xlu0 %4975  ;;  %v5002_v57 = vpack.c.bf16 %v4996_v10, %v4994_v4 }
 0xf8f   : > { %v4982_v27 = vpop.permute.xlu1 %4981  ;;  %5168 = vmatprep.subr.bf16.mxu0 %v5002_v57  ;;  %v8189_v57 = vld [vmem:[%s14802_s2 + $0x128] sm:$0xff] }
 0xf90   : > { %v4987_v47 = vsel %vm601_vm13, %v4974_v1, %v4982_v27  ;;  %v4991_v38 = vsel %vm601_vm13, %v4982_v27, %v4974_v1  ;;  %5169 = vmatpush1.bf16.msra.mxu0 %v5001_v6  ;;  %v8188_v6 = vld [vmem:[%s14802_s2 + $0x120] sm:$0xff] }
 0xf91   : > { %v4984_v0 = vpop.permute.xlu0 %4983  ;;  %v4997_v31 = vmul.f32 %v8973_v11, %v4987_v47  ;;  %v4998_v42 = vmul.f32 %v4991_v38, %v9114_v59  ;;  %v8191_v38 = vld [vmem:[%s14802_s2 + $0x138] sm:$0xff] }
 0xf92   : > { %v4988_v30 = vsel %vm601_vm13, %v4976_v32, %v4984_v0  ;;  %v4992_v39 = vsel %vm601_vm13, %v4984_v0, %v4976_v32 }
 0xf93   : > { %v4999_v21 = vmul.f32 %v8973_v11, %v4988_v30  ;;  %v5000_v29 = vmul.f32 %v4992_v39, %v9114_v59  ;;  %5158 = vmatmul.mubr.bf16.gmra.mrb[52].mxu0 %v8575_v24  ;;  %v8190_v24 = vld [vmem:[%s14802_s2 + $0x130] sm:$0xff] }
 0xf94   : > { %5200 = vmatprep.mubr.bf16.mxu0 %v14812_v2 }
 0xf95   : > { %v5003_v8 = vpack.c.bf16 %v4999_v21, %v4997_v31  ;;  %v5004_v13 = vpack.c.bf16 %v5000_v29, %v4998_v42 }
 0xf97   : > { %5170 = vmatprep.subr.bf16.mxu0 %v5004_v13 }
 0xf98   : > { %5171 = vmatpush1.bf16.msra.mxu0 %v5003_v8  ;;  %v14814_v8 = vld [vmem:[#allocation3_spill] sm:$0xff] }
 0xf9b   : > { %8178 = vmatmul.mubr.msk.bf16.vlgmr.msra.gmra.mrb[48].mxu0 %vm724_vm14, %v8576_v56 }
 0xf9c   : > { %5210 = vmatprep.mubr.bf16.mxu0 %v14812_v2 }
 0xfa0   : > { %v5062_v3 = vpop.permute.xlu1 %5061 }
 0xfa2   : > { %v5067_v45 = vpop.permute.xlu0 %5066 }
 0xfa3   : > { %8179 = vmatmul.mubr.msk.bf16.gmra.mrb[52].mxu0 %vm724_vm14, %v8577_v50 }
0x106e   : > { %v5202_v46 = vpop.f32.mrb[48].mxu0 }
0x106f   : > { %v8366_v49 = vadd.f32 %v5202_v46, %v5062_v3  ;;  %v5204_v44 = vpop.f32.mrb[49].mxu0 }
0x1070   : > { %v5206_v35 = vpop.f32.mrb[50].mxu0 }
0x1071   : > { %v12753_v51 = vadd.f32 %v8366_v49, %v11877_v19  ;;  %v8368_v62 = vadd.f32 %v5206_v35, %v5067_v45  ;;  %v5208_v52 = vpop.f32.mrb[51].mxu0  ;;  %v8367_v19 = vadd.f32 %v5204_v44, %v5062_v3 }
0x1073   : > { %v12756_v55 = vadd.f32 %v8368_v62, %v11880_v54  ;;  %5229 = vrot.lane.b32.xlu1 %v12753_v51, %s8686_s21  ;;  %v8369_v54 = vadd.f32 %v5208_v52, %v5067_v45  ;;  %v12777_v25 = vadd.f32 %v8367_v19, %v11901_v41  ;;  %v5072_v41 = vpop.permute.xlu1 %5071 }
0x1075   : > { %5231 = vrot.lane.b32.xlu0 %v12756_v55, %s8686_s21  ;;  %v12782_v58 = vadd.f32 %v8369_v54, %v11906_v22  ;;  %v5077_v22 = vpop.permute.xlu0 %5076 }
0x1076   : > { %v5212_v5 = vpop.f32.mrb[52].mxu0 }
0x1077   : > { %v5214_v48 = vpop.f32.mrb[53].mxu0  ;;  %5269 = vrot.lane.b32.xlu1 %v12753_v51, %s8687_s22  ;;  %v8370_v43 = vadd.f32 %v5212_v5, %v5072_v41 }
0x1078   : > { %v5216_v36 = vpop.f32.mrb[54].mxu0 }
0x1079   : > { %v5218_v53 = vpop.f32.mrb[55].mxu0  ;;  %5271 = vrot.lane.b32.xlu0 %v12756_v55, %s8687_s22  ;;  %v8372_v26 = vadd.f32 %v5216_v36, %v5077_v22  ;;  %v12799_v14 = vadd.f32 %v8370_v43, %v11923_v63  ;;  %v8371_v63 = vadd.f32 %v5214_v48, %v5072_v41 }
0x107b   : > { %5309 = vrot.lane.b32.xlu1 %v12753_v51, %s8688_s23  ;;  %v12804_v37 = vadd.f32 %v8372_v26, %v11928_v15  ;;  %v8373_v15 = vadd.f32 %v5218_v53, %v5077_v22  ;;  %v12821_v40 = vadd.f32 %v8371_v63, %v11945_v7  ;;  %v8580_v7 = vld [vmem:[%s14801_s1 + $0x1b4] ss:$12 sps:$4 sm:$0xff]  }
0x107c   : > { %5695 = vmatprep.mubr.bf16.mxu1 %v8580_v7 }
0x107d   : > { %5311 = vrot.lane.b32.xlu0 %v12756_v55, %s8688_s23  ;;  %v12826_v61 = vadd.f32 %v8373_v15, %v11950_v18 }
0x107f   : > { %5349 = vrot.lane.b32.xlu1 %v12753_v51, %s8689_s24 }
0x1081   : > { %5351 = vrot.lane.b32.xlu0 %v12756_v55, %s8689_s24 }
0x1083   : > { %5397 = vrot.lane.b32.xlu1 %v12753_v51, %s8690_s25 }
0x1085   : > { %5399 = vrot.lane.b32.xlu0 %v12756_v55, %s8690_s25 }
0x1087   : > { %5237 = vrot.lane.b32.xlu1 %v12777_v25, %s8686_s21 }
0x1089   : > { %5239 = vrot.lane.b32.xlu0 %v12782_v58, %s8686_s21 }
0x108b   : > { %5277 = vrot.lane.b32.xlu1 %v12777_v25, %s8687_s22 }
0x108d   : > { %5279 = vrot.lane.b32.xlu0 %v12782_v58, %s8687_s22 }
0x108f   : > { %5317 = vrot.lane.b32.xlu1 %v12777_v25, %s8688_s23 }
0x1091   : > { %5319 = vrot.lane.b32.xlu0 %v12782_v58, %s8688_s23 }
0x1093   : > { %5357 = vrot.lane.b32.xlu1 %v12777_v25, %s8689_s24 }
0x1095   : > { %5359 = vrot.lane.b32.xlu0 %v12782_v58, %s8689_s24 }
0x1097   : > { %5233 = vrot.lane.b32.xlu1 %v12799_v14, %s8686_s21 }
0x1099   : > { %5235 = vrot.lane.b32.xlu0 %v12804_v37, %s8686_s21 }
0x109b   : > { %5273 = vrot.lane.b32.xlu1 %v12799_v14, %s8687_s22 }
0x109d   : > { %5275 = vrot.lane.b32.xlu0 %v12804_v37, %s8687_s22 }
0x109f   : > { %5313 = vrot.lane.b32.xlu1 %v12799_v14, %s8688_s23 }
0x10a1   : > { %5315 = vrot.lane.b32.xlu0 %v12804_v37, %s8688_s23 }
0x10a3   : > { %5353 = vrot.lane.b32.xlu1 %v12799_v14, %s8689_s24 }
0x10a5   : > { %5355 = vrot.lane.b32.xlu0 %v12804_v37, %s8689_s24 }
0x10a7   : > { %5241 = vrot.lane.b32.xlu1 %v12821_v40, %s8686_s21 }
0x10a9   : > { %5243 = vrot.lane.b32.xlu0 %v12826_v61, %s8686_s21 }
0x10ab   : > { %5405 = vrot.lane.b32.xlu1 %v12777_v25, %s8690_s25 }
0x10ad   : > { %5407 = vrot.lane.b32.xlu0 %v12782_v58, %s8690_s25 }
0x10af   : > { %5281 = vrot.lane.b32.xlu1 %v12821_v40, %s8687_s22 }
0x10b1   : > { %5283 = vrot.lane.b32.xlu0 %v12826_v61, %s8687_s22 }
0x10b3   : > { %5321 = vrot.lane.b32.xlu1 %v12821_v40, %s8688_s23 }
0x10b5   : > { %5403 = vrot.lane.b32.xlu0 %v12804_v37, %s8690_s25 }
0x10b7   : > { %5361 = vrot.lane.b32.xlu1 %v12821_v40, %s8689_s24 }
0x10b9   : > { %5323 = vrot.lane.b32.xlu0 %v12826_v61, %s8688_s23 }
0x10bb   : > { %5401 = vrot.lane.b32.xlu1 %v12799_v14, %s8690_s25 }
0x10bd   : > { %5439 = vrot.lane.b32.xlu0 %v12756_v55, %s8691_s26 }
0x10bf   : > { %5409 = vrot.lane.b32.xlu1 %v12821_v40, %s8690_s25 }
0x10c1   : > { %5363 = vrot.lane.b32.xlu0 %v12826_v61, %s8689_s24 }
0x10c3   : > { %5437 = vrot.lane.b32.xlu1 %v12753_v51, %s8691_s26 }
0x10c5   : > { %5447 = vrot.lane.b32.xlu0 %v12782_v58, %s8691_s26 }
0x10c7   : > { %5445 = vrot.lane.b32.xlu1 %v12777_v25, %s8691_s26 }
0x10c9   : > { %5443 = vrot.lane.b32.xlu0 %v12804_v37, %s8691_s26 }
0x10cb   : > { %5441 = vrot.lane.b32.xlu1 %v12799_v14, %s8691_s26 }
0x10cd   : > { %5479 = vrot.lane.b32.xlu0 %v12756_v55, %s8692_s27 }
0x10cf   : > { %5449 = vrot.lane.b32.xlu1 %v12821_v40, %s8691_s26 }
0x10d1   : > { %5411 = vrot.lane.b32.xlu0 %v12826_v61, %s8690_s25 }
0x10d3   : > { %5477 = vrot.lane.b32.xlu1 %v12753_v51, %s8692_s27 }
0x10d5   : > { %5487 = vrot.lane.b32.xlu0 %v12782_v58, %s8692_s27 }
0x10d7   : > { %5485 = vrot.lane.b32.xlu1 %v12777_v25, %s8692_s27 }
0x10d9   : > { %5451 = vrot.lane.b32.xlu0 %v12826_v61, %s8691_s26 }
0x10db   : > { %5481 = vrot.lane.b32.xlu1 %v12799_v14, %s8692_s27 }
0x10dd   : > { %5483 = vrot.lane.b32.xlu0 %v12804_v37, %s8692_s27 }
0x10df   : > { %5489 = vrot.lane.b32.xlu1 %v12821_v40, %s8692_s27 }
0x10e1   : > { %5491 = vrot.lane.b32.xlu0 %v12826_v61, %s8692_s27 }
0x10e3   : > { %5517 = vrot.lane.b32.xlu1 %v12753_v51, %s8693_s28 }
0x10e5   : > { %5519 = vrot.lane.b32.xlu0 %v12756_v55, %s8693_s28  ;;  %v5230_v18 = vpop.permute.xlu1 %5229 }
0x10e7   : > { %v5232_v60 = vpop.permute.xlu0 %5231  ;;  %5525 = vrot.lane.b32.xlu1 %v12777_v25, %s8693_s28 }
0x10e9   : > { %5527 = vrot.lane.b32.xlu0 %v12782_v58, %s8693_s28  ;;  %v12899_v4 = vpop.permute.xlu1 %5269 }
0x10eb   : > { %v5272_v28 = vpop.permute.xlu0 %5271  ;;  %5521 = vrot.lane.b32.xlu1 %v12799_v14, %s8693_s28 }
0x10ed   : > { %5523 = vrot.lane.b32.xlu0 %v12804_v37, %s8693_s28  ;;  %v12905_v10 = vpop.permute.xlu1 %5309 }
0x10ef   : > { %v12907_v1 = vpop.permute.xlu0 %5311  ;;  %5529 = vrot.lane.b32.xlu1 %v12821_v40, %s8693_s28 }
0x10f1   : > { %5531 = vrot.lane.b32.xlu0 %v12826_v61, %s8693_s28  ;;  %v12916_v32 = vpop.permute.xlu1 %5349 }
0x10f3   : > { %v12921_v27 = vpop.permute.xlu0 %5351  ;;  %5609 = vperm.xlu1 %8505, %v8188_v6  }
0x10f5   : > { %5614 = vperm.xlu0 %8504, %v8189_v57   ;;  %v12926_v47 = vpop.permute.xlu1 %5397 }
0x10f7   : > { %v12931_v0 = vpop.permute.xlu0 %5399  ;;  %5619 = vperm.xlu1 %8505, %v8190_v24  }
0x10f9   : > { %5624 = vperm.xlu0 %8504, %v8191_v38   ;;  %v5238_v30 = vpop.permute.xlu1 %5237 }
0x10fa   : > { %v5245_v39 = vsel %vm306_vm2, %v5230_v18, %v5238_v30  ;;  %v5249_v31 = vsel %vm306_vm2, %v5238_v30, %v5230_v18 }
0x10fb   : > { %v5240_v42 = vpop.permute.xlu0 %5239  ;;  %v5253_v13 = vmul.f32 %v5249_v31, %v14814_v8  ;;  %v5254_v56 = vmul.f32 %v8896_v20, %v5245_v39 }
0x10fc   : > { %v5246_v21 = vsel %vm306_vm2, %v5232_v60, %v5240_v42  ;;  %v5250_v29 = vsel %vm306_vm2, %v5240_v42, %v5232_v60 }
0x10fd   : > { %v5255_v50 = vmul.f32 %v5250_v29, %v14814_v8  ;;  %v5256_v3 = vmul.f32 %v8896_v20, %v5246_v21  ;;  %v5278_v46 = vpop.permute.xlu1 %5277 }
0x10fe   : > { %v5289_v31 = vsel %vm347_vm4, %v5278_v46, %v12899_v4 }
0x10ff   : > { %v5261_v49 = vpack.c.bf16 %v5255_v50, %v5253_v13  ;;  %v5280_v44 = vpop.permute.xlu0 %5279  ;;  %v5262_v45 = vpack.c.bf16 %v5256_v3, %v5254_v56  ;;  %v5285_v50 = vsel %vm347_vm4, %v12899_v4, %v5278_v46  ;;  %v5293_v3 = vmul.f32 %v8889_v17, %v5289_v31 }
0x1100   : > { %v5290_v18 = vsel %vm347_vm4, %v5280_v44, %v5272_v28  ;;  %v5286_v42 = vsel %vm347_vm4, %v5272_v28, %v5280_v44 }
0x1101   : > { %5663 = vmatprep.subr.bf16.mxu1 %v5262_v45  ;;  %v5318_v35 = vpop.permute.xlu1 %5317  ;;  %v5295_v21 = vmul.f32 %v8889_v17, %v5290_v18  ;;  %v5302_v45 = vpack.c.bf16 %v5286_v42, %v5285_v50 }
0x1102   : > { %5664 = vmatpush1.bf16.msra.mxu1 %v5261_v49 }
0x1103   : > { %v5320_v62 = vpop.permute.xlu0 %5319  ;;  %v5301_v44 = vpack.c.bf16 %v5295_v21, %v5293_v3 }
0x1104   : > { %v5330_v4 = vsel %vm388_vm7, %v5320_v62, %v12907_v1 }
0x1105   : > { %v12945_v52 = vpop.permute.xlu1 %5357 }
0x1107   : > { %v12947_v5 = vpop.permute.xlu0 %5359 }
0x1108   : > { %v5370_v50 = vsel %vm429_vm8, %v12947_v5, %v12921_v27 }
0x1109   : > { %v5234_v48 = vpop.permute.xlu1 %5233 }
0x110b   : > { %v5236_v36 = vpop.permute.xlu0 %5235 }
0x110d   : > { %v5274_v53 = vpop.permute.xlu1 %5273 }
0x110f   : > { %v5276_v19 = vpop.permute.xlu0 %5275 }
0x1111   : > { %v5314_v54 = vpop.permute.xlu1 %5313 }
0x1113   : > { %v12949_v41 = vpop.permute.xlu0 %5315 }
0x1115   : > { %v12951_v43 = vpop.permute.xlu1 %5353 }
0x1117   : > { %v12953_v22 = vpop.permute.xlu0 %5355 }
0x1119   : > { %v5242_v26 = vpop.permute.xlu1 %5241 }
0x111a   : > { %v5247_v63 = vsel %vm306_vm2, %v5234_v48, %v5242_v26  ;;  %v5251_v15 = vsel %vm306_vm2, %v5242_v26, %v5234_v48  ;;  %v5326_v48 = vsel %vm388_vm7, %v12907_v1, %v5320_v62  ;;  %v5329_v1 = vsel %vm388_vm7, %v5318_v35, %v12905_v10 }
0x111b   : > { %v5244_v7 = vpop.permute.xlu0 %5243  ;;  %v5257_v57 = vmul.f32 %v5251_v15, %v14814_v8  ;;  %v5258_v24 = vmul.f32 %v8896_v20, %v5247_v63 }
0x111c   : > { %v5248_v60 = vsel %vm306_vm2, %v5236_v36, %v5244_v7  ;;  %v5252_v6 = vsel %vm306_vm2, %v5244_v7, %v5236_v36  ;;  %v5325_v36 = vsel %vm388_vm7, %v12905_v10, %v5318_v35  ;;  %v5336_v7 = vmul.f32 %v8983_v34, %v5326_v48 }
0x111d   : > { %v5259_v38 = vmul.f32 %v5252_v6, %v14814_v8  ;;  %v5260_v30 = vmul.f32 %v8896_v20, %v5248_v60  ;;  %v12969_v39 = vpop.permute.xlu1 %5405  ;;  %v5334_v62 = vmul.f32 %v8983_v34, %v5325_v36 }
0x111f   : > { %v5263_v29 = vpack.c.bf16 %v5259_v38, %v5257_v57  ;;  %v12977_v13 = vpop.permute.xlu0 %5407  ;;  %v5264_v56 = vpack.c.bf16 %v5260_v30, %v5258_v24  ;;  %v5366_v30 = vsel %vm429_vm8, %v12921_v27, %v12947_v5  ;;  %v5342_v42 = vpack.c.bf16 %v5336_v7, %v5334_v62 }
0x1120   : > { %v5376_v3 = vmul.f32 %v8896_v20, %v5366_v30  ;;  %v5369_v27 = vsel %vm429_vm8, %v12945_v52, %v12916_v32 }
0x1121   : > { %5665 = vmatprep.subr.bf16.mxu1 %v5264_v56  ;;  %v5282_v49 = vpop.permute.xlu1 %5281  ;;  %v5373_v7 = vmul.f32 %v8886_v16, %v5369_v27 }
0x1122   : > { %v5291_v28 = vsel %vm347_vm4, %v5282_v49, %v5274_v53  ;;  %5666 = vmatpush1.bf16.msra.mxu1 %v5263_v29  ;;  %v5287_v46 = vsel %vm347_vm4, %v5274_v53, %v5282_v49  ;;  %v5335_v53 = vmul.f32 %v5330_v4, %v8979_v33  ;;  %v5365_v29 = vsel %vm429_vm8, %v12916_v32, %v12945_v52 }
0x1123   : > { %v5284_v26 = vpop.permute.xlu0 %5283  ;;  %5667 = vmatprep.subr.bf16.mxu1 %v5302_v45  ;;  %v5297_v18 = vmul.f32 %v8889_v17, %v5291_v28  ;;  %v5374_v5 = vmul.f32 %v8896_v20, %v5365_v29  ;;  %v5414_v29 = vsel %vm478_vm9, %v12931_v0, %v12977_v13 }
0x1124   : > { %v5288_v63 = vsel %vm347_vm4, %v5276_v19, %v5284_v26  ;;  %v5292_v15 = vsel %vm347_vm4, %v5284_v26, %v5276_v19  ;;  %v5333_v19 = vmul.f32 %v5329_v1, %v8979_v33 }
0x1125   : > { %v5299_v60 = vmul.f32 %v8889_v17, %v5292_v15  ;;  %v5322_v6 = vpop.permute.xlu1 %5321  ;;  %v5304_v57 = vpack.c.bf16 %v5288_v63, %v5287_v46  ;;  %v5375_v46 = vmul.f32 %v8886_v16, %v5370_v50  ;;  %v5382_v15 = vpack.c.bf16 %v5376_v3, %v5374_v5 }
0x1126   : > { %5668 = vmatpush1.bf16.msra.mxu1 %v5301_v44  ;;  %v5327_v10 = vsel %vm388_vm7, %v5314_v54, %v5322_v6  ;;  %v5331_v35 = vsel %vm388_vm7, %v5322_v6, %v5314_v54  ;;  %v5341_v21 = vpack.c.bf16 %v5335_v53, %v5333_v19 }
0x1127   : > { %v5303_v24 = vpack.c.bf16 %v5299_v60, %v5297_v18  ;;  %v13008_v38 = vpop.permute.xlu0 %5403  ;;  %5669 = vmatprep.subr.bf16.mxu1 %v5304_v57  ;;  %v5337_v45 = vmul.f32 %v5331_v35, %v8979_v33  ;;  %v5338_v48 = vmul.f32 %v8983_v34, %v5327_v10  ;;  %v5381_v60 = vpack.c.bf16 %v5375_v46, %v5373_v7 }
0x1128   : > { %v5390_v10 = vpack.c.bf16 %v12782_v58, %v12777_v25 }
0x1129   : > { %v5362_v31 = vpop.permute.xlu1 %5361 }
0x112a   : > { %5670 = vmatpush1.bf16.msra.mxu1 %v5303_v24  ;;  %v5367_v18 = vsel %vm429_vm8, %v12951_v43, %v5362_v31  ;;  %v5371_v32 = vsel %vm429_vm8, %v5362_v31, %v12951_v43 }
0x112b   : > { %v5324_v56 = vpop.permute.xlu0 %5323  ;;  %5671 = vmatprep.subr.bf16.mxu1 %v5342_v42  ;;  %v5377_v1 = vmul.f32 %v8886_v16, %v5371_v32  ;;  %v5378_v62 = vmul.f32 %v8896_v20, %v5367_v18 }
0x112c   : > { %v5328_v54 = vsel %vm388_vm7, %v12949_v41, %v5324_v56  ;;  %v5332_v49 = vsel %vm388_vm7, %v5324_v56, %v12949_v41  ;;  %v5389_v56 = vpack.c.bf16 %v12756_v55, %v12753_v51 }
0x112d   : > { %v5339_v28 = vmul.f32 %v5332_v49, %v8979_v33  ;;  %v5340_v44 = vmul.f32 %v8983_v34, %v5328_v54  ;;  %v5402_v36 = vpop.permute.xlu1 %5401  ;;  %v5392_v54 = vpack.c.bf16 %v12826_v61, %v12821_v40  ;;  %v5413_v49 = vsel %vm478_vm9, %v12926_v47, %v12969_v39 }
0x112e   : > { %5672 = vmatpush1.bf16.msra.mxu1 %v5341_v21  ;;  %v5417_v21 = vsel %vm478_vm9, %v12969_v39, %v12926_v47 }
0x112f   : > { %v5343_v26 = vpack.c.bf16 %v5339_v28, %v5337_v45  ;;  %v13043_v4 = vpop.permute.xlu0 %5439  ;;  %v5344_v41 = vpack.c.bf16 %v5340_v44, %v5338_v48  ;;  %v5422_v45 = vmul.f32 %v8983_v34, %v5417_v21  ;;  %v5423_v48 = vmul.f32 %v8973_v11, %v5414_v29 }
0x1130   : > { %v5391_v28 = vpack.c.bf16 %v12804_v37, %v12799_v14  ;;  %v5421_v44 = vmul.f32 %v8973_v11, %v5413_v49 }
0x1131   : > { %5673 = vmatprep.subr.bf16.mxu1 %v5344_v41  ;;  %v5410_v63 = vpop.permute.xlu1 %5409 }
0x1132   : > { %5674 = vmatpush1.bf16.msra.mxu1 %v5343_v26  ;;  %v5419_v47 = vsel %vm478_vm9, %v5410_v63, %v5402_v36  ;;  %v5429_v26 = vpack.c.bf16 %v5423_v48, %v5421_v44 }
0x1133   : > { %v5364_v52 = vpop.permute.xlu0 %5363  ;;  %5675 = vmatprep.subr.bf16.mxu1 %v5382_v15  ;;  %v5426_v18 = vmul.f32 %v8983_v34, %v5419_v47 }
0x1134   : > { %v5368_v6 = vsel %vm429_vm8, %v12953_v22, %v5364_v52  ;;  %v5372_v57 = vsel %vm429_vm8, %v5364_v52, %v12953_v22  ;;  %v5418_v22 = vsel %vm478_vm9, %v12977_v13, %v12931_v0  ;;  %v5415_v13 = vsel %vm478_vm9, %v5402_v36, %v5410_v63 }
0x1135   : > { %v5379_v53 = vmul.f32 %v8886_v16, %v5372_v57  ;;  %v5380_v43 = vmul.f32 %v8896_v20, %v5368_v6  ;;  %v5438_v24 = vpop.permute.xlu1 %5437  ;;  %v5424_v50 = vmul.f32 %v8983_v34, %v5418_v22  ;;  %v5425_v41 = vmul.f32 %v8973_v11, %v5415_v13 }
0x1136   : > { %5676 = vmatpush1.bf16.msra.mxu1 %v5381_v60 }
0x1137   : > { %v5383_v19 = vpack.c.bf16 %v5379_v53, %v5377_v1  ;;  %v5448_v30 = vpop.permute.xlu0 %5447  ;;  %v5384_v31 = vpack.c.bf16 %v5380_v43, %v5378_v62  ;;  %v5430_v5 = vpack.c.bf16 %v5424_v50, %v5422_v45 }
0x1138   : > { %v5458_v15 = vsel %vm519_vm11, %v5448_v30, %v13043_v4  ;;  %v5454_v57 = vsel %vm519_vm11, %v13043_v4, %v5448_v30 }
0x1139   : > { %5677 = vmatprep.subr.bf16.mxu1 %v5384_v31  ;;  %v5446_v42 = vpop.permute.xlu1 %5445  ;;  %v5464_v1 = vmul.f32 %v5458_v15, %v9073_v23 }
0x113a   : > { %5678 = vmatpush1.bf16.msra.mxu1 %v5383_v19  ;;  %v5457_v39 = vsel %vm519_vm11, %v5446_v42, %v5438_v24  ;;  %v5453_v7 = vsel %vm519_vm11, %v5438_v24, %v5446_v42  ;;  %v5463_v24 = vmul.f32 %v8886_v16, %v5454_v57  ;;  %v8578_v57 = vld [vmem:[%s14801_s1 + $0x1b0] ss:$12 sps:$4 sm:$0xff]  }
0x113b   : > { %v5444_v35 = vpop.permute.xlu0 %5443  ;;  %5679 = vmatprep.subr.bf16.mxu1 %v5390_v10  ;;  %v5462_v32 = vmul.f32 %v5457_v39, %v9073_v23  ;;  %v5461_v62 = vmul.f32 %v8886_v16, %v5453_v7 }
0x113d   : > { %v5442_v3 = vpop.permute.xlu1 %5441  ;;  %v5470_v42 = vpack.c.bf16 %v5464_v1, %v5462_v32  ;;  %v5469_v30 = vpack.c.bf16 %v5463_v24, %v5461_v62 }
0x113e   : > { %5680 = vmatpush1.bf16.msra.mxu1 %v5389_v56 }
0x113f   : > { %v5480_v0 = vpop.permute.xlu0 %5479  ;;  %5681 = vmatprep.subr.bf16.mxu1 %v5392_v54 }
0x1141   : > { %v5450_v27 = vpop.permute.xlu1 %5449 }
0x1142   : > { %5682 = vmatpush1.bf16.msra.mxu1 %v5391_v28  ;;  %v5455_v19 = vsel %vm519_vm11, %v5442_v3, %v5450_v27  ;;  %v5459_v10 = vsel %vm519_vm11, %v5450_v27, %v5442_v3 }
0x1143   : > { %v5412_v46 = vpop.permute.xlu0 %5411  ;;  %5683 = vmatprep.subr.bf16.mxu1 %v5430_v5  ;;  %v5465_v21 = vmul.f32 %v8886_v16, %v5455_v19  ;;  %v5466_v3 = vmul.f32 %v5459_v10, %v9073_v23 }
0x1144   : > { %v5416_v36 = vsel %vm478_vm9, %v13008_v38, %v5412_v46  ;;  %v5420_v63 = vsel %vm478_vm9, %v5412_v46, %v13008_v38 }
0x1145   : > { %v5427_v52 = vmul.f32 %v8973_v11, %v5416_v36  ;;  %v5428_v60 = vmul.f32 %v8983_v34, %v5420_v63  ;;  %v5478_v6 = vpop.permute.xlu1 %5477 }
0x1146   : > { %5684 = vmatpush1.bf16.msra.mxu1 %v5429_v26 }
0x1147   : > { %v5431_v53 = vpack.c.bf16 %v5427_v52, %v5425_v41  ;;  %v5488_v38 = vpop.permute.xlu0 %5487  ;;  %v5432_v43 = vpack.c.bf16 %v5428_v60, %v5426_v18 }
0x1148   : > { %v5498_v29 = vsel %vm560_vm12, %v5488_v38, %v5480_v0  ;;  %v5494_v26 = vsel %vm560_vm12, %v5480_v0, %v5488_v38 }
0x1149   : > { %v5486_v31 = vpop.permute.xlu1 %5485  ;;  %5685 = vmatprep.subr.bf16.mxu1 %v5432_v43  ;;  %v5504_v13 = vmul.f32 %v9069_v12, %v5498_v29 }
0x114a   : > { %v5497_v4 = vsel %vm560_vm12, %v5486_v31, %v5478_v6  ;;  %5686 = vmatpush1.bf16.msra.mxu1 %v5431_v53  ;;  %v5493_v5 = vsel %vm560_vm12, %v5478_v6, %v5486_v31  ;;  %v8581_v53 = vld [vmem:[%s14801_s1 + $0x1cc] ss:$12 sps:$4 sm:$0xff]  }
0x114b   : > { %v5452_v22 = vpop.permute.xlu0 %5451  ;;  %5687 = vmatprep.subr.bf16.mxu1 %v5470_v42  ;;  %v5502_v54 = vmul.f32 %v9069_v12, %v5497_v4  ;;  %v5509_v46 = vpack.c.bf16 %v5494_v26, %v5493_v5 }
0x114c   : > { %v5456_v56 = vsel %vm519_vm11, %v5444_v35, %v5452_v22  ;;  %v5460_v50 = vsel %vm519_vm11, %v5452_v22, %v5444_v35 }
0x114d   : > { %v5467_v49 = vmul.f32 %v8886_v16, %v5456_v56  ;;  %v5468_v45 = vmul.f32 %v5460_v50, %v9073_v23  ;;  %v5482_v48 = vpop.permute.xlu1 %5481  ;;  %v5510_v35 = vpack.c.bf16 %v5504_v13, %v5502_v54  ;;  %v8583_v56 = vld [vmem:[%s14801_s1 + $0x1c8] ss:$12 sps:$4 sm:$0xff]  }
0x114e   : > { %5688 = vmatpush1.bf16.msra.mxu1 %v5469_v30 }
0x114f   : > { %v5471_v28 = vpack.c.bf16 %v5467_v49, %v5465_v21  ;;  %v5484_v44 = vpop.permute.xlu0 %5483  ;;  %v5472_v27 = vpack.c.bf16 %v5468_v45, %v5466_v3 }
0x1151   : > { %v5490_v47 = vpop.permute.xlu1 %5489  ;;  %5689 = vmatprep.subr.bf16.mxu1 %v5472_v27 }
0x1152   : > { %v5499_v39 = vsel %vm560_vm12, %v5490_v47, %v5482_v48  ;;  %5690 = vmatpush1.bf16.msra.mxu1 %v5471_v28  ;;  %v5495_v32 = vsel %vm560_vm12, %v5482_v48, %v5490_v47  ;;  %v8584_v47 = vld [vmem:[%s14801_s1 + $0x1b8] ss:$12 sps:$4 sm:$0xff]  }
0x1153   : > { %v5492_v41 = vpop.permute.xlu0 %5491  ;;  %5691 = vmatprep.subr.bf16.mxu1 %v5510_v35  ;;  %v5506_v7 = vmul.f32 %v9069_v12, %v5499_v39  ;;  %v8585_v35 = vld [vmem:[%s14801_s1 + $0x1d0] ss:$12 sps:$4 sm:$0xff]  }
0x1154   : > { %v5500_v15 = vsel %vm560_vm12, %v5492_v41, %v5484_v44  ;;  %v5496_v36 = vsel %vm560_vm12, %v5484_v44, %v5492_v41 }
0x1155   : > { %v5508_v63 = vmul.f32 %v9069_v12, %v5500_v15  ;;  %v5518_v18 = vpop.permute.xlu1 %5517  ;;  %v5511_v60 = vpack.c.bf16 %v5496_v36, %v5495_v32 }
0x1156   : > { %5692 = vmatpush1.bf16.msra.mxu1 %v5509_v46 }
0x1157   : > { %v5520_v52 = vpop.permute.xlu0 %5519  ;;  %v5512_v0 = vpack.c.bf16 %v5508_v63, %v5506_v7 }
0x1159   : > { %v5526_v6 = vpop.permute.xlu1 %5525  ;;  %5693 = vmatprep.subr.bf16.mxu1 %v5512_v0 }
0x115a   : > { %v5533_v1 = vsel %vm601_vm13, %v5518_v18, %v5526_v6  ;;  %v5537_v62 = vsel %vm601_vm13, %v5526_v6, %v5518_v18  ;;  %5694 = vmatpush1.bf16.msra.mxu1 %v5511_v60 }
0x115b   : > { %v5528_v38 = vpop.permute.xlu0 %5527  ;;  %v5541_v19 = vmul.f32 %v8973_v11, %v5533_v1  ;;  %v5542_v31 = vmul.f32 %v5537_v62, %v9114_v59 }
0x115c   : > { %v5534_v43 = vsel %vm601_vm13, %v5520_v52, %v5528_v38  ;;  %v5538_v24 = vsel %vm601_vm13, %v5528_v38, %v5520_v52 }
0x115d   : > { %v5543_v42 = vmul.f32 %v8973_v11, %v5534_v43  ;;  %v5544_v10 = vmul.f32 %v5538_v24, %v9114_v59  ;;  %v5522_v4 = vpop.permute.xlu1 %5521  ;;  %5696 = vmatmul.mubr.bf16.vlgmr.msra.gmra.mrb[40].mxu1 %v8578_v57 }
0x115e   : > { %5705 = vmatprep.mubr.bf16.mxu1 %v8581_v53 }
0x115f   : > { %v5549_v30 = vpack.c.bf16 %v5543_v42, %v5541_v19  ;;  %v5524_v22 = vpop.permute.xlu0 %5523  ;;  %v5550_v21 = vpack.c.bf16 %v5544_v10, %v5542_v31 }
0x1161   : > { %v5530_v29 = vpop.permute.xlu1 %5529  ;;  %5716 = vmatprep.subr.bf16.mxu1 %v5550_v21  ;;  %v8588_v21 = vld [vmem:[%s14801_s1 + $0x1e4] ss:$12 sps:$4 sm:$0xff]  }
0x1162   : > { %v5535_v50 = vsel %vm601_vm13, %v5522_v4, %v5530_v29  ;;  %v5539_v3 = vsel %vm601_vm13, %v5530_v29, %v5522_v4  ;;  %5717 = vmatpush1.bf16.msra.mxu1 %v5549_v30  ;;  %6243 = vmatprep.mubr.bf16.mxu0 %v8588_v21 }
0x1163   : > { %v5532_v54 = vpop.permute.xlu0 %5531  ;;  %v5545_v48 = vmul.f32 %v8973_v11, %v5535_v50  ;;  %v5546_v13 = vmul.f32 %v5539_v3, %v9114_v59 }
0x1164   : > { %v5536_v49 = vsel %vm601_vm13, %v5524_v22, %v5532_v54  ;;  %v5540_v45 = vsel %vm601_vm13, %v5532_v54, %v5524_v22 }
0x1165   : > { %v5547_v28 = vmul.f32 %v8973_v11, %v5536_v49  ;;  %v5548_v44 = vmul.f32 %v5540_v45, %v9114_v59  ;;  %5706 = vmatmul.mubr.bf16.gmra.mrb[44].mxu1 %v8583_v56  ;;  %v8208_v45 = vld [vmem:[%s14802_s2 + $0x140] sm:$0xff] }
0x1166   : > { %5748 = vmatprep.mubr.bf16.mxu1 %v14812_v2 }
0x1167   : > { %v5551_v27 = vpack.c.bf16 %v5547_v28, %v5545_v48  ;;  %v5552_v5 = vpack.c.bf16 %v5548_v44, %v5546_v13  ;;  %v8209_v13 = vld [vmem:[%s14802_s2 + $0x148] sm:$0xff]  ;;  %v8210_v44 = vld [vmem:[%s14802_s2 + $0x150] sm:$0xff] }
0x1169   : > { %5718 = vmatprep.subr.bf16.mxu1 %v5552_v5  ;;  %v8211_v5 = vld [vmem:[%s14802_s2 + $0x158] sm:$0xff] }
0x116a   : > { %5719 = vmatpush1.bf16.msra.mxu1 %v5551_v27 }
0x116d   : > { %8198 = vmatmul.mubr.msk.bf16.vlgmr.msra.gmra.mrb[40].mxu1 %vm724_vm14, %v8584_v47 }
0x116e   : > { %5758 = vmatprep.mubr.bf16.mxu1 %v14812_v2 }
0x1172   : > { %v5610_v39 = vpop.permute.xlu1 %5609 }
0x1174   : > { %v5615_v15 = vpop.permute.xlu0 %5614 }
0x1175   : > { %8199 = vmatmul.mubr.msk.bf16.gmra.mrb[44].mxu1 %vm724_vm14, %v8585_v35  ;;  %v6325_v35 = vld [vmem:[%s14803_s3] sm:$0xff] }
0x1176   : > { %v5620_v38 = vpop.permute.xlu1 %5619 }
0x1178   : > { %v5625_v24 = vpop.permute.xlu0 %5624 }
0x1240   : > { %v5750_v26 = vpop.f32.mrb[40].mxu1 }
0x1241   : > { %v8374_v41 = vadd.f32 %v5750_v26, %v5610_v39  ;;  %v5752_v46 = vpop.f32.mrb[41].mxu1 }
0x1242   : > { %v5754_v7 = vpop.f32.mrb[42].mxu1  ;;  %v8375_v57 = vadd.f32 %v5752_v46, %v5610_v39  ;;  %v6326_v46 = vld [vmem:[%s14803_s3 + $0x8] sm:$0xff] }
0x1243   : > { %v13194_v36 = vmax.f32 %v8374_v41, 0.0  ;;  %v8376_v63 = vadd.f32 %v5754_v7, %v5615_v15  ;;  %v5756_v18 = vpop.f32.mrb[43].mxu1 }
0x1244   : > { %v8377_v1 = vadd.f32 %v5756_v18, %v5615_v15  ;;  %v13216_v62 = vmax.f32 %v8375_v57, 0.0  ;;  %v8220_v18 = vld [vmem:[%s14803_s3 + $0x20] sm:$0xff] }
0x1245   : > { %v13196_v32 = vmax.f32 %v8376_v63, 0.0  ;;  %5777 = vrot.lane.b32.xlu1 %v13194_v36, %s8686_s21 }
0x1246   : > { %v13220_v53 = vmax.f32 %v8377_v1, 0.0  ;;  %v8221_v1 = vld [vmem:[%s14803_s3 + $0x28] sm:$0xff] }
0x1247   : > { %5779 = vrot.lane.b32.xlu0 %v13196_v32, %s8686_s21 }
0x1248   : > { %v5760_v52 = vpop.f32.mrb[44].mxu1 }
0x1249   : > { %v5762_v0 = vpop.f32.mrb[45].mxu1  ;;  %5817 = vrot.lane.b32.xlu1 %v13194_v36, %s8687_s22  ;;  %v8378_v43 = vadd.f32 %v5760_v52, %v5620_v38 }
0x124a   : > { %v5764_v60 = vpop.f32.mrb[46].mxu1  ;;  %v8379_v10 = vadd.f32 %v5762_v0, %v5620_v38 }
0x124b   : > { %v5766_v6 = vpop.f32.mrb[47].mxu1  ;;  %5819 = vrot.lane.b32.xlu0 %v13196_v32, %s8687_s22  ;;  %v8380_v19 = vadd.f32 %v5764_v60, %v5625_v24  ;;  %v13236_v31 = vmax.f32 %v8378_v43, 0.0 }
0x124c   : > { %v8381_v4 = vadd.f32 %v5766_v6, %v5625_v24  ;;  %v13256_v30 = vmax.f32 %v8379_v10, 0.0 }
0x124d   : > { %5857 = vrot.lane.b32.xlu1 %v13194_v36, %s8688_s23  ;;  %v13240_v42 = vmax.f32 %v8380_v19, 0.0  ;;  %v6327_v19 = vld [vmem:[%s14803_s3 + $0x10] sm:$0xff] }
0x124e   : > { %v13260_v22 = vmax.f32 %v8381_v4, 0.0  ;;  %v6328_v4 = vld [vmem:[%s14803_s3 + $0x18] sm:$0xff] }
0x124f   : > { %5859 = vrot.lane.b32.xlu0 %v13196_v32, %s8688_s23 }
0x1251   : > { %5897 = vrot.lane.b32.xlu1 %v13194_v36, %s8689_s24 }
0x1253   : > { %5899 = vrot.lane.b32.xlu0 %v13196_v32, %s8689_s24 }
0x1255   : > { %5945 = vrot.lane.b32.xlu1 %v13194_v36, %s8690_s25 }
0x1257   : > { %5947 = vrot.lane.b32.xlu0 %v13196_v32, %s8690_s25 }
0x1259   : > { %5785 = vrot.lane.b32.xlu1 %v13216_v62, %s8686_s21 }
0x125b   : > { %5787 = vrot.lane.b32.xlu0 %v13220_v53, %s8686_s21 }
0x125d   : > { %5825 = vrot.lane.b32.xlu1 %v13216_v62, %s8687_s22 }
0x125f   : > { %5827 = vrot.lane.b32.xlu0 %v13220_v53, %s8687_s22 }
0x1261   : > { %5865 = vrot.lane.b32.xlu1 %v13216_v62, %s8688_s23 }
0x1263   : > { %5867 = vrot.lane.b32.xlu0 %v13220_v53, %s8688_s23 }
0x1265   : > { %5905 = vrot.lane.b32.xlu1 %v13216_v62, %s8689_s24 }
0x1267   : > { %5907 = vrot.lane.b32.xlu0 %v13220_v53, %s8689_s24 }
0x1269   : > { %5781 = vrot.lane.b32.xlu1 %v13236_v31, %s8686_s21 }
0x126b   : > { %5783 = vrot.lane.b32.xlu0 %v13240_v42, %s8686_s21 }
0x126d   : > { %5821 = vrot.lane.b32.xlu1 %v13236_v31, %s8687_s22 }
0x126f   : > { %5823 = vrot.lane.b32.xlu0 %v13240_v42, %s8687_s22 }
0x1271   : > { %5861 = vrot.lane.b32.xlu1 %v13236_v31, %s8688_s23 }
0x1273   : > { %5863 = vrot.lane.b32.xlu0 %v13240_v42, %s8688_s23 }
0x1275   : > { %5901 = vrot.lane.b32.xlu1 %v13236_v31, %s8689_s24 }
0x1277   : > { %5903 = vrot.lane.b32.xlu0 %v13240_v42, %s8689_s24 }
0x1279   : > { %5789 = vrot.lane.b32.xlu1 %v13256_v30, %s8686_s21 }
0x127b   : > { %5791 = vrot.lane.b32.xlu0 %v13260_v22, %s8686_s21 }
0x127d   : > { %5953 = vrot.lane.b32.xlu1 %v13216_v62, %s8690_s25 }
0x127f   : > { %5955 = vrot.lane.b32.xlu0 %v13220_v53, %s8690_s25 }
0x1281   : > { %5829 = vrot.lane.b32.xlu1 %v13256_v30, %s8687_s22 }
0x1283   : > { %5831 = vrot.lane.b32.xlu0 %v13260_v22, %s8687_s22 }
0x1285   : > { %5869 = vrot.lane.b32.xlu1 %v13256_v30, %s8688_s23 }
0x1287   : > { %5951 = vrot.lane.b32.xlu0 %v13240_v42, %s8690_s25 }
0x1289   : > { %5909 = vrot.lane.b32.xlu1 %v13256_v30, %s8689_s24 }
0x128b   : > { %5871 = vrot.lane.b32.xlu0 %v13260_v22, %s8688_s23 }
0x128d   : > { %5949 = vrot.lane.b32.xlu1 %v13236_v31, %s8690_s25 }
0x128f   : > { %5987 = vrot.lane.b32.xlu0 %v13196_v32, %s8691_s26 }
0x1291   : > { %5957 = vrot.lane.b32.xlu1 %v13256_v30, %s8690_s25 }
0x1293   : > { %5911 = vrot.lane.b32.xlu0 %v13260_v22, %s8689_s24 }
0x1295   : > { %5985 = vrot.lane.b32.xlu1 %v13194_v36, %s8691_s26 }
0x1297   : > { %5995 = vrot.lane.b32.xlu0 %v13220_v53, %s8691_s26 }
0x1299   : > { %5993 = vrot.lane.b32.xlu1 %v13216_v62, %s8691_s26 }
0x129b   : > { %5991 = vrot.lane.b32.xlu0 %v13240_v42, %s8691_s26 }
0x129d   : > { %5989 = vrot.lane.b32.xlu1 %v13236_v31, %s8691_s26 }
0x129f   : > { %6027 = vrot.lane.b32.xlu0 %v13196_v32, %s8692_s27 }
0x12a1   : > { %5997 = vrot.lane.b32.xlu1 %v13256_v30, %s8691_s26 }
0x12a3   : > { %5959 = vrot.lane.b32.xlu0 %v13260_v22, %s8690_s25 }
0x12a5   : > { %6025 = vrot.lane.b32.xlu1 %v13194_v36, %s8692_s27 }
0x12a7   : > { %6035 = vrot.lane.b32.xlu0 %v13220_v53, %s8692_s27 }
0x12a9   : > { %6033 = vrot.lane.b32.xlu1 %v13216_v62, %s8692_s27 }
0x12ab   : > { %5999 = vrot.lane.b32.xlu0 %v13260_v22, %s8691_s26 }
0x12ad   : > { %6029 = vrot.lane.b32.xlu1 %v13236_v31, %s8692_s27 }
0x12af   : > { %6031 = vrot.lane.b32.xlu0 %v13240_v42, %s8692_s27 }
0x12b1   : > { %6037 = vrot.lane.b32.xlu1 %v13256_v30, %s8692_s27 }
0x12b3   : > { %6039 = vrot.lane.b32.xlu0 %v13260_v22, %s8692_s27 }
0x12b5   : > { %6065 = vrot.lane.b32.xlu1 %v13194_v36, %s8693_s28 }
0x12b7   : > { %6067 = vrot.lane.b32.xlu0 %v13196_v32, %s8693_s28  ;;  %v5778_v29 = vpop.permute.xlu1 %5777 }
0x12b9   : > { %v5780_v56 = vpop.permute.xlu0 %5779  ;;  %6073 = vrot.lane.b32.xlu1 %v13216_v62, %s8693_s28 }
0x12bb   : > { %6075 = vrot.lane.b32.xlu0 %v13220_v53, %s8693_s28  ;;  %v13333_v50 = vpop.permute.xlu1 %5817 }
0x12bd   : > { %v13335_v3 = vpop.permute.xlu0 %5819  ;;  %6069 = vrot.lane.b32.xlu1 %v13236_v31, %s8693_s28 }
0x12bf   : > { %6071 = vrot.lane.b32.xlu0 %v13240_v42, %s8693_s28  ;;  %v13341_v54 = vpop.permute.xlu1 %5857 }
0x12c1   : > { %v13343_v49 = vpop.permute.xlu0 %5859  ;;  %6077 = vrot.lane.b32.xlu1 %v13256_v30, %s8693_s28 }
0x12c3   : > { %6079 = vrot.lane.b32.xlu0 %v13260_v22, %s8693_s28  ;;  %v13352_v48 = vpop.permute.xlu1 %5897 }
0x12c5   : > { %v13357_v28 = vpop.permute.xlu0 %5899  ;;  %6157 = vperm.xlu1 %8505, %v8208_v45   ;;  %v8223_v45 = vld [vmem:[%s14803_s3 + $0x38] sm:$0xff] }
0x12c7   : > { %6162 = vperm.xlu0 %8504, %v8209_v13   ;;  %v13362_v27 = vpop.permute.xlu1 %5945 }
0x12c9   : > { %v13367_v47 = vpop.permute.xlu0 %5947  ;;  %6167 = vperm.xlu1 %8505, %v8210_v44  }
0x12cb   : > { %6172 = vperm.xlu0 %8504, %v8211_v5   ;;  %v5786_v39 = vpop.permute.xlu1 %5785 }
0x12cc   : > { %v5793_v26 = vsel %vm306_vm2, %v5778_v29, %v5786_v39  ;;  %v5797_v41 = vsel %vm306_vm2, %v5786_v39, %v5778_v29  ;;  %v8222_v29 = vld [vmem:[%s14803_s3 + $0x30] sm:$0xff] }
0x12cd   : > { %v5788_v15 = vpop.permute.xlu0 %5787  ;;  %6331 = vperm.xlu1 %8505, %v6325_v35   ;;  %v5801_v52 = vmul.f32 %v5797_v41, %v14814_v8  ;;  %v5802_v0 = vmul.f32 %v8896_v20, %v5793_v26 }
0x12ce   : > { %v5794_v7 = vsel %vm306_vm2, %v5780_v56, %v5788_v15  ;;  %v5798_v63 = vsel %vm306_vm2, %v5788_v15, %v5780_v56 }
0x12cf   : > { %v5803_v60 = vmul.f32 %v5798_v63, %v14814_v8  ;;  %v5804_v6 = vmul.f32 %v8896_v20, %v5794_v7  ;;  %6336 = vperm.xlu0 %8504, %v6326_v46   ;;  %v5826_v57 = vpop.permute.xlu1 %5825 }
0x12d1   : > { %v5809_v38 = vpack.c.bf16 %v5803_v60, %v5801_v52  ;;  %v5828_v43 = vpop.permute.xlu0 %5827  ;;  %6364 = vperm.xlu1 %8505, %v8220_v18   ;;  %v5810_v24 = vpack.c.bf16 %v5804_v6, %v5802_v0 }
0x12d2   : > { %v5838_v0 = vsel %vm347_vm4, %v5828_v43, %v13335_v3 }
0x12d3   : > { %6369 = vperm.xlu0 %8504, %v8221_v1   ;;  %6211 = vmatprep.subr.bf16.mxu0 %v5810_v24  ;;  %v5866_v10 = vpop.permute.xlu1 %5865 }
0x12d4   : > { %6212 = vmatpush1.bf16.msra.mxu0 %v5809_v38 }
0x12d5   : > { %v5868_v21 = vpop.permute.xlu0 %5867  ;;  %6341 = vperm.xlu1 %8505, %v6327_v19  }
0x12d7   : > { %6346 = vperm.xlu0 %8504, %v6328_v4   ;;  %v13402_v56 = vpop.permute.xlu1 %5905 }
0x12d9   : > { %v13407_v13 = vpop.permute.xlu0 %5907  ;;  %6374 = vperm.xlu1 %8505, %v8222_v29   ;;  %v5837_v29 = vsel %vm347_vm4, %v5826_v57, %v13333_v50 }
0x12db   : > { %6379 = vperm.xlu0 %8504, %v8223_v45   ;;  %v5782_v44 = vpop.permute.xlu1 %5781  ;;  %v5834_v45 = vsel %vm347_vm4, %v13335_v3, %v5828_v43 }
0x12dd   : > { %v5784_v5 = vpop.permute.xlu0 %5783 }
0x12df   : > { %v5822_v35 = vpop.permute.xlu1 %5821 }
0x12e1   : > { %v5824_v39 = vpop.permute.xlu0 %5823 }
0x12e3   : > { %v5862_v26 = vpop.permute.xlu1 %5861 }
0x12e5   : > { %v13409_v41 = vpop.permute.xlu0 %5863 }
0x12e7   : > { %v13411_v46 = vpop.permute.xlu1 %5901 }
0x12e9   : > { %v13413_v15 = vpop.permute.xlu0 %5903 }
0x12eb   : > { %v5790_v7 = vpop.permute.xlu1 %5789 }
0x12ec   : > { %v5795_v63 = vsel %vm306_vm2, %v5782_v44, %v5790_v7  ;;  %v5799_v18 = vsel %vm306_vm2, %v5790_v7, %v5782_v44  ;;  %v5843_v44 = vmul.f32 %v8889_v17, %v5838_v0  ;;  %v5873_v0 = vsel %vm388_vm7, %v13341_v54, %v5866_v10 }
0x12ed   : > { %v5792_v52 = vpop.permute.xlu0 %5791  ;;  %v5805_v1 = vmul.f32 %v5799_v18, %v14814_v8  ;;  %v5806_v38 = vmul.f32 %v8896_v20, %v5795_v63  ;;  %v5833_v18 = vsel %vm347_vm4, %v13333_v50, %v5826_v57  ;;  %v5878_v50 = vsel %vm388_vm7, %v5868_v21, %v13343_v49 }
0x12ee   : > { %v5796_v60 = vsel %vm306_vm2, %v5784_v5, %v5792_v52  ;;  %v5800_v6 = vsel %vm306_vm2, %v5792_v52, %v5784_v5  ;;  %v5841_v52 = vmul.f32 %v8889_v17, %v5837_v29 }
0x12ef   : > { %v5807_v24 = vmul.f32 %v5800_v6, %v14814_v8  ;;  %v5808_v19 = vmul.f32 %v8896_v20, %v5796_v60  ;;  %v13430_v4 = vpop.permute.xlu1 %5953  ;;  %v5850_v6 = vpack.c.bf16 %v5834_v45, %v5833_v18  ;;  %v5874_v8 = vsel %vm388_vm7, %v13343_v49, %v5868_v21 }
0x12f0   : > { %v5849_v43 = vpack.c.bf16 %v5843_v44, %v5841_v52  ;;  %v5877_v49 = vsel %vm388_vm7, %v5866_v10, %v13341_v54  ;;  %v5882_v21 = vmul.f32 %v8983_v34, %v5873_v0  ;;  %v5918_v0 = vsel %vm429_vm8, %v13407_v13, %v13357_v28 }
0x12f1   : > { %v5811_v5 = vpack.c.bf16 %v5807_v24, %v5805_v1  ;;  %v13439_v7 = vpop.permute.xlu0 %5955  ;;  %v5812_v63 = vpack.c.bf16 %v5808_v19, %v5806_v38  ;;  %v5884_v19 = vmul.f32 %v8983_v34, %v5874_v8  ;;  %v5881_v8 = vmul.f32 %v5877_v49, %v8979_v33 }
0x12f3   : > { %6213 = vmatprep.subr.bf16.mxu0 %v5812_v63  ;;  %v5830_v60 = vpop.permute.xlu1 %5829 }
0x12f4   : > { %v5839_v3 = vsel %vm347_vm4, %v5830_v60, %v5822_v35  ;;  %6214 = vmatpush1.bf16.msra.mxu0 %v5811_v5  ;;  %v5835_v57 = vsel %vm347_vm4, %v5822_v35, %v5830_v60  ;;  %v5883_v35 = vmul.f32 %v5878_v50, %v8979_v33  ;;  %v5890_v60 = vpack.c.bf16 %v5884_v19, %v5882_v21 }
0x12f5   : > { %v5832_v1 = vpop.permute.xlu0 %5831  ;;  %6215 = vmatprep.subr.bf16.mxu0 %v5850_v6  ;;  %v5845_v29 = vmul.f32 %v8889_v17, %v5839_v3  ;;  %v5913_v3 = vsel %vm429_vm8, %v13352_v48, %v13402_v56 }
0x12f6   : > { %v5836_v38 = vsel %vm347_vm4, %v5824_v39, %v5832_v1  ;;  %v5840_v24 = vsel %vm347_vm4, %v5832_v1, %v5824_v39  ;;  %v5914_v39 = vsel %vm429_vm8, %v13357_v28, %v13407_v13  ;;  %v5889_v6 = vpack.c.bf16 %v5883_v35, %v5881_v8 }
0x12f7   : > { %v5847_v45 = vmul.f32 %v8889_v17, %v5840_v24  ;;  %v5870_v44 = vpop.permute.xlu1 %5869  ;;  %v5852_v5 = vpack.c.bf16 %v5836_v38, %v5835_v57  ;;  %v5924_v1 = vmul.f32 %v8896_v20, %v5914_v39  ;;  %v5917_v28 = vsel %vm429_vm8, %v13402_v56, %v13352_v48 }
0x12f8   : > { %6216 = vmatpush1.bf16.msra.mxu0 %v5849_v43  ;;  %v5875_v54 = vsel %vm388_vm7, %v5862_v26, %v5870_v44  ;;  %v5879_v10 = vsel %vm388_vm7, %v5870_v44, %v5862_v26  ;;  %v5922_v13 = vmul.f32 %v8896_v20, %v5913_v3  ;;  %v5921_v35 = vmul.f32 %v8886_v16, %v5917_v28 }
0x12f9   : > { %v5851_v63 = vpack.c.bf16 %v5847_v45, %v5845_v29  ;;  %v13470_v18 = vpop.permute.xlu0 %5951  ;;  %6217 = vmatprep.subr.bf16.mxu0 %v5852_v5  ;;  %v5885_v57 = vmul.f32 %v5879_v10, %v8979_v33  ;;  %v5886_v38 = vmul.f32 %v8983_v34, %v5875_v54  ;;  %v5923_v5 = vmul.f32 %v8886_v16, %v5918_v0 }
0x12fa   : > { %v5930_v21 = vpack.c.bf16 %v5924_v1, %v5922_v13  ;;  %v5961_v28 = vsel %vm478_vm9, %v13362_v27, %v13430_v4 }
0x12fb   : > { %v5910_v52 = vpop.permute.xlu1 %5909  ;;  %v5929_v8 = vpack.c.bf16 %v5923_v5, %v5921_v35 }
0x12fc   : > { %6218 = vmatpush1.bf16.msra.mxu0 %v5851_v63  ;;  %v5915_v63 = vsel %vm429_vm8, %v13411_v46, %v5910_v52  ;;  %v5919_v48 = vsel %vm429_vm8, %v5910_v52, %v13411_v46 }
0x12fd   : > { %v5872_v43 = vpop.permute.xlu0 %5871  ;;  %6219 = vmatprep.subr.bf16.mxu0 %v5890_v60  ;;  %v5925_v54 = vmul.f32 %v8886_v16, %v5919_v48  ;;  %v5926_v10 = vmul.f32 %v8896_v20, %v5915_v63 }
0x12fe   : > { %v5876_v26 = vsel %vm388_vm7, %v13409_v41, %v5872_v43  ;;  %v5880_v50 = vsel %vm388_vm7, %v5872_v43, %v13409_v41 }
0x12ff   : > { %v5887_v24 = vmul.f32 %v5880_v50, %v8979_v33  ;;  %v5888_v19 = vmul.f32 %v8983_v34, %v5876_v26  ;;  %v5950_v29 = vpop.permute.xlu1 %5949  ;;  %v5938_v26 = vpack.c.bf16 %v13220_v53, %v13216_v62  ;;  %v5937_v62 = vpack.c.bf16 %v13196_v32, %v13194_v36 }
0x1300   : > { %6220 = vmatpush1.bf16.msra.mxu0 %v5889_v6  ;;  %v5939_v32 = vpack.c.bf16 %v13240_v42, %v13236_v31 }
0x1301   : > { %v5891_v45 = vpack.c.bf16 %v5887_v24, %v5885_v57  ;;  %v13505_v44 = vpop.permute.xlu0 %5987  ;;  %v5892_v41 = vpack.c.bf16 %v5888_v19, %v5886_v38  ;;  %v5965_v57 = vsel %vm478_vm9, %v13430_v4, %v13362_v27  ;;  %v5962_v38 = vsel %vm478_vm9, %v13367_v47, %v13439_v7 }
0x1302   : > { %v5940_v19 = vpack.c.bf16 %v13260_v22, %v13256_v30  ;;  %v5970_v13 = vmul.f32 %v8983_v34, %v5965_v57  ;;  %v5969_v30 = vmul.f32 %v8973_v11, %v5961_v28 }
0x1303   : > { %6221 = vmatprep.subr.bf16.mxu0 %v5892_v41  ;;  %v5958_v49 = vpop.permute.xlu1 %5957 }
0x1304   : > { %6222 = vmatpush1.bf16.msra.mxu0 %v5891_v45  ;;  %v5971_v45 = vmul.f32 %v8973_v11, %v5962_v38  ;;  %v5963_v36 = vsel %vm478_vm9, %v5950_v29, %v5958_v49  ;;  %v5967_v27 = vsel %vm478_vm9, %v5958_v49, %v5950_v29 }
0x1305   : > { %v5912_v56 = vpop.permute.xlu0 %5911  ;;  %6223 = vmatprep.subr.bf16.mxu0 %v5930_v21  ;;  %v5973_v5 = vmul.f32 %v8973_v11, %v5963_v36  ;;  %v5974_v35 = vmul.f32 %v8983_v34, %v5967_v27 }
0x1306   : > { %v5916_v39 = vsel %vm429_vm8, %v13413_v15, %v5912_v56  ;;  %v5920_v60 = vsel %vm429_vm8, %v5912_v56, %v13413_v15  ;;  %v5966_v15 = vsel %vm478_vm9, %v13439_v7, %v13367_v47  ;;  %v5977_v41 = vpack.c.bf16 %v5971_v45, %v5969_v30 }
0x1307   : > { %v5927_v6 = vmul.f32 %v8886_v16, %v5920_v60  ;;  %v5928_v46 = vmul.f32 %v8896_v20, %v5916_v39  ;;  %v5986_v52 = vpop.permute.xlu1 %5985  ;;  %v5972_v53 = vmul.f32 %v8983_v34, %v5966_v15 }
0x1308   : > { %6224 = vmatpush1.bf16.msra.mxu0 %v5929_v8 }
0x1309   : > { %v5931_v3 = vpack.c.bf16 %v5927_v6, %v5925_v54  ;;  %v5996_v43 = vpop.permute.xlu0 %5995  ;;  %v5932_v0 = vpack.c.bf16 %v5928_v46, %v5926_v10  ;;  %v5978_v7 = vpack.c.bf16 %v5972_v53, %v5970_v13 }
0x130a   : > { %v6006_v31 = vsel %vm519_vm11, %v5996_v43, %v13505_v44  ;;  %v6002_v39 = vsel %vm519_vm11, %v13505_v44, %v5996_v43 }
0x130b   : > { %6225 = vmatprep.subr.bf16.mxu0 %v5932_v0  ;;  %v5994_v1 = vpop.permute.xlu1 %5993  ;;  %v6012_v60 = vmul.f32 %v6006_v31, %v9073_v23  ;;  %v6011_v46 = vmul.f32 %v8886_v16, %v6002_v39 }
0x130c   : > { %6226 = vmatpush1.bf16.msra.mxu0 %v5931_v3  ;;  %v6005_v4 = vsel %vm519_vm11, %v5994_v1, %v5986_v52  ;;  %v6001_v42 = vsel %vm519_vm11, %v5986_v52, %v5994_v1 }
0x130d   : > { %v5992_v50 = vpop.permute.xlu0 %5991  ;;  %6227 = vmatprep.subr.bf16.mxu0 %v5938_v26  ;;  %v6010_v63 = vmul.f32 %v6005_v4, %v9073_v23  ;;  %v6009_v54 = vmul.f32 %v8886_v16, %v6001_v42 }
0x130f   : > { %v5990_v24 = vpop.permute.xlu1 %5989  ;;  %v6018_v0 = vpack.c.bf16 %v6012_v60, %v6010_v63  ;;  %v6017_v43 = vpack.c.bf16 %v6011_v46, %v6009_v54  ;;  %v8589_v54 = vld [vmem:[%s14801_s1 + $0x1fc] ss:$12 sps:$4 sm:$0xff]  }
0x1310   : > { %6228 = vmatpush1.bf16.msra.mxu0 %v5937_v62 }
0x1311   : > { %v6028_v47 = vpop.permute.xlu0 %6027  ;;  %6229 = vmatprep.subr.bf16.mxu0 %v5940_v19 }
0x1313   : > { %v5998_v22 = vpop.permute.xlu1 %5997 }
0x1314   : > { %6230 = vmatpush1.bf16.msra.mxu0 %v5939_v32  ;;  %v6003_v52 = vsel %vm519_vm11, %v5990_v24, %v5998_v22  ;;  %v6007_v1 = vsel %vm519_vm11, %v5998_v22, %v5990_v24 }
0x1315   : > { %v5960_v21 = vpop.permute.xlu0 %5959  ;;  %6231 = vmatprep.subr.bf16.mxu0 %v5978_v7  ;;  %v6013_v15 = vmul.f32 %v8886_v16, %v6003_v52  ;;  %v6014_v53 = vmul.f32 %v6007_v1, %v9073_v23 }
0x1316   : > { %v5964_v29 = vsel %vm478_vm9, %v13470_v18, %v5960_v21  ;;  %v5968_v49 = vsel %vm478_vm9, %v5960_v21, %v13470_v18 }
0x1317   : > { %v5975_v48 = vmul.f32 %v8973_v11, %v5964_v29  ;;  %v5976_v56 = vmul.f32 %v8983_v34, %v5968_v49  ;;  %v6026_v8 = vpop.permute.xlu1 %6025 }
0x1318   : > { %6232 = vmatpush1.bf16.msra.mxu0 %v5977_v41 }
0x1319   : > { %v5979_v10 = vpack.c.bf16 %v5975_v48, %v5973_v5  ;;  %v6036_v18 = vpop.permute.xlu0 %6035  ;;  %v5980_v6 = vpack.c.bf16 %v5976_v56, %v5974_v35 }
0x131a   : > { %v6046_v57 = vsel %vm560_vm12, %v6036_v18, %v6028_v47  ;;  %v6042_v4 = vsel %vm560_vm12, %v6028_v47, %v6036_v18 }
0x131b   : > { %v6034_v3 = vpop.permute.xlu1 %6033  ;;  %6233 = vmatprep.subr.bf16.mxu0 %v5980_v6  ;;  %v6052_v45 = vmul.f32 %v9069_v12, %v6046_v57  ;;  %v8591_v57 = vld [vmem:[%s14801_s1 + $0x1f8] ss:$12 sps:$4 sm:$0xff]  }
0x131c   : > { %v6045_v44 = vsel %vm560_vm12, %v6034_v3, %v6026_v8  ;;  %6234 = vmatpush1.bf16.msra.mxu0 %v5979_v10  ;;  %v6041_v22 = vsel %vm560_vm12, %v6026_v8, %v6034_v3  ;;  %v8586_v8 = vld [vmem:[%s14801_s1 + $0x1e0] ss:$12 sps:$4 sm:$0xff]  }
0x131d   : > { %v6000_v26 = vpop.permute.xlu0 %5999  ;;  %6235 = vmatprep.subr.bf16.mxu0 %v6018_v0  ;;  %v6050_v24 = vmul.f32 %v9069_v12, %v6045_v44  ;;  %v6057_v5 = vpack.c.bf16 %v6042_v4, %v6041_v22  ;;  %v8592_v22 = vld [vmem:[%s14801_s1 + $0x1e8] ss:$12 sps:$4 sm:$0xff]  }
0x131e   : > { %v6004_v38 = vsel %vm519_vm11, %v5992_v50, %v6000_v26  ;;  %v6008_v62 = vsel %vm519_vm11, %v6000_v26, %v5992_v50 }
0x131f   : > { %v6015_v19 = vmul.f32 %v8886_v16, %v6004_v38  ;;  %v6016_v28 = vmul.f32 %v6008_v62, %v9073_v23  ;;  %v6030_v13 = vpop.permute.xlu1 %6029  ;;  %v6058_v50 = vpack.c.bf16 %v6052_v45, %v6050_v24 }
0x1320   : > { %6236 = vmatpush1.bf16.msra.mxu0 %v6017_v43 }
0x1321   : > { %v6019_v36 = vpack.c.bf16 %v6015_v19, %v6013_v15  ;;  %v6032_v32 = vpop.permute.xlu0 %6031  ;;  %v6020_v30 = vpack.c.bf16 %v6016_v28, %v6014_v53 }
0x1323   : > { %v6038_v7 = vpop.permute.xlu1 %6037  ;;  %6237 = vmatprep.subr.bf16.mxu0 %v6020_v30 }
0x1324   : > { %v6047_v27 = vsel %vm560_vm12, %v6038_v7, %v6030_v13  ;;  %6238 = vmatpush1.bf16.msra.mxu0 %v6019_v36  ;;  %v6043_v35 = vsel %vm560_vm12, %v6030_v13, %v6038_v7  ;;  %v8593_v7 = vld [vmem:[%s14801_s1 + $0x200] ss:$12 sps:$4 sm:$0xff]  }
0x1325   : > { %v6040_v41 = vpop.permute.xlu0 %6039  ;;  %6239 = vmatprep.subr.bf16.mxu0 %v6058_v50  ;;  %v6054_v31 = vmul.f32 %v9069_v12, %v6047_v27 }
0x1326   : > { %v6048_v21 = vsel %vm560_vm12, %v6040_v41, %v6032_v32  ;;  %v6044_v42 = vsel %vm560_vm12, %v6032_v32, %v6040_v41 }
0x1327   : > { %v6056_v29 = vmul.f32 %v9069_v12, %v6048_v21  ;;  %v6066_v49 = vpop.permute.xlu1 %6065  ;;  %v6059_v48 = vpack.c.bf16 %v6044_v42, %v6043_v35 }
0x1328   : > { %6240 = vmatpush1.bf16.msra.mxu0 %v6057_v5 }
0x1329   : > { %v6068_v63 = vpop.permute.xlu0 %6067  ;;  %v6060_v47 = vpack.c.bf16 %v6056_v29, %v6054_v31 }
0x132b   : > { %v6074_v56 = vpop.permute.xlu1 %6073  ;;  %6241 = vmatprep.subr.bf16.mxu0 %v6060_v47 }
0x132c   : > { %v6081_v39 = vsel %vm601_vm13, %v6066_v49, %v6074_v56  ;;  %v6085_v60 = vsel %vm601_vm13, %v6074_v56, %v6066_v49  ;;  %6242 = vmatpush1.bf16.msra.mxu0 %v6059_v48 }
0x132d   : > { %v6076_v10 = vpop.permute.xlu0 %6075  ;;  %v6089_v46 = vmul.f32 %v8973_v11, %v6081_v39  ;;  %v6090_v52 = vmul.f32 %v6085_v60, %v9114_v59 }
0x132e   : > { %v6082_v18 = vsel %vm601_vm13, %v6068_v63, %v6076_v10  ;;  %v6086_v6 = vsel %vm601_vm13, %v6076_v10, %v6068_v63 }
0x132f   : > { %v6091_v3 = vmul.f32 %v8973_v11, %v6082_v18  ;;  %v6092_v0 = vmul.f32 %v6086_v6, %v9114_v59  ;;  %v6070_v1 = vpop.permute.xlu1 %6069  ;;  %6244 = vmatmul.mubr.bf16.vlgmr.msra.gmra.mrb[56].mxu0 %v8586_v8 }
0x1330   : > { %6253 = vmatprep.mubr.bf16.mxu0 %v8589_v54 }
0x1331   : > { %v6097_v44 = vpack.c.bf16 %v6091_v3, %v6089_v46  ;;  %v6072_v43 = vpop.permute.xlu0 %6071  ;;  %v6098_v26 = vpack.c.bf16 %v6092_v0, %v6090_v52 }
0x1333   : > { %v6078_v15 = vpop.permute.xlu1 %6077  ;;  %6264 = vmatprep.subr.bf16.mxu0 %v6098_v26 }
0x1334   : > { %v6083_v38 = vsel %vm601_vm13, %v6070_v1, %v6078_v15  ;;  %v6087_v62 = vsel %vm601_vm13, %v6078_v15, %v6070_v1  ;;  %6265 = vmatpush1.bf16.msra.mxu0 %v6097_v44 }
0x1335   : > { %v6080_v53 = vpop.permute.xlu0 %6079  ;;  %v6093_v28 = vmul.f32 %v8973_v11, %v6083_v38  ;;  %v6094_v13 = vmul.f32 %v6087_v62, %v9114_v59 }
0x1336   : > { %v6084_v24 = vsel %vm601_vm13, %v6072_v43, %v6080_v53  ;;  %v6088_v19 = vsel %vm601_vm13, %v6080_v53, %v6072_v43 }
0x1337   : > { %v6095_v45 = vmul.f32 %v8973_v11, %v6084_v24  ;;  %v6096_v36 = vmul.f32 %v6088_v19, %v9114_v59  ;;  %6254 = vmatmul.mubr.bf16.gmra.mrb[60].mxu0 %v8591_v57 }
0x1338   : > { %6296 = vmatprep.mubr.bf16.mxu0 %v14812_v2 }
0x1339   : > { %v6099_v32 = vpack.c.bf16 %v6095_v45, %v6093_v28  ;;  %v6100_v30 = vpack.c.bf16 %v6096_v36, %v6094_v13 }
0x133b   : > { %6266 = vmatprep.subr.bf16.mxu0 %v6100_v30 }
0x133c   : > { %6267 = vmatpush1.bf16.msra.mxu0 %v6099_v32 }
0x133f   : > { %8218 = vmatmul.mubr.msk.bf16.vlgmr.msra.gmra.mrb[56].mxu0 %vm724_vm14, %v8592_v22 }
0x1340   : > { %6306 = vmatprep.mubr.bf16.mxu0 %v14812_v2 }
0x1344   : > { %v6158_v50 = vpop.permute.xlu1 %6157 }
0x1346   : > { %v6163_v27 = vpop.permute.xlu0 %6162 }
0x1347   : > { %8219 = vmatmul.mubr.msk.bf16.gmra.mrb[60].mxu0 %vm724_vm14, %v8593_v7 }
0x1348   : > { %v6168_v4 = vpop.permute.xlu1 %6167 }
0x134a   : > { %v6173_v41 = vpop.permute.xlu0 %6172 }
0x134c   : > { %v6332_v5 = vpop.permute.xlu1 %6331 }
0x134e   : > { %v6337_v29 = vpop.permute.xlu0 %6336 }
0x1350   : > { %v6365_v8 = vpop.permute.xlu1 %6364 }
0x1352   : > { %v6370_v54 = vpop.permute.xlu0 %6369 }
0x1354   : > { %v6342_v57 = vpop.permute.xlu1 %6341 }
0x1356   : > { %v6347_v62 = vpop.permute.xlu0 %6346 }
0x1358   : > { %v6375_v19 = vpop.permute.xlu1 %6374 }
0x135a   : > { %v6380_v28 = vpop.permute.xlu0 %6379 }
0x1412   : > { %v6298_v21 = vpop.f32.mrb[56].mxu0 }
0x1413   : > { %v8382_v31 = vadd.f32 %v6298_v21, %v6158_v50  ;;  %v6300_v42 = vpop.f32.mrb[57].mxu0 }
0x1414   : > { %v6302_v49 = vpop.f32.mrb[58].mxu0 }
0x1415   : > { %v6317_v35 = vadd.f32 %v8382_v31, %v12753_v51  ;;  %v8384_v63 = vadd.f32 %v6302_v49, %v6163_v27  ;;  %v6304_v47 = vpop.f32.mrb[59].mxu0  ;;  %v8383_v51 = vadd.f32 %v6300_v42, %v6158_v50  ;;  %v8232_v31 = vld [vmem:[%s14802_s2 + $0x160] sm:$0xff] }
0x1417   : > { %v6349_v48 = vmul.f32 %v6332_v5, %v6317_v35  ;;  %v6319_v56 = vadd.f32 %v8384_v63, %v12756_v55  ;;  %v8385_v55 = vadd.f32 %v6304_v47, %v6163_v27  ;;  %v6318_v3 = vadd.f32 %v8383_v51, %v12777_v25  ;;  %v8234_v35 = vld [vmem:[%s14802_s2 + $0x170] sm:$0xff]  ;;  %v8235_v47 = vld [vmem:[%s14802_s2 + $0x178] sm:$0xff]  ;;  %v8248_v51 = vld [vmem:[%s14803_s3 + $0x60] sm:$0xff] }
0x1419   : > { %v13658_v39 = vadd.f32 %v6365_v8, %v6349_v48  ;;  %v6351_v60 = vmul.f32 %v6337_v29, %v6319_v56  ;;  %v6320_v0 = vadd.f32 %v8385_v55, %v12782_v58  ;;  %v6350_v1 = vmul.f32 %v6332_v5, %v6318_v3  ;;  %v8244_v56 = vld [vmem:[%s14803_s3 + $0x40] sm:$0xff] }
0x141a   : > { %v6308_v10 = vpop.f32.mrb[60].mxu0  ;;  %v14815_v55 = vld [vmem:[#allocation3_spill] sm:$0xff] }
0x141b   : > { %v13660_v18 = vadd.f32 %v6370_v54, %v6351_v60  ;;  %v6310_v6 = vpop.f32.mrb[61].mxu0  ;;  %6390 = vrot.lane.b32.xlu1 %v13658_v39, %s8686_s21  ;;  %v6352_v44 = vmul.f32 %v6337_v29, %v6320_v0  ;;  %v13682_v43 = vadd.f32 %v6365_v8, %v6350_v1  ;;  %v8386_v58 = vadd.f32 %v6308_v10, %v6168_v4  ;;  %v8233_v29 = vld [vmem:[%s14802_s2 + $0x168] sm:$0xff] }
0x141c   : > { %v6312_v46 = vpop.f32.mrb[62].mxu0  ;;  %v8387_v13 = vadd.f32 %v6310_v6, %v6168_v4  ;;  %v8245_v10 = vld [vmem:[%s14803_s3 + $0x48] sm:$0xff] }
0x141d   : > { %v6314_v52 = vpop.f32.mrb[63].mxu0  ;;  %6392 = vrot.lane.b32.xlu0 %v13660_v18, %s8686_s21  ;;  %v13686_v25 = vadd.f32 %v6370_v54, %v6352_v44  ;;  %v8388_v26 = vadd.f32 %v6312_v46, %v6173_v41  ;;  %v6321_v15 = vadd.f32 %v8386_v58, %v12799_v14 }
0x141e   : > { %v8389_v45 = vadd.f32 %v6314_v52, %v6173_v41  ;;  %v6322_v36 = vadd.f32 %v8387_v13, %v12821_v40 }
0x141f   : > { %6430 = vrot.lane.b32.xlu1 %v13658_v39, %s8687_s22  ;;  %v6323_v38 = vadd.f32 %v8388_v26, %v12804_v37  ;;  %v6353_v53 = vmul.f32 %v6342_v57, %v6321_v15  ;;  %v8249_v26 = vld [vmem:[%s14803_s3 + $0x68] sm:$0xff] }
0x1420   : > { %v6324_v32 = vadd.f32 %v8389_v45, %v12826_v61  ;;  %v6354_v30 = vmul.f32 %v6342_v57, %v6322_v36  ;;  %v8596_v61 = vld [vmem:[%s14801_s1 + $0x214] ss:$12 sps:$4 sm:$0xff]   ;;  %v8251_v45 = vld [vmem:[%s14803_s3 + $0x78] sm:$0xff] }
0x1421   : > { %6432 = vrot.lane.b32.xlu0 %v13660_v18, %s8687_s22  ;;  %v6355_v24 = vmul.f32 %v6347_v62, %v6323_v38  ;;  %v13704_v14 = vadd.f32 %v6375_v19, %v6353_v53  ;;  %6856 = vmatprep.mubr.bf16.mxu1 %v8596_v61 }
0x1422   : > { %v6356_v22 = vmul.f32 %v6347_v62, %v6324_v32  ;;  %v13726_v7 = vadd.f32 %v6375_v19, %v6354_v30  ;;  %v8246_v62 = vld [vmem:[%s14803_s3 + $0x50] sm:$0xff] }
0x1423   : > { %6470 = vrot.lane.b32.xlu1 %v13658_v39, %s8688_s23  ;;  %v13708_v37 = vadd.f32 %v6380_v28, %v6355_v24  ;;  %v8247_v24 = vld [vmem:[%s14803_s3 + $0x58] sm:$0xff] }
0x1424   : > { %v13730_v40 = vadd.f32 %v6380_v28, %v6356_v22  ;;  %v8250_v28 = vld [vmem:[%s14803_s3 + $0x70] sm:$0xff] }
0x1425   : > { %6472 = vrot.lane.b32.xlu0 %v13660_v18, %s8688_s23 }
0x1427   : > { %6510 = vrot.lane.b32.xlu1 %v13658_v39, %s8689_s24 }
0x1429   : > { %6512 = vrot.lane.b32.xlu0 %v13660_v18, %s8689_s24 }
0x142b   : > { %6558 = vrot.lane.b32.xlu1 %v13658_v39, %s8690_s25 }
0x142d   : > { %6560 = vrot.lane.b32.xlu0 %v13660_v18, %s8690_s25 }
0x142f   : > { %6398 = vrot.lane.b32.xlu1 %v13682_v43, %s8686_s21 }
0x1431   : > { %6400 = vrot.lane.b32.xlu0 %v13686_v25, %s8686_s21 }
0x1433   : > { %6438 = vrot.lane.b32.xlu1 %v13682_v43, %s8687_s22 }
0x1435   : > { %6440 = vrot.lane.b32.xlu0 %v13686_v25, %s8687_s22 }
0x1437   : > { %6478 = vrot.lane.b32.xlu1 %v13682_v43, %s8688_s23 }
0x1439   : > { %6480 = vrot.lane.b32.xlu0 %v13686_v25, %s8688_s23 }
0x143b   : > { %6518 = vrot.lane.b32.xlu1 %v13682_v43, %s8689_s24 }
0x143d   : > { %6520 = vrot.lane.b32.xlu0 %v13686_v25, %s8689_s24 }
0x143f   : > { %6394 = vrot.lane.b32.xlu1 %v13704_v14, %s8686_s21 }
0x1441   : > { %6396 = vrot.lane.b32.xlu0 %v13708_v37, %s8686_s21 }
0x1443   : > { %6434 = vrot.lane.b32.xlu1 %v13704_v14, %s8687_s22 }
0x1445   : > { %6436 = vrot.lane.b32.xlu0 %v13708_v37, %s8687_s22 }
0x1447   : > { %6474 = vrot.lane.b32.xlu1 %v13704_v14, %s8688_s23 }
0x1449   : > { %6476 = vrot.lane.b32.xlu0 %v13708_v37, %s8688_s23 }
0x144b   : > { %6514 = vrot.lane.b32.xlu1 %v13704_v14, %s8689_s24 }
0x144d   : > { %6516 = vrot.lane.b32.xlu0 %v13708_v37, %s8689_s24 }
0x144f   : > { %6402 = vrot.lane.b32.xlu1 %v13726_v7, %s8686_s21 }
0x1451   : > { %6404 = vrot.lane.b32.xlu0 %v13730_v40, %s8686_s21 }
0x1453   : > { %6566 = vrot.lane.b32.xlu1 %v13682_v43, %s8690_s25 }
0x1455   : > { %6568 = vrot.lane.b32.xlu0 %v13686_v25, %s8690_s25 }
0x1457   : > { %6442 = vrot.lane.b32.xlu1 %v13726_v7, %s8687_s22 }
0x1459   : > { %6444 = vrot.lane.b32.xlu0 %v13730_v40, %s8687_s22 }
0x145b   : > { %6482 = vrot.lane.b32.xlu1 %v13726_v7, %s8688_s23 }
0x145d   : > { %6564 = vrot.lane.b32.xlu0 %v13708_v37, %s8690_s25 }
0x145f   : > { %6522 = vrot.lane.b32.xlu1 %v13726_v7, %s8689_s24 }
0x1461   : > { %6484 = vrot.lane.b32.xlu0 %v13730_v40, %s8688_s23 }
0x1463   : > { %6562 = vrot.lane.b32.xlu1 %v13704_v14, %s8690_s25 }
0x1465   : > { %6600 = vrot.lane.b32.xlu0 %v13660_v18, %s8691_s26 }
0x1467   : > { %6570 = vrot.lane.b32.xlu1 %v13726_v7, %s8690_s25 }
0x1469   : > { %6524 = vrot.lane.b32.xlu0 %v13730_v40, %s8689_s24 }
0x146b   : > { %6598 = vrot.lane.b32.xlu1 %v13658_v39, %s8691_s26 }
0x146d   : > { %6608 = vrot.lane.b32.xlu0 %v13686_v25, %s8691_s26 }
0x146f   : > { %6606 = vrot.lane.b32.xlu1 %v13682_v43, %s8691_s26 }
0x1471   : > { %6604 = vrot.lane.b32.xlu0 %v13708_v37, %s8691_s26 }
0x1473   : > { %6602 = vrot.lane.b32.xlu1 %v13704_v14, %s8691_s26 }
0x1475   : > { %6640 = vrot.lane.b32.xlu0 %v13660_v18, %s8692_s27 }
0x1477   : > { %6610 = vrot.lane.b32.xlu1 %v13726_v7, %s8691_s26 }
0x1479   : > { %6572 = vrot.lane.b32.xlu0 %v13730_v40, %s8690_s25 }
0x147b   : > { %6638 = vrot.lane.b32.xlu1 %v13658_v39, %s8692_s27 }
0x147d   : > { %6648 = vrot.lane.b32.xlu0 %v13686_v25, %s8692_s27 }
0x147f   : > { %6646 = vrot.lane.b32.xlu1 %v13682_v43, %s8692_s27 }
0x1481   : > { %6612 = vrot.lane.b32.xlu0 %v13730_v40, %s8691_s26 }
0x1483   : > { %6642 = vrot.lane.b32.xlu1 %v13704_v14, %s8692_s27 }
0x1485   : > { %6644 = vrot.lane.b32.xlu0 %v13708_v37, %s8692_s27 }
0x1487   : > { %6650 = vrot.lane.b32.xlu1 %v13726_v7, %s8692_s27 }
0x1489   : > { %6652 = vrot.lane.b32.xlu0 %v13730_v40, %s8692_s27 }
0x148b   : > { %6678 = vrot.lane.b32.xlu1 %v13658_v39, %s8693_s28 }
0x148d   : > { %6680 = vrot.lane.b32.xlu0 %v13660_v18, %s8693_s28  ;;  %v6391_v50 = vpop.permute.xlu1 %6390 }
0x148f   : > { %v6393_v27 = vpop.permute.xlu0 %6392  ;;  %6686 = vrot.lane.b32.xlu1 %v13682_v43, %s8693_s28 }
0x1491   : > { %6688 = vrot.lane.b32.xlu0 %v13686_v25, %s8693_s28  ;;  %v13803_v4 = vpop.permute.xlu1 %6430 }
0x1493   : > { %v13805_v41 = vpop.permute.xlu0 %6432  ;;  %6682 = vrot.lane.b32.xlu1 %v13704_v14, %s8693_s28 }
0x1495   : > { %6684 = vrot.lane.b32.xlu0 %v13708_v37, %s8693_s28  ;;  %v13811_v5 = vpop.permute.xlu1 %6470 }
0x1497   : > { %v13813_v21 = vpop.permute.xlu0 %6472  ;;  %6690 = vrot.lane.b32.xlu1 %v13726_v7, %s8693_s28 }
0x1499   : > { %6692 = vrot.lane.b32.xlu0 %v13730_v40, %s8693_s28  ;;  %v13822_v42 = vpop.permute.xlu1 %6510 }
0x149b   : > { %v13827_v49 = vpop.permute.xlu0 %6512  ;;  %6770 = vperm.xlu1 %8505, %v8232_v31  }
0x149d   : > { %6775 = vperm.xlu0 %8504, %v8233_v29   ;;  %v13832_v63 = vpop.permute.xlu1 %6558 }
0x149f   : > { %v13837_v48 = vpop.permute.xlu0 %6560  ;;  %6780 = vperm.xlu1 %8505, %v8234_v35  }
0x14a1   : > { %6785 = vperm.xlu0 %8504, %v8235_v47   ;;  %v6399_v8 = vpop.permute.xlu1 %6398 }
0x14a2   : > { %v6406_v60 = vsel %vm306_vm2, %v6391_v50, %v6399_v8  ;;  %v6410_v54 = vsel %vm306_vm2, %v6399_v8, %v6391_v50 }
0x14a3   : > { %v6401_v6 = vpop.permute.xlu0 %6400  ;;  %6945 = vperm.xlu1 %8505, %v8244_v56   ;;  %v6414_v3 = vmul.f32 %v6410_v54, %v14815_v55  ;;  %v6415_v0 = vmul.f32 %v8896_v20, %v6406_v60 }
0x14a4   : > { %v6407_v46 = vsel %vm306_vm2, %v6393_v27, %v6401_v6  ;;  %v6411_v52 = vsel %vm306_vm2, %v6401_v6, %v6393_v27 }
0x14a5   : > { %v6416_v1 = vmul.f32 %v6411_v52, %v14815_v55  ;;  %v6417_v44 = vmul.f32 %v8896_v20, %v6407_v46  ;;  %6950 = vperm.xlu0 %8504, %v8245_v10   ;;  %v6439_v58 = vpop.permute.xlu1 %6438 }
0x14a7   : > { %v6422_v15 = vpack.c.bf16 %v6416_v1, %v6414_v3  ;;  %v6441_v57 = vpop.permute.xlu0 %6440  ;;  %6978 = vperm.xlu1 %8505, %v8248_v51   ;;  %v6423_v38 = vpack.c.bf16 %v6417_v44, %v6415_v0  ;;  %v6450_v0 = vsel %vm347_vm4, %v6439_v58, %v13803_v4 }
0x14a8   : > { %v6451_v60 = vsel %vm347_vm4, %v6441_v57, %v13805_v41  ;;  %v6447_v1 = vsel %vm347_vm4, %v13805_v41, %v6441_v57 }
0x14a9   : > { %6983 = vperm.xlu0 %8504, %v8249_v26   ;;  %6824 = vmatprep.subr.bf16.mxu1 %v6423_v38  ;;  %v6479_v53 = vpop.permute.xlu1 %6478  ;;  %v6456_v44 = vmul.f32 %v8889_v17, %v6451_v60 }
0x14aa   : > { %6825 = vmatpush1.bf16.msra.mxu1 %v6422_v15 }
0x14ab   : > { %v6481_v19 = vpop.permute.xlu0 %6480  ;;  %6955 = vperm.xlu1 %8505, %v8246_v62   ;;  %v6446_v62 = vsel %vm347_vm4, %v13803_v4, %v6439_v58 }
0x14ac   : > { %v6491_v4 = vsel %vm388_vm7, %v6481_v19, %v13813_v21 }
0x14ad   : > { %6960 = vperm.xlu0 %8504, %v8247_v24   ;;  %v13872_v13 = vpop.permute.xlu1 %6518  ;;  %v6454_v24 = vmul.f32 %v8889_v17, %v6450_v0 }
0x14af   : > { %v13877_v36 = vpop.permute.xlu0 %6520  ;;  %6988 = vperm.xlu1 %8505, %v8250_v28   ;;  %v6462_v57 = vpack.c.bf16 %v6456_v44, %v6454_v24 }
0x14b1   : > { %6993 = vperm.xlu0 %8504, %v8251_v45   ;;  %v6395_v32 = vpop.permute.xlu1 %6394  ;;  %v6463_v45 = vpack.c.bf16 %v6447_v1, %v6446_v62  ;;  %v6531_v62 = vsel %vm429_vm8, %v13877_v36, %v13827_v49 }
0x14b3   : > { %v6397_v30 = vpop.permute.xlu0 %6396 }
0x14b5   : > { %v6435_v22 = vpop.permute.xlu1 %6434 }
0x14b7   : > { %v6437_v61 = vpop.permute.xlu0 %6436 }
0x14b9   : > { %v6475_v50 = vpop.permute.xlu1 %6474 }
0x14bb   : > { %v13879_v27 = vpop.permute.xlu0 %6476 }
0x14bd   : > { %v13881_v31 = vpop.permute.xlu1 %6514 }
0x14bf   : > { %v13883_v29 = vpop.permute.xlu0 %6516 }
0x14c1   : > { %v6403_v35 = vpop.permute.xlu1 %6402 }
0x14c2   : > { %v6408_v47 = vsel %vm306_vm2, %v6395_v32, %v6403_v35  ;;  %v6412_v56 = vsel %vm306_vm2, %v6403_v35, %v6395_v32  ;;  %v6487_v32 = vsel %vm388_vm7, %v13813_v21, %v6481_v19  ;;  %v6490_v21 = vsel %vm388_vm7, %v6479_v53, %v13811_v5 }
0x14c3   : > { %v6405_v8 = vpop.permute.xlu0 %6404  ;;  %v6418_v6 = vmul.f32 %v6412_v56, %v14815_v55  ;;  %v6419_v46 = vmul.f32 %v8896_v20, %v6408_v47 }
0x14c4   : > { %v6409_v54 = vsel %vm306_vm2, %v6397_v30, %v6405_v8  ;;  %v6413_v10 = vsel %vm306_vm2, %v6405_v8, %v6397_v30  ;;  %v6486_v30 = vsel %vm388_vm7, %v13811_v5, %v6479_v53  ;;  %v6497_v8 = vmul.f32 %v8983_v34, %v6487_v32 }
0x14c5   : > { %v6420_v52 = vmul.f32 %v6413_v10, %v14815_v55  ;;  %v6421_v51 = vmul.f32 %v8896_v20, %v6409_v54  ;;  %v13900_v3 = vpop.permute.xlu1 %6566  ;;  %v6495_v19 = vmul.f32 %v8983_v34, %v6486_v30 }
0x14c7   : > { %v6424_v26 = vpack.c.bf16 %v6420_v52, %v6418_v6  ;;  %v13909_v15 = vpop.permute.xlu0 %6568  ;;  %v6425_v38 = vpack.c.bf16 %v6421_v51, %v6419_v46  ;;  %v6527_v51 = vsel %vm429_vm8, %v13827_v49, %v13877_v36  ;;  %v6503_v1 = vpack.c.bf16 %v6497_v8, %v6495_v19 }
0x14c8   : > { %v6537_v24 = vmul.f32 %v8896_v20, %v6527_v51  ;;  %v6530_v49 = vsel %vm429_vm8, %v13872_v13, %v13822_v42 }
0x14c9   : > { %6826 = vmatprep.subr.bf16.mxu1 %v6425_v38  ;;  %v6443_v28 = vpop.permute.xlu1 %6442  ;;  %v6534_v8 = vmul.f32 %v8886_v16, %v6530_v49 }
0x14ca   : > { %v6452_v41 = vsel %vm347_vm4, %v6443_v28, %v6435_v22  ;;  %6827 = vmatpush1.bf16.msra.mxu1 %v6424_v26  ;;  %v6448_v58 = vsel %vm347_vm4, %v6435_v22, %v6443_v28  ;;  %v6496_v22 = vmul.f32 %v6491_v4, %v8979_v33  ;;  %v6526_v26 = vsel %vm429_vm8, %v13822_v42, %v13872_v13 }
0x14cb   : > { %v6445_v35 = vpop.permute.xlu0 %6444  ;;  %6828 = vmatprep.subr.bf16.mxu1 %v6463_v45  ;;  %v6458_v60 = vmul.f32 %v8889_v17, %v6452_v41  ;;  %v6535_v36 = vmul.f32 %v8896_v20, %v6526_v26  ;;  %v6575_v26 = vsel %vm478_vm9, %v13837_v48, %v13909_v15 }
0x14cc   : > { %v6449_v47 = vsel %vm347_vm4, %v6437_v61, %v6445_v35  ;;  %v6453_v56 = vsel %vm347_vm4, %v6445_v35, %v6437_v61  ;;  %v6494_v61 = vmul.f32 %v6490_v21, %v8979_v33 }
0x14cd   : > { %v6460_v54 = vmul.f32 %v8889_v17, %v6453_v56  ;;  %v6483_v10 = vpop.permute.xlu1 %6482  ;;  %v6465_v6 = vpack.c.bf16 %v6449_v47, %v6448_v58  ;;  %v6536_v58 = vmul.f32 %v8886_v16, %v6531_v62  ;;  %v6543_v56 = vpack.c.bf16 %v6537_v24, %v6535_v36 }
0x14ce   : > { %6829 = vmatpush1.bf16.msra.mxu1 %v6462_v57  ;;  %v6488_v5 = vsel %vm388_vm7, %v6475_v50, %v6483_v10  ;;  %v6492_v53 = vsel %vm388_vm7, %v6483_v10, %v6475_v50  ;;  %v6502_v44 = vpack.c.bf16 %v6496_v22, %v6494_v61  ;;  %v6553_v62 = vpack.c.bf16 %v13730_v40, %v13726_v7 }
0x14cf   : > { %v6464_v46 = vpack.c.bf16 %v6460_v54, %v6458_v60  ;;  %v13940_v52 = vpop.permute.xlu0 %6564  ;;  %6830 = vmatprep.subr.bf16.mxu1 %v6465_v6  ;;  %v6498_v45 = vmul.f32 %v6492_v53, %v8979_v33  ;;  %v6499_v32 = vmul.f32 %v8983_v34, %v6488_v5  ;;  %v6542_v54 = vpack.c.bf16 %v6536_v58, %v6534_v8 }
0x14d0   : > { %v6551_v5 = vpack.c.bf16 %v13686_v25, %v13682_v43  ;;  %v6550_v43 = vpack.c.bf16 %v13660_v18, %v13658_v39  ;;  %v6574_v24 = vsel %vm478_vm9, %v13832_v63, %v13900_v3  ;;  %v6552_v18 = vpack.c.bf16 %v13708_v37, %v13704_v14 }
0x14d1   : > { %v6523_v0 = vpop.permute.xlu1 %6522  ;;  %v6582_v7 = vmul.f32 %v8973_v11, %v6574_v24 }
0x14d2   : > { %6831 = vmatpush1.bf16.msra.mxu1 %v6464_v46  ;;  %v6528_v60 = vsel %vm429_vm8, %v13881_v31, %v6523_v0  ;;  %v6532_v42 = vsel %vm429_vm8, %v6523_v0, %v13881_v31 }
0x14d3   : > { %v6485_v38 = vpop.permute.xlu0 %6484  ;;  %6832 = vmatprep.subr.bf16.mxu1 %v6503_v1  ;;  %v6538_v21 = vmul.f32 %v8886_v16, %v6532_v42  ;;  %v6539_v19 = vmul.f32 %v8896_v20, %v6528_v60 }
0x14d4   : > { %v6489_v50 = vsel %vm388_vm7, %v13879_v27, %v6485_v38  ;;  %v6493_v28 = vsel %vm388_vm7, %v6485_v38, %v13879_v27 }
0x14d5   : > { %v6500_v41 = vmul.f32 %v6493_v28, %v8979_v33  ;;  %v6501_v57 = vmul.f32 %v8983_v34, %v6489_v50  ;;  %v6563_v30 = vpop.permute.xlu1 %6562  ;;  %v6584_v28 = vmul.f32 %v8973_v11, %v6575_v26 }
0x14d6   : > { %6833 = vmatpush1.bf16.msra.mxu1 %v6502_v44  ;;  %v6578_v44 = vsel %vm478_vm9, %v13900_v3, %v13832_v63 }
0x14d7   : > { %v6504_v35 = vpack.c.bf16 %v6500_v41, %v6498_v45  ;;  %v13975_v4 = vpop.permute.xlu0 %6600  ;;  %v6505_v27 = vpack.c.bf16 %v6501_v57, %v6499_v32  ;;  %v6583_v50 = vmul.f32 %v8983_v34, %v6578_v44  ;;  %v6590_v45 = vpack.c.bf16 %v6584_v28, %v6582_v7 }
0x14d9   : > { %6834 = vmatprep.subr.bf16.mxu1 %v6505_v27  ;;  %v6571_v47 = vpop.permute.xlu1 %6570 }
0x14da   : > { %6835 = vmatpush1.bf16.msra.mxu1 %v6504_v35  ;;  %v6576_v39 = vsel %vm478_vm9, %v6563_v30, %v6571_v47  ;;  %v6580_v63 = vsel %vm478_vm9, %v6571_v47, %v6563_v30 }
0x14db   : > { %v6525_v13 = vpop.permute.xlu0 %6524  ;;  %6836 = vmatprep.subr.bf16.mxu1 %v6543_v56  ;;  %v6586_v32 = vmul.f32 %v8973_v11, %v6576_v39  ;;  %v6587_v49 = vmul.f32 %v8983_v34, %v6580_v63 }
0x14dc   : > { %v6529_v10 = vsel %vm429_vm8, %v13883_v29, %v6525_v13  ;;  %v6533_v6 = vsel %vm429_vm8, %v6525_v13, %v13883_v29  ;;  %v6579_v29 = vsel %vm478_vm9, %v13909_v15, %v13837_v48 }
0x14dd   : > { %v6540_v22 = vmul.f32 %v8886_v16, %v6533_v6  ;;  %v6541_v31 = vmul.f32 %v8896_v20, %v6529_v10  ;;  %v6599_v46 = vpop.permute.xlu1 %6598  ;;  %v6585_v25 = vmul.f32 %v8983_v34, %v6579_v29 }
0x14de   : > { %6837 = vmatpush1.bf16.msra.mxu1 %v6542_v54 }
0x14df   : > { %v6544_v61 = vpack.c.bf16 %v6540_v22, %v6538_v21  ;;  %v6609_v51 = vpop.permute.xlu0 %6608  ;;  %v6545_v0 = vpack.c.bf16 %v6541_v31, %v6539_v19  ;;  %v6591_v15 = vpack.c.bf16 %v6585_v25, %v6583_v50 }
0x14e0   : > { %v6619_v14 = vsel %vm519_vm11, %v6609_v51, %v13975_v4  ;;  %v6615_v47 = vsel %vm519_vm11, %v13975_v4, %v6609_v51 }
0x14e1   : > { %6838 = vmatprep.subr.bf16.mxu1 %v6545_v0  ;;  %v6607_v1 = vpop.permute.xlu1 %6606  ;;  %v6625_v56 = vmul.f32 %v6619_v14, %v9073_v23  ;;  %v6624_v13 = vmul.f32 %v8886_v16, %v6615_v47 }
0x14e2   : > { %6839 = vmatpush1.bf16.msra.mxu1 %v6544_v61  ;;  %v6618_v3 = vsel %vm519_vm11, %v6607_v1, %v6599_v46  ;;  %v6614_v37 = vsel %vm519_vm11, %v6599_v46, %v6607_v1 }
0x14e3   : > { %v6605_v53 = vpop.permute.xlu0 %6604  ;;  %6840 = vmatprep.subr.bf16.mxu1 %v6551_v5  ;;  %v6623_v36 = vmul.f32 %v6618_v3, %v9073_v23  ;;  %v6622_v8 = vmul.f32 %v8886_v16, %v6614_v37  ;;  %v8594_v37 = vld [vmem:[%s14801_s1 + $0x210] ss:$12 sps:$4 sm:$0xff]  }
0x14e5   : > { %v6603_v38 = vpop.permute.xlu1 %6602  ;;  %v6631_v6 = vpack.c.bf16 %v6625_v56, %v6623_v36  ;;  %v6630_v19 = vpack.c.bf16 %v6624_v13, %v6622_v8 }
0x14e6   : > { %6841 = vmatpush1.bf16.msra.mxu1 %v6550_v43 }
0x14e7   : > { %v6641_v48 = vpop.permute.xlu0 %6640  ;;  %6842 = vmatprep.subr.bf16.mxu1 %v6553_v62 }
0x14e9   : > { %v6611_v40 = vpop.permute.xlu1 %6610 }
0x14ea   : > { %6843 = vmatpush1.bf16.msra.mxu1 %v6552_v18  ;;  %v6616_v54 = vsel %vm519_vm11, %v6603_v38, %v6611_v40  ;;  %v6620_v21 = vsel %vm519_vm11, %v6611_v40, %v6603_v38 }
0x14eb   : > { %v6573_v41 = vpop.permute.xlu0 %6572  ;;  %6844 = vmatprep.subr.bf16.mxu1 %v6591_v15  ;;  %v6626_v31 = vmul.f32 %v8886_v16, %v6616_v54  ;;  %v6627_v0 = vmul.f32 %v6620_v21, %v9073_v23 }
0x14ec   : > { %v6577_v57 = vsel %vm478_vm9, %v13940_v52, %v6573_v41  ;;  %v6581_v30 = vsel %vm478_vm9, %v6573_v41, %v13940_v52 }
0x14ed   : > { %v6588_v35 = vmul.f32 %v8973_v11, %v6577_v57  ;;  %v6589_v27 = vmul.f32 %v8983_v34, %v6581_v30  ;;  %v6639_v58 = vpop.permute.xlu1 %6638 }
0x14ee   : > { %6845 = vmatpush1.bf16.msra.mxu1 %v6590_v45 }
0x14ef   : > { %v6592_v60 = vpack.c.bf16 %v6588_v35, %v6586_v32  ;;  %v6649_v52 = vpop.permute.xlu0 %6648  ;;  %v6593_v42 = vpack.c.bf16 %v6589_v27, %v6587_v49  ;;  %v8597_v49 = vld [vmem:[%s14801_s1 + $0x22c] ss:$12 sps:$4 sm:$0xff]  }
0x14f0   : > { %v6659_v46 = vsel %vm560_vm12, %v6649_v52, %v6641_v48  ;;  %v6655_v28 = vsel %vm560_vm12, %v6641_v48, %v6649_v52 }
0x14f1   : > { %v6647_v10 = vpop.permute.xlu1 %6646  ;;  %6846 = vmatprep.subr.bf16.mxu1 %v6593_v42  ;;  %v6665_v26 = vmul.f32 %v9069_v12, %v6659_v46 }
0x14f2   : > { %v6658_v4 = vsel %vm560_vm12, %v6647_v10, %v6639_v58  ;;  %6847 = vmatpush1.bf16.msra.mxu1 %v6592_v60  ;;  %v6654_v62 = vsel %vm560_vm12, %v6639_v58, %v6647_v10  ;;  %v8599_v10 = vld [vmem:[%s14801_s1 + $0x228] ss:$12 sps:$4 sm:$0xff]  }
0x14f3   : > { %v6613_v22 = vpop.permute.xlu0 %6612  ;;  %6848 = vmatprep.subr.bf16.mxu1 %v6631_v6  ;;  %v6663_v1 = vmul.f32 %v9069_v12, %v6658_v4  ;;  %v6670_v18 = vpack.c.bf16 %v6655_v28, %v6654_v62 }
0x14f4   : > { %v6617_v61 = vsel %vm519_vm11, %v6605_v53, %v6613_v22  ;;  %v6621_v51 = vsel %vm519_vm11, %v6613_v22, %v6605_v53 }
0x14f5   : > { %v6628_v5 = vmul.f32 %v8886_v16, %v6617_v61  ;;  %v6629_v29 = vmul.f32 %v6621_v51, %v9073_v23  ;;  %v6643_v44 = vpop.permute.xlu1 %6642  ;;  %v6671_v53 = vpack.c.bf16 %v6665_v26, %v6663_v1 }
0x14f6   : > { %6849 = vmatpush1.bf16.msra.mxu1 %v6630_v19 }
0x14f7   : > { %v6632_v43 = vpack.c.bf16 %v6628_v5, %v6626_v31  ;;  %v6645_v25 = vpop.permute.xlu0 %6644  ;;  %v6633_v38 = vpack.c.bf16 %v6629_v29, %v6627_v0  ;;  %v8600_v5 = vld [vmem:[%s14801_s1 + $0x218] ss:$12 sps:$4 sm:$0xff]   ;;  %v8601_v29 = vld [vmem:[%s14801_s1 + $0x230] ss:$12 sps:$4 sm:$0xff]  }
0x14f9   : > { %v6651_v24 = vpop.permute.xlu1 %6650  ;;  %6850 = vmatprep.subr.bf16.mxu1 %v6633_v38 }
0x14fa   : > { %v6660_v50 = vsel %vm560_vm12, %v6651_v24, %v6643_v44  ;;  %6851 = vmatpush1.bf16.msra.mxu1 %v6632_v43  ;;  %v6656_v45 = vsel %vm560_vm12, %v6643_v44, %v6651_v24 }
0x14fb   : > { %v6653_v39 = vpop.permute.xlu0 %6652  ;;  %6852 = vmatprep.subr.bf16.mxu1 %v6671_v53  ;;  %v6667_v40 = vmul.f32 %v9069_v12, %v6660_v50 }
0x14fc   : > { %v6661_v7 = vsel %vm560_vm12, %v6653_v39, %v6645_v25  ;;  %v6657_v15 = vsel %vm560_vm12, %v6645_v25, %v6653_v39 }
0x14fd   : > { %v6669_v63 = vmul.f32 %v9069_v12, %v6661_v7  ;;  %v6679_v3 = vpop.permute.xlu1 %6678  ;;  %v6672_v41 = vpack.c.bf16 %v6657_v15, %v6656_v45 }
0x14fe   : > { %6853 = vmatpush1.bf16.msra.mxu1 %v6670_v18 }
0x14ff   : > { %v6681_v32 = vpop.permute.xlu0 %6680  ;;  %v6673_v48 = vpack.c.bf16 %v6669_v63, %v6667_v40 }
0x1501   : > { %v6687_v14 = vpop.permute.xlu1 %6686  ;;  %6854 = vmatprep.subr.bf16.mxu1 %v6673_v48 }
0x1502   : > { %v6694_v57 = vsel %vm601_vm13, %v6679_v3, %v6687_v14  ;;  %v6698_v30 = vsel %vm601_vm13, %v6687_v14, %v6679_v3  ;;  %6855 = vmatpush1.bf16.msra.mxu1 %v6672_v41 }
0x1503   : > { %v6689_v36 = vpop.permute.xlu0 %6688  ;;  %v6702_v58 = vmul.f32 %v8973_v11, %v6694_v57  ;;  %v6703_v47 = vmul.f32 %v6698_v30, %v9114_v59 }
0x1504   : > { %v6695_v35 = vsel %vm601_vm13, %v6681_v32, %v6689_v36  ;;  %v6699_v27 = vsel %vm601_vm13, %v6689_v36, %v6681_v32 }
0x1505   : > { %v6704_v56 = vmul.f32 %v8973_v11, %v6695_v35  ;;  %v6705_v8 = vmul.f32 %v6699_v27, %v9114_v59  ;;  %v6683_v60 = vpop.permute.xlu1 %6682  ;;  %6857 = vmatmul.mubr.bf16.vlgmr.msra.gmra.mrb[48].mxu1 %v8594_v37 }
0x1506   : > { %6866 = vmatprep.mubr.bf16.mxu1 %v8597_v49 }
0x1507   : > { %v6710_v52 = vpack.c.bf16 %v6704_v56, %v6702_v58  ;;  %v6685_v42 = vpop.permute.xlu0 %6684  ;;  %v6711_v13 = vpack.c.bf16 %v6705_v8, %v6703_v47 }
0x1509   : > { %v6691_v54 = vpop.permute.xlu1 %6690  ;;  %6877 = vmatprep.subr.bf16.mxu1 %v6711_v13 }
0x150a   : > { %v6696_v6 = vsel %vm601_vm13, %v6683_v60, %v6691_v54  ;;  %v6700_v21 = vsel %vm601_vm13, %v6691_v54, %v6683_v60  ;;  %6878 = vmatpush1.bf16.msra.mxu1 %v6710_v52 }
0x150b   : > { %v6693_v4 = vpop.permute.xlu0 %6692  ;;  %v6706_v31 = vmul.f32 %v8973_v11, %v6696_v6  ;;  %v6707_v46 = vmul.f32 %v6700_v21, %v9114_v59 }
0x150c   : > { %v6697_v19 = vsel %vm601_vm13, %v6685_v42, %v6693_v4  ;;  %v6701_v22 = vsel %vm601_vm13, %v6693_v4, %v6685_v42 }
0x150d   : > { %v6708_v61 = vmul.f32 %v8973_v11, %v6697_v19  ;;  %v6709_v51 = vmul.f32 %v6701_v22, %v9114_v59  ;;  %6867 = vmatmul.mubr.bf16.gmra.mrb[52].mxu1 %v8599_v10 }
0x150e   : > { %6909 = vmatprep.mubr.bf16.mxu1 %v14812_v2 }
0x150f   : > { %v6712_v0 = vpack.c.bf16 %v6708_v61, %v6706_v31  ;;  %v6713_v1 = vpack.c.bf16 %v6709_v51, %v6707_v46 }
0x1511   : > { %6879 = vmatprep.subr.bf16.mxu1 %v6713_v1 }
0x1512   : > { %6880 = vmatpush1.bf16.msra.mxu1 %v6712_v0 }
0x1515   : > { %8242 = vmatmul.mubr.msk.bf16.vlgmr.msra.gmra.mrb[48].mxu1 %vm724_vm14, %v8600_v5 }
0x1516   : > { %6919 = vmatprep.mubr.bf16.mxu1 %v14812_v2 }
0x151a   : > { %v6771_v44 = vpop.permute.xlu1 %6770 }
0x151c   : > { %v6776_v26 = vpop.permute.xlu0 %6775 }
0x151d   : > { %8243 = vmatmul.mubr.msk.bf16.gmra.mrb[52].mxu1 %vm724_vm14, %v8601_v29 }
0x151e   : > { %v6781_v43 = vpop.permute.xlu1 %6780 }
0x1520   : > { %v6786_v25 = vpop.permute.xlu0 %6785 }
0x1522   : > { %v6946_v38 = vpop.permute.xlu1 %6945 }
0x1524   : > { %v6951_v50 = vpop.permute.xlu0 %6950 }
0x1526   : > { %v6979_v63 = vpop.permute.xlu1 %6978 }
0x1528   : > { %v6984_v32 = vpop.permute.xlu0 %6983 }
0x152a   : > { %v6956_v42 = vpop.permute.xlu1 %6955 }
0x152c   : > { %v6961_v54 = vpop.permute.xlu0 %6960 }
0x152e   : > { %v6989_v21 = vpop.permute.xlu1 %6988 }
0x1530   : > { %v6994_v19 = vpop.permute.xlu0 %6993 }
0x15e8   : > { %v6911_v62 = vpop.f32.mrb[48].mxu1 }
0x15e9   : > { %v8390_v24 = vadd.f32 %v6911_v62, %v6771_v44  ;;  %v6913_v53 = vpop.f32.mrb[49].mxu1 }
0x15ea   : > { %v6915_v28 = vpop.f32.mrb[50].mxu1  ;;  %v8391_v30 = vadd.f32 %v6913_v53, %v6771_v44  ;;  %v8604_v44 = vld [vmem:[%s14801_s1 + $0x244] ss:$12 sps:$4 sm:$0xff]  }
0x15eb   : > { %v6930_v39 = vmax.f32 %v8390_v24, 0.0  ;;  %v8392_v18 = vadd.f32 %v6915_v28, %v6776_v26  ;;  %v6917_v7 = vpop.f32.mrb[51].mxu1  ;;  %7470 = vmatprep.mubr.bf16.mxu0 %v8604_v44  ;;  %v8260_v53 = vld [vmem:[%s14802_s2 + $0x180] sm:$0xff]  ;;  %v8261_v28 = vld [vmem:[%s14802_s2 + $0x188] sm:$0xff] }
0x15ec   : > { %v8393_v49 = vadd.f32 %v6917_v7, %v6776_v26  ;;  %v6931_v36 = vmax.f32 %v8391_v30, 0.0 }
0x15ed   : > { %v6963_v40 = vmul.f32 %v6946_v38, %v6930_v39  ;;  %v6932_v15 = vmax.f32 %v8392_v18, 0.0  ;;  %v8262_v18 = vld [vmem:[%s14802_s2 + $0x190] sm:$0xff] }
0x15ee   : > { %v6933_v35 = vmax.f32 %v8393_v49, 0.0  ;;  %v6964_v27 = vmul.f32 %v6946_v38, %v6931_v36 }
0x15ef   : > { %v14126_v3 = vadd.f32 %v6979_v63, %v6963_v40  ;;  %v6965_v45 = vmul.f32 %v6951_v50, %v6932_v15  ;;  %v8263_v40 = vld [vmem:[%s14802_s2 + $0x198] sm:$0xff] }
0x15f0   : > { %v6921_v48 = vpop.f32.mrb[52].mxu1  ;;  %v6966_v58 = vmul.f32 %v6951_v50, %v6933_v35  ;;  %v14148_v47 = vadd.f32 %v6979_v63, %v6964_v27 }
0x15f1   : > { %v14128_v41 = vadd.f32 %v6984_v32, %v6965_v45  ;;  %v6923_v14 = vpop.f32.mrb[53].mxu1  ;;  %7004 = vrot.lane.b32.xlu1 %v14126_v3, %s8686_s21  ;;  %v8394_v8 = vadd.f32 %v6921_v48, %v6781_v43 }
0x15f2   : > { %v6925_v37 = vpop.f32.mrb[54].mxu1  ;;  %v14152_v56 = vadd.f32 %v6984_v32, %v6966_v58  ;;  %v8395_v31 = vadd.f32 %v6923_v14, %v6781_v43 }
0x15f3   : > { %v6927_v57 = vpop.f32.mrb[55].mxu1  ;;  %7006 = vrot.lane.b32.xlu0 %v14128_v41, %s8686_s21  ;;  %v8396_v60 = vadd.f32 %v6925_v37, %v6786_v25  ;;  %v6934_v52 = vmax.f32 %v8394_v8, 0.0 }
0x15f4   : > { %v8397_v46 = vadd.f32 %v6927_v57, %v6786_v25  ;;  %v6935_v61 = vmax.f32 %v8395_v31, 0.0 }
0x15f5   : > { %7044 = vrot.lane.b32.xlu1 %v14126_v3, %s8687_s22  ;;  %v6936_v13 = vmax.f32 %v8396_v60, 0.0  ;;  %v6967_v10 = vmul.f32 %v6956_v42, %v6934_v52 }
0x15f6   : > { %v6937_v51 = vmax.f32 %v8397_v46, 0.0  ;;  %v6968_v0 = vmul.f32 %v6956_v42, %v6935_v61 }
0x15f7   : > { %7046 = vrot.lane.b32.xlu0 %v14128_v41, %s8687_s22  ;;  %v6969_v6 = vmul.f32 %v6961_v54, %v6936_v13  ;;  %v14168_v4 = vadd.f32 %v6989_v21, %v6967_v10 }
0x15f8   : > { %v6970_v1 = vmul.f32 %v6961_v54, %v6937_v51  ;;  %v14188_v5 = vadd.f32 %v6989_v21, %v6968_v0 }
0x15f9   : > { %7084 = vrot.lane.b32.xlu1 %v14126_v3, %s8688_s23  ;;  %v14172_v22 = vadd.f32 %v6994_v19, %v6969_v6 }
0x15fa   : > { %v14192_v29 = vadd.f32 %v6994_v19, %v6970_v1 }
0x15fb   : > { %7086 = vrot.lane.b32.xlu0 %v14128_v41, %s8688_s23 }
0x15fd   : > { %7124 = vrot.lane.b32.xlu1 %v14126_v3, %s8689_s24 }
0x15ff   : > { %7126 = vrot.lane.b32.xlu0 %v14128_v41, %s8689_s24 }
0x1601   : > { %7172 = vrot.lane.b32.xlu1 %v14126_v3, %s8690_s25 }
0x1603   : > { %7174 = vrot.lane.b32.xlu0 %v14128_v41, %s8690_s25 }
0x1605   : > { %7012 = vrot.lane.b32.xlu1 %v14148_v47, %s8686_s21 }
0x1607   : > { %7014 = vrot.lane.b32.xlu0 %v14152_v56, %s8686_s21 }
0x1609   : > { %7052 = vrot.lane.b32.xlu1 %v14148_v47, %s8687_s22 }
0x160b   : > { %7054 = vrot.lane.b32.xlu0 %v14152_v56, %s8687_s22 }
0x160d   : > { %7092 = vrot.lane.b32.xlu1 %v14148_v47, %s8688_s23 }
0x160f   : > { %7094 = vrot.lane.b32.xlu0 %v14152_v56, %s8688_s23 }
0x1611   : > { %7132 = vrot.lane.b32.xlu1 %v14148_v47, %s8689_s24 }
0x1613   : > { %7134 = vrot.lane.b32.xlu0 %v14152_v56, %s8689_s24 }
0x1615   : > { %7008 = vrot.lane.b32.xlu1 %v14168_v4, %s8686_s21 }
0x1617   : > { %7010 = vrot.lane.b32.xlu0 %v14172_v22, %s8686_s21 }
0x1619   : > { %7048 = vrot.lane.b32.xlu1 %v14168_v4, %s8687_s22 }
0x161b   : > { %7050 = vrot.lane.b32.xlu0 %v14172_v22, %s8687_s22 }
0x161d   : > { %7088 = vrot.lane.b32.xlu1 %v14168_v4, %s8688_s23 }
0x161f   : > { %7090 = vrot.lane.b32.xlu0 %v14172_v22, %s8688_s23 }
0x1621   : > { %7128 = vrot.lane.b32.xlu1 %v14168_v4, %s8689_s24 }
0x1623   : > { %7130 = vrot.lane.b32.xlu0 %v14172_v22, %s8689_s24 }
0x1625   : > { %7016 = vrot.lane.b32.xlu1 %v14188_v5, %s8686_s21 }
0x1627   : > { %7018 = vrot.lane.b32.xlu0 %v14192_v29, %s8686_s21 }
0x1629   : > { %7180 = vrot.lane.b32.xlu1 %v14148_v47, %s8690_s25 }
0x162b   : > { %7182 = vrot.lane.b32.xlu0 %v14152_v56, %s8690_s25 }
0x162d   : > { %7056 = vrot.lane.b32.xlu1 %v14188_v5, %s8687_s22 }
0x162f   : > { %7058 = vrot.lane.b32.xlu0 %v14192_v29, %s8687_s22 }
0x1631   : > { %7096 = vrot.lane.b32.xlu1 %v14188_v5, %s8688_s23 }
0x1633   : > { %7178 = vrot.lane.b32.xlu0 %v14172_v22, %s8690_s25 }
0x1635   : > { %7136 = vrot.lane.b32.xlu1 %v14188_v5, %s8689_s24 }
0x1637   : > { %7098 = vrot.lane.b32.xlu0 %v14192_v29, %s8688_s23 }
0x1639   : > { %7176 = vrot.lane.b32.xlu1 %v14168_v4, %s8690_s25 }
0x163b   : > { %7214 = vrot.lane.b32.xlu0 %v14128_v41, %s8691_s26 }
0x163d   : > { %7184 = vrot.lane.b32.xlu1 %v14188_v5, %s8690_s25 }
0x163f   : > { %7138 = vrot.lane.b32.xlu0 %v14192_v29, %s8689_s24 }
0x1641   : > { %7212 = vrot.lane.b32.xlu1 %v14126_v3, %s8691_s26 }
0x1643   : > { %7222 = vrot.lane.b32.xlu0 %v14152_v56, %s8691_s26 }
0x1645   : > { %7220 = vrot.lane.b32.xlu1 %v14148_v47, %s8691_s26 }
0x1647   : > { %7218 = vrot.lane.b32.xlu0 %v14172_v22, %s8691_s26 }
0x1649   : > { %7216 = vrot.lane.b32.xlu1 %v14168_v4, %s8691_s26 }
0x164b   : > { %7254 = vrot.lane.b32.xlu0 %v14128_v41, %s8692_s27 }
0x164d   : > { %7224 = vrot.lane.b32.xlu1 %v14188_v5, %s8691_s26 }
0x164f   : > { %7186 = vrot.lane.b32.xlu0 %v14192_v29, %s8690_s25 }
0x1651   : > { %7252 = vrot.lane.b32.xlu1 %v14126_v3, %s8692_s27 }
0x1653   : > { %7262 = vrot.lane.b32.xlu0 %v14152_v56, %s8692_s27 }
0x1655   : > { %7260 = vrot.lane.b32.xlu1 %v14148_v47, %s8692_s27 }
0x1657   : > { %7226 = vrot.lane.b32.xlu0 %v14192_v29, %s8691_s26 }
0x1659   : > { %7256 = vrot.lane.b32.xlu1 %v14168_v4, %s8692_s27 }
0x165b   : > { %7258 = vrot.lane.b32.xlu0 %v14172_v22, %s8692_s27 }
0x165d   : > { %7264 = vrot.lane.b32.xlu1 %v14188_v5, %s8692_s27 }
0x165f   : > { %7266 = vrot.lane.b32.xlu0 %v14192_v29, %s8692_s27 }
0x1661   : > { %7292 = vrot.lane.b32.xlu1 %v14126_v3, %s8693_s28 }
0x1663   : > { %7294 = vrot.lane.b32.xlu0 %v14128_v41, %s8693_s28  ;;  %v7005_v26 = vpop.permute.xlu1 %7004 }
0x1665   : > { %v7007_v43 = vpop.permute.xlu0 %7006  ;;  %7300 = vrot.lane.b32.xlu1 %v14148_v47, %s8693_s28 }
0x1667   : > { %7302 = vrot.lane.b32.xlu0 %v14152_v56, %s8693_s28  ;;  %v14265_v25 = vpop.permute.xlu1 %7044 }
0x1669   : > { %v7047_v38 = vpop.permute.xlu0 %7046  ;;  %7296 = vrot.lane.b32.xlu1 %v14168_v4, %s8693_s28 }
0x166b   : > { %7298 = vrot.lane.b32.xlu0 %v14172_v22, %s8693_s28  ;;  %v14271_v62 = vpop.permute.xlu1 %7084 }
0x166d   : > { %v14273_v24 = vpop.permute.xlu0 %7086  ;;  %7304 = vrot.lane.b32.xlu1 %v14188_v5, %s8693_s28 }
0x166f   : > { %7306 = vrot.lane.b32.xlu0 %v14192_v29, %s8693_s28  ;;  %v14282_v50 = vpop.permute.xlu1 %7124 }
0x1671   : > { %v14287_v39 = vpop.permute.xlu0 %7126  ;;  %7384 = vperm.xlu1 %8505, %v8260_v53  }
0x1673   : > { %7389 = vperm.xlu0 %8504, %v8261_v28   ;;  %v7173_v7 = vpop.permute.xlu1 %7172 }
0x1675   : > { %v7175_v15 = vpop.permute.xlu0 %7174  ;;  %7394 = vperm.xlu1 %8505, %v8262_v18  }
0x1677   : > { %7399 = vperm.xlu0 %8504, %v8263_v40   ;;  %v7013_v63 = vpop.permute.xlu1 %7012 }
0x1678   : > { %v7020_v45 = vsel %vm306_vm2, %v7005_v26, %v7013_v63  ;;  %v7024_v32 = vsel %vm306_vm2, %v7013_v63, %v7005_v26 }
0x1679   : > { %v7015_v48 = vpop.permute.xlu0 %7014  ;;  %v7028_v57 = vmul.f32 %v7024_v32, %v14815_v55  ;;  %v7029_v30 = vmul.f32 %v8896_v20, %v7020_v45 }
0x167a   : > { %v7021_v14 = vsel %vm306_vm2, %v7007_v43, %v7015_v48  ;;  %v7025_v37 = vsel %vm306_vm2, %v7015_v48, %v7007_v43 }
0x167b   : > { %v7030_v49 = vmul.f32 %v7025_v37, %v14815_v55  ;;  %v7031_v36 = vmul.f32 %v8896_v20, %v7021_v14  ;;  %v7053_v35 = vpop.permute.xlu1 %7052 }
0x167c   : > { %v7064_v44 = vsel %vm347_vm4, %v7053_v35, %v14265_v25  ;;  %v7060_v37 = vsel %vm347_vm4, %v14265_v25, %v7053_v35 }
0x167d   : > { %v7036_v27 = vpack.c.bf16 %v7030_v49, %v7028_v57  ;;  %v7055_v58 = vpop.permute.xlu0 %7054  ;;  %v7037_v8 = vpack.c.bf16 %v7031_v36, %v7029_v30 }
0x167e   : > { %v7061_v43 = vsel %vm347_vm4, %v7047_v38, %v7055_v58  ;;  %v7065_v53 = vsel %vm347_vm4, %v7055_v58, %v7047_v38 }
0x167f   : > { %7438 = vmatprep.subr.bf16.mxu0 %v7037_v8  ;;  %v14307_v60 = vpop.permute.xlu1 %7092  ;;  %v7070_v57 = vmul.f32 %v8889_v17, %v7065_v53 }
0x1680   : > { %7439 = vmatpush1.bf16.msra.mxu0 %v7036_v27  ;;  %v7077_v27 = vpack.c.bf16 %v7061_v43, %v7060_v37 }
0x1681   : > { %v7095_v52 = vpop.permute.xlu0 %7094 }
0x1682   : > { %v7105_v53 = vsel %vm388_vm7, %v7095_v52, %v14273_v24 }
0x1683   : > { %v14309_v42 = vpop.permute.xlu1 %7132 }
0x1685   : > { %v14311_v13 = vpop.permute.xlu0 %7134 }
0x1687   : > { %v7009_v54 = vpop.permute.xlu1 %7008 }
0x1689   : > { %v7011_v10 = vpop.permute.xlu0 %7010 }
0x168b   : > { %v7049_v6 = vpop.permute.xlu1 %7048 }
0x168d   : > { %v7051_v21 = vpop.permute.xlu0 %7050 }
0x168f   : > { %v14313_v19 = vpop.permute.xlu1 %7088 }
0x1691   : > { %v14315_v31 = vpop.permute.xlu0 %7090 }
0x1693   : > { %v14317_v46 = vpop.permute.xlu1 %7128 }
0x1695   : > { %v14319_v61 = vpop.permute.xlu0 %7130 }
0x1697   : > { %v7017_v51 = vpop.permute.xlu1 %7016 }
0x1698   : > { %v7022_v0 = vsel %vm306_vm2, %v7009_v54, %v7017_v51  ;;  %v7026_v1 = vsel %vm306_vm2, %v7017_v51, %v7009_v54  ;;  %v7101_v51 = vsel %vm388_vm7, %v14273_v24, %v7095_v52  ;;  %v7104_v24 = vsel %vm388_vm7, %v14307_v60, %v14271_v62 }
0x1699   : > { %v7019_v26 = vpop.permute.xlu0 %7018  ;;  %v7032_v40 = vmul.f32 %v7026_v1, %v14815_v55  ;;  %v7033_v63 = vmul.f32 %v8896_v20, %v7022_v0  ;;  %v7100_v1 = vsel %vm388_vm7, %v14271_v62, %v14307_v60  ;;  %v7108_v37 = vmul.f32 %v7104_v24, %v8979_v33 }
0x169a   : > { %v7023_v28 = vsel %vm306_vm2, %v7011_v10, %v7019_v26  ;;  %v7027_v18 = vsel %vm306_vm2, %v7019_v26, %v7011_v10  ;;  %v7109_v52 = vmul.f32 %v8983_v34, %v7100_v1  ;;  %vm7776_vm2 = vcmask 1040384  }
0x169b   : > { %v7034_v45 = vmul.f32 %v7027_v18, %v14815_v55  ;;  %v7035_v32 = vmul.f32 %v8896_v20, %v7023_v28  ;;  %v7181_v48 = vpop.permute.xlu1 %7180  ;;  %v7068_v55 = vmul.f32 %v8889_v17, %v7064_v44 }
0x169c   : > { %v7188_v14 = vsel %vm478_vm9, %v7173_v7, %v7181_v48  ;;  %v7192_v38 = vsel %vm478_vm9, %v7181_v48, %v7173_v7 }
0x169d   : > { %v7038_v30 = vpack.c.bf16 %v7034_v45, %v7032_v40  ;;  %v7183_v49 = vpop.permute.xlu0 %7182  ;;  %v7039_v36 = vpack.c.bf16 %v7035_v32, %v7033_v63  ;;  %v14354_v7 = vmul.f32 %v8973_v11, %v7188_v14  ;;  %v14357_v54 = vmul.f32 %v8983_v34, %v7192_v38 }
0x169e   : > { %v7189_v58 = vsel %vm478_vm9, %v7175_v15, %v7183_v49  ;;  %v7193_v8 = vsel %vm478_vm9, %v7183_v49, %v7175_v15  ;;  %v7076_v0 = vpack.c.bf16 %v7070_v57, %v7068_v55  ;;  %v7111_v63 = vmul.f32 %v8983_v34, %v7101_v51 }
0x169f   : > { %v14360_v25 = vmul.f32 %v8973_v11, %v7189_v58  ;;  %v14363_v35 = vmul.f32 %v8983_v34, %v7193_v8  ;;  %7440 = vmatprep.subr.bf16.mxu0 %v7039_v36  ;;  %v7057_v10 = vpop.permute.xlu1 %7056  ;;  %v7140_v36 = vsel %vm429_vm8, %v14282_v50, %v14309_v42 }
0x16a0   : > { %v7066_v15 = vsel %vm347_vm4, %v7057_v10, %v7049_v6  ;;  %7441 = vmatpush1.bf16.msra.mxu0 %v7038_v30  ;;  %v7062_v28 = vsel %vm347_vm4, %v7049_v6, %v7057_v10  ;;  %v7110_v6 = vmul.f32 %v7105_v53, %v8979_v33  ;;  %v7117_v30 = vpack.c.bf16 %v7111_v63, %v7109_v52 }
0x16a1   : > { %v7204_v44 = vpack.c.bf16 %v14360_v25, %v14354_v7  ;;  %v7059_v26 = vpop.permute.xlu0 %7058  ;;  %7442 = vmatprep.subr.bf16.mxu0 %v7077_v27  ;;  %v7205_v43 = vpack.c.bf16 %v14363_v35, %v14357_v54  ;;  %v7072_v45 = vmul.f32 %v8889_v17, %v7066_v15  ;;  %v7145_v27 = vsel %vm429_vm8, %v14311_v13, %v14287_v39 }
0x16a2   : > { %v7063_v18 = vsel %vm347_vm4, %v7051_v21, %v7059_v26  ;;  %v7067_v40 = vsel %vm347_vm4, %v7059_v26, %v7051_v21  ;;  %v7116_v49 = vpack.c.bf16 %v7110_v6, %v7108_v37  ;;  %vm7568_vm4 = vcmask 1047556  }
0x16a3   : > { %v7074_v32 = vmul.f32 %v8889_v17, %v7067_v40  ;;  %v7079_v48 = vpack.c.bf16 %v7063_v18, %v7062_v28  ;;  %v7097_v14 = vpop.permute.xlu1 %7096  ;;  %v7141_v17 = vsel %vm429_vm8, %v14287_v39, %v14311_v13  ;;  %v7144_v39 = vsel %vm429_vm8, %v14309_v42, %v14282_v50 }
0x16a4   : > { %7443 = vmatpush1.bf16.msra.mxu0 %v7076_v0  ;;  %v7102_v62 = vsel %vm388_vm7, %v14313_v19, %v7097_v14  ;;  %v7106_v60 = vsel %vm388_vm7, %v7097_v14, %v14313_v19  ;;  %v7151_v58 = vmul.f32 %v8896_v20, %v7141_v17  ;;  %v7149_v13 = vmul.f32 %v8896_v20, %v7140_v36 }
0x16a5   : > { %v7078_v38 = vpack.c.bf16 %v7074_v32, %v7072_v45  ;;  %v14396_v21 = vpop.permute.xlu0 %7178  ;;  %7444 = vmatprep.subr.bf16.mxu0 %v7079_v48  ;;  %v7112_v10 = vmul.f32 %v7106_v60, %v8979_v33  ;;  %v7113_v51 = vmul.f32 %v8983_v34, %v7102_v62  ;;  %v7150_v28 = vmul.f32 %v8886_v16, %v7145_v27 }
0x16a6   : > { %v7157_v40 = vpack.c.bf16 %v7151_v58, %v7149_v13  ;;  %v7164_v62 = vpack.c.bf16 %v14128_v41, %v14126_v3 }
0x16a7   : > { %v7137_v57 = vpop.permute.xlu1 %7136 }
0x16a8   : > { %7445 = vmatpush1.bf16.msra.mxu0 %v7078_v38  ;;  %v7142_v63 = vsel %vm429_vm8, %v14317_v46, %v7137_v57  ;;  %v7146_v50 = vsel %vm429_vm8, %v7137_v57, %v14317_v46 }
0x16a9   : > { %v7099_v55 = vpop.permute.xlu0 %7098  ;;  %7446 = vmatprep.subr.bf16.mxu0 %v7117_v30  ;;  %v7152_v14 = vmul.f32 %v8886_v16, %v7146_v50  ;;  %v7153_v24 = vmul.f32 %v8896_v20, %v7142_v63  ;;  %v7165_v30 = vpack.c.bf16 %v14152_v56, %v14148_v47 }
0x16aa   : > { %v7103_v19 = vsel %vm388_vm7, %v14315_v31, %v7099_v55  ;;  %v7107_v8 = vsel %vm388_vm7, %v7099_v55, %v14315_v31  ;;  %v7166_v55 = vpack.c.bf16 %v14172_v22, %v14168_v4  ;;  %vm7931_vm7 = vcmask 1044480  }
0x16ab   : > { %v7114_v15 = vmul.f32 %v7107_v8, %v8979_v33  ;;  %v7115_v0 = vmul.f32 %v8983_v34, %v7103_v19  ;;  %v7177_v1 = vpop.permute.xlu1 %7176  ;;  %v7148_v33 = vmul.f32 %v8886_v16, %v7144_v39 }
0x16ac   : > { %7447 = vmatpush1.bf16.msra.mxu0 %v7116_v49 }
0x16ad   : > { %v7118_v26 = vpack.c.bf16 %v7114_v15, %v7112_v10  ;;  %v7215_v53 = vpop.permute.xlu0 %7214  ;;  %v7119_v31 = vpack.c.bf16 %v7115_v0, %v7113_v51  ;;  %v7156_v45 = vpack.c.bf16 %v7150_v28, %v7148_v33 }
0x16af   : > { %7448 = vmatprep.subr.bf16.mxu0 %v7119_v31  ;;  %v7185_v18 = vpop.permute.xlu1 %7184 }
0x16b0   : > { %7449 = vmatpush1.bf16.msra.mxu0 %v7118_v26  ;;  %v7190_v36 = vsel %vm478_vm9, %v7177_v1, %v7185_v18  ;;  %v7194_v56 = vsel %vm478_vm9, %v7185_v18, %v7177_v1 }
0x16b1   : > { %v7139_v42 = vpop.permute.xlu0 %7138  ;;  %7450 = vmatprep.subr.bf16.mxu0 %v7157_v40  ;;  %v7200_v41 = vmul.f32 %v8973_v11, %v7190_v36  ;;  %v7201_v58 = vmul.f32 %v8983_v34, %v7194_v56  ;;  %v8605_v56 = vld [vmem:[%s14801_s1 + $0x25c] ss:$12 sps:$4 sm:$0xff]  }
0x16b2   : > { %v7143_v32 = vsel %vm429_vm8, %v14319_v61, %v7139_v42  ;;  %v7147_v48 = vsel %vm429_vm8, %v7139_v42, %v14319_v61 }
0x16b3   : > { %v7154_v52 = vmul.f32 %v8886_v16, %v7147_v48  ;;  %v7155_v46 = vmul.f32 %v8896_v20, %v7143_v32  ;;  %v7213_v6 = vpop.permute.xlu1 %7212  ;;  %v7167_v20 = vpack.c.bf16 %v14192_v29, %v14188_v5 }
0x16b4   : > { %7451 = vmatpush1.bf16.msra.mxu0 %v7156_v45 }
0x16b5   : > { %v7158_v38 = vpack.c.bf16 %v7154_v52, %v7152_v14  ;;  %v7223_v37 = vpop.permute.xlu0 %7222  ;;  %v7159_v17 = vpack.c.bf16 %v7155_v46, %v7153_v24 }
0x16b6   : > { %v7233_v29 = vsel %vm519_vm11, %v7223_v37, %v7215_v53  ;;  %v7229_v8 = vsel %vm519_vm11, %v7215_v53, %v7223_v37 }
0x16b7   : > { %7452 = vmatprep.subr.bf16.mxu0 %v7159_v17  ;;  %v7221_v57 = vpop.permute.xlu1 %7220  ;;  %v7239_v10 = vmul.f32 %v7233_v29, %v9073_v23  ;;  %v7238_v1 = vmul.f32 %v8886_v16, %v7229_v8  ;;  %v8607_v8 = vld [vmem:[%s14801_s1 + $0x258] ss:$12 sps:$4 sm:$0xff]  }
0x16b8   : > { %7453 = vmatpush1.bf16.msra.mxu0 %v7158_v38  ;;  %v7232_v3 = vsel %vm519_vm11, %v7221_v57, %v7213_v6  ;;  %v7228_v4 = vsel %vm519_vm11, %v7213_v6, %v7221_v57 }
0x16b9   : > { %v7219_v61 = vpop.permute.xlu0 %7218  ;;  %7454 = vmatprep.subr.bf16.mxu0 %v7165_v30  ;;  %v7237_v19 = vmul.f32 %v7232_v3, %v9073_v23 }
0x16bb   : > { %v7217_v60 = vpop.permute.xlu1 %7216  ;;  %v7245_v13 = vpack.c.bf16 %v7239_v10, %v7237_v19 }
0x16bc   : > { %7455 = vmatpush1.bf16.msra.mxu0 %v7164_v62 }
0x16bd   : > { %v7255_v49 = vpop.permute.xlu0 %7254  ;;  %7456 = vmatprep.subr.bf16.mxu0 %v7167_v20 }
0x16bf   : > { %v7225_v47 = vpop.permute.xlu1 %7224 }
0x16c0   : > { %7457 = vmatpush1.bf16.msra.mxu0 %v7166_v55  ;;  %v7234_v26 = vsel %vm519_vm11, %v7225_v47, %v7217_v60  ;;  %v8602_v55 = vld [vmem:[%s14801_s1 + $0x240] ss:$12 sps:$4 sm:$0xff]  }
0x16c1   : > { %v7187_v5 = vpop.permute.xlu0 %7186  ;;  %7458 = vmatprep.subr.bf16.mxu0 %v7205_v43  ;;  %v7241_v40 = vmul.f32 %v7234_v26, %v9073_v23 }
0x16c2   : > { %v7191_v22 = vsel %vm478_vm9, %v14396_v21, %v7187_v5  ;;  %v7195_v27 = vsel %vm478_vm9, %v7187_v5, %v14396_v21  ;;  %v7236_v21 = vmul.f32 %v8886_v16, %v7228_v4 }
0x16c3   : > { %v7202_v54 = vmul.f32 %v8973_v11, %v7191_v22  ;;  %v7203_v35 = vmul.f32 %v8983_v34, %v7195_v27  ;;  %v7253_v43 = vpop.permute.xlu1 %7252  ;;  %v7230_v34 = vsel %vm519_vm11, %v7217_v60, %v7225_v47 }
0x16c4   : > { %7459 = vmatpush1.bf16.msra.mxu0 %v7204_v44  ;;  %v7244_v25 = vpack.c.bf16 %v7238_v1, %v7236_v21  ;;  %v7240_v53 = vmul.f32 %v8886_v16, %v7230_v34 }
0x16c5   : > { %v7206_v51 = vpack.c.bf16 %v7202_v54, %v7200_v41  ;;  %v7263_v15 = vpop.permute.xlu0 %7262  ;;  %v7207_v0 = vpack.c.bf16 %v7203_v35, %v7201_v58 }
0x16c6   : > { %v7273_v31 = vsel %vm560_vm12, %v7263_v15, %v7255_v49 }
0x16c7   : > { %v7261_v39 = vpop.permute.xlu1 %7260  ;;  %7460 = vmatprep.subr.bf16.mxu0 %v7207_v0  ;;  %v7279_v45 = vmul.f32 %v9069_v12, %v7273_v31 }
0x16c8   : > { %v7272_v7 = vsel %vm560_vm12, %v7261_v39, %v7253_v43  ;;  %7461 = vmatpush1.bf16.msra.mxu0 %v7206_v51  ;;  %v7268_v24 = vsel %vm560_vm12, %v7253_v43, %v7261_v39 }
0x16c9   : > { %v7227_v44 = vpop.permute.xlu0 %7226  ;;  %7462 = vmatprep.subr.bf16.mxu0 %v7245_v13  ;;  %v7277_v33 = vmul.f32 %v9069_v12, %v7272_v7 }
0x16ca   : > { %v7231_v28 = vsel %vm519_vm11, %v7219_v61, %v7227_v44  ;;  %v7235_v18 = vsel %vm519_vm11, %v7227_v44, %v7219_v61 }
0x16cb   : > { %v7242_v63 = vmul.f32 %v8886_v16, %v7231_v28  ;;  %v7243_v50 = vmul.f32 %v7235_v18, %v9073_v23  ;;  %v7257_v42 = vpop.permute.xlu1 %7256  ;;  %v7285_v46 = vpack.c.bf16 %v7279_v45, %v7277_v33  ;;  %v7269_v16 = vsel %vm560_vm12, %v7255_v49, %v7263_v15 }
0x16cc   : > { %7463 = vmatpush1.bf16.msra.mxu0 %v7244_v25  ;;  %v7284_v38 = vpack.c.bf16 %v7269_v16, %v7268_v24  ;;  %v8608_v25 = vld [vmem:[%s14801_s1 + $0x248] ss:$12 sps:$4 sm:$0xff]  }
0x16cd   : > { %v7246_v32 = vpack.c.bf16 %v7242_v63, %v7240_v53  ;;  %v7259_v48 = vpop.permute.xlu0 %7258  ;;  %v7247_v14 = vpack.c.bf16 %v7243_v50, %v7241_v40 }
0x16cf   : > { %v7265_v52 = vpop.permute.xlu1 %7264  ;;  %7464 = vmatprep.subr.bf16.mxu0 %v7247_v14 }
0x16d0   : > { %v7274_v6 = vsel %vm560_vm12, %v7265_v52, %v7257_v42  ;;  %7465 = vmatpush1.bf16.msra.mxu0 %v7246_v32  ;;  %v7270_v62 = vsel %vm560_vm12, %v7257_v42, %v7265_v52 }
0x16d1   : > { %v7267_v23 = vpop.permute.xlu0 %7266  ;;  %7466 = vmatprep.subr.bf16.mxu0 %v7285_v46  ;;  %v7281_v17 = vmul.f32 %v9069_v12, %v7274_v6 }
0x16d2   : > { %v7275_v37 = vsel %vm560_vm12, %v7267_v23, %v7259_v48  ;;  %v7271_v57 = vsel %vm560_vm12, %v7259_v48, %v7267_v23 }
0x16d3   : > { %v7283_v30 = vmul.f32 %v9069_v12, %v7275_v37  ;;  %v7293_v61 = vpop.permute.xlu1 %7292  ;;  %v7286_v49 = vpack.c.bf16 %v7271_v57, %v7270_v62 }
0x16d4   : > { %7467 = vmatpush1.bf16.msra.mxu0 %v7284_v38 }
0x16d5   : > { %v7295_v60 = vpop.permute.xlu0 %7294  ;;  %v7287_v20 = vpack.c.bf16 %v7283_v30, %v7281_v17 }
0x16d7   : > { %v7301_v36 = vpop.permute.xlu1 %7300  ;;  %7468 = vmatprep.subr.bf16.mxu0 %v7287_v20 }
0x16d8   : > { %v7308_v47 = vsel %vm601_vm13, %v7293_v61, %v7301_v36  ;;  %v7312_v12 = vsel %vm601_vm13, %v7301_v36, %v7293_v61  ;;  %7469 = vmatpush1.bf16.msra.mxu0 %v7286_v49 }
0x16d9   : > { %v7303_v3 = vpop.permute.xlu0 %7302  ;;  %v7316_v29 = vmul.f32 %v8973_v11, %v7308_v47  ;;  %v7317_v4 = vmul.f32 %v7312_v12, %v9114_v59 }
0x16da   : > { %v7309_v41 = vsel %vm601_vm13, %v7295_v60, %v7303_v3  ;;  %v7313_v5 = vsel %vm601_vm13, %v7303_v3, %v7295_v60 }
0x16db   : > { %v7318_v22 = vmul.f32 %v8973_v11, %v7309_v41  ;;  %v7319_v27 = vmul.f32 %v7313_v5, %v9114_v59  ;;  %v7297_v58 = vpop.permute.xlu1 %7296  ;;  %7471 = vmatmul.mubr.bf16.vlgmr.msra.gmra.mrb[64].mxu0 %v8602_v55 }
0x16dc   : > { %7480 = vmatprep.mubr.bf16.mxu0 %v8605_v56 }
0x16dd   : > { %v7324_v19 = vpack.c.bf16 %v7318_v22, %v7316_v29  ;;  %v7299_v54 = vpop.permute.xlu0 %7298  ;;  %v7325_v35 = vpack.c.bf16 %v7319_v27, %v7317_v4 }
0x16df   : > { %v7305_v43 = vpop.permute.xlu1 %7304  ;;  %7491 = vmatprep.subr.bf16.mxu0 %v7325_v35 }
0x16e0   : > { %v7310_v10 = vsel %vm601_vm13, %v7297_v58, %v7305_v43  ;;  %v7314_v21 = vsel %vm601_vm13, %v7305_v43, %v7297_v58  ;;  %7492 = vmatpush1.bf16.msra.mxu0 %v7324_v19 }
0x16e1   : > { %v7307_v51 = vpop.permute.xlu0 %7306  ;;  %v7320_v1 = vmul.f32 %v8973_v11, %v7310_v10  ;;  %v7321_v34 = vmul.f32 %v7314_v21, %v9114_v59 }
0x16e2   : > { %v7311_v15 = vsel %vm601_vm13, %v7299_v54, %v7307_v51  ;;  %v7315_v0 = vsel %vm601_vm13, %v7307_v51, %v7299_v54 }
0x16e3   : > { %v7322_v39 = vmul.f32 %v8973_v11, %v7311_v15  ;;  %v7323_v13 = vmul.f32 %v7315_v0, %v9114_v59  ;;  %7481 = vmatmul.mubr.bf16.gmra.mrb[68].mxu0 %v8607_v8 }
0x16e4   : > { %7523 = vmatprep.mubr.bf16.mxu0 %v14812_v2 }
0x16e5   : > { %v7326_v26 = vpack.c.bf16 %v7322_v39, %v7320_v1  ;;  %v7327_v7 = vpack.c.bf16 %v7323_v13, %v7321_v34 }
0x16e7   : > { %7493 = vmatprep.subr.bf16.mxu0 %v7327_v7 }
0x16e8   : > { %7494 = vmatpush1.bf16.msra.mxu0 %v7326_v26 }
0x16eb   : > { %8270 = vmatmul.mubr.msk.bf16.vlgmr.msra.gmra.mrb[64].mxu0 %vm724_vm14, %v8608_v25 }
0x16ec   : > { %7533 = vmatprep.mubr.bf16.mxu0 %v14812_v2 }
0x16f0   : > { %v7385_v11 = vpop.permute.xlu1 %7384 }
0x16f2   : > { %v7390_v31 = vpop.permute.xlu0 %7389 }
0x16f3   : > { %8271 = vmatmul.mubr.msk.bf16.gmra.mrb[68].mxu0 %vm724_vm14, %v8609_v9 }
0x17be   : > { %v7525_v59 = vpop.f32.mrb[64].mxu0 }
0x17bf   : > { %v14566_v44 = vadd.f32 %v7525_v59, %v7385_v11  ;;  %v7527_v53 = vpop.f32.mrb[65].mxu0 }
0x17c0   : > { %v14568_v28 = vadd.f32 %v7527_v53, %v7385_v11  ;;  %v7529_v18 = vpop.f32.mrb[66].mxu0 }
0x17c1   : > { %v7691_v2 = vsel %vm7690_vm15, %v14566_v44, -inf  ;;  %v7730_v40 = vsel %vm7729_vm0, %v14566_v44, -inf  ;;  %v14574_v33 = vadd.f32 %v7529_v18, %v7390_v31  ;;  %v7531_v63 = vpop.f32.mrb[67].mxu0  ;;  %v7775_v48 = vsel %vm7774_vm1, %v14566_v44, -inf }
0x17c2   : > { %v7692_v50 = vrot.slane %v7691_v2, 4  ;;  %v7731_v42 = vrot.slane %v7730_v40, 4  ;;  %v7698_v45 = vsel %vm7690_vm15, %v14568_v28, -inf  ;;  %v7737_v32 = vsel %vm7729_vm0, %v14568_v28, -inf }
0x17c3   : > { %v7699_v14 = vrot.slane %v7698_v45, 4  ;;  %v7738_v24 = vrot.slane %v7737_v32, 4  ;;  %v7777_v52 = vsel %vm7776_vm2, %v14574_v33, -inf  ;;  %v7840_v23 = vsel %vm7839_vm3, %v14574_v33, -inf }
0x17c4   : > { %v7693_v46 = vmax.f32 %v7691_v2, %v7692_v50  ;;  %v7732_v6 = vmax.f32 %v7730_v40, %v7731_v42  ;;  %v7778_v16 = vmax.f32 %v7775_v48, %v7777_v52  ;;  %v7841_v17 = vrot.slane %v7840_v23, 4 }
0x17c5   : > { %v7700_v38 = vmax.f32 %v7698_v45, %v7699_v14  ;;  %v7739_v37 = vmax.f32 %v7737_v32, %v7738_v24  ;;  %v14586_v57 = vadd.f32 %v7531_v63, %v7390_v31  ;;  %v7785_v62 = vsel %vm7774_vm1, %v14568_v28, -inf  ;;  %v7395_v14 = vpop.permute.xlu1 %7394 }
0x17c6   : > { %v7694_v30 = vrot.slane %v7693_v46, 2  ;;  %v7733_v61 = vrot.slane %v7732_v6, 2  ;;  %v7779_v60 = vrot.slane %v7778_v16, 4  ;;  %v7535_v20 = vpop.f32.mrb[68].mxu0  ;;  %v7842_v55 = vmax.f32 %v7840_v23, %v7841_v17 }
0x17c7   : > { %v7701_v49 = vrot.slane %v7700_v38, 2  ;;  %v7740_v36 = vrot.slane %v7739_v37, 2  ;;  %v7786_v47 = vsel %vm7776_vm2, %v14586_v57, -inf  ;;  %v7537_v12 = vpop.f32.mrb[69].mxu0  ;;  %v7847_v27 = vsel %vm7839_vm3, %v14586_v57, -inf }
0x17c8   : > { %v7695_v56 = vmax.f32 %v7693_v46, %v7694_v30  ;;  %v7734_v3 = vmax.f32 %v7732_v6, %v7733_v61  ;;  %v7780_v41 = vmax.f32 %v7778_v16, %v7779_v60  ;;  %v7787_v5 = vmax.f32 %v7785_v62, %v7786_v47  ;;  %v14592_v29 = vpop.f32.mrb[70].mxu0 }
0x17c9   : > { %v7741_v4 = vmax.f32 %v7739_v37, %v7740_v36  ;;  %v7843_v22 = vrot.slane %v7842_v55, 2  ;;  %v14596_v58 = vpop.f32.mrb[71].mxu0  ;;  %v7702_v8 = vmax.f32 %v7700_v38, %v7701_v49  ;;  %v7848_v51 = vrot.slane %v7847_v27, 4 }
0x17ca   : > { %v7696_v19 = vrot.slane %v7695_v56, 1  ;;  %v7735_v54 = vrot.slane %v7734_v3, 1  ;;  %v7781_v35 = vrot.slane %v7780_v41, 2  ;;  %v7788_v43 = vrot.slane %v7787_v5, 4 }
0x17cb   : > { %v7742_v10 = vrot.slane %v7741_v4, 1  ;;  %v7844_v21 = vmax.f32 %v7842_v55, %v7843_v22  ;;  %v7849_v26 = vmax.f32 %v7847_v27, %v7848_v51  ;;  %v7703_v59 = vrot.slane %v7702_v8, 1 }
0x17cc   : > { %v7697_v15 = vmax.f32 %v7695_v56, %v7696_v19  ;;  %v7736_v0 = vmax.f32 %v7734_v3, %v7735_v54  ;;  %v7782_v1 = vmax.f32 %v7780_v41, %v7781_v35  ;;  %v7789_v34 = vmax.f32 %v7787_v5, %v7788_v43  ;;  %v7400_v56 = vpop.permute.xlu0 %7399 }
0x17cd   : > { %v7743_v39 = vmax.f32 %v7741_v4, %v7742_v10  ;;  %v7845_v13 = vrot.slane %v7844_v21, 1  ;;  %v7850_v18 = vrot.slane %v7849_v26, 2  ;;  %v7569_v48 = vsel %vm7568_vm4, %v14574_v33, -inf }
0x17ce   : > { %v7705_v7 = vsub.f32 %v14566_v44, %v7697_v15  ;;  %v7744_v25 = vsub.f32 %v14566_v44, %v7736_v0  ;;  %v7783_v9 = vrot.slane %v7782_v1, 1  ;;  %v7790_v11 = vrot.slane %v7789_v34, 2 }
0x17cf   : > { %v7745_v53 = vsub.f32 %v14568_v28, %v7743_v39  ;;  %v7846_v31 = vmax.f32 %v7844_v21, %v7845_v13  ;;  %v7851_v32 = vmax.f32 %v7849_v26, %v7850_v18  ;;  %v7704_v6 = vmax.f32 %v7702_v8, %v7703_v59 }
0x17d0   : > { %v7707_v2 = vmul.f32 1.442695, %v7705_v7  ;;  %v7746_v40 = vmul.f32 1.442695, %v7744_v25  ;;  %v7784_v63 = vmax.f32 %v7782_v1, %v7783_v9  ;;  %v7791_v50 = vmax.f32 %v7789_v34, %v7790_v11 }
0x17d1   : > { %v7748_v42 = vmul.f32 1.442695, %v7745_v53  ;;  %v7854_v45 = vsub.f32 %v14574_v33, %v7846_v31  ;;  %v7852_v16 = vrot.slane %v7851_v32, 1  ;;  %v14606_v23 = vadd.f32 %v7535_v20, %v7395_v14 }
0x17d2   : > { %8610 = vpow2.f32 %v7707_v2  ;;  %v7794_v24 = vsub.f32 %v14566_v44, %v7784_v63  ;;  %v7796_v52 = vsub.f32 %v14574_v33, %v7784_v63  ;;  %v7792_v46 = vrot.slane %v7791_v50, 1 }
0x17d3   : > { %8612 = vpow2.f32 %v7746_v40  ;;  %v7856_v17 = vmul.f32 1.442695, %v7854_v45  ;;  %v7853_v61 = vmax.f32 %v7851_v32, %v7852_v16  ;;  %v7571_v62 = vsel %vm7570_vm5, %v14606_v23, -inf }
0x17d4   : > { %v7798_v38 = vmul.f32 1.442695, %v7794_v24  ;;  %v7802_v37 = vmul.f32 1.442695, %v7796_v52  ;;  %v7793_v30 = vmax.f32 %v7791_v50, %v7792_v46  ;;  %8614 = vpow2.f32 %v7748_v42 }
0x17d5   : > { %v14610_v60 = vadd.f32 %v7537_v12, %v7395_v14  ;;  %v7572_v36 = vmax.f32 %v7569_v48, %v7571_v62  ;;  %v7855_v20 = vsub.f32 %v14586_v57, %v7853_v61  ;;  %v7579_v55 = vsel %vm7568_vm4, %v14586_v57, -inf }
0x17d6   : > { %8616 = vpow2.f32 %v7798_v38  ;;  %v7795_v44 = vsub.f32 %v14568_v28, %v7793_v30  ;;  %v7797_v49 = vsub.f32 %v14586_v57, %v7793_v30  ;;  %v14620_v22 = vadd.f32 %v14592_v29, %v7400_v56 }
0x17d7   : > { %8618 = vpow2.f32 %v7802_v37  ;;  %v7580_v47 = vsel %vm7570_vm5, %v14610_v60, -inf  ;;  %v7573_v41 = vrot.slane %v7572_v36, 4  ;;  %v7858_v5 = vmul.f32 1.442695, %v7855_v20 }
0x17d8   : > { %8620 = vpow2.f32 %v7856_v17  ;;  %v7800_v3 = vmul.f32 1.442695, %v7795_v44  ;;  %v7804_v12 = vmul.f32 1.442695, %v7797_v49  ;;  %v7581_v4 = vmax.f32 %v7579_v55, %v7580_v47 }
0x17d9   : > { %v7706_v27 = vsub.f32 %v14568_v28, %v7704_v6  ;;  %v7574_v19 = vmax.f32 %v7572_v36, %v7573_v41  ;;  %v7630_v35 = vsel %vm7568_vm4, %v14606_v23, -inf  ;;  %v7631_v43 = vsel %vm7570_vm5, %v14620_v22, -inf }
0x17da   : > { %8622 = vpow2.f32 %v7800_v3  ;;  %v7582_v54 = vrot.slane %v7581_v4, 4  ;;  %v14629_v21 = vmax.f32 %v7630_v35, %v7631_v43  ;;  %v14637_v1 = vadd.f32 %v14596_v58, %v7400_v56 }
0x17db   : > { %8624 = vpow2.f32 %v7804_v12  ;;  %v7575_v10 = vrot.slane %v7574_v19, 2  ;;  %v7709_v51 = vmul.f32 1.442695, %v7706_v27  ;;  %v8272_v7 = vclamps-f32 %v14620_v22, 100.0 }
0x17dc   : > { %v14627_v8 = vpop.eup %8610  ;;  %8626 = vpow2.f32 %v7858_v5  ;;  %v7583_v15 = vmax.f32 %v7581_v4, %v7582_v54  ;;  %v8273_v48 = vclamps-f32 %v14637_v1, 100.0  ;;  %v7633_v47 = vrot.slane %v14629_v21, 4 }
0x17dd   : > { %v14631_v29 = vpop.eup %8612  ;;  %v7576_v26 = vmax.f32 %v7574_v19, %v7575_v10  ;;  %8628 = vpow2.f32 %v7709_v51  ;;  %v14653_v18 = vsel %vm7690_vm15, %v14627_v8, 0.0  ;;  %v7548_v32 = vand.u32 2147483647, %v8272_v7 }
0x17de   : > { %v7752_v28 = vrot.slane %v14631_v29, 3  ;;  %v14634_v0 = vpop.eup %8614  ;;  %v7584_v31 = vrot.slane %v7583_v15, 2  ;;  %v7712_v38 = vrot.slane %v14653_v18, 4  ;;  %vm7562_vm8 = vcmp.ge.f32.partialorder %v8272_v7, 0.0 }
0x17df   : > { %v7753_v13 = vrot.slane %v14634_v0, 3  ;;  %v7577_v45 = vrot.slane %v7576_v26, 1  ;;  %v7550_v19 = vsub.f32 0.0, %v7548_v32  ;;  %vm7563_vm9 = vcmp.ge.f32.partialorder %v8273_v48, 0.0 }
0x17e0   : > { %v14639_v34 = vpop.eup %8616  ;;  %v7756_v39 = vsel %vm7690_vm15, %v7752_v28, 0.0  ;;  %v7585_v30 = vmax.f32 %v7583_v15, %v7584_v31 }
0x17e1   : > { %v14644_v25 = vpop.eup %8618  ;;  %v7757_v9 = vrot.slane %v7756_v39, 4  ;;  %v7811_v11 = vrot.slane %v14639_v34, 6  ;;  %v7763_v58 = vsel %vm7690_vm15, %v7753_v13, 0.0  ;;  %v7578_v55 = vmax.f32 %v7576_v26, %v7577_v45 }
0x17e2   : > { %v14647_v59 = vpop.eup %8620  ;;  %v7812_v53 = vrot.slane %v14644_v25, 6  ;;  %v7764_v40 = vrot.slane %v7763_v58, 4  ;;  %v7586_v27 = vrot.slane %v7585_v30, 1  ;;  %v7549_v13 = vand.u32 2147483647, %v8273_v48 }
0x17e3   : > { %v7758_v2 = vadd.f32 %v7757_v9, %v7756_v39  ;;  %v7862_v63 = vrot.slane %v14647_v59, 1 }
0x17e4   : > { %v14656_v50 = vpop.eup %8622  ;;  %v7813_v42 = vsel %vm7810_vm6, %v7811_v11, %v7812_v53  ;;  %v7765_v52 = vadd.f32 %v7764_v40, %v7763_v58  ;;  %v7588_v11 = vsub.f32 %v14574_v33, %v7578_v55 }
0x17e5   : > { %v14662_v14 = vpop.eup %8624  ;;  %v7759_v24 = vrot.slane %v7758_v2, 2  ;;  %v7819_v46 = vsel %vm7690_vm15, %v7813_v42, 0.0  ;;  %v7866_v6 = vsel %vm7690_vm15, %v7862_v63, 0.0  ;;  %v7814_v44 = vrot.slane %v14656_v50, 6 }
0x17e6   : > { %v14666_v16 = vpop.eup %8626  ;;  %v7820_v37 = vrot.slane %v7819_v46, 4  ;;  %v7867_v17 = vrot.slane %v7866_v6, 4  ;;  %v7766_v62 = vrot.slane %v7765_v52, 2  ;;  %v7815_v49 = vrot.slane %v14662_v14, 6 }
0x17e7   : > { %v7760_v61 = vadd.f32 %v7759_v24, %v7758_v2  ;;  %v7863_v41 = vrot.slane %v14666_v16, 1  ;;  %v14676_v28 = vpop.eup %8628  ;;  %v7590_v2 = vsub.f32 %v14606_v23, %v7578_v55  ;;  %v7592_v63 = vmul.f32 1.442695, %v7588_v11 }
0x17e8   : > { %v7821_v36 = vadd.f32 %v7820_v37, %v7819_v46  ;;  %v7868_v20 = vadd.f32 %v7867_v17, %v7866_v6  ;;  %v7767_v3 = vadd.f32 %v7766_v62, %v7765_v52  ;;  %v7816_v12 = vsel %vm7810_vm6, %v7814_v44, %v7815_v49 }
0x17e9   : > { %v7761_v56 = vrot.slane %v7760_v61, 1  ;;  %v7826_v43 = vsel %vm7690_vm15, %v7816_v12, 0.0  ;;  %v7873_v10 = vsel %vm7690_vm15, %v7863_v41, 0.0  ;;  %v7587_v42 = vmax.f32 %v7585_v30, %v7586_v27 }
0x17ea   : > { %v7822_v5 = vrot.slane %v7821_v36, 2  ;;  %v7869_v4 = vrot.slane %v7868_v20, 2  ;;  %v7768_v35 = vrot.slane %v7767_v3, 1  ;;  %v7827_v39 = vrot.slane %v7826_v43, 4 }
0x17eb   : > { %v7762_v54 = vadd.f32 %v7761_v56, %v7760_v61  ;;  %v7874_v9 = vrot.slane %v7873_v10, 4  ;;  %v7596_v52 = vmul.f32 1.442695, %v7590_v2  ;;  %v7589_v6 = vsub.f32 %v14586_v57, %v7587_v42 }
0x17ec   : > { %v7823_v51 = vadd.f32 %v7822_v5, %v7821_v36  ;;  %v7870_v15 = vadd.f32 %v7869_v4, %v7868_v20  ;;  %v7769_v26 = vadd.f32 %v7768_v35, %v7767_v3  ;;  %v7828_v31 = vadd.f32 %v7827_v39, %v7826_v43 }
0x17ed   : > { %8630 = vrcp.f32 %v7762_v54  ;;  %v7875_v40 = vadd.f32 %v7874_v9, %v7873_v10  ;;  %v7591_v37 = vsub.f32 %v14610_v60, %v7587_v42  ;;  %v7552_v17 = vmul.f32 1.442695, %v7550_v19 }
0x17ee   : > { %v7824_v58 = vrot.slane %v7823_v51, 1  ;;  %v7871_v53 = vrot.slane %v7870_v15, 1  ;;  %8632 = vrcp.f32 %v7769_v26  ;;  %v7829_v24 = vrot.slane %v7828_v31, 2 }
0x17ef   : > { %v7876_v46 = vrot.slane %v7875_v40, 2  ;;  %8634 = vpow2.f32 %v7592_v63  ;;  %v7634_v61 = vmax.f32 %v14629_v21, %v7633_v47  ;;  %v7594_v44 = vmul.f32 1.442695, %v7589_v6 }
0x17f0   : > { %v7825_v45 = vadd.f32 %v7824_v58, %v7823_v51  ;;  %v7872_v32 = vadd.f32 %v7871_v53, %v7870_v15  ;;  %v7830_v33 = vadd.f32 %v7829_v24, %v7828_v31  ;;  %v7598_v49 = vmul.f32 1.442695, %v7591_v37 }
0x17f1   : > { %v7877_v62 = vadd.f32 %v7876_v46, %v7875_v40  ;;  %v7635_v36 = vrot.slane %v7634_v61, 2  ;;  %v7551_v20 = vsub.f32 0.0, %v7549_v13  ;;  %v7639_v57 = vsel %vm7568_vm4, %v14610_v60, -inf }
0x17f2   : > { %8636 = vrcp.f32 %v7825_v45  ;;  %v7831_v30 = vrot.slane %v7830_v33, 1  ;;  %v14689_v21 = vsel %vm7690_vm15, %v14676_v28, 0.0  ;;  %v7640_v5 = vsel %vm7570_vm5, %v14637_v1, -inf }
0x17f3   : > { %8638 = vrcp.f32 %v7872_v32  ;;  %v7878_v55 = vrot.slane %v7877_v62, 1  ;;  %v7636_v3 = vmax.f32 %v7634_v61, %v7635_v36  ;;  %v7554_v12 = vmul.f32 1.442695, %v7551_v20 }
0x17f4   : > { %8640 = vpow2.f32 %v7596_v52  ;;  %v7832_v56 = vadd.f32 %v7831_v30, %v7830_v33  ;;  %v14696_v4 = vadd.f32 %v7712_v38, %v14653_v18  ;;  %v7641_v19 = vmax.f32 %v7639_v57, %v7640_v5 }
0x17f5   : > { %8642 = vpow2.f32 %v7594_v44  ;;  %v7879_v47 = vadd.f32 %v7878_v55, %v7877_v62  ;;  %v7637_v27 = vrot.slane %v7636_v3, 1  ;;  %v7719_v15 = vrot.slane %v14689_v21, 4 }
0x17f6   : > { %8644 = vpow2.f32 %v7598_v49  ;;  %v7642_v10 = vrot.slane %v7641_v19, 4  ;;  %v7714_v18 = vrot.slane %v14696_v4, 2 }
0x17f7   : > { %v8631_v41 = vpop.eup %8630  ;;  %8646 = vpow2.f32 %v7552_v17  ;;  %v7638_v43 = vmax.f32 %v7636_v3, %v7637_v27 }
0x17f8   : > { %8648 = vrcp.f32 %v7832_v56  ;;  %v8633_v54 = vpop.eup %8632  ;;  %v14699_v35 = vmul.f32 %v8631_v41, %v14631_v29  ;;  %v7643_v26 = vmax.f32 %v7641_v19, %v7642_v10 }
0x17f9   : > { %8650 = vrcp.f32 %v7879_v47  ;;  %v14701_v51 = vpop.eup %8634  ;;  %v7648_v38 = vsub.f32 %v14606_v23, %v7638_v43  ;;  %v7650_v13 = vsub.f32 %v14620_v22, %v7638_v43 }
0x17fa   : > { %8652 = vpow2.f32 %v7554_v12  ;;  %v7604_v58 = vrot.slane %v14701_v51, 4  ;;  %v7898_v53 = vrot.slane %v14699_v35, 4  ;;  %v7644_v23 = vrot.slane %v7643_v26, 2 }
0x17fb   : > { %v7652_v40 = vmul.f32 1.442695, %v7648_v38  ;;  %v7656_v63 = vmul.f32 1.442695, %v7650_v13 }
0x17fc   : > { %v8637_v39 = vpop.eup %8636 }
0x17fd   : > { %v8639_v9 = vpop.eup %8638  ;;  %v7834_v29 = vmul.f32 %v8637_v39, %v14639_v34  ;;  %v7837_v11 = vmul.f32 %v8637_v39, %v14644_v25  ;;  %v14718_v25 = vmul.f32 %v8633_v54, %v14634_v0  ;;  %8654 = vpow2.f32 %v7652_v40 }
0x17fe   : > { %v14711_v31 = vpop.eup %8640  ;;  %v7881_v2 = vmul.f32 %v8639_v9, %v14647_v59  ;;  %v7645_v59 = vmax.f32 %v7643_v26, %v7644_v23  ;;  %8656 = vpow2.f32 %v7656_v63  ;;  %v7715_v9 = vadd.f32 %v7714_v18, %v14696_v4 }
0x17ff   : > { %v14714_v42 = vpop.eup %8642  ;;  %v7906_v45 = vrot.slane %v7834_v29, 4  ;;  %v7907_v32 = vrot.slane %v7837_v11, 4  ;;  %v7605_v34 = vrot.slane %v14711_v31, 4  ;;  %v7720_v23 = vadd.f32 %v7719_v15, %v14689_v21 }
0x1800   : > { %v14720_v24 = vpop.eup %8644  ;;  %v7916_v52 = vrot.slane %v7881_v2, 4  ;;  %v7607_v46 = vrot.slane %v14714_v42, 4  ;;  %v7646_v49 = vrot.slane %v7645_v59, 1 }
0x1801   : > { %v14723_v6 = vpop.eup %8646  ;;  %v7606_v37 = vsel %vm7570_vm5, %v7604_v58, %v7605_v34  ;;  %v7608_v33 = vrot.slane %v14720_v24, 4  ;;  %v7908_v0 = vsel %vm7570_vm5, %v7906_v45, %v7907_v32  ;;  %v7716_v34 = vrot.slane %v7715_v9, 1 }
0x1802   : > { %v8649_v17 = vpop.eup %8648  ;;  %v7612_v61 = vrot.slane %v7606_v37, 4  ;;  %v7556_v62 = vadd.f32 1.0, %v14723_v6  ;;  %v7929_v44 = vsel %vm7810_vm6, %v7898_v53, %v7908_v0  ;;  %v7647_v19 = vmax.f32 %v7645_v59, %v7646_v49 }
0x1803   : > { %v8651_v30 = vpop.eup %8650  ;;  %v7836_v36 = vmul.f32 %v8649_v17, %v14656_v50  ;;  %v7838_v20 = vmul.f32 %v8649_v17, %v14662_v14  ;;  %v7609_v55 = vsel %vm7570_vm5, %v7607_v46, %v7608_v33  ;;  %v7932_v57 = vsel %vm7931_vm7, %v7929_v44, %v7916_v52 }
0x1804   : > { %v8653_v56 = vpop.eup %8652  ;;  %v7883_v3 = vmul.f32 %v8651_v30, %v14666_v16  ;;  %v7613_v12 = vadd.f32 %v7612_v61, %v7606_v37  ;;  %v7618_v41 = vrot.slane %v7609_v55, 4  ;;  %8658 = vrcp.f32 %v7556_v62  ;;  %7940 = vst [vmem:[%s14732_s30 + $0x30] sm:$0xff] %v7932_v57 }
0x1805   : > { %v7909_v47 = vrot.slane %v7836_v36, 4  ;;  %v7910_v5 = vrot.slane %v7838_v20, 4  ;;  %v7557_v27 = vadd.f32 1.0, %v8653_v56  ;;  %v7899_v14 = vrot.slane %v14718_v25, 4 }
0x1806   : > { %v7917_v54 = vrot.slane %v7883_v3, 4  ;;  %v7614_v43 = vrot.slane %v7613_v12, 2  ;;  %v7619_v50 = vadd.f32 %v7618_v41, %v7609_v55  ;;  %v7649_v10 = vsub.f32 %v14610_v60, %v7647_v19 }
0x1807   : > { %8660 = vrcp.f32 %v7557_v27  ;;  %v7651_v39 = vsub.f32 %v14637_v1, %v7647_v19  ;;  %v7911_v16 = vsel %vm7570_vm5, %v7909_v47, %v7910_v5  ;;  %v14754_v2 = vpop.eup %8654  ;;  %v7721_v33 = vrot.slane %v7720_v23, 2 }
0x1808   : > { %v7615_v38 = vadd.f32 %v7614_v43, %v7613_v12  ;;  %v7620_v13 = vrot.slane %v7619_v50, 2  ;;  %v7930_v26 = vsel %vm7810_vm6, %v7899_v14, %v7911_v16  ;;  %v7654_v29 = vmul.f32 1.442695, %v7649_v10  ;;  %v14757_v63 = vpop.eup %8656 }
0x1809   : > { %v7658_v11 = vmul.f32 1.442695, %v7651_v39  ;;  %v7933_v58 = vsel %vm7931_vm7, %v7930_v26, %v7917_v54  ;;  %v7664_v45 = vrot.slane %v14754_v2, 4  ;;  %v7665_v18 = vrot.slane %v14757_v63, 4 }
0x180a   : > { %v7616_v40 = vrot.slane %v7615_v38, 1  ;;  %v7621_v60 = vadd.f32 %v7620_v13, %v7619_v50  ;;  %7941 = vst [vmem:[%s14732_s30 + $0x38] sm:$0xff] %v7933_v58  ;;  %8662 = vpow2.f32 %v7654_v29  ;;  %v7717_v17 = vadd.f32 %v7716_v34, %v7715_v9 }
0x180b   : > { %8664 = vpow2.f32 %v7658_v11  ;;  %v7666_v59 = vsel %vm7570_vm5, %v7664_v45, %v7665_v18  ;;  %v7722_v44 = vadd.f32 %v7721_v33, %v7720_v23 }
0x180c   : > { %v7617_v32 = vadd.f32 %v7616_v40, %v7615_v38  ;;  %v7622_v4 = vrot.slane %v7621_v60, 1  ;;  %v7672_v37 = vrot.slane %v7666_v59, 4 }
0x180d   : > { %v7723_v41 = vrot.slane %v7722_v44, 1 }
0x180e   : > { %v8659_v52 = vpop.eup %8658  ;;  %8666 = vrcp.f32 %v7617_v32  ;;  %v7623_v46 = vadd.f32 %v7622_v4, %v7621_v60  ;;  %v7673_v15 = vadd.f32 %v7672_v37, %v7666_v59 }
0x180f   : > { %v7564_v21 = vmul.f32 %v8659_v52, %v14723_v6  ;;  %v7724_v50 = vadd.f32 %v7723_v41, %v7722_v44 }
0x1810   : > { %8668 = vrcp.f32 %v7623_v46  ;;  %v7674_v61 = vrot.slane %v7673_v15, 2 }
0x1811   : > { %v8661_v0 = vpop.eup %8660  ;;  %8670 = vrcp.f32 %v7717_v17  ;;  %v7566_v30 = vsel %vm7562_vm8, %v8659_v52, %v7564_v21 }
0x1812   : > { %v7565_v62 = vmul.f32 %v8661_v0, %v8653_v56  ;;  %v7675_v36 = vadd.f32 %v7674_v61, %v7673_v15  ;;  %v7886_v56 = vrot.slane %v7566_v30, 4 }
0x1814   : > { %v8663_v49 = vpop.eup %8662  ;;  %v7676_v57 = vrot.slane %v7675_v36, 1  ;;  %v7567_v3 = vsel %vm7563_vm9, %v8661_v0, %v7565_v62 }
0x1815   : > { %v8665_v20 = vpop.eup %8664  ;;  %v7667_v55 = vrot.slane %v8663_v49, 4  ;;  %v7887_v1 = vrot.slane %v7567_v3, 4 }
0x1816   : > { %v7668_v12 = vrot.slane %v8665_v20, 4  ;;  %v7677_v7 = vadd.f32 %v7676_v57, %v7675_v36 }
0x1818   : > { %v8667_v6 = vpop.eup %8666  ;;  %v7669_v5 = vsel %vm7570_vm5, %v7667_v55, %v7668_v12  ;;  %8672 = vrcp.f32 %v7677_v7 }
0x1819   : > { %v7628_v47 = vmul.f32 %v8667_v6, %v14711_v31  ;;  %v7625_v22 = vmul.f32 %v8667_v6, %v14701_v51  ;;  %v7678_v19 = vrot.slane %v7669_v5, 4  ;;  %8674 = vrcp.f32 %v7724_v50 }
0x181a   : > { %v8669_v27 = vpop.eup %8668 }
0x181b   : > { %v7629_v48 = vmul.f32 %v8669_v27, %v14720_v24  ;;  %v7920_v54 = vsel %vm7570_vm5, %v7886_v56, %v7625_v22  ;;  %v7627_v43 = vmul.f32 %v8669_v27, %v14714_v42  ;;  %v7679_v10 = vadd.f32 %v7678_v19, %v7669_v5  ;;  %v8671_v51 = vpop.eup %8670 }
0x181c   : > { %7934 = vst [vmem:[%s14732_s30] sm:$0xff] %v7920_v54  ;;  %v7726_v38 = vmul.f32 %v8671_v51, %v14627_v8 }
0x181d   : > { %v7921_v31 = vsel %vm7570_vm5, %v7887_v1, %v7627_v43  ;;  %v7680_v39 = vrot.slane %v7679_v10, 2 }
0x181e   : > { %7935 = vst [vmem:[%s14732_s30 + $0x8] sm:$0xff] %v7921_v31  ;;  %v7892_v29 = vrot.slane %v7726_v38, 4 }
0x181f   : > { %v7681_v16 = vadd.f32 %v7680_v39, %v7679_v10 }
0x1821   : > { %v7682_v24 = vrot.slane %v7681_v16, 1 }
0x1822   : > { %v8673_v26 = vpop.eup %8672 }
0x1823   : > { %v7683_v13 = vadd.f32 %v7682_v24, %v7681_v16  ;;  %v7685_v42 = vmul.f32 %v8673_v26, %v14754_v2  ;;  %v7688_v9 = vmul.f32 %v8673_v26, %v14757_v63  ;;  %v8675_v40 = vpop.eup %8674 }
0x1824   : > { %v7728_v60 = vmul.f32 %v8675_v40, %v14676_v28 }
0x1825   : > { %8676 = vrcp.f32 %v7683_v13  ;;  %v7922_v11 = vsel %vm7570_vm5, %v7628_v47, %v7685_v42  ;;  %v7924_v58 = vsel %vm7570_vm5, %v7688_v9, %v7892_v29 }
0x1826   : > { %v7927_v8 = vsel %vm7926_vm10, %v7924_v58, %v7898_v53  ;;  %7936 = vst [vmem:[%s14732_s30 + $0x10] sm:$0xff] %v7922_v11  ;;  %v7893_v45 = vrot.slane %v7728_v60, 4 }
0x1827   : > { %7938 = vst [vmem:[%s14732_s30 + $0x20] sm:$0xff] %v7927_v8 }
0x182f   : > { %v8677_v2 = vpop.eup %8676 }
0x1830   : > { %v7687_v23 = vmul.f32 %v8677_v2, %v8663_v49  ;;  %v7689_v63 = vmul.f32 %v8677_v2, %v8665_v20 }
0x1832   : > { %v7923_v32 = vsel %vm7570_vm5, %v7629_v48, %v7687_v23  ;;  %v7925_v4 = vsel %vm7570_vm5, %v7689_v63, %v7893_v45 }
0x1833   : > { %v7928_v18 = vsel %vm7926_vm10, %v7925_v4, %v7899_v14  ;;  %7937 = vst [vmem:[%s14732_s30 + $0x18] sm:$0xff] %v7923_v32 }
0x1834   : > { %7939 = vst [vmem:[%s14732_s30 + $0x28] sm:$0xff] %v7928_v18 }
0x1835 PF: > { %s14_s15 = sadd.s32 1, %s8684_s15  }
0x1836   : > { %p11_p4 = scmp.ge.s32.totalorder %s14_s15, 4  }
0x1838   :  { %13 = sbr.rel (!%p11_p4) target bundleno = 1 (0x1), region = 93 }

</bundles_post_ra>
